<compile_context>
chip_gen: v6e
topology: v6e:2x2x1
jax: 0.10.0
libtpu: 0.0.40
codegen_flags: <defaults>
</compile_context>

<pallas_src>
import functools

import jax
import jax.numpy as jnp
from jax import lax
from jax.experimental import pallas as pl
from jax.experimental.pallas import tpu as pltpu

EPS = 1e-5  # nn.BatchNorm2d default eps


# --------------------------------------------------------------------------- #
# Kernels
# --------------------------------------------------------------------------- #
def _conv_pass_kernel(*refs, fuse_bn_relu):
    """One image: [optional BN+ReLU of previous layer] -> 3x3 conv -> bf16 output + BN partials.

    refs (fuse_bn_relu=False): x, w, y, stats, xpad_scratch
    refs (fuse_bn_relu=True):  x, w, scale, shift, y, stats, xpad_scratch

    x     : (1, H, W, Cin)   bf16
    w     : (9*Cin, Cout)    bf16, rows ordered (kh, kw, ci)
    scale : (1, Cin) f32     folded BN scale of the previous layer
    shift : (1, Cin) f32     folded BN shift of the previous layer
    y     : (1, H, W, Cout)  bf16 raw (pre-BN, bias-free) conv output
    stats : (1, 2, Cout)     f32 per-image [sum, sum((x - mean_i)^2)] over H*W
    xpad  : (H+2, W+2, Cin)  bf16 VMEM scratch (zero halo)
    """
    if fuse_bn_relu:
        x_ref, w_ref, scale_ref, shift_ref, y_ref, stats_ref, xpad_ref = refs
    else:
        x_ref, w_ref, y_ref, stats_ref, xpad_ref = refs
        scale_ref = shift_ref = None

    _, H, W, Cin = x_ref.shape
    Cout = y_ref.shape[-1]

    x = x_ref[0]                                           # (H, W, Cin)
    if fuse_bn_relu:
        # Previous layer's BatchNorm (pre-folded scale/shift) + ReLU, in f32.
        x = jnp.maximum(x.astype(jnp.float32) * scale_ref[...] + shift_ref[...],
                        0.0)
    xb = x.astype(jnp.bfloat16)

    # Zero-padded halo lives in a VMEM scratch. The scratch persists across grid
    # steps (and is per-core under megacore), so it is fully re-initialized every
    # step: zero the slab, then overwrite the interior. Only the halo actually
    # needs the zeros; the full clear keeps the stores simple and robust.
    xpad_ref[...] = jnp.zeros((H + 2, W + 2, Cin), jnp.bfloat16)
    xpad_ref[1:H + 1, 1:W + 1, :] = xb

    # im2col from 9 static window loads of the padded scratch; all taps folded
    # into ONE MXU matmul with K = 9*Cin (bf16 operands, f32 accumulation).
    patch = jnp.concatenate(
        [xpad_ref[kh:kh + H, kw:kw + W, :]
         for kh in range(3) for kw in range(3)],
        axis=-1).reshape(H * W, 9 * Cin)
    acc = jnp.dot(patch, w_ref[...],
                  preferred_element_type=jnp.float32)      # (H*W, Cout) f32

    # Conv bias intentionally omitted: it cancels exactly under train-mode BN.
    # Store the raw conv output in bf16 (halves the HBM traffic of the tensors
    # written in pass 1/2 and re-read in pass 2/3).
    y_ref[...] = acc.reshape(1, H, W, Cout).astype(y_ref.dtype)

    # Per-image BN partials from the f32 accumulator: [sum, sum of squared
    # deviations about the per-image mean] -> merged Welford-style in JAX glue
    # (avoids E[x^2]-E[x]^2 cancellation).
    s1 = jnp.sum(acc, axis=0, keepdims=True)               # (1, Cout)
    mean_i = s1 * (1.0 / (H * W))
    m2 = jnp.sum(jnp.square(acc - mean_i), axis=0, keepdims=True)
    stats_ref[...] = jnp.concatenate([s1, m2], axis=0)[None]


def _bn_relu_kernel(y_ref, scale_ref, shift_ref, o_ref):
    """One image: final BatchNorm (folded scale/shift) + ReLU, bf16 -> f32."""
    y = y_ref[0].astype(jnp.float32)                        # (H, W, C)
    o = jnp.maximum(y * scale_ref[...] + shift_ref[...], 0.0)
    o_ref[...] = o[None].astype(o_ref.dtype)


# --------------------------------------------------------------------------- #
# pallas_call wrappers
# --------------------------------------------------------------------------- #
def _vmem_limit_bytes():
    # Generation-aware scoped-VMEM budget: ~3/4 of physical capacity
    # (v5e/v6e: 128 MiB -> 96 MiB, v7x: 64 MiB -> 48 MiB), safe fallback otherwise.
    cap = 64 * 1024 * 1024
    try:
        cap = int(pltpu.get_tpu_info().vmem_capacity_bytes)
    except Exception:
        pass
    return int(min((cap * 3) // 4, 112 * 1024 * 1024))


def _compiler_params():
    return pltpu.CompilerParams(
        dimension_semantics=("parallel",),   # megacore / multi-TC split over N
        vmem_limit_bytes=_vmem_limit_bytes(),
    )


def _conv_pass(x, wk, cout, scale=None, shift=None):
    N, H, W, cin = x.shape
    fuse = scale is not None
    kernel = functools.partial(_conv_pass_kernel, fuse_bn_relu=fuse)

    in_specs = [
        pl.BlockSpec((1, H, W, cin), lambda n: (n, 0, 0, 0)),
        pl.BlockSpec(wk.shape, lambda n: (0, 0)),           # weights: resident
    ]
    args = [x, wk]
    if fuse:
        in_specs += [pl.BlockSpec((1, cin), lambda n: (0, 0)),
                     pl.BlockSpec((1, cin), lambda n: (0, 0))]
        args += [scale, shift]

    return pl.pallas_call(
        kernel,
        grid=(N,),
        in_specs=in_specs,
        out_specs=(
            pl.BlockSpec((1, H, W, cout), lambda n: (n, 0, 0, 0)),
            pl.BlockSpec((1, 2, cout), lambda n: (n, 0, 0)),
        ),
        out_shape=(
            jax.ShapeDtypeStruct((N, H, W, cout), jnp.bfloat16),  # bf16 intermediate
            jax.ShapeDtypeStruct((N, 2, cout), jnp.float32),
        ),
        scratch_shapes=[pltpu.VMEM((H + 2, W + 2, cin), jnp.bfloat16)],
        compiler_params=_compiler_params(),
    )(*args)


def _bn_relu(y, scale, shift):
    N, H, W, c = y.shape
    return pl.pallas_call(
        _bn_relu_kernel,
        grid=(N,),
        in_specs=[
            pl.BlockSpec((1, H, W, c), lambda n: (n, 0, 0, 0)),
            pl.BlockSpec((1, c), lambda n: (0, 0)),
            pl.BlockSpec((1, c), lambda n: (0, 0)),
        ],
        out_specs=pl.BlockSpec((1, H, W, c), lambda n: (n, 0, 0, 0)),
        out_shape=jax.ShapeDtypeStruct((N, H, W, c), jnp.float32),
        compiler_params=_compiler_params(),
    )(y, scale, shift)


def _finalize_stats(partials, gamma, beta, hw):
    """(N, 2, C) per-image [sum, M2] -> folded train-mode BN scale/shift (f32).

    Welford-style merge of the per-image partials: no E[x^2]-E[x]^2 cancellation.
    """
    n_images = partials.shape[0]
    mean_i = partials[:, 0, :] / hw                          # (N, C)
    m2_i = partials[:, 1, :]                                 # (N, C)
    mean = jnp.mean(mean_i, axis=0)                          # (C,) equal counts/image
    m2 = jnp.sum(m2_i, axis=0) + hw * jnp.sum(jnp.square(mean_i - mean), axis=0)
    var = m2 / (n_images * hw)        # biased variance, matches PyTorch train-mode
    scale = gamma * lax.rsqrt(var + EPS)
    shift = beta - mean * scale
    return scale.reshape(1, -1), shift.reshape(1, -1)


def conv_block_forward(x_nchw, params):
    """PyTorch-facing wrapper: NCHW float32 in -> NCHW float32 out."""
    w1, b1, g1, be1, w2, b2, g2, be2 = params
    del b1, b2  # conv bias cancels exactly under train-mode BatchNorm
    N, Cin, H, W = x_nchw.shape
    Cout = w1.shape[0]

    # NCHW -> NHWC (channels on the lane axis) + bf16 for the MXU. The input is the
    # smallest tensor of the block so this XLA relayout is cheap.
    # TODO(synk): fuse this and the final NHWC->NCHW transpose (and a lane-dense
    # repack for C < 128) into pass 1 / pass 3 kernels.
    x = jnp.transpose(x_nchw, (0, 2, 3, 1)).astype(jnp.bfloat16)

    # PyTorch conv weights (Cout, Cin, 3, 3) -> (kh, kw, ci, co) -> (9*Cin, Cout):
    # all nine taps live in one contraction.
    w1k = jnp.transpose(w1, (2, 3, 1, 0)).reshape(9 * Cin, Cout).astype(jnp.bfloat16)
    w2k = jnp.transpose(w2, (2, 3, 1, 0)).reshape(9 * Cout, Cout).astype(jnp.bfloat16)

    # pass 1: conv1 (raw, bf16) + per-image BN1 partials
    y1, st1 = _conv_pass(x, w1k, Cout)
    scale1, shift1 = _finalize_stats(st1, g1, be1, H * W)

    # pass 2: BN1 + ReLU (fused) -> conv2 (raw, bf16) + per-image BN2 partials
    y2, st2 = _conv_pass(y1, w2k, Cout, scale1, shift1)
    scale2, shift2 = _finalize_stats(st2, g2, be2, H * W)

    # pass 3: BN2 + ReLU -> f32 output
    out_nhwc = _bn_relu(y2, scale2, shift2)
    return jnp.transpose(out_nhwc, (0, 3, 1, 2))             # back to NCHW


# --------------------------------------------------------------------------- #
# Reference + test harness
# --------------------------------------------------------------------------- #
def reference_forward(x_nchw, params):
    """Plain-JAX reference matching PyTorch conv_block.forward (train-mode BN).

    Mirrors the kernel's precision choices: bf16 conv operands with f32
    accumulation, and the raw conv outputs rounded to bf16 (the kernel stores
    them as bf16 intermediates in HBM). BN stats / normalization / ReLU in f32.
    """
    w1, b1, g1, be1, w2, b2, g2, be2 = params

    def conv(x, w, b):
        y = lax.conv_general_dilated(
            x.astype(jnp.bfloat16), w.astype(jnp.bfloat16),
            window_strides=(1, 1), padding=((1, 1), (1, 1)),
            dimension_numbers=('NCHW', 'OIHW', 'NCHW'),
            preferred_element_type=jnp.float32)
        y = y + b.reshape(1, -1, 1, 1)
        return y.astype(jnp.bfloat16).astype(jnp.float32)   # mirror bf16 storage

    def bn_relu(y, g, be):
        m = jnp.mean(y, axis=(0, 2, 3), keepdims=True)
        v = jnp.mean((y - m) ** 2, axis=(0, 2, 3), keepdims=True)  # biased variance
        z = (y - m) * lax.rsqrt(v + EPS) * g.reshape(1, -1, 1, 1) + be.reshape(1, -1, 1, 1)
        return jnp.maximum(z, 0.0)

    y = bn_relu(conv(x_nchw, w1, b1), g1, be1)
    return bn_relu(conv(y, w2, b2), g2, be2)


def init_params(key, in_ch, out_ch):
    """Deterministic params mimicking PyTorch defaults (kaiming-uniform conv,
    BN gamma=1 beta=0)."""
    k1, k2, k3, k4 = jax.random.split(key, 4)
    fan1 = in_ch * 9
    fan2 = out_ch * 9
    w1 = jax.random.uniform(k1, (out_ch, in_ch, 3, 3), jnp.float32,
                            -1.0 / jnp.sqrt(fan1), 1.0 / jnp.sqrt(fan1))
    b1 = jax.random.uniform(k2, (out_ch,), jnp.float32,
                            -1.0 / jnp.sqrt(fan1), 1.0 / jnp.sqrt(fan1))
    w2 = jax.random.uniform(k3, (out_ch, out_ch, 3, 3), jnp.float32,
                            -1.0 / jnp.sqrt(fan2), 1.0 / jnp.sqrt(fan2))
    b2 = jax.random.uniform(k4, (out_ch,), jnp.float32,
                            -1.0 / jnp.sqrt(fan2), 1.0 / jnp.sqrt(fan2))
    g1 = jnp.ones((out_ch,), jnp.float32)
    be1 = jnp.zeros((out_ch,), jnp.float32)
    g2 = jnp.ones((out_ch,), jnp.float32)
    be2 = jnp.zeros((out_ch,), jnp.float32)
    return (w1, b1, g1, be1, w2, b2, g2, be2)


if __name__ == "__main__":
    key = jax.random.PRNGKey(0)
    kx, kp = jax.random.split(key)

    N, Cin, Cout, H, W = 2, 4, 16, 16, 16
    x = jax.random.normal(kx, (N, Cin, H, W), jnp.float32)
    params = init_params(kp, Cin, Cout)

    fwd = jax.jit(conv_block_forward)
    out = jax.block_until_ready(fwd(x, params))

    ref = jax.block_until_ready(reference_forward(x, params))
    assert out.shape == (N, Cout, H, W)
    max_err = float(jnp.max(jnp.abs(out - ref)))
    # Tolerance covers bf16 MXU operands + bf16 intermediate storage (kernel rounds
    # the bias-free conv output, reference rounds the biased one -> ulp-level grid
    # differences) and matmul accumulation-order differences.
    assert jnp.allclose(out, ref, atol=2e-2, rtol=1e-2), (
        f"max abs err = {max_err}")

    print("KERNEL_OK")
</pallas_src>

<mosaic_0001>
module attributes {stable_mosaic.version = 11 : i64} {
  func.func @_conv_pass_kernel(%arg0: i32, %arg1: memref<1x16x16x4xbf16, #tpu.memory_space<vmem>>, %arg2: memref<36x16xbf16, #tpu.memory_space<vmem>>, %arg3: memref<1x16x16x16xbf16, #tpu.memory_space<vmem>>, %arg4: memref<1x2x16xf32, #tpu.memory_space<vmem>>, %arg5: memref<18x18x4xbf16, #tpu.memory_space<vmem>>) attributes {dimension_semantics = [#tpu.dimension_semantics<parallel>], iteration_bounds = array<i64: 2>, scalar_prefetch = 0 : i64, scratch_operands = 1 : i64, tpu.core_type = #tpu.core_type<tc>, window_params = [{transform_indices = @transform_0, window_bounds = array<i64: 1, 16, 16, 4>}, {pipeline_mode = #tpu.pipeline_mode<synchronous>, transform_indices = @transform_1, window_bounds = array<i64: 36, 16>}, {transform_indices = @transform_2, window_bounds = array<i64: 1, 16, 16, 16>}, {transform_indices = @transform_3, window_bounds = array<i64: 1, 2, 16>}]} {
    %c0 = arith.constant 0 : index
    %c0_0 = arith.constant 0 : index
    %c0_1 = arith.constant 0 : index
    %c0_2 = arith.constant 0 : index
    %0 = vector.load %arg1[%c0, %c0_0, %c0_1, %c0_2] : memref<1x16x16x4xbf16, #tpu.memory_space<vmem>>, vector<1x16x16x4xbf16>
    %1 = vector.shape_cast %0 : vector<1x16x16x4xbf16> to vector<16x16x4xbf16>
    %cst = arith.constant 0.000000e+00 : bf16
    %2 = vector.broadcast %cst : bf16 to vector<18x18x4xbf16>
    %c0_3 = arith.constant 0 : index
    %c0_4 = arith.constant 0 : index
    %c0_5 = arith.constant 0 : index
    %3 = vector.load %arg5[%c0_3, %c0_4, %c0_5] : memref<18x18x4xbf16, #tpu.memory_space<vmem>>, vector<18x18x4xbf16>
    tpu.vector_store %arg5[%c0_3, %c0_4, %c0_5], %2 {strides = array<i32>} : memref<18x18x4xbf16, #tpu.memory_space<vmem>>, vector<18x18x4xbf16>,
    %c1 = arith.constant 1 : index
    %c1_6 = arith.constant 1 : index
    %c0_7 = arith.constant 0 : index
    %4 = vector.load %arg5[%c1, %c1_6, %c0_7] : memref<18x18x4xbf16, #tpu.memory_space<vmem>>, vector<16x16x4xbf16>
    tpu.vector_store %arg5[%c1, %c1_6, %c0_7], %1 {strides = array<i32>} : memref<18x18x4xbf16, #tpu.memory_space<vmem>>, vector<16x16x4xbf16>,
    %c0_8 = arith.constant 0 : index
    %c0_9 = arith.constant 0 : index
    %c0_10 = arith.constant 0 : index
    %5 = vector.load %arg5[%c0_8, %c0_9, %c0_10] : memref<18x18x4xbf16, #tpu.memory_space<vmem>>, vector<16x16x4xbf16>
    %c0_11 = arith.constant 0 : index
    %c1_12 = arith.constant 1 : index
    %c0_13 = arith.constant 0 : index
    %6 = vector.load %arg5[%c0_11, %c1_12, %c0_13] : memref<18x18x4xbf16, #tpu.memory_space<vmem>>, vector<16x16x4xbf16>
    %c0_14 = arith.constant 0 : index
    %c2 = arith.constant 2 : index
    %c0_15 = arith.constant 0 : index
    %7 = vector.load %arg5[%c0_14, %c2, %c0_15] : memref<18x18x4xbf16, #tpu.memory_space<vmem>>, vector<16x16x4xbf16>
    %c1_16 = arith.constant 1 : index
    %c0_17 = arith.constant 0 : index
    %c0_18 = arith.constant 0 : index
    %8 = vector.load %arg5[%c1_16, %c0_17, %c0_18] : memref<18x18x4xbf16, #tpu.memory_space<vmem>>, vector<16x16x4xbf16>
    %c1_19 = arith.constant 1 : index
    %c1_20 = arith.constant 1 : index
    %c0_21 = arith.constant 0 : index
    %9 = vector.load %arg5[%c1_19, %c1_20, %c0_21] : memref<18x18x4xbf16, #tpu.memory_space<vmem>>, vector<16x16x4xbf16>
    %c1_22 = arith.constant 1 : index
    %c2_23 = arith.constant 2 : index
    %c0_24 = arith.constant 0 : index
    %10 = vector.load %arg5[%c1_22, %c2_23, %c0_24] : memref<18x18x4xbf16, #tpu.memory_space<vmem>>, vector<16x16x4xbf16>
    %c2_25 = arith.constant 2 : index
    %c0_26 = arith.constant 0 : index
    %c0_27 = arith.constant 0 : index
    %11 = vector.load %arg5[%c2_25, %c0_26, %c0_27] : memref<18x18x4xbf16, #tpu.memory_space<vmem>>, vector<16x16x4xbf16>
    %c2_28 = arith.constant 2 : index
    %c1_29 = arith.constant 1 : index
    %c0_30 = arith.constant 0 : index
    %12 = vector.load %arg5[%c2_28, %c1_29, %c0_30] : memref<18x18x4xbf16, #tpu.memory_space<vmem>>, vector<16x16x4xbf16>
    %c2_31 = arith.constant 2 : index
    %c2_32 = arith.constant 2 : index
    %c0_33 = arith.constant 0 : index
    %13 = vector.load %arg5[%c2_31, %c2_32, %c0_33] : memref<18x18x4xbf16, #tpu.memory_space<vmem>>, vector<16x16x4xbf16>
    %14 = tpu.concatenate %5, %6, %7, %8, %9, %10, %11, %12, %13 in 2 : vector<16x16x4xbf16>, vector<16x16x4xbf16>, vector<16x16x4xbf16>, vector<16x16x4xbf16>, vector<16x16x4xbf16>, vector<16x16x4xbf16>, vector<16x16x4xbf16>, vector<16x16x4xbf16>, vector<16x16x4xbf16> -> vector<16x16x36xbf16>
    %15 = vector.shape_cast %14 : vector<16x16x36xbf16> to vector<256x36xbf16>
    %c0_34 = arith.constant 0 : index
    %c0_35 = arith.constant 0 : index
    %16 = vector.load %arg2[%c0_34, %c0_35] : memref<36x16xbf16, #tpu.memory_space<vmem>>, vector<36x16xbf16>
    %cst_36 = arith.constant dense<0.000000e+00> : vector<256x16xf32>
    %17 = tpu.matmul %15, %16, %cst_36 {dimension_numbers = #tpu.dot_dimension_numbers<[1], [0], [0], [1], [0, 0, 1, 1], [], []>} : vector<256x36xbf16>, vector<36x16xbf16>, vector<256x16xf32> -> vector<256x16xf32>
    %18 = vector.shape_cast %17 : vector<256x16xf32> to vector<1x16x16x16xf32>
    %19 = arith.truncf %18 : vector<1x16x16x16xf32> to vector<1x16x16x16xbf16>
    %c0_37 = arith.constant 0 : index
    %c0_38 = arith.constant 0 : index
    %c0_39 = arith.constant 0 : index
    %c0_40 = arith.constant 0 : index
    %20 = vector.load %arg3[%c0_37, %c0_38, %c0_39, %c0_40] : memref<1x16x16x16xbf16, #tpu.memory_space<vmem>>, vector<1x16x16x16xbf16>
    tpu.vector_store %arg3[%c0_37, %c0_38, %c0_39, %c0_40], %19 {strides = array<i32>} : memref<1x16x16x16xbf16, #tpu.memory_space<vmem>>, vector<1x16x16x16xbf16>,
    %cst_41 = arith.constant dense<0.000000e+00> : vector<16xf32>
    %21 = vector.multi_reduction <add>, %17, %cst_41 [0] : vector<256x16xf32> to vector<16xf32>
    %22 = vector.shape_cast %21 : vector<16xf32> to vector<1x16xf32>
    %cst_42 = arith.constant 3.906250e-03 : f32
    %23 = vector.broadcast %cst_42 : f32 to vector<1x16xf32>
    %24 = arith.mulf %22, %23 : vector<1x16xf32>
    %25 = vector.broadcast %24 : vector<1x16xf32> to vector<256x16xf32>
    %26 = arith.subf %17, %25 : vector<256x16xf32>
    %27 = arith.mulf %26, %26 : vector<256x16xf32>
    %cst_43 = arith.constant dense<0.000000e+00> : vector<16xf32>
    %28 = vector.multi_reduction <add>, %27, %cst_43 [0] : vector<256x16xf32> to vector<16xf32>
    %29 = vector.shape_cast %28 : vector<16xf32> to vector<1x16xf32>
    %30 = tpu.concatenate %22, %29 in 0 : vector<1x16xf32>, vector<1x16xf32> -> vector<2x16xf32>
    %31 = vector.shape_cast %30 : vector<2x16xf32> to vector<1x2x16xf32>
    %c0_44 = arith.constant 0 : index
    %c0_45 = arith.constant 0 : index
    %c0_46 = arith.constant 0 : index
    %32 = vector.load %arg4[%c0_44, %c0_45, %c0_46] : memref<1x2x16xf32, #tpu.memory_space<vmem>>, vector<1x2x16xf32>
    tpu.vector_store %arg4[%c0_44, %c0_45, %c0_46], %31 {strides = array<i32>} : memref<1x2x16xf32, #tpu.memory_space<vmem>>, vector<1x2x16xf32>,
    return
  }
  func.func @transform_0(%arg0: i32) -> (i32, i32, i32, i32) {
    %c0_i32 = arith.constant 0 : i32
    %c0_i32_0 = arith.constant 0 : i32
    %c0_i32_1 = arith.constant 0 : i32
    %c0_i32_2 = arith.constant 0 : i32
    return %arg0, %c0_i32, %c0_i32_0, %c0_i32_1 : i32, i32, i32, i32
  }
  func.func @transform_1(%arg0: i32) -> (i32, i32) {
    %c0_i32 = arith.constant 0 : i32
    %c0_i32_0 = arith.constant 0 : i32
    %c0_i32_1 = arith.constant 0 : i32
    return %c0_i32, %c0_i32_0 : i32, i32
  }
  func.func @transform_2(%arg0: i32) -> (i32, i32, i32, i32) {
    %c0_i32 = arith.constant 0 : i32
    %c0_i32_0 = arith.constant 0 : i32
    %c0_i32_1 = arith.constant 0 : i32
    %c0_i32_2 = arith.constant 0 : i32
    return %arg0, %c0_i32, %c0_i32_0, %c0_i32_1 : i32, i32, i32, i32
  }
  func.func @transform_3(%arg0: i32) -> (i32, i32, i32) {
    %c0_i32 = arith.constant 0 : i32
    %c0_i32_0 = arith.constant 0 : i32
    %c0_i32_1 = arith.constant 0 : i32
    return %arg0, %c0_i32, %c0_i32_0 : i32, i32, i32
  }
}

module attributes {stable_mosaic.version = 11 : i64} {
  func.func @_bn_relu_kernel(%arg0: i32, %arg1: memref<1x16x16x16xbf16, #tpu.memory_space<vmem>>, %arg2: memref<1x16xf32, #tpu.memory_space<vmem>>, %arg3: memref<1x16xf32, #tpu.memory_space<vmem>>, %arg4: memref<1x16x16x16xf32, #tpu.memory_space<vmem>>) attributes {dimension_semantics = [#tpu.dimension_semantics<parallel>], iteration_bounds = array<i64: 2>, scalar_prefetch = 0 : i64, scratch_operands = 0 : i64, tpu.core_type = #tpu.core_type<tc>, window_params = [{transform_indices = @transform_0, window_bounds = array<i64: 1, 16, 16, 16>}, {pipeline_mode = #tpu.pipeline_mode<synchronous>, transform_indices = @transform_1, window_bounds = array<i64: 1, 16>}, {pipeline_mode = #tpu.pipeline_mode<synchronous>, transform_indices = @transform_2, window_bounds = array<i64: 1, 16>}, {transform_indices = @transform_3, window_bounds = array<i64: 1, 16, 16, 16>}]} {
    %c0 = arith.constant 0 : index
    %c0_0 = arith.constant 0 : index
    %c0_1 = arith.constant 0 : index
    %c0_2 = arith.constant 0 : index
    %0 = vector.load %arg1[%c0, %c0_0, %c0_1, %c0_2] : memref<1x16x16x16xbf16, #tpu.memory_space<vmem>>, vector<1x16x16x16xbf16>
    %1 = vector.shape_cast %0 : vector<1x16x16x16xbf16> to vector<16x16x16xbf16>
    %2 = arith.extf %1 : vector<16x16x16xbf16> to vector<16x16x16xf32>
    %c0_3 = arith.constant 0 : index
    %c0_4 = arith.constant 0 : index
    %3 = vector.load %arg2[%c0_3, %c0_4] : memref<1x16xf32, #tpu.memory_space<vmem>>, vector<1x16xf32>
    %4 = vector.shape_cast %3 : vector<1x16xf32> to vector<1x1x16xf32>
    %5 = vector.broadcast %4 : vector<1x1x16xf32> to vector<16x16x16xf32>
    %6 = arith.mulf %2, %5 : vector<16x16x16xf32>
    %c0_5 = arith.constant 0 : index
    %c0_6 = arith.constant 0 : index
    %7 = vector.load %arg3[%c0_5, %c0_6] : memref<1x16xf32, #tpu.memory_space<vmem>>, vector<1x16xf32>
    %8 = vector.shape_cast %7 : vector<1x16xf32> to vector<1x1x16xf32>
    %9 = vector.broadcast %8 : vector<1x1x16xf32> to vector<16x16x16xf32>
    %10 = arith.addf %6, %9 : vector<16x16x16xf32>
    %cst = arith.constant 0.000000e+00 : f32
    %11 = vector.broadcast %cst : f32 to vector<16x16x16xf32>
    %12 = arith.maximumf %10, %11 : vector<16x16x16xf32>
    %13 = vector.shape_cast %12 : vector<16x16x16xf32> to vector<1x16x16x16xf32>
    %c0_7 = arith.constant 0 : index
    %c0_8 = arith.constant 0 : index
    %c0_9 = arith.constant 0 : index
    %c0_10 = arith.constant 0 : index
    %14 = vector.load %arg4[%c0_7, %c0_8, %c0_9, %c0_10] : memref<1x16x16x16xf32, #tpu.memory_space<vmem>>, vector<1x16x16x16xf32>
    tpu.vector_store %arg4[%c0_7, %c0_8, %c0_9, %c0_10], %13 {strides = array<i32>} : memref<1x16x16x16xf32, #tpu.memory_space<vmem>>, vector<1x16x16x16xf32>,
    return
  }
  func.func @transform_0(%arg0: i32) -> (i32, i32, i32, i32) {
    %c0_i32 = arith.constant 0 : i32
    %c0_i32_0 = arith.constant 0 : i32
    %c0_i32_1 = arith.constant 0 : i32
    %c0_i32_2 = arith.constant 0 : i32
    return %arg0, %c0_i32, %c0_i32_0, %c0_i32_1 : i32, i32, i32, i32
  }
  func.func @transform_1(%arg0: i32) -> (i32, i32) {
    %c0_i32 = arith.constant 0 : i32
    %c0_i32_0 = arith.constant 0 : i32
    %c0_i32_1 = arith.constant 0 : i32
    return %c0_i32, %c0_i32_0 : i32, i32
  }
  func.func @transform_2(%arg0: i32) -> (i32, i32) {
    %c0_i32 = arith.constant 0 : i32
    %c0_i32_0 = arith.constant 0 : i32
    %c0_i32_1 = arith.constant 0 : i32
    return %c0_i32, %c0_i32_0 : i32, i32
  }
  func.func @transform_3(%arg0: i32) -> (i32, i32, i32, i32) {
    %c0_i32 = arith.constant 0 : i32
    %c0_i32_0 = arith.constant 0 : i32
    %c0_i32_1 = arith.constant 0 : i32
    %c0_i32_2 = arith.constant 0 : i32
    return %arg0, %c0_i32, %c0_i32_0, %c0_i32_1 : i32, i32, i32, i32
  }
}

module attributes {stable_mosaic.version = 11 : i64} {
  func.func @_conv_pass_kernel(%arg0: i32, %arg1: memref<1x16x16x16xbf16, #tpu.memory_space<vmem>>, %arg2: memref<144x16xbf16, #tpu.memory_space<vmem>>, %arg3: memref<1x16xf32, #tpu.memory_space<vmem>>, %arg4: memref<1x16xf32, #tpu.memory_space<vmem>>, %arg5: memref<1x16x16x16xbf16, #tpu.memory_space<vmem>>, %arg6: memref<1x2x16xf32, #tpu.memory_space<vmem>>, %arg7: memref<18x18x16xbf16, #tpu.memory_space<vmem>>) attributes {dimension_semantics = [#tpu.dimension_semantics<parallel>], iteration_bounds = array<i64: 2>, scalar_prefetch = 0 : i64, scratch_operands = 1 : i64, tpu.core_type = #tpu.core_type<tc>, window_params = [{transform_indices = @transform_0, window_bounds = array<i64: 1, 16, 16, 16>}, {pipeline_mode = #tpu.pipeline_mode<synchronous>, transform_indices = @transform_1, window_bounds = array<i64: 144, 16>}, {pipeline_mode = #tpu.pipeline_mode<synchronous>, transform_indices = @transform_2, window_bounds = array<i64: 1, 16>}, {pipeline_mode = #tpu.pipeline_mode<synchronous>, transform_indices = @transform_3, window_bounds = array<i64: 1, 16>}, {transform_indices = @transform_4, window_bounds = array<i64: 1, 16, 16, 16>}, {transform_indices = @transform_5, window_bounds = array<i64: 1, 2, 16>}]} {
    %c0 = arith.constant 0 : index
    %c0_0 = arith.constant 0 : index
    %c0_1 = arith.constant 0 : index
    %c0_2 = arith.constant 0 : index
    %0 = vector.load %arg1[%c0, %c0_0, %c0_1, %c0_2] : memref<1x16x16x16xbf16, #tpu.memory_space<vmem>>, vector<1x16x16x16xbf16>
    %1 = vector.shape_cast %0 : vector<1x16x16x16xbf16> to vector<16x16x16xbf16>
    %2 = arith.extf %1 : vector<16x16x16xbf16> to vector<16x16x16xf32>
    %c0_3 = arith.constant 0 : index
    %c0_4 = arith.constant 0 : index
    %3 = vector.load %arg3[%c0_3, %c0_4] : memref<1x16xf32, #tpu.memory_space<vmem>>, vector<1x16xf32>
    %4 = vector.shape_cast %3 : vector<1x16xf32> to vector<1x1x16xf32>
    %5 = vector.broadcast %4 : vector<1x1x16xf32> to vector<16x16x16xf32>
    %6 = arith.mulf %2, %5 : vector<16x16x16xf32>
    %c0_5 = arith.constant 0 : index
    %c0_6 = arith.constant 0 : index
    %7 = vector.load %arg4[%c0_5, %c0_6] : memref<1x16xf32, #tpu.memory_space<vmem>>, vector<1x16xf32>
    %8 = vector.shape_cast %7 : vector<1x16xf32> to vector<1x1x16xf32>
    %9 = vector.broadcast %8 : vector<1x1x16xf32> to vector<16x16x16xf32>
    %10 = arith.addf %6, %9 : vector<16x16x16xf32>
    %cst = arith.constant 0.000000e+00 : f32
    %11 = vector.broadcast %cst : f32 to vector<16x16x16xf32>
    %12 = arith.maximumf %10, %11 : vector<16x16x16xf32>
    %13 = arith.truncf %12 : vector<16x16x16xf32> to vector<16x16x16xbf16>
    %cst_7 = arith.constant 0.000000e+00 : bf16
    %14 = vector.broadcast %cst_7 : bf16 to vector<18x18x16xbf16>
    %c0_8 = arith.constant 0 : index
    %c0_9 = arith.constant 0 : index
    %c0_10 = arith.constant 0 : index
    %15 = vector.load %arg7[%c0_8, %c0_9, %c0_10] : memref<18x18x16xbf16, #tpu.memory_space<vmem>>, vector<18x18x16xbf16>
    tpu.vector_store %arg7[%c0_8, %c0_9, %c0_10], %14 {strides = array<i32>} : memref<18x18x16xbf16, #tpu.memory_space<vmem>>, vector<18x18x16xbf16>,
    %c1 = arith.constant 1 : index
    %c1_11 = arith.constant 1 : index
    %c0_12 = arith.constant 0 : index
    %16 = vector.load %arg7[%c1, %c1_11, %c0_12] : memref<18x18x16xbf16, #tpu.memory_space<vmem>>, vector<16x16x16xbf16>
    tpu.vector_store %arg7[%c1, %c1_11, %c0_12], %13 {strides = array<i32>} : memref<18x18x16xbf16, #tpu.memory_space<vmem>>, vector<16x16x16xbf16>,
    %c0_13 = arith.constant 0 : index
    %c0_14 = arith.constant 0 : index
    %c0_15 = arith.constant 0 : index
    %17 = vector.load %arg7[%c0_13, %c0_14, %c0_15] : memref<18x18x16xbf16, #tpu.memory_space<vmem>>, vector<16x16x16xbf16>
    %c0_16 = arith.constant 0 : index
    %c1_17 = arith.constant 1 : index
    %c0_18 = arith.constant 0 : index
    %18 = vector.load %arg7[%c0_16, %c1_17, %c0_18] : memref<18x18x16xbf16, #tpu.memory_space<vmem>>, vector<16x16x16xbf16>
    %c0_19 = arith.constant 0 : index
    %c2 = arith.constant 2 : index
    %c0_20 = arith.constant 0 : index
    %19 = vector.load %arg7[%c0_19, %c2, %c0_20] : memref<18x18x16xbf16, #tpu.memory_space<vmem>>, vector<16x16x16xbf16>
    %c1_21 = arith.constant 1 : index
    %c0_22 = arith.constant 0 : index
    %c0_23 = arith.constant 0 : index
    %20 = vector.load %arg7[%c1_21, %c0_22, %c0_23] : memref<18x18x16xbf16, #tpu.memory_space<vmem>>, vector<16x16x16xbf16>
    %c1_24 = arith.constant 1 : index
    %c1_25 = arith.constant 1 : index
    %c0_26 = arith.constant 0 : index
    %21 = vector.load %arg7[%c1_24, %c1_25, %c0_26] : memref<18x18x16xbf16, #tpu.memory_space<vmem>>, vector<16x16x16xbf16>
    %c1_27 = arith.constant 1 : index
    %c2_28 = arith.constant 2 : index
    %c0_29 = arith.constant 0 : index
    %22 = vector.load %arg7[%c1_27, %c2_28, %c0_29] : memref<18x18x16xbf16, #tpu.memory_space<vmem>>, vector<16x16x16xbf16>
    %c2_30 = arith.constant 2 : index
    %c0_31 = arith.constant 0 : index
    %c0_32 = arith.constant 0 : index
    %23 = vector.load %arg7[%c2_30, %c0_31, %c0_32] : memref<18x18x16xbf16, #tpu.memory_space<vmem>>, vector<16x16x16xbf16>
    %c2_33 = arith.constant 2 : index
    %c1_34 = arith.constant 1 : index
    %c0_35 = arith.constant 0 : index
    %24 = vector.load %arg7[%c2_33, %c1_34, %c0_35] : memref<18x18x16xbf16, #tpu.memory_space<vmem>>, vector<16x16x16xbf16>
    %c2_36 = arith.constant 2 : index
    %c2_37 = arith.constant 2 : index
    %c0_38 = arith.constant 0 : index
    %25 = vector.load %arg7[%c2_36, %c2_37, %c0_38] : memref<18x18x16xbf16, #tpu.memory_space<vmem>>, vector<16x16x16xbf16>
    %26 = tpu.concatenate %17, %18, %19, %20, %21, %22, %23, %24, %25 in 2 : vector<16x16x16xbf16>, vector<16x16x16xbf16>, vector<16x16x16xbf16>, vector<16x16x16xbf16>, vector<16x16x16xbf16>, vector<16x16x16xbf16>, vector<16x16x16xbf16>, vector<16x16x16xbf16>, vector<16x16x16xbf16> -> vector<16x16x144xbf16>
    %27 = vector.shape_cast %26 : vector<16x16x144xbf16> to vector<256x144xbf16>
    %c0_39 = arith.constant 0 : index
    %c0_40 = arith.constant 0 : index
    %28 = vector.load %arg2[%c0_39, %c0_40] : memref<144x16xbf16, #tpu.memory_space<vmem>>, vector<144x16xbf16>
    %cst_41 = arith.constant dense<0.000000e+00> : vector<256x16xf32>
    %29 = tpu.matmul %27, %28, %cst_41 {dimension_numbers = #tpu.dot_dimension_numbers<[1], [0], [0], [1], [0, 0, 1, 1], [], []>} : vector<256x144xbf16>, vector<144x16xbf16>, vector<256x16xf32> -> vector<256x16xf32>
    %30 = vector.shape_cast %29 : vector<256x16xf32> to vector<1x16x16x16xf32>
    %31 = arith.truncf %30 : vector<1x16x16x16xf32> to vector<1x16x16x16xbf16>
    %c0_42 = arith.constant 0 : index
    %c0_43 = arith.constant 0 : index
    %c0_44 = arith.constant 0 : index
    %c0_45 = arith.constant 0 : index
    %32 = vector.load %arg5[%c0_42, %c0_43, %c0_44, %c0_45] : memref<1x16x16x16xbf16, #tpu.memory_space<vmem>>, vector<1x16x16x16xbf16>
    tpu.vector_store %arg5[%c0_42, %c0_43, %c0_44, %c0_45], %31 {strides = array<i32>} : memref<1x16x16x16xbf16, #tpu.memory_space<vmem>>, vector<1x16x16x16xbf16>,
    %cst_46 = arith.constant dense<0.000000e+00> : vector<16xf32>
    %33 = vector.multi_reduction <add>, %29, %cst_46 [0] : vector<256x16xf32> to vector<16xf32>
    %34 = vector.shape_cast %33 : vector<16xf32> to vector<1x16xf32>
    %cst_47 = arith.constant 3.906250e-03 : f32
    %35 = vector.broadcast %cst_47 : f32 to vector<1x16xf32>
    %36 = arith.mulf %34, %35 : vector<1x16xf32>
    %37 = vector.broadcast %36 : vector<1x16xf32> to vector<256x16xf32>
    %38 = arith.subf %29, %37 : vector<256x16xf32>
    %39 = arith.mulf %38, %38 : vector<256x16xf32>
    %cst_48 = arith.constant dense<0.000000e+00> : vector<16xf32>
    %40 = vector.multi_reduction <add>, %39, %cst_48 [0] : vector<256x16xf32> to vector<16xf32>
    %41 = vector.shape_cast %40 : vector<16xf32> to vector<1x16xf32>
    %42 = tpu.concatenate %34, %41 in 0 : vector<1x16xf32>, vector<1x16xf32> -> vector<2x16xf32>
    %43 = vector.shape_cast %42 : vector<2x16xf32> to vector<1x2x16xf32>
    %c0_49 = arith.constant 0 : index
    %c0_50 = arith.constant 0 : index
    %c0_51 = arith.constant 0 : index
    %44 = vector.load %arg6[%c0_49, %c0_50, %c0_51] : memref<1x2x16xf32, #tpu.memory_space<vmem>>, vector<1x2x16xf32>
    tpu.vector_store %arg6[%c0_49, %c0_50, %c0_51], %43 {strides = array<i32>} : memref<1x2x16xf32, #tpu.memory_space<vmem>>, vector<1x2x16xf32>,
    return
  }
  func.func @transform_0(%arg0: i32) -> (i32, i32, i32, i32) {
    %c0_i32 = arith.constant 0 : i32
    %c0_i32_0 = arith.constant 0 : i32
    %c0_i32_1 = arith.constant 0 : i32
    %c0_i32_2 = arith.constant 0 : i32
    return %arg0, %c0_i32, %c0_i32_0, %c0_i32_1 : i32, i32, i32, i32
  }
  func.func @transform_1(%arg0: i32) -> (i32, i32) {
    %c0_i32 = arith.constant 0 : i32
    %c0_i32_0 = arith.constant 0 : i32
    %c0_i32_1 = arith.constant 0 : i32
    return %c0_i32, %c0_i32_0 : i32, i32
  }
  func.func @transform_2(%arg0: i32) -> (i32, i32) {
    %c0_i32 = arith.constant 0 : i32
    %c0_i32_0 = arith.constant 0 : i32
    %c0_i32_1 = arith.constant 0 : i32
    return %c0_i32, %c0_i32_0 : i32, i32
  }
  func.func @transform_3(%arg0: i32) -> (i32, i32) {
    %c0_i32 = arith.constant 0 : i32
    %c0_i32_0 = arith.constant 0 : i32
    %c0_i32_1 = arith.constant 0 : i32
    return %c0_i32, %c0_i32_0 : i32, i32
  }
  func.func @transform_4(%arg0: i32) -> (i32, i32, i32, i32) {
    %c0_i32 = arith.constant 0 : i32
    %c0_i32_0 = arith.constant 0 : i32
    %c0_i32_1 = arith.constant 0 : i32
    %c0_i32_2 = arith.constant 0 : i32
    return %arg0, %c0_i32, %c0_i32_0, %c0_i32_1 : i32, i32, i32, i32
  }
  func.func @transform_5(%arg0: i32) -> (i32, i32, i32) {
    %c0_i32 = arith.constant 0 : i32
    %c0_i32_0 = arith.constant 0 : i32
    %c0_i32_1 = arith.constant 0 : i32
    return %arg0, %c0_i32, %c0_i32_0 : i32, i32, i32
  }
}

</mosaic_0001>

<bundles_post_ra>
// kernel: conv_block_forward.5
= control target key start
LH: loop header
LB: loop body
LE: loop exit
PB: predicated region body
PF: predicated region fallthrough
CT: control target
= control target key end

     0   :  { %s563_s12 = smov 0   ;;  %s742_s0 = inlined_call_operand.vmem [shape: bf16[2,16,16,16], index: 0, kind: input, shape index: {}]   ;;  %s743_s1 = inlined_call_operand.vmem [shape: f32[1,16], index: 1, kind: input, shape index: {}]   ;;  %s744_s2 = inlined_call_operand.vmem [shape: f32[1,16], index: 2, kind: input, shape index: {}]   ;;  %s745_s3 = inlined_call_operand.vmem [shape: f32[2,16,16,16], index: 3, kind: output, shape index: {}]  }
   0x1 LB: > { %s433_s13 = sadd.s32 4294967295, %s541_s12   ;;  %p437_p0 = scmp.ge.s32.totalorder %s541_s12, 1  ;;  %s541_s12 = sphi %s563_s12, %s13_s12  }
   0x2   : > { %p137_p1 = scmp.lt.s32.totalorder %s541_s12, 3 }
   0x4   : > { %p138_p2 = pnand %p437_p0, %p137_p1 }
   0x5   : > { %p161_p3 = scmp.lt.s32.totalorder (!%p138_p2), %s433_s13, 1 }
   0x6   : > { %141 = sbr.rel (%p138_p2) target bundleno = 51 (0x33), region = 32 }
   0xb   : > { %s747_s13 = smov (!%p161_p3, %s433_s13), 1  ;;  %v582_v0 = vld [vmem:[%s743_s1] ss:$0 sm:$0xff]  ;;  %vm345_vm0 = vcmask 130048  }
   0xc   : > { %s446_s14 = sshll.u32 %s747_s13, 7  ;;  %v591_v9 = vld [vmem:[%s744_s2] ss:$0 sm:$0xff]  ;;  %s447_s22 = sshll.u32 %s747_s13, 8 }
   0xd   : > { %s577_s17 = scalar_lea.vmem %s742_s0, %s446_s14  ;;  %s609_s25 = scalar_lea.vmem %s745_s3, %s447_s22 }
   0xe   : > { %v449_v1 = vld [vmem:[%s577_s17] sm:$0xff]   ;;  %v512_v2 = vld [vmem:[%s577_s17 + $0x8] sm:$0xff]   ;;  %v513_v3 = vld [vmem:[%s577_s17 + $0x10] sm:$0xff]  }
   0xf   : > { %v450_v4 = vunpack.c.l.bf16 %v449_v1  ;;  %v451_v5 = vunpack.c.h.bf16 %v449_v1  ;;  %v454_v6 = vunpack.c.l.bf16 %v512_v2  ;;  %v455_v7 = vunpack.c.h.bf16 %v512_v2  ;;  %v514_v8 = vld [vmem:[%s577_s17 + $0x18] sm:$0xff]   ;;  %v515_v30 = vld [vmem:[%s577_s17 + $0x20] sm:$0xff]   ;;  %v516_v31 = vld [vmem:[%s577_s17 + $0x28] sm:$0xff]  }
  0x10   : > { %v458_v10 = vunpack.c.l.bf16 %v513_v3  ;;  %v459_v11 = vunpack.c.h.bf16 %v513_v3  ;;  %v462_v12 = vunpack.c.l.bf16 %v514_v8  ;;  %v463_v13 = vunpack.c.h.bf16 %v514_v8  ;;  %v517_v36 = vld [vmem:[%s577_s17 + $0x30] sm:$0xff]   ;;  %v518_v37 = vld [vmem:[%s577_s17 + $0x38] sm:$0xff]   ;;  %v519_v3 = vld [vmem:[%s577_s17 + $0x40] sm:$0xff]  }
  0x11   : > { %v242_v14 = vmul.f32 %v450_v4, %v582_v0  ;;  %v243_v15 = vmul.f32 %v451_v5, %v582_v0  ;;  %v244_v16 = vmul.f32 %v454_v6, %v582_v0  ;;  %v245_v17 = vmul.f32 %v455_v7, %v582_v0  ;;  %v520_v4 = vld [vmem:[%s577_s17 + $0x48] sm:$0xff]  }
  0x12   : > { %v246_v18 = vmul.f32 %v458_v10, %v582_v0  ;;  %v247_v19 = vmul.f32 %v459_v11, %v582_v0  ;;  %v248_v20 = vmul.f32 %v462_v12, %v582_v0  ;;  %v249_v21 = vmul.f32 %v463_v13, %v582_v0  ;;  %v521_v10 = vld [vmem:[%s577_s17 + $0x50] sm:$0xff]   ;;  %v522_v11 = vld [vmem:[%s577_s17 + $0x58] sm:$0xff]  }
  0x13   : > { %v281_v22 = vadd.f32 %v591_v9, %v242_v14  ;;  %v282_v23 = vadd.f32 %v591_v9, %v243_v15  ;;  %v283_v24 = vadd.f32 %v591_v9, %v244_v16  ;;  %v284_v25 = vadd.f32 %v591_v9, %v245_v17 }
  0x14   : > { %v285_v26 = vadd.f32 %v591_v9, %v246_v18  ;;  %v286_v27 = vadd.f32 %v591_v9, %v247_v19  ;;  %v287_v28 = vadd.f32 %v591_v9, %v248_v20  ;;  %v288_v29 = vadd.f32 %v591_v9, %v249_v21 }
  0x15   : > { %v313_v32 = vmax.f32 %v281_v22, 0.0  ;;  %v314_v33 = vmax.f32 %v282_v23, 0.0  ;;  %v315_v34 = vmax.f32 %v283_v24, 0.0  ;;  %v316_v35 = vmax.f32 %v284_v25, 0.0 }
  0x16   : > { %v317_v38 = vmax.f32 %v285_v26, 0.0  ;;  %v318_v39 = vmax.f32 %v286_v27, 0.0  ;;  %v319_v40 = vmax.f32 %v287_v28, 0.0  ;;  %v320_v41 = vmax.f32 %v288_v29, 0.0 }
  0x17   : > { %346 = vst.msk [vmem:[%s609_s25] sm:$0xff] %vm345_vm0, %v313_v32  ;;  %347 = vst.msk [vmem:[%s609_s25 + $0x8] sm:$0xff] %vm345_vm0, %v314_v33  ;;  %v466_v42 = vunpack.c.l.bf16 %v515_v30  ;;  %v467_v43 = vunpack.c.h.bf16 %v515_v30  ;;  %v470_v44 = vunpack.c.l.bf16 %v516_v31  ;;  %v471_v45 = vunpack.c.h.bf16 %v516_v31 }
  0x18   : > { %348 = vst.msk [vmem:[%s609_s25 + $0x10] sm:$0xff] %vm345_vm0, %v315_v34  ;;  %349 = vst.msk [vmem:[%s609_s25 + $0x18] sm:$0xff] %vm345_vm0, %v316_v35  ;;  %v474_v46 = vunpack.c.l.bf16 %v517_v36  ;;  %v475_v47 = vunpack.c.h.bf16 %v517_v36  ;;  %v478_v48 = vunpack.c.l.bf16 %v518_v37  ;;  %v479_v49 = vunpack.c.h.bf16 %v518_v37 }
  0x19   : > { %350 = vst.msk [vmem:[%s609_s25 + $0x20] sm:$0xff] %vm345_vm0, %v317_v38  ;;  %351 = vst.msk [vmem:[%s609_s25 + $0x28] sm:$0xff] %vm345_vm0, %v318_v39  ;;  %v250_v50 = vmul.f32 %v466_v42, %v582_v0  ;;  %v251_v51 = vmul.f32 %v467_v43, %v582_v0  ;;  %v252_v52 = vmul.f32 %v470_v44, %v582_v0  ;;  %v482_v16 = vunpack.c.l.bf16 %v519_v3 }
  0x1a   : > { %352 = vst.msk [vmem:[%s609_s25 + $0x30] sm:$0xff] %vm345_vm0, %v319_v40  ;;  %353 = vst.msk [vmem:[%s609_s25 + $0x38] sm:$0xff] %vm345_vm0, %v320_v41  ;;  %v253_v53 = vmul.f32 %v471_v45, %v582_v0  ;;  %v254_v54 = vmul.f32 %v474_v46, %v582_v0  ;;  %v255_v55 = vmul.f32 %v475_v47, %v582_v0  ;;  %v483_v17 = vunpack.c.h.bf16 %v519_v3  ;;  %v523_v40 = vld [vmem:[%s577_s17 + $0x60] sm:$0xff]   ;;  %v524_v41 = vld [vmem:[%s577_s17 + $0x68] sm:$0xff]  }
  0x1b   : > { %v256_v56 = vmul.f32 %v478_v48, %v582_v0  ;;  %v257_v57 = vmul.f32 %v479_v49, %v582_v0  ;;  %v289_v58 = vadd.f32 %v591_v9, %v250_v50  ;;  %v290_v59 = vadd.f32 %v591_v9, %v251_v51  ;;  %v525_v46 = vld [vmem:[%s577_s17 + $0x70] sm:$0xff]   ;;  %v526_v47 = vld [vmem:[%s577_s17 + $0x78] sm:$0xff]  }
  0x1c   : > { %v291_v60 = vadd.f32 %v591_v9, %v252_v52  ;;  %v292_v61 = vadd.f32 %v591_v9, %v253_v53  ;;  %v293_v62 = vadd.f32 %v591_v9, %v254_v54  ;;  %v294_v63 = vadd.f32 %v591_v9, %v255_v55 }
  0x1d   : > { %v295_v1 = vadd.f32 %v591_v9, %v256_v56  ;;  %v296_v2 = vadd.f32 %v591_v9, %v257_v57  ;;  %v321_v5 = vmax.f32 %v289_v58, 0.0  ;;  %v322_v6 = vmax.f32 %v290_v59, 0.0 }
  0x1e   : > { %v323_v7 = vmax.f32 %v291_v60, 0.0  ;;  %v324_v8 = vmax.f32 %v292_v61, 0.0  ;;  %v325_v12 = vmax.f32 %v293_v62, 0.0  ;;  %v326_v13 = vmax.f32 %v294_v63, 0.0 }
  0x1f   : > { %v327_v14 = vmax.f32 %v295_v1, 0.0  ;;  %v328_v15 = vmax.f32 %v296_v2, 0.0  ;;  %354 = vst.msk [vmem:[%s609_s25 + $0x40] sm:$0xff] %vm345_vm0, %v321_v5  ;;  %355 = vst.msk [vmem:[%s609_s25 + $0x48] sm:$0xff] %vm345_vm0, %v322_v6  ;;  %v486_v18 = vunpack.c.l.bf16 %v520_v4  ;;  %v487_v19 = vunpack.c.h.bf16 %v520_v4 }
  0x20   : > { %356 = vst.msk [vmem:[%s609_s25 + $0x50] sm:$0xff] %vm345_vm0, %v323_v7  ;;  %357 = vst.msk [vmem:[%s609_s25 + $0x58] sm:$0xff] %vm345_vm0, %v324_v8  ;;  %v490_v20 = vunpack.c.l.bf16 %v521_v10  ;;  %v491_v21 = vunpack.c.h.bf16 %v521_v10  ;;  %v494_v22 = vunpack.c.l.bf16 %v522_v11  ;;  %v495_v23 = vunpack.c.h.bf16 %v522_v11 }
  0x21   : > { %358 = vst.msk [vmem:[%s609_s25 + $0x60] sm:$0xff] %vm345_vm0, %v325_v12  ;;  %359 = vst.msk [vmem:[%s609_s25 + $0x68] sm:$0xff] %vm345_vm0, %v326_v13  ;;  %v258_v24 = vmul.f32 %v482_v16, %v582_v0  ;;  %v259_v25 = vmul.f32 %v483_v17, %v582_v0  ;;  %v260_v26 = vmul.f32 %v486_v18, %v582_v0  ;;  %v498_v52 = vunpack.c.l.bf16 %v523_v40 }
  0x22   : > { %360 = vst.msk [vmem:[%s609_s25 + $0x70] sm:$0xff] %vm345_vm0, %v327_v14  ;;  %361 = vst.msk [vmem:[%s609_s25 + $0x78] sm:$0xff] %vm345_vm0, %v328_v15  ;;  %v261_v27 = vmul.f32 %v487_v19, %v582_v0  ;;  %v262_v28 = vmul.f32 %v490_v20, %v582_v0  ;;  %v263_v29 = vmul.f32 %v491_v21, %v582_v0  ;;  %v499_v53 = vunpack.c.h.bf16 %v523_v40 }
  0x23   : > { %v264_v30 = vmul.f32 %v494_v22, %v582_v0  ;;  %v265_v31 = vmul.f32 %v495_v23, %v582_v0  ;;  %v297_v32 = vadd.f32 %v591_v9, %v258_v24  ;;  %v298_v33 = vadd.f32 %v591_v9, %v259_v25 }
  0x24   : > { %v299_v34 = vadd.f32 %v591_v9, %v260_v26  ;;  %v300_v35 = vadd.f32 %v591_v9, %v261_v27  ;;  %v301_v36 = vadd.f32 %v591_v9, %v262_v28  ;;  %v302_v37 = vadd.f32 %v591_v9, %v263_v29 }
  0x25   : > { %v303_v38 = vadd.f32 %v591_v9, %v264_v30  ;;  %v304_v39 = vadd.f32 %v591_v9, %v265_v31  ;;  %v329_v42 = vmax.f32 %v297_v32, 0.0  ;;  %v330_v43 = vmax.f32 %v298_v33, 0.0 }
  0x26   : > { %v331_v44 = vmax.f32 %v299_v34, 0.0  ;;  %v332_v45 = vmax.f32 %v300_v35, 0.0  ;;  %v333_v48 = vmax.f32 %v301_v36, 0.0  ;;  %v334_v49 = vmax.f32 %v302_v37, 0.0 }
  0x27   : > { %v335_v50 = vmax.f32 %v303_v38, 0.0  ;;  %v336_v51 = vmax.f32 %v304_v39, 0.0  ;;  %362 = vst.msk [vmem:[%s609_s25 + $0x80] sm:$0xff] %vm345_vm0, %v329_v42  ;;  %363 = vst.msk [vmem:[%s609_s25 + $0x88] sm:$0xff] %vm345_vm0, %v330_v43  ;;  %v502_v54 = vunpack.c.l.bf16 %v524_v41  ;;  %v503_v55 = vunpack.c.h.bf16 %v524_v41 }
  0x28   : > { %364 = vst.msk [vmem:[%s609_s25 + $0x90] sm:$0xff] %vm345_vm0, %v331_v44  ;;  %365 = vst.msk [vmem:[%s609_s25 + $0x98] sm:$0xff] %vm345_vm0, %v332_v45  ;;  %v506_v56 = vunpack.c.l.bf16 %v525_v46  ;;  %v507_v57 = vunpack.c.h.bf16 %v525_v46  ;;  %v510_v58 = vunpack.c.l.bf16 %v526_v47  ;;  %v511_v59 = vunpack.c.h.bf16 %v526_v47 }
  0x29   : > { %366 = vst.msk [vmem:[%s609_s25 + $0xa0] sm:$0xff] %vm345_vm0, %v333_v48  ;;  %367 = vst.msk [vmem:[%s609_s25 + $0xa8] sm:$0xff] %vm345_vm0, %v334_v49  ;;  %v266_v60 = vmul.f32 %v498_v52, %v582_v0  ;;  %v267_v61 = vmul.f32 %v499_v53, %v582_v0  ;;  %v268_v62 = vmul.f32 %v502_v54, %v582_v0 }
  0x2a   : > { %368 = vst.msk [vmem:[%s609_s25 + $0xb0] sm:$0xff] %vm345_vm0, %v335_v50  ;;  %369 = vst.msk [vmem:[%s609_s25 + $0xb8] sm:$0xff] %vm345_vm0, %v336_v51  ;;  %v269_v63 = vmul.f32 %v503_v55, %v582_v0  ;;  %v270_v1 = vmul.f32 %v506_v56, %v582_v0  ;;  %v271_v2 = vmul.f32 %v507_v57, %v582_v0 }
  0x2b   : > { %v272_v3 = vmul.f32 %v510_v58, %v582_v0  ;;  %v273_v4 = vmul.f32 %v511_v59, %v582_v0  ;;  %v305_v5 = vadd.f32 %v591_v9, %v266_v60  ;;  %v306_v6 = vadd.f32 %v591_v9, %v267_v61 }
  0x2c   : > { %v307_v7 = vadd.f32 %v591_v9, %v268_v62  ;;  %v308_v8 = vadd.f32 %v591_v9, %v269_v63  ;;  %v309_v10 = vadd.f32 %v591_v9, %v270_v1  ;;  %v310_v11 = vadd.f32 %v591_v9, %v271_v2 }
  0x2d   : > { %v311_v0 = vadd.f32 %v591_v9, %v272_v3  ;;  %v312_v12 = vadd.f32 %v591_v9, %v273_v4  ;;  %v337_v13 = vmax.f32 %v305_v5, 0.0  ;;  %v338_v14 = vmax.f32 %v306_v6, 0.0 }
  0x2e   : > { %v339_v15 = vmax.f32 %v307_v7, 0.0  ;;  %v340_v16 = vmax.f32 %v308_v8, 0.0  ;;  %v341_v17 = vmax.f32 %v309_v10, 0.0  ;;  %v342_v18 = vmax.f32 %v310_v11, 0.0 }
  0x2f   : > { %v343_v19 = vmax.f32 %v311_v0, 0.0  ;;  %v344_v20 = vmax.f32 %v312_v12, 0.0  ;;  %370 = vst.msk [vmem:[%s609_s25 + $0xc0] sm:$0xff] %vm345_vm0, %v337_v13  ;;  %371 = vst.msk [vmem:[%s609_s25 + $0xc8] sm:$0xff] %vm345_vm0, %v338_v14 }
  0x30   : > { %372 = vst.msk [vmem:[%s609_s25 + $0xd0] sm:$0xff] %vm345_vm0, %v339_v15  ;;  %373 = vst.msk [vmem:[%s609_s25 + $0xd8] sm:$0xff] %vm345_vm0, %v340_v16 }
  0x31   : > { %374 = vst.msk [vmem:[%s609_s25 + $0xe0] sm:$0xff] %vm345_vm0, %v341_v17  ;;  %375 = vst.msk [vmem:[%s609_s25 + $0xe8] sm:$0xff] %vm345_vm0, %v342_v18 }
  0x32   : > { %376 = vst.msk [vmem:[%s609_s25 + $0xf0] sm:$0xff] %vm345_vm0, %v343_v19  ;;  %377 = vst.msk [vmem:[%s609_s25 + $0xf8] sm:$0xff] %vm345_vm0, %v344_v20 }
  0x33 PF: > { %s13_s12 = sadd.s32 1, %s541_s12  }
  0x34   : > { %p10_p4 = scmp.ge.s32.totalorder %s13_s12, 4  }
  0x36   :  { %12 = sbr.rel (!%p10_p4) target bundleno = 1 (0x1), region = 62 }

// kernel: conv_block_forward.3
= control target key start
LH: loop header
LB: loop body
LE: loop exit
PB: predicated region body
PF: predicated region fallthrough
CT: control target
= control target key end

     0   :  { %s3853_s12 = smov 0   ;;  %s5526_s0 = inlined_call_operand.vmem [shape: bf16[2,16,16,4], index: 0, kind: input, shape index: {}]   ;;  %s5527_s1 = inlined_call_operand.vmem [shape: bf16[36,16], index: 1, kind: input, shape index: {}]   ;;  %s5528_s2 = inlined_call_operand.vmem [shape: bf16[2,16,16,16], index: 2, kind: output, shape index: {0}]   ;;  %s5529_s3 = inlined_call_operand.vmem [shape: f32[2,2,16], index: 3, kind: output, shape index: {1}]  }
   0x1 LB: > { %s3347_s13 = sadd.s32 4294967295, %s3822_s12   ;;  %p3351_p0 = scmp.ge.s32.totalorder %s3822_s12, 1  ;;  %s3822_s12 = sphi %s3853_s12, %s14_s12  }
   0x2   : > { %p140_p1 = scmp.lt.s32.totalorder %s3822_s12, 3 }
   0x4   : > { %p141_p2 = pnand %p3351_p0, %p140_p1 }
   0x5   : > { %p168_p3 = scmp.lt.s32.totalorder (!%p141_p2), %s3347_s13, 1  ;;  %s3825_s18 = smov (!%p141_p2), 8  }
   0x6   : > { %144 = sbr.rel (%p141_p2) target bundleno = 721 (0x2d1), region = 28  ;;  %s3826_s19 = smov (!%p141_p2), 4  }
   0x7   : > { %s3827_s20 = smov (!%p141_p2), 12   ;;  %s3828_s21 = smov (!%p141_p2), 24  }
   0x8   : > { %s3829_s22 = smov (!%p141_p2), 20   ;;  %s3830_s23 = smov (!%p141_p2), 32  }
   0x9   : > { %s3831_s24 = smov (!%p141_p2), 16   ;;  %s3832_s25 = smov (!%p141_p2), 28  }
   0xb   : > { %vm215_vm0 = vcmask 27648   ;;  %vm218_vm1 = vcmask 24576   ;;  %v3824_v0 = vmov 0   ;;  %s5537_s13 = smov (!%p168_p3, %s3347_s13), 1  ;;  %vm1306_vm2 = vcmask 1046528  }
   0xc   : > { %216 = vst.msk [vmem:[#allocation2] sm:$0xf] %vm215_vm0, %v3824_v0  ;;  %217 = vst.msk [vmem:[#allocation2 + $0x4] sm:$0xf] %vm215_vm0, %v3824_v0  ;;  %s3554_s14 = sshll.u32 %s5537_s13, 7  ;;  %vm2728_vm10 = vcmask 1041408  }
   0xd   : > { %219 = vst.msk [vmem:[#allocation2 + $0x8] sm:$0x1] %vm218_vm1, %v3824_v0  ;;  %222 = vst.msk [vmem:[#allocation2 + $0x14] sm:$0x1] %vm218_vm1, %v3824_v0  ;;  %s3927_s17 = scalar_lea.vmem %s5526_s0, %s3554_s14  ;;  %vm271_vm3 = vsmask.f32 256  ;;  %s5138_s7 = scalar_lea.vmem %s5528_s2, %s3554_s14 }
   0xe   : > { %220 = vst.msk [vmem:[#allocation2 + $0xc] sm:$0xf] %vm215_vm0, %v3824_v0  ;;  %221 = vst.msk [vmem:[#allocation2 + $0x10] sm:$0xf] %vm215_vm0, %v3824_v0  ;;  %vm272_vm4 = vsmask.f32 4368 }
   0xf   : > { %223 = vst.msk [vmem:[#allocation2 + $0x18] sm:$0xf] %vm215_vm0, %v3824_v0  ;;  %224 = vst.msk [vmem:[#allocation2 + $0x1c] sm:$0xf] %vm215_vm0, %v3824_v0  ;;  %vm596_vm5 = vsmask.f32 7938 }
  0x10   : > { %225 = vst.msk [vmem:[#allocation2 + $0x20] sm:$0x1] %vm218_vm1, %v3824_v0  ;;  %228 = vst.msk [vmem:[#allocation2 + $0x2c] sm:$0x1] %vm218_vm1, %v3824_v0  ;;  %vm1033_vm6 = vsmask.f32 7424 }
  0x11   : > { %226 = vst.msk [vmem:[#allocation2 + $0x24] sm:$0xf] %vm215_vm0, %v3824_v0  ;;  %227 = vst.msk [vmem:[#allocation2 + $0x28] sm:$0xf] %vm215_vm0, %v3824_v0  ;;  %v185_v1 = vld [vmem:[%s3927_s17 + $0x8] sm:$0xf] }
  0x12   : > { %229 = vst.msk [vmem:[#allocation2 + $0x30] sm:$0xf] %vm215_vm0, %v3824_v0  ;;  %230 = vst.msk [vmem:[#allocation2 + $0x34] sm:$0xf] %vm215_vm0, %v3824_v0  ;;  %v186_v2 = vld [vmem:[%s3927_s17 + $0xc] sm:$0xf] }
  0x13   : > { %231 = vst.msk [vmem:[#allocation2 + $0x38] sm:$0x1] %vm218_vm1, %v3824_v0  ;;  %234 = vst.msk [vmem:[#allocation2 + $0x44] sm:$0x1] %vm218_vm1, %v3824_v0  ;;  %v183_v3 = vld [vmem:[%s3927_s17] sm:$0xf] }
  0x14   : > { %232 = vst.msk [vmem:[#allocation2 + $0x3c] sm:$0xf] %vm215_vm0, %v3824_v0  ;;  %233 = vst.msk [vmem:[#allocation2 + $0x40] sm:$0xf] %vm215_vm0, %v3824_v0  ;;  %v713_v4 = vld [vmem:[#allocation2 + $0x4] sm:$0xf] }
  0x15   : > { %235 = vst.msk [vmem:[#allocation2 + $0x48] sm:$0xf] %vm215_vm0, %v3824_v0  ;;  %236 = vst.msk [vmem:[#allocation2 + $0x4c] sm:$0xf] %vm215_vm0, %v3824_v0  ;;  %v760_v5 = vld [vmem:[#allocation2] sm:$0xe] }
  0x16   : > { %237 = vst.msk [vmem:[#allocation2 + $0x50] sm:$0x1] %vm218_vm1, %v3824_v0  ;;  %240 = vst.msk [vmem:[#allocation2 + $0x5c] sm:$0x1] %vm218_vm1, %v3824_v0  ;;  %v3389_v7 = vcombine.low %v760_v5, %v713_v4  ;;  %v712_v8 = vld [vmem:[#allocation2] sm:$0xf] }
  0x17   : > { %238 = vst.msk [vmem:[#allocation2 + $0x54] sm:$0xf] %vm215_vm0, %v3824_v0  ;;  %239 = vst.msk [vmem:[#allocation2 + $0x58] sm:$0xf] %vm215_vm0, %v3824_v0  ;;  %v292_v9 = vshrl.u32 %v185_v1, 16  ;;  %v3932_v10 = vcombine.low %v712_v8, %v713_v4  ;;  %v295_v11 = vshll.u32 %v185_v1, 16 }
  0x18   : > { %241 = vst.msk [vmem:[#allocation2 + $0x60] sm:$0xf] %vm215_vm0, %v3824_v0  ;;  %242 = vst.msk [vmem:[#allocation2 + $0x64] sm:$0xf] %vm215_vm0, %v3824_v0  ;;  %v300_v12 = vshrl.u32 %v186_v2, 16  ;;  %v303_v13 = vshll.u32 %v186_v2, 16 }
  0x19   : > { %243 = vst.msk [vmem:[#allocation2 + $0x68] sm:$0x1] %vm218_vm1, %v3824_v0  ;;  %246 = vst.msk [vmem:[#allocation2 + $0x74] sm:$0x1] %vm218_vm1, %v3824_v0  ;;  %v1307_v14 = vrot.slane %v3389_v7, 1  ;;  %v294_v17 = vrot.slane %v292_v9, 7 }
  0x1a   : > { %244 = vst.msk [vmem:[#allocation2 + $0x6c] sm:$0xf] %vm215_vm0, %v3824_v0  ;;  %245 = vst.msk [vmem:[#allocation2 + $0x70] sm:$0xf] %vm215_vm0, %v3824_v0  ;;  %v607_v18 = vld [vmem:[#allocation2 + $0x18] sm:$0xf] }
  0x1b   : > { %247 = vst.msk [vmem:[#allocation2 + $0x78] sm:$0xf] %vm215_vm0, %v3824_v0  ;;  %248 = vst.msk [vmem:[#allocation2 + $0x7c] sm:$0xf] %vm215_vm0, %v3824_v0  ;;  %v1035_v19 = vshrl.u32 %v3932_v10, 16  ;;  %v1037_v20 = vshll.u32 %v3932_v10, 16  ;;  %v297_v28 = vor.u32 %v295_v11, %v294_v17 }
  0x1c   : > { %249 = vst.msk [vmem:[#allocation2 + $0x80] sm:$0x1] %vm218_vm1, %v3824_v0  ;;  %252 = vst.msk [vmem:[#allocation2 + $0x8c] sm:$0x1] %vm218_vm1, %v3824_v0  ;;  %v302_v21 = vrot.slane %v300_v12, 7  ;;  %v275_v24 = vshrl.u32 %v183_v3, 16 }
  0x1d   : > { %250 = vst.msk [vmem:[#allocation2 + $0x84] sm:$0xf] %vm215_vm0, %v3824_v0  ;;  %251 = vst.msk [vmem:[#allocation2 + $0x88] sm:$0xf] %vm215_vm0, %v3824_v0  ;;  %v184_v23 = vld [vmem:[%s3927_s17 + $0x4] sm:$0xf] }
  0x1e   : > { %253 = vst.msk [vmem:[#allocation2 + $0x90] sm:$0xf] %vm215_vm0, %v3824_v0  ;;  %254 = vst.msk [vmem:[#allocation2 + $0x94] sm:$0xf] %vm215_vm0, %v3824_v0  ;;  %v298_v29 = vrot.slane %v294_v17, 4  ;;  %v1039_v31 = vrot.slane %v1037_v20, 1  ;;  %v305_v32 = vor.u32 %v303_v13, %v302_v21 }
  0x1f   : > { %255 = vst.msk [vmem:[#allocation2 + $0x98] sm:$0x1] %vm218_vm1, %v3824_v0  ;;  %258 = vst.msk [vmem:[#allocation2 + $0xa4] sm:$0x1] %vm218_vm1, %v3824_v0  ;;  %v187_v30 = vld [vmem:[%s3927_s17 + $0x10] sm:$0xf] }
  0x20   : > { %256 = vst.msk [vmem:[#allocation2 + $0x9c] sm:$0xf] %vm215_vm0, %v3824_v0  ;;  %257 = vst.msk [vmem:[#allocation2 + $0xa0] sm:$0xf] %vm215_vm0, %v3824_v0  ;;  %v277_v33 = vrot.slane %v275_v24, 7  ;;  %v278_v34 = vshll.u32 %v183_v3, 16  ;;  %v1040_v41 = vor.u32 %v1039_v31, %v1035_v19 }
  0x21   : > { %259 = vst.msk [vmem:[#allocation2 + $0xa8] sm:$0xf] %vm215_vm0, %v3824_v0  ;;  %260 = vst.msk [vmem:[#allocation2 + $0xac] sm:$0xf] %vm215_vm0, %v3824_v0  ;;  %v188_v35 = vld [vmem:[%s3927_s17 + $0x14] sm:$0xf] }
  0x22   : > { %261 = vst.msk [vmem:[#allocation2 + $0xb0] sm:$0x1] %vm218_vm1, %v3824_v0  ;;  %264 = vst.msk [vmem:[#allocation2 + $0xbc] sm:$0x1] %vm218_vm1, %v3824_v0  ;;  %v283_v37 = vshrl.u32 %v184_v23, 16  ;;  %v286_v38 = vshll.u32 %v184_v23, 16  ;;  %v280_v43 = vor.u32 %v278_v34, %v277_v33 }
  0x23   : > { %262 = vst.msk [vmem:[#allocation2 + $0xb4] sm:$0xf] %vm215_vm0, %v3824_v0  ;;  %263 = vst.msk [vmem:[#allocation2 + $0xb8] sm:$0xf] %vm215_vm0, %v3824_v0  ;;  %v598_v39 = vld [vmem:[#allocation2 + $0xc] sm:$0xf] }
  0x24   : > { %265 = vst.msk [vmem:[#allocation2 + $0xc0] sm:$0xf] %vm215_vm0, %v3824_v0  ;;  %266 = vst.msk [vmem:[#allocation2 + $0xc4] sm:$0xf] %vm215_vm0, %v3824_v0  ;;  %v309_v40 = vshrl.u32 %v187_v30, 16  ;;  %v281_v44 = vrot.slane %v277_v33, 4 }
  0x25   : > { %267 = vst.msk [vmem:[#allocation2 + $0xc8] sm:$0x1] %vm218_vm1, %v3824_v0  ;;  %270 = vst.msk [vmem:[#allocation2 + $0xd4] sm:$0x1] %vm218_vm1, %v3824_v0  ;;  %v611_v45 = vld [vmem:[#allocation2 + $0x20] sm:$0x1] }
  0x26   : > { %268 = vst.msk [vmem:[#allocation2 + $0xcc] sm:$0xf] %vm215_vm0, %v3824_v0  ;;  %269 = vst.msk [vmem:[#allocation2 + $0xd0] sm:$0xf] %vm215_vm0, %v3824_v0  ;;  %v285_v46 = vrot.slane %v283_v37, 7  ;;  %v311_v47 = vrot.slane %v309_v40, 7 }
  0x27   : > { %v3670_v6 = vld [vmem:[#allocation2 + $0x8] ss:$0 sps:$4 sm:$0x11]   ;;  %vm3938_vm7 = vmand %vm215_vm0, %vm596_vm5  ;;  %v312_v48 = vshll.u32 %v187_v30, 16  ;;  %v317_v49 = vshrl.u32 %v188_v35, 16  ;;  %v320_v53 = vshll.u32 %v188_v35, 16 }
  0x28   : > { %v1308_v15 = vrot.slane %v3670_v6, 1  ;;  %v1042_v16 = vshll.u32 %v3670_v6, 16  ;;  %vm3946_vm8 = vmor %vm271_vm3, %vm272_vm4  ;;  %v608_v36 = vsel %vm3938_vm7, %v297_v28, %v607_v18  ;;  %v189_v50 = vld [vmem:[%s3927_s17 + $0x18] sm:$0xf]  ;;  %v599_v52 = vsel %vm3938_vm7, %v280_v43, %v598_v39  ;;  %v614_v54 = vld [vmem:[#allocation2 + $0x24] sm:$0xf] }
  0x29   : > { %v306_v42 = vsel %vm3946_vm8, %v298_v29, %v305_v32  ;;  %609 = vst [vmem:[#allocation2 + $0x18] sm:$0xf] %v608_v36  ;;  %v307_v55 = vrot.slane %v302_v21, 4  ;;  %vm3965_vm9 = vmand %vm218_vm1, %vm271_vm3  ;;  %v288_v57 = vor.u32 %v286_v38, %v285_v46  ;;  %v314_v58 = vor.u32 %v312_v48, %v311_v47  ;;  %v604_v61 = vld [vmem:[#allocation2 + $0x14] sm:$0x1]  ;;  %s3356_s8 = sshll.u32 %s5537_s13, 1 }
  0x2a   : > { %v1309_v25 = vsel %vm1306_vm2, %v1307_v14, %v1308_v15  ;;  %v1044_v26 = vrot.slane %v1042_v16, 1  ;;  %610 = vst.msk [vmem:[#allocation2 + $0x1c] sm:$0xf] %vm215_vm0, %v306_v42  ;;  %600 = vst [vmem:[#allocation2 + $0xc] sm:$0xf] %v599_v52  ;;  %v315_v59 = vrot.slane %v311_v47, 4  ;;  %s181_s11 = scalar_lea.vmem %s5529_s3, %s3356_s8 }
  0x2b   : > { %1355 = vrot.lane.b32.xlu1 %v1309_v25, %s3825_s18  ;;  %v319_v60 = vrot.slane %v317_v49, 7  ;;  %v290_v62 = vrot.slane %v285_v46, 4  ;;  %v612_v63 = vsel %vm3965_vm9, %v307_v55, %v611_v45  ;;  %v618_v0 = vld [vmem:[#allocation2 + $0x2c] sm:$0x1]  ;;  %v326_v1 = vshrl.u32 %v189_v50, 16 }
  0x2c   : > { %v1045_v51 = vsel %vm1033_vm6, %v1040_v41, %v1044_v26  ;;  %v329_v2 = vshll.u32 %v189_v50, 16  ;;  %v289_v3 = vsel %vm3946_vm8, %v281_v44, %v288_v57  ;;  %v615_v5 = vsel %vm3938_vm7, %v314_v58, %v614_v54  ;;  %613 = vst [vmem:[#allocation2 + $0x20] sm:$0x1] %v612_v63  ;;  %v621_v9 = vld [vmem:[#allocation2 + $0x30] sm:$0xf] }
  0x2d   : > { %1226 = vrot.lane.b32.xlu0 %v1045_v51, %s3826_s19  ;;  %v322_v4 = vor.u32 %v320_v53, %v319_v60  ;;  %v324_v6 = vrot.slane %v319_v60, 4  ;;  %601 = vst.msk [vmem:[#allocation2 + $0x10] sm:$0xf] %vm215_vm0, %v289_v3  ;;  %616 = vst [vmem:[#allocation2 + $0x24] sm:$0xf] %v615_v5  ;;  %v605_v7 = vsel %vm3965_vm9, %v290_v62, %v604_v61  ;;  %v3978_v8 = vrot.slane %v326_v1, 7 }
  0x2e   : > { %606 = vst [vmem:[#allocation2 + $0x14] sm:$0x1] %v605_v7  ;;  %vm2411_vm11 = vcmask 31744   ;;  %vm2444_vm12 = vcmask 64512   ;;  %vm2477_vm13 = vcmask 97280   ;;  %vm2510_vm14 = vcmask 130048  }
  0x2f   : > { %v323_v13 = vsel %vm3946_vm8, %v315_v59, %v322_v4  ;;  %v619_v15 = vsel %vm3965_vm9, %v324_v6, %v618_v0  ;;  %v331_v19 = vor.u32 %v329_v2, %v3978_v8  ;;  %vm2543_vm15 = vcmask 162816  }
  0x30   : > { %v778_v11 = vld [vmem:[#allocation2 + $0x18] sm:$0xf]  ;;  %617 = vst.msk [vmem:[#allocation2 + $0x28] sm:$0xf] %vm215_vm0, %v323_v13  ;;  %620 = vst [vmem:[#allocation2 + $0x2c] sm:$0x1] %v619_v15 }
  0x31   : > { %v825_v12 = vld [vmem:[#allocation2 + $0x18] sm:$0xe]  ;;  %v779_v16 = vld [vmem:[#allocation2 + $0x1c] sm:$0xf]  ;;  %v622_v24 = vsel %vm3938_vm7, %v331_v19, %v621_v9  ;;  %v776_v25 = vld [vmem:[#allocation2 + $0xc] sm:$0xf] }
  0x32   : > { %v841_v14 = vld [vmem:[#allocation2 + $0x18] sm:$0xf]  ;;  %v842_v17 = vld [vmem:[#allocation2 + $0x1c] sm:$0xf]  ;;  %v3406_v20 = vcombine.low %v778_v11, %v779_v16  ;;  %v3438_v23 = vcombine.low %v825_v12, %v779_v16  ;;  %v824_v26 = vld [vmem:[#allocation2 + $0xc] sm:$0xe] }
  0x33   : > { %v889_v18 = vld [vmem:[#allocation2 + $0x18] sm:$0xe]  ;;  %v3989_v28 = vcombine.low %v841_v14, %v842_v17  ;;  %623 = vst [vmem:[#allocation2 + $0x30] sm:$0xf] %v622_v24  ;;  %v761_v30 = vld [vmem:[#allocation2 + $0xc] sm:$0xe] }
  0x34   : > { %v3485_v21 = vcombine.low %v889_v18, %v842_v17  ;;  %1469 = vrot.lane.b32.xlu1 %v3406_v20, %s3827_s20  ;;  %v1562_v29 = vshll.u32 %v3406_v20, 16  ;;  %v714_v31 = vld [vmem:[#allocation2 + $0xc] sm:$0xf]  ;;  %v777_v32 = vld [vmem:[#allocation2 + $0x10] sm:$0xf]  ;;  %v1822_v40 = vrot.slane %v3438_v23, 1 }
  0x35   : > { %v843_v33 = vld [vmem:[#allocation2 + $0x24] sm:$0xf]  ;;  %v2062_v34 = vshll.u32 %v3989_v28, 16  ;;  %v3992_v36 = vcombine.low %v776_v25, %v777_v32  ;;  %v3437_v37 = vcombine.low %v824_v26, %v777_v32  ;;  %v3994_v38 = vld [vmem:[#allocation2 + $0x14] ss:$0 sps:$4 sm:$0x11]  }
  0x36   : > { %v2331_v35 = vrot.slane %v3485_v21, 1  ;;  %v3996_v39 = vld [vmem:[#allocation2 + $0x20] ss:$0 sps:$4 sm:$0x11]   ;;  %v715_v42 = vld [vmem:[#allocation2 + $0x10] sm:$0xf] }
  0x37   : > { %v3998_v41 = vld [vmem:[#allocation2 + $0x28] sm:$0xf]  ;;  %v716_v43 = vld [vmem:[#allocation2 + $0x18] sm:$0xf]  ;;  %v4000_v44 = vld [vmem:[#allocation2 + $0x1c] sm:$0xf]  ;;  %1467 = vrot.lane.b32.xlu0 %v3992_v36, %s3827_s20  ;;  %v3390_v51 = vcombine.low %v761_v30, %v715_v42  ;;  %v4007_v52 = vcombine.low %v714_v31, %v715_v42 }
  0x38   : > { %v1550_v45 = vshll.u32 %v3992_v36, 16  ;;  %v3454_v46 = vcombine.low %v843_v33, %v3998_v41  ;;  %v1819_v47 = vrot.slane %v3437_v37, 1  ;;  %v3682_v48 = vld [vmem:[#allocation2 + $0x14] ss:$0 sps:$4 sm:$0x11]   ;;  %v1560_v49 = vshrl.u32 %v3406_v20, 16 }
  0x39   : > { %v1820_v50 = vrot.slane %v3994_v38, 1  ;;  %v3686_v53 = vld [vmem:[#allocation2 + $0x20] ss:$0 sps:$4 sm:$0x11]   ;;  %v1311_v55 = vrot.slane %v3682_v48, 1  ;;  %v1564_v57 = vrot.slane %v1562_v29, 1  ;;  %v4018_v3 = vcombine.low %v716_v43, %v4000_v44 }
  0x3a   : > { %v2074_v54 = vshll.u32 %v3454_v46, 16  ;;  %1981 = vrot.lane.b32.xlu1 %v3454_v46, %s3828_s21  ;;  %v1054_v58 = vshll.u32 %v3682_v48, 16  ;;  %v1310_v59 = vrot.slane %v3390_v51, 1  ;;  %v1823_v60 = vrot.slane %v3686_v53, 1  ;;  %v890_v63 = vld [vmem:[#allocation2 + $0x24] sm:$0xe] }
  0x3b   : > { %v1567_v61 = vshll.u32 %v3686_v53, 16  ;;  %v4010_v62 = vld [vmem:[#allocation2 + $0x2c] ss:$0 sps:$4 sm:$0x11]   ;;  %1979 = vrot.lane.b32.xlu0 %v3989_v28, %s3828_s21  ;;  %v1821_v0 = vsel %vm1306_vm2, %v1819_v47, %v1820_v50  ;;  %v2332_v1 = vrot.slane %v3996_v39, 1  ;;  %v1049_v2 = vshll.u32 %v4007_v52, 16 }
  0x3c   : > { %v1312_v4 = vsel %vm1306_vm2, %v1310_v59, %v1311_v55  ;;  %v1565_v5 = vor.u32 %v1564_v57, %v1560_v49  ;;  %v1047_v6 = vshrl.u32 %v4007_v52, 16  ;;  %v1056_v7 = vrot.slane %v1054_v58, 1  ;;  %v4022_v9 = vld [vmem:[#allocation2 + $0x20] ss:$0 sps:$4 sm:$0x11]  }
  0x3d   : > { %v1051_v11 = vrot.slane %v1049_v2, 1  ;;  %v2072_v12 = vshrl.u32 %v3454_v46, 16  ;;  %v2076_v13 = vrot.slane %v2074_v54, 1  ;;  %v2079_v14 = vshll.u32 %v4010_v62, 16  ;;  %v4027_v15 = vld [vmem:[%s3927_s17 + $0x1c] sm:$0xf] }
  0x3e   : > { %1357 = vrot.lane.b32.xlu1 %v1312_v4, %s3825_s18  ;;  %v1824_v16 = vsel %vm1306_vm2, %v1822_v40, %v1823_v60  ;;  %v1569_v17 = vrot.slane %v1567_v61, 1  ;;  %v1548_v18 = vshrl.u32 %v3992_v36, 16  ;;  %v1552_v19 = vrot.slane %v1550_v45, 1  ;;  %v718_v20 = vld [vmem:[#allocation2 + $0x24] sm:$0xf] }
  0x3f   : > { %v3486_v21 = vcombine.low %v890_v63, %v3998_v41  ;;  %1867 = vrot.lane.b32.xlu0 %v1821_v0, %s3829_s22  ;;  %v2333_v23 = vsel %vm1306_vm2, %v2331_v35, %v2332_v1  ;;  %v1555_v24 = vshll.u32 %v3994_v38, 16  ;;  %v1061_v25 = vshll.u32 %v4018_v3, 16  ;;  %v719_v26 = vld [vmem:[#allocation2 + $0x28] sm:$0xf]  ;;  %v762_v33 = vld [vmem:[#allocation2 + $0x18] sm:$0xe] }
  0x40   : > { %v1052_v29 = vor.u32 %v1051_v11, %v1047_v6  ;;  %v2081_v30 = vrot.slane %v2079_v14, 1  ;;  %v1059_v31 = vshrl.u32 %v4018_v3, 16  ;;  %v1066_v32 = vshll.u32 %v4022_v9, 16  ;;  %v4042_v38 = vld [vmem:[#allocation2 + $0x2c] ss:$0 sps:$4 sm:$0x11]  }
  0x41   : > { %v2077_v36 = vor.u32 %v2076_v13, %v2072_v12  ;;  %v1063_v37 = vrot.slane %v1061_v25, 1  ;;  %v2060_v40 = vshrl.u32 %v3989_v28, 16  ;;  %v2064_v35 = vrot.slane %v2062_v34, 1  ;;  %v625_v1 = vld [vmem:[#allocation2 + $0x38] sm:$0x1] }
  0x42   : > { %1869 = vrot.lane.b32.xlu1 %v1824_v16, %s3829_s22  ;;  %v1570_v41 = vsel %vm1033_vm6, %v1565_v5, %v1569_v17  ;;  %v2067_v42 = vshll.u32 %v3996_v39, 16  ;;  %v4046_v43 = vcombine.low %v718_v20, %v719_v26  ;;  %v334_v45 = vshrl.u32 %v4027_v15, 16  ;;  %v763_v39 = vld [vmem:[#allocation2 + $0x24] sm:$0xe]  ;;  %v191_v2 = vld [vmem:[%s3927_s17 + $0x20] sm:$0xf] }
  0x43   : > { %2379 = vrot.lane.b32.xlu0 %v2333_v23, %s3830_s23  ;;  %v1553_v46 = vor.u32 %v1552_v19, %v1548_v18  ;;  %v1557_v47 = vrot.slane %v1555_v24, 1  ;;  %v3391_v48 = vcombine.low %v762_v33, %v4000_v44  ;;  %v337_v28 = vshll.u32 %v4027_v15, 16  ;;  %v780_v6 = vld [vmem:[#allocation2 + $0x24] sm:$0xf]  ;;  %v193_v19 = vld [vmem:[%s3927_s17 + $0x28] sm:$0xf] }
  0x44   : > { %v1057_v34 = vsel %vm1033_vm6, %v1052_v29, %v1056_v7  ;;  %v1064_v49 = vor.u32 %v1063_v37, %v1059_v31  ;;  %v1068_v50 = vrot.slane %v1066_v32, 1  ;;  %v1073_v51 = vshll.u32 %v4046_v43, 16  ;;  %v4064_v7 = vld [vmem:[#allocation2 + $0x28] sm:$0xf]  ;;  %v192_v11 = vld [vmem:[%s3927_s17 + $0x24] sm:$0xf] }
  0x45   : > { %v2082_v53 = vsel %vm1033_vm6, %v2077_v36, %v2081_v30  ;;  %v2065_v54 = vor.u32 %v2064_v35, %v2060_v40  ;;  %v1078_v55 = vshll.u32 %v4042_v38, 16  ;;  %v2334_v44 = vrot.slane %v3486_v21, 1  ;;  %v4069_v14 = vld [vmem:[#allocation2 + $0x2c] ss:$0 sps:$4 sm:$0x11]  }
  0x46   : > { %1741 = vrot.lane.b32.xlu1 %v1570_v41, %s3831_s24  ;;  %v2069_v57 = vrot.slane %v2067_v42, 1  ;;  %v1071_v58 = vshrl.u32 %v4046_v43, 16  ;;  %v1075_v59 = vrot.slane %v1073_v51, 1  ;;  %v2335_v60 = vrot.slane %v4010_v62, 1  ;;  %v194_v25 = vld [vmem:[%s3927_s17 + $0x2c] sm:$0xf] }
  0x47   : > { %1228 = vrot.lane.b32.xlu0 %v1057_v34, %s3826_s19  ;;  %v3392_v61 = vcombine.low %v763_v39, %v719_v26  ;;  %v332_v63 = vrot.slane %v3978_v8, 4  ;;  %v336_v0 = vrot.slane %v334_v45, 7  ;;  %v1558_v4 = vsel %vm1033_vm6, %v1553_v46, %v1557_v47  ;;  %v195_v32 = vld [vmem:[%s3927_s17 + $0x30] sm:$0xf]  ;;  %v628_v45 = vld [vmem:[#allocation2 + $0x3c] sm:$0xf] }
  0x48   : > { %v1069_v5 = vsel %vm1033_vm6, %v1064_v49, %v1068_v50  ;;  %v1080_v62 = vrot.slane %v1078_v55, 1  ;;  %v1317_v12 = vrot.slane %v4042_v38, 1  ;;  %v2070_v15 = vsel %vm1033_vm6, %v2065_v54, %v2069_v57  ;;  %v632_v51 = vld [vmem:[#allocation2 + $0x44] sm:$0x1]  ;;  %v635_v39 = vld [vmem:[#allocation2 + $0x48] sm:$0xf] }
  0x49   : > { %v339_v8 = vor.u32 %v337_v28, %v336_v0  ;;  %v341_v13 = vrot.slane %v336_v0, 4  ;;  %v1076_v16 = vor.u32 %v1075_v59, %v1071_v58  ;;  %v2336_v17 = vsel %vm1306_vm2, %v2334_v44, %v2335_v60  ;;  %v827_v58 = vld [vmem:[#allocation2 + $0x30] sm:$0xe]  ;;  %v826_v59 = vld [vmem:[#allocation2 + $0x24] sm:$0xe] }
  0x4a   : > { %2253 = vrot.lane.b32.xlu1 %v2082_v53, %s3832_s25  ;;  %v1313_v18 = vrot.slane %v3391_v48, 1  ;;  %v1316_v20 = vrot.slane %v3392_v61, 1  ;;  %v1314_v21 = vrot.slane %v4022_v9, 1  ;;  %v4083_v26 = vcombine.low %v780_v6, %v4064_v7  ;;  %v782_v53 = vld [vmem:[#allocation2 + $0x30] sm:$0xf] }
  0x4b   : > { %1739 = vrot.lane.b32.xlu0 %v1558_v4, %s3831_s24  ;;  %v340_v23 = vsel %vm3946_vm8, %v332_v63, %v339_v8  ;;  %v626_v24 = vsel %vm3965_vm9, %v341_v13, %v625_v1  ;;  %v343_v29 = vshrl.u32 %v191_v2, 16  ;;  %v346_v30 = vshll.u32 %v191_v2, 16  ;;  %v845_v4 = vld [vmem:[#allocation2 + $0x30] sm:$0xf] }
  0x4c   : > { %624 = vst.msk [vmem:[#allocation2 + $0x34] sm:$0xf] %vm215_vm0, %v340_v23  ;;  %627 = vst [vmem:[#allocation2 + $0x38] sm:$0x1] %v626_v24  ;;  %v351_v31 = vshrl.u32 %v192_v11, 16  ;;  %v1579_v9 = vshll.u32 %v4069_v14, 16  ;;  %v1081_v40 = vsel %vm1033_vm6, %v1076_v16, %v1080_v62  ;;  %v1318_v42 = vsel %vm1306_vm2, %v1316_v20, %v1317_v12 }
  0x4d   : > { %v354_v33 = vshll.u32 %v192_v11, 16  ;;  %v360_v36 = vshrl.u32 %v193_v19, 16  ;;  %v363_v37 = vshll.u32 %v193_v19, 16  ;;  %v345_v35 = vrot.slane %v343_v29, 7 }
  0x4e   : > { %1230 = vrot.lane.b32.xlu1 %v1069_v5, %s3826_s19  ;;  %v353_v38 = vrot.slane %v351_v31, 7  ;;  %v368_v41 = vshrl.u32 %v194_v25, 16  ;;  %v371_v47 = vshll.u32 %v194_v25, 16  ;;  %v377_v48 = vshrl.u32 %v195_v32, 16  ;;  %v639_v31 = vld [vmem:[#allocation2 + $0x50] sm:$0x1] }
  0x4f   : > { %2251 = vrot.lane.b32.xlu0 %v2070_v15, %s3832_s25  ;;  %v362_v46 = vrot.slane %v360_v36, 7  ;;  %v1574_v28 = vshll.u32 %v4083_v26, 16  ;;  %v348_v34 = vor.u32 %v346_v30, %v345_v35  ;;  %v349_v49 = vrot.slane %v345_v35, 4  ;;  %v720_v15 = vld [vmem:[#allocation2 + $0x30] sm:$0xf] }
  0x50   : > { %v356_v50 = vor.u32 %v354_v33, %v353_v38  ;;  %v358_v54 = vrot.slane %v353_v38, 4  ;;  %v370_v57 = vrot.slane %v368_v41, 7  ;;  %v4097_v63 = vrot.slane %v377_v48, 7 }
  0x51   : > { %v365_v55 = vor.u32 %v363_v37, %v362_v46  ;;  %v366_v44 = vrot.slane %v362_v46, 4  ;;  %v629_v61 = vsel %vm3938_vm7, %v348_v34, %v628_v45  ;;  %v380_v0 = vshll.u32 %v195_v32, 16  ;;  %v642_v32 = vld [vmem:[#allocation2 + $0x54] sm:$0xf] }
  0x52   : > { %1232 = vrot.lane.b32.xlu1 %v1081_v40, %s3826_s19  ;;  %v357_v60 = vsel %vm3946_vm8, %v349_v49, %v356_v50  ;;  %v1572_v2 = vshrl.u32 %v4083_v26, 16  ;;  %630 = vst [vmem:[#allocation2 + $0x3c] sm:$0xf] %v629_v61  ;;  %v633_v5 = vsel %vm3965_vm9, %v358_v54, %v632_v51  ;;  %v373_v6 = vor.u32 %v371_v47, %v370_v57 }
  0x53   : > { %2381 = vrot.lane.b32.xlu0 %v2336_v17, %s3830_s23  ;;  %v783_v1 = vld [vmem:[#allocation2 + $0x34] sm:$0xf]  ;;  %631 = vst.msk [vmem:[#allocation2 + $0x40] sm:$0xf] %vm215_vm0, %v357_v60  ;;  %v636_v11 = vsel %vm3938_vm7, %v365_v55, %v635_v39  ;;  %v1315_v62 = vsel %vm1306_vm2, %v1313_v18, %v1314_v21  ;;  %v1576_v13 = vrot.slane %v1574_v28, 1  ;;  %v375_v23 = vrot.slane %v370_v57, 4 }
  0x54   : > { %v3408_v12 = vcombine.low %v782_v53, %v783_v1  ;;  %v3698_v8 = vld [vmem:[#allocation2 + $0x38] ss:$0 sps:$4 sm:$0x11]   ;;  %634 = vst [vmem:[#allocation2 + $0x44] sm:$0x1] %v633_v5  ;;  %v3440_v16 = vcombine.low %v827_v58, %v783_v1  ;;  %v374_v20 = vsel %vm3946_vm8, %v366_v44, %v373_v6  ;;  %v382_v21 = vor.u32 %v380_v0, %v4097_v63 }
  0x55   : > { %637 = vst [vmem:[#allocation2 + $0x48] sm:$0xf] %v636_v11  ;;  %v4108_v17 = vld [vmem:[#allocation2 + $0x34] sm:$0xf]  ;;  %v1591_v18 = vshll.u32 %v3698_v8, 16  ;;  %v3439_v29 = vcombine.low %v826_v59, %v4064_v7  ;;  %v1581_v30 = vrot.slane %v1579_v9, 1  ;;  %v1577_v37 = vor.u32 %v1576_v13, %v1572_v2 }
  0x56   : > { %1361 = vrot.lane.b32.xlu1 %v1318_v42, %s3825_s18  ;;  %v4110_v19 = vld [vmem:[#allocation2 + $0x34] sm:$0xf]  ;;  %v1586_v24 = vshll.u32 %v3408_v12, 16  ;;  %v1584_v25 = vshrl.u32 %v3408_v12, 16  ;;  %638 = vst.msk [vmem:[#allocation2 + $0x4c] sm:$0xf] %vm215_vm0, %v374_v20  ;;  %v3455_v40 = vcombine.low %v845_v4, %v4108_v17  ;;  %v640_v9 = vsel %vm3965_vm9, %v375_v23, %v639_v31 }
  0x57   : > { %1359 = vrot.lane.b32.xlu0 %v1315_v62, %s3825_s18  ;;  %v1593_v36 = vrot.slane %v1591_v18, 1  ;;  %v1828_v35 = vrot.slane %v3440_v16, 1  ;;  %v4121_v38 = vcombine.low %v720_v15, %v4110_v19  ;;  %v1829_v42 = vrot.slane %v3698_v8, 1  ;;  %v4125_v7 = vld [vmem:[#allocation2 + $0x38] ss:$0 sps:$4 sm:$0x11]  }
  0x58   : > { %v1588_v33 = vrot.slane %v1586_v24, 1  ;;  %v643_v47 = vsel %vm3938_vm7, %v382_v21, %v642_v32  ;;  %v1825_v48 = vrot.slane %v3439_v29, 1  ;;  %v4136_v49 = vld [vmem:[#allocation2 + $0x38] ss:$0 sps:$4 sm:$0x11]   ;;  %v1582_v51 = vsel %vm1033_vm6, %v1577_v37, %v1581_v30 }
  0x59   : > { %v847_v45 = vld [vmem:[#allocation2 + $0x3c] sm:$0xf]  ;;  %641 = vst [vmem:[#allocation2 + $0x50] sm:$0x1] %v640_v9  ;;  %644 = vst [vmem:[#allocation2 + $0x54] sm:$0xf] %v643_v47  ;;  %v1830_v57 = vsel %vm1306_vm2, %v1828_v35, %v1829_v42 }
  0x5a   : > { %1473 = vrot.lane.b32.xlu1 %v3408_v12, %s3827_s20  ;;  %v1589_v41 = vor.u32 %v1588_v33, %v1584_v25  ;;  %v4123_v46 = vld [vmem:[#allocation2 + $0x40] sm:$0xf]  ;;  %v1826_v39 = vrot.slane %v4069_v14, 1  ;;  %v2086_v53 = vshll.u32 %v3455_v40, 16  ;;  %v722_v54 = vld [vmem:[#allocation2 + $0x3c] sm:$0xf] }
  0x5b   : > { %1471 = vrot.lane.b32.xlu0 %v4083_v26, %s3827_s20  ;;  %v3456_v28 = vcombine.low %v847_v45, %v4123_v46  ;;  %v4134_v34 = vld [vmem:[#allocation2 + $0x44] ss:$0 sps:$4 sm:$0x11]   ;;  %v4141_v55 = vld [vmem:[#allocation2 + $0x40] sm:$0xf]  ;;  %v1085_v44 = vshll.u32 %v4121_v38, 16 }
  0x5c   : > { %v1594_v50 = vsel %vm1033_vm6, %v1589_v41, %v1593_v36  ;;  %v2103_v59 = vshll.u32 %v4134_v34, 16  ;;  %v4148_v60 = vcombine.low %v722_v54, %v4141_v55  ;;  %v1827_v61 = vsel %vm1306_vm2, %v1825_v48, %v1826_v39  ;;  %v891_v0 = vld [vmem:[#allocation2 + $0x30] sm:$0xe]  ;;  %v196_v62 = vld [vmem:[%s3927_s17 + $0x34] sm:$0xf] }
  0x5d   : > { %v2098_v26 = vshll.u32 %v3456_v28, 16  ;;  %v2096_v58 = vshrl.u32 %v3456_v28, 16  ;;  %v2084_v1 = vshrl.u32 %v3455_v40, 16  ;;  %v2088_v2 = vrot.slane %v2086_v53, 1  ;;  %v892_v16 = vld [vmem:[#allocation2 + $0x3c] sm:$0xe] }
  0x5e   : > { %1745 = vrot.lane.b32.xlu1 %v1594_v50, %s3831_s24  ;;  %v2091_v4 = vshll.u32 %v4125_v7, 16  ;;  %v1083_v5 = vshrl.u32 %v4121_v38, 16  ;;  %v1087_v6 = vrot.slane %v1085_v44, 1  ;;  %v1090_v11 = vshll.u32 %v4136_v49, 16  ;;  %v765_v33 = vld [vmem:[#allocation2 + $0x3c] sm:$0xe] }
  0x5f   : > { %1743 = vrot.lane.b32.xlu0 %v1582_v51, %s3831_s24  ;;  %v2100_v14 = vrot.slane %v2098_v26, 1  ;;  %v2105_v8 = vrot.slane %v2103_v59, 1  ;;  %v4157_v13 = vld [vmem:[#allocation2 + $0x44] ss:$0 sps:$4 sm:$0x11]   ;;  %v1097_v15 = vshll.u32 %v4148_v60, 16  ;;  %v3487_v20 = vcombine.low %v891_v0, %v4108_v17 }
  0x60   : > { %v2089_v23 = vor.u32 %v2088_v2, %v2084_v1  ;;  %v2093_v24 = vrot.slane %v2091_v4, 1  ;;  %v1088_v25 = vor.u32 %v1087_v6, %v1083_v5  ;;  %v1092_v18 = vrot.slane %v1090_v11, 1  ;;  %v786_v17 = vld [vmem:[#allocation2 + $0x48] sm:$0xf]  ;;  %v4168_v37 = vld [vmem:[#allocation2 + $0x4c] sm:$0xf] }
  0x61   : > { %v2101_v12 = vor.u32 %v2100_v14, %v2096_v58  ;;  %v385_v21 = vshrl.u32 %v196_v62, 16  ;;  %v1095_v30 = vshrl.u32 %v4148_v60, 16  ;;  %v1099_v31 = vrot.slane %v1097_v15, 1  ;;  %v764_v45 = vld [vmem:[#allocation2 + $0x30] sm:$0xe] }
  0x62   : > { %1873 = vrot.lane.b32.xlu1 %v1830_v57, %s3829_s22  ;;  %v1102_v32 = vshll.u32 %v4157_v13, 16  ;;  %v3488_v36 = vcombine.low %v892_v16, %v4123_v46  ;;  %v2094_v35 = vsel %vm1033_vm6, %v2089_v23, %v2093_v24  ;;  %v2337_v41 = vrot.slane %v3487_v20, 1  ;;  %v784_v9 = vld [vmem:[#allocation2 + $0x3c] sm:$0xf]  ;;  %v4174_v48 = vld [vmem:[#allocation2 + $0x40] sm:$0xf] }
  0x63   : > { %1871 = vrot.lane.b32.xlu0 %v1827_v61, %s3829_s22  ;;  %v2106_v29 = vsel %vm1033_vm6, %v2101_v12, %v2105_v8  ;;  %v2338_v42 = vrot.slane %v4125_v7, 1  ;;  %v3394_v47 = vcombine.low %v765_v33, %v4141_v55  ;;  %v383_v46 = vrot.slane %v4097_v63, 4  ;;  %v646_v7 = vld [vmem:[#allocation2 + $0x5c] sm:$0x1]  ;;  %v197_v57 = vld [vmem:[%s3927_s17 + $0x38] sm:$0xf] }
  0x64   : > { %v1093_v50 = vsel %vm1033_vm6, %v1088_v25, %v1092_v18  ;;  %v1100_v51 = vor.u32 %v1099_v31, %v1095_v30  ;;  %v1104_v39 = vrot.slane %v1102_v32, 1  ;;  %v4179_v53 = vcombine.low %v786_v17, %v4168_v37  ;;  %v4189_v14 = vld [vmem:[#allocation2 + $0x50] ss:$0 sps:$4 sm:$0x11]   ;;  %v649_v24 = vld [vmem:[#allocation2 + $0x60] sm:$0xf] }
  0x65   : > { %v2340_v54 = vrot.slane %v3488_v36, 1  ;;  %v3393_v26 = vcombine.low %v764_v45, %v4110_v19  ;;  %v2339_v63 = vsel %vm1306_vm2, %v2337_v41, %v2338_v42  ;;  %v2341_v58 = vrot.slane %v4134_v34, 1  ;;  %v829_v34 = vld [vmem:[#allocation2 + $0x48] sm:$0xe]  ;;  %v828_v18 = vld [vmem:[#allocation2 + $0x3c] sm:$0xe] }
  0x66   : > { %1985 = vrot.lane.b32.xlu1 %v3456_v28, %s3828_s21  ;;  %v388_v28 = vshll.u32 %v196_v62, 16  ;;  %v4187_v59 = vcombine.low %v784_v9, %v4174_v48  ;;  %v1323_v61 = vrot.slane %v4157_v13, 1  ;;  %v1105_v1 = vsel %vm1033_vm6, %v1100_v51, %v1104_v39  ;;  %v198_v62 = vld [vmem:[%s3927_s17 + $0x3c] sm:$0xf]  ;;  %v851_v32 = vld [vmem:[#allocation2 + $0x54] sm:$0xf] }
  0x67   : > { %1983 = vrot.lane.b32.xlu0 %v3455_v40, %s3828_s21  ;;  %v387_v40 = vrot.slane %v385_v21, 7  ;;  %v1322_v2 = vrot.slane %v3394_v47, 1  ;;  %v1610_v4 = vshll.u32 %v4179_v53, 16  ;;  %v394_v5 = vshrl.u32 %v197_v57, 16  ;;  %v849_v41 = vld [vmem:[#allocation2 + $0x48] sm:$0xf] }
  0x68   : > { %v1319_v6 = vrot.slane %v3393_v26, 1  ;;  %v1320_v11 = vrot.slane %v4136_v49, 1  ;;  %v2342_v12 = vsel %vm1306_vm2, %v2340_v54, %v2341_v58  ;;  %v1598_v8 = vshll.u32 %v4187_v59, 16  ;;  %v4206_v15 = vld [vmem:[#allocation2 + $0x44] ss:$0 sps:$4 sm:$0x11]  }
  0x69   : > { %v390_v55 = vor.u32 %v388_v28, %v387_v40  ;;  %v392_v44 = vrot.slane %v387_v40, 4  ;;  %v1615_v13 = vshll.u32 %v4189_v14, 16  ;;  %v3442_v16 = vcombine.low %v829_v34, %v4168_v37  ;;  %v4220_v47 = vld [vmem:[#allocation2 + $0x4c] sm:$0xf]  ;;  %v653_v34 = vld [vmem:[#allocation2 + $0x68] sm:$0x1] }
  0x6a   : > { %2257 = vrot.lane.b32.xlu1 %v2106_v29, %s3832_s25  ;;  %v396_v20 = vrot.slane %v394_v5, 7  ;;  %v397_v23 = vshll.u32 %v197_v57, 16  ;;  %v1324_v25 = vsel %vm1306_vm2, %v1322_v2, %v1323_v61  ;;  %v1608_v49 = vshrl.u32 %v4179_v53, 16  ;;  %v4227_v51 = vld [vmem:[#allocation2 + $0x4c] sm:$0xf] }
  0x6b   : > { %2255 = vrot.lane.b32.xlu0 %v2094_v35, %s3832_s25  ;;  %v391_v19 = vsel %vm3946_vm8, %v383_v46, %v390_v55  ;;  %v647_v0 = vsel %vm3965_vm9, %v392_v44, %v646_v7  ;;  %v1612_v21 = vrot.slane %v1610_v4, 1  ;;  %v402_v29 = vshrl.u32 %v198_v62, 16  ;;  %v199_v57 = vld [vmem:[%s3927_s17 + $0x40] sm:$0xf] }
  0x6c   : > { %645 = vst.msk [vmem:[#allocation2 + $0x58] sm:$0xf] %vm215_vm0, %v391_v19  ;;  %648 = vst [vmem:[#allocation2 + $0x5c] sm:$0x1] %v647_v0  ;;  %v1321_v30 = vsel %vm1306_vm2, %v1319_v6, %v1320_v11  ;;  %v1596_v31 = vshrl.u32 %v4187_v59, 16  ;;  %v399_v33 = vor.u32 %v397_v23, %v396_v20  ;;  %v405_v36 = vshll.u32 %v198_v62, 16 }
  0x6d   : > { %v1617_v17 = vrot.slane %v1615_v13, 1  ;;  %v1600_v37 = vrot.slane %v1598_v8, 1  ;;  %v1603_v35 = vshll.u32 %v4206_v15, 16  ;;  %v404_v42 = vrot.slane %v402_v29, 7  ;;  %v200_v13 = vld [vmem:[%s3927_s17 + $0x44] sm:$0xf] }
  0x6e   : > { %1234 = vrot.lane.b32.xlu1 %v1093_v50, %s3826_s19  ;;  %v3441_v45 = vcombine.low %v828_v18, %v4174_v48  ;;  %v650_v46 = vsel %vm3938_vm7, %v399_v33, %v649_v24  ;;  %v1613_v40 = vor.u32 %v1612_v21, %v1608_v49  ;;  %v724_v50 = vld [vmem:[#allocation2 + $0x48] sm:$0xf]  ;;  %v1834_v39 = vrot.slane %v3442_v16, 1  ;;  %v4238_v61 = vld [vmem:[#allocation2 + $0x50] ss:$0 sps:$4 sm:$0x11]  }
  0x6f   : > { %2383 = vrot.lane.b32.xlu0 %v2339_v63, %s3830_s23  ;;  %651 = vst [vmem:[#allocation2 + $0x60] sm:$0xf] %v650_v46  ;;  %v400_v48 = vrot.slane %v396_v20, 4  ;;  %v407_v7 = vor.u32 %v405_v36, %v404_v42  ;;  %v1601_v54 = vor.u32 %v1600_v37, %v1596_v31  ;;  %v1605_v26 = vrot.slane %v1603_v35, 1  ;;  %v660_v35 = vld [vmem:[#allocation2 + $0x74] sm:$0x1] }
  0x70   : > { %v1835_v55 = vrot.slane %v4189_v14, 1  ;;  %v4232_v44 = vcombine.low %v849_v41, %v4220_v47  ;;  %v1831_v63 = vrot.slane %v3441_v45, 1  ;;  %v1832_v58 = vrot.slane %v4206_v15, 1  ;;  %v4256_v8 = vld [vmem:[#allocation2 + $0x50] ss:$0 sps:$4 sm:$0x11]  }
  0x71   : > { %v4241_v19 = vcombine.low %v724_v50, %v4227_v51  ;;  %v409_v0 = vrot.slane %v404_v42, 4  ;;  %v408_v5 = vsel %vm3946_vm8, %v400_v48, %v407_v7  ;;  %v411_v6 = vshrl.u32 %v199_v57, 16  ;;  %v4273_v49 = vld [vmem:[%s5527_s1 + $0x10] ss:$0 sps:$4 sm:$0x33]  }
  0x72   : > { %1236 = vrot.lane.b32.xlu1 %v1105_v1, %s3826_s19  ;;  %v1618_v1 = vsel %vm1033_vm6, %v1613_v40, %v1617_v17  ;;  %v1606_v11 = vsel %vm1033_vm6, %v1601_v54, %v1605_v26  ;;  %v1836_v62 = vsel %vm1306_vm2, %v1834_v39, %v1835_v55  ;;  %652 = vst.msk [vmem:[#allocation2 + $0x64] sm:$0xf] %vm215_vm0, %v408_v5  ;;  %v414_v20 = vshll.u32 %v199_v57, 16  ;;  %v893_v41 = vld [vmem:[#allocation2 + $0x48] sm:$0xe] }
  0x73   : > { %2385 = vrot.lane.b32.xlu0 %v2342_v12, %s3830_s23  ;;  %v4218_v9 = vld [vmem:[#allocation2 + $0x58] sm:$0xf]  ;;  %v4245_v2 = vld [vmem:[#allocation2 + $0x5c] ss:$0 sps:$4 sm:$0x11]   ;;  %v2110_v12 = vshll.u32 %v4232_v44, 16  ;;  %v654_v16 = vsel %vm3965_vm9, %v409_v0, %v653_v34  ;;  %3651 = vmatprep.subr.msk.bf16.mxu0 %vm2728_vm10, %v4273_v49 }
  0x74   : > { %v4225_v28 = vcombine.low %v851_v32, %v4218_v9  ;;  %v4249_v4 = vld [vmem:[#allocation2 + $0x58] sm:$0xf]  ;;  %v1109_v15 = vshll.u32 %v4241_v19, 16  ;;  %655 = vst [vmem:[#allocation2 + $0x68] sm:$0x1] %v654_v16  ;;  %v2108_v21 = vshrl.u32 %v4232_v44, 16  ;;  %3652 = vmatprep.subr.msk.bf16.mxu1 %vm2728_vm10, %v4273_v49 }
  0x75   : > { %v2115_v29 = vshll.u32 %v4238_v61, 16  ;;  %v419_v31 = vshrl.u32 %v200_v13, 16  ;;  %v656_v32 = vld [vmem:[#allocation2 + $0x6c] sm:$0xf]  ;;  %v2112_v33 = vrot.slane %v2110_v12, 1  ;;  %v1107_v36 = vshrl.u32 %v4241_v19, 16 }
  0x76   : > { %1365 = vrot.lane.b32.xlu1 %v1324_v25, %s3825_s18  ;;  %v2122_v14 = vshll.u32 %v4225_v28, 16  ;;  %v2120_v23 = vshrl.u32 %v4225_v28, 16  ;;  %v2127_v25 = vshll.u32 %v4245_v2, 16  ;;  %v1114_v17 = vshll.u32 %v4256_v8, 16  ;;  %v894_v54 = vld [vmem:[#allocation2 + $0x54] sm:$0xe] }
  0x77   : > { %1363 = vrot.lane.b32.xlu0 %v1321_v30, %s3825_s18  ;;  %v413_v30 = vrot.slane %v411_v6, 7  ;;  %v422_v37 = vshll.u32 %v200_v13, 16  ;;  %v1111_v42 = vrot.slane %v1109_v15, 1  ;;  %v421_v40 = vrot.slane %v419_v31, 7  ;;  %v789_v5 = vld [vmem:[#allocation2 + $0x58] sm:$0xf] }
  0x78   : > { %v2124_v24 = vrot.slane %v2122_v14, 1  ;;  %v2129_v39 = vrot.slane %v2127_v25, 1  ;;  %v4281_v48 = vld [vmem:[#allocation2 + $0x5c] ss:$0 sps:$4 sm:$0x11]   ;;  %v2117_v0 = vrot.slane %v2115_v29, 1 }
  0x79   : > { %v416_v45 = vor.u32 %v414_v20, %v413_v30  ;;  %v417_v46 = vrot.slane %v413_v30, 4  ;;  %v424_v26 = vor.u32 %v422_v37, %v421_v40  ;;  %v426_v57 = vrot.slane %v421_v40, 4  ;;  %v788_v14 = vld [vmem:[#allocation2 + $0x54] sm:$0xf]  ;;  %v4305_v15 = vld [vmem:[#allocation2 + $0x64] sm:$0xf] }
  0x7a   : > { %1477 = vrot.lane.b32.xlu1 %v4179_v53, %s3827_s20  ;;  %v726_v53 = vld [vmem:[#allocation2 + $0x54] sm:$0xf]  ;;  %v2125_v50 = vor.u32 %v2124_v24, %v2120_v23  ;;  %v1112_v34 = vor.u32 %v1111_v42, %v1107_v36  ;;  %v1126_v13 = vshll.u32 %v4281_v48, 16  ;;  %v201_v16 = vld [vmem:[%s3927_s17 + $0x48] sm:$0xf]  ;;  %v2344_v24 = vrot.slane %v4238_v61, 1 }
  0x7b   : > { %1475 = vrot.lane.b32.xlu0 %v4187_v59, %s3827_s20  ;;  %v1833_v59 = vsel %vm1306_vm2, %v1831_v63, %v1832_v58  ;;  %v4268_v18 = vcombine.low %v726_v53, %v4249_v4  ;;  %v657_v55 = vsel %vm3938_vm7, %v416_v45, %v656_v32  ;;  %v3489_v63 = vcombine.low %v893_v41, %v4220_v47  ;;  %v766_v25 = vld [vmem:[#allocation2 + $0x48] sm:$0xe]  ;;  %v830_v36 = vld [vmem:[#allocation2 + $0x54] sm:$0xe]  ;;  %v202_v45 = vld [vmem:[%s3927_s17 + $0x4c] sm:$0xf] }
  0x7c   : > { %v2113_v58 = vor.u32 %v2112_v33, %v2108_v21  ;;  %658 = vst [vmem:[#allocation2 + $0x6c] sm:$0xf] %v657_v55  ;;  %v1116_v53 = vrot.slane %v1114_v17, 1  ;;  %v425_v6 = vsel %vm3946_vm8, %v417_v46, %v424_v26  ;;  %v661_v47 = vsel %vm3965_vm9, %v426_v57, %v660_v35  ;;  %v4323_v35 = vld [vmem:[#allocation2 + $0x5c] ss:$0 sps:$4 sm:$0x11]  }
  0x7d   : > { %v1121_v7 = vshll.u32 %v4268_v18, 16  ;;  %659 = vst.msk [vmem:[#allocation2 + $0x70] sm:$0xf] %vm215_vm0, %v425_v6  ;;  %662 = vst [vmem:[#allocation2 + $0x74] sm:$0x1] %v661_v47  ;;  %v2343_v23 = vrot.slane %v3489_v63, 1  ;;  %v4310_v21 = vcombine.low %v788_v14, %v789_v5  ;;  %v3395_v33 = vcombine.low %v766_v25, %v4227_v51 }
  0x7e   : > { %1749 = vrot.lane.b32.xlu1 %v1618_v1, %s3831_s24  ;;  %v767_v1 = vld [vmem:[#allocation2 + $0x54] sm:$0xe]  ;;  %v2118_v20 = vsel %vm1033_vm6, %v2113_v58, %v2117_v0  ;;  %v1128_v30 = vrot.slane %v1126_v13, 1  ;;  %v2347_v61 = vrot.slane %v4245_v2, 1  ;;  %v428_v17 = vshrl.u32 %v201_v16, 16 }
  0x7f   : > { %1747 = vrot.lane.b32.xlu0 %v1606_v11, %s3831_s24  ;;  %v2130_v11 = vsel %vm1033_vm6, %v2125_v50, %v2129_v39  ;;  %v1123_v12 = vrot.slane %v1121_v7, 1  ;;  %v3396_v29 = vcombine.low %v767_v1, %v4249_v4  ;;  %v2345_v37 = vsel %vm1306_vm2, %v2343_v23, %v2344_v24  ;;  %v4331_v50 = vld [vmem:[#allocation2 + $0x68] ss:$0 sps:$4 sm:$0x11]   ;;  %v663_v58 = vld [vmem:[#allocation2 + $0x78] sm:$0xf] }
  0x80   : > { %v1622_v4 = vshll.u32 %v4310_v21, 16  ;;  %v1329_v42 = vrot.slane %v4281_v48, 1  ;;  %v1326_v2 = vrot.slane %v4256_v8, 1  ;;  %v3443_v40 = vcombine.low %v830_v36, %v789_v5  ;;  %v831_v0 = vld [vmem:[#allocation2 + $0x60] sm:$0xe] }
  0x81   : > { %v1328_v41 = vrot.slane %v3396_v29, 1  ;;  %v1325_v7 = vrot.slane %v3395_v33, 1  ;;  %v431_v26 = vshll.u32 %v201_v16, 16  ;;  %v1620_v55 = vshrl.u32 %v4310_v21, 16  ;;  %v853_v14 = vld [vmem:[#allocation2 + $0x60] sm:$0xf] }
  0x82   : > { %1877 = vrot.lane.b32.xlu1 %v1836_v62, %s3829_s22  ;;  %v1119_v62 = vshrl.u32 %v4268_v18, 16  ;;  %v1624_v48 = vrot.slane %v1622_v4, 1  ;;  %v1627_v57 = vshll.u32 %v4323_v35, 16  ;;  %v436_v63 = vshrl.u32 %v202_v45, 16  ;;  %v4342_v47 = vld [vmem:[#allocation2 + $0x64] sm:$0xf] }
  0x83   : > { %1875 = vrot.lane.b32.xlu0 %v1833_v59, %s3829_s22  ;;  %v790_v59 = vld [vmem:[#allocation2 + $0x60] sm:$0xf]  ;;  %v1330_v8 = vsel %vm1306_vm2, %v1328_v41, %v1329_v42  ;;  %v1838_v1 = vrot.slane %v4323_v35, 1  ;;  %v1639_v5 = vshll.u32 %v4331_v50, 16  ;;  %v1837_v6 = vrot.slane %v3443_v40, 1 }
  0x84   : > { %v4316_v31 = vcombine.low %v790_v59, %v4305_v15  ;;  %v4349_v13 = vld [vmem:[#allocation2 + $0x70] sm:$0xf]  ;;  %v3444_v59 = vcombine.low %v831_v0, %v4305_v15  ;;  %v1625_v16 = vor.u32 %v1624_v48, %v1620_v55  ;;  %v728_v23 = vld [vmem:[#allocation2 + $0x60] sm:$0xf]  ;;  %v4352_v24 = vld [vmem:[#allocation2 + $0x64] sm:$0xf]  ;;  %v4356_v29 = vcombine.low %v853_v14, %v4342_v47 }
  0x85   : > { %v438_v25 = vrot.slane %v436_v63, 7  ;;  %v1641_v15 = vrot.slane %v1639_v5, 1  ;;  %v2730_v33 = vsel %vm2728_vm10, %v4273_v49, 0  ;;  %v4367_v36 = vcombine.low %v728_v23, %v4352_v24  ;;  %v203_v4 = vld [vmem:[%s3927_s17 + $0x50] sm:$0xf] }
  0x86   : > { %1989 = vrot.lane.b32.xlu1 %v4225_v28, %s3828_s21  ;;  %v3490_v28 = vcombine.low %v894_v54, %v4218_v9  ;;  %v1117_v9 = vsel %vm1033_vm6, %v1112_v34, %v1116_v53  ;;  %v1634_v51 = vshll.u32 %v4316_v31, 16  ;;  %v430_v54 = vrot.slane %v428_v17, 7  ;;  %3608 = vmatpush3.bf16.msra.mxu0 %v2730_v33  ;;  %v204_v49 = vld [vmem:[%s3927_s17 + $0x54] sm:$0xf]  ;;  %v4391_v55 = vld [vmem:[#allocation2 + $0x70] sm:$0xf] }
  0x87   : > { %1987 = vrot.lane.b32.xlu0 %v4232_v44, %s3828_s21  ;;  %v1124_v44 = vor.u32 %v1123_v12, %v1119_v62  ;;  %v1632_v34 = vshrl.u32 %v4316_v31, 16  ;;  %v1327_v62 = vsel %vm1306_vm2, %v1325_v7, %v1326_v2  ;;  %v855_v12 = vld [vmem:[#allocation2 + $0x6c] sm:$0xf]  ;;  %v1840_v35 = vrot.slane %v3444_v59, 1  ;;  %3648 = vmatpush3.bf16.msra.mxu1 %v2730_v33  ;;  %v670_v59 = vld [vmem:[#allocation2 + $0x84] sm:$0xf] }
  0x88   : > { %v2346_v32 = vrot.slane %v3490_v28, 1  ;;  %v1636_v53 = vrot.slane %v1634_v51, 1  ;;  %v433_v28 = vor.u32 %v431_v26, %v430_v54  ;;  %v1841_v41 = vrot.slane %v4331_v50, 1  ;;  %v4381_v51 = vld [vmem:[#allocation2 + $0x74] ss:$0 sps:$4 sm:$0x11]  }
  0x89   : > { %v1129_v46 = vsel %vm1033_vm6, %v1124_v44, %v1128_v30  ;;  %v439_v44 = vshll.u32 %v202_v45, 16  ;;  %v443_v42 = vrot.slane %v438_v25, 4  ;;  %v3756_v45 = vld [vmem:[%s5527_s1] sm:$0xff]   ;;  %v4379_v2 = vsel %vm1306_vm2, %v1837_v6, %v1838_v1  ;;  %v205_v50 = vld [vmem:[%s3927_s17 + $0x58] sm:$0xf] }
  0x8a   : > { %2261 = vrot.lane.b32.xlu1 %v2130_v11, %s3832_s25  ;;  %v2348_v39 = vsel %vm1306_vm2, %v2346_v32, %v2347_v61  ;;  %v3753_v11 = vld [vmem:[%s5527_s1 + $0x8] sm:$0xff]   ;;  %v664_v30 = vsel %vm3938_vm7, %v433_v28, %v663_v58  ;;  %v1637_v32 = vor.u32 %v1636_v53, %v1632_v34  ;;  %v4361_v61 = vcombine.low %v855_v12, %v4349_v13 }
  0x8b   : > { %2259 = vrot.lane.b32.xlu0 %v2118_v20, %s3832_s25  ;;  %v1629_v20 = vrot.slane %v1627_v57, 1  ;;  %665 = vst [vmem:[#allocation2 + $0x78] sm:$0xf] %v664_v30  ;;  %v441_v17 = vor.u32 %v439_v44, %v438_v25  ;;  %3609 = vmatprep.subr.bf16.mxu0 %v3753_v11  ;;  %v4389_v26 = vld [vmem:[#allocation2 + $0x68] ss:$0 sps:$4 sm:$0x11]   ;;  %v1842_v0 = vsel %vm1306_vm2, %v1840_v35, %v1841_v41 }
  0x8c   : > { %3646 = vmatprep.subr.bf16.mxu1 %v3753_v11  ;;  %v2146_v7 = vshll.u32 %v4361_v61, 16  ;;  %v2132_v57 = vshrl.u32 %v4356_v29, 16  ;;  %v1133_v63 = vshll.u32 %v4367_v36, 16  ;;  %3610 = vmatpush3.bf16.msra.mxu0 %v3753_v11  ;;  %v445_v58 = vshrl.u32 %v203_v4, 16  ;;  %v674_v30 = vld [vmem:[#allocation2 + $0x8c] sm:$0x1] }
  0x8d   : > { %3611 = vmatprep.subr.bf16.mxu0 %v3756_v45  ;;  %v453_v1 = vshrl.u32 %v204_v49, 16  ;;  %v456_v14 = vshll.u32 %v204_v49, 16  ;;  %v462_v34 = vshrl.u32 %v205_v50, 16  ;;  %3649 = vmatpush3.bf16.msra.mxu1 %v3753_v11  ;;  %v2144_v53 = vshrl.u32 %v4361_v61, 16  ;;  %v792_v41 = vld [vmem:[#allocation2 + $0x6c] sm:$0xf] }
  0x8e   : > { %1238 = vrot.lane.b32.xlu1 %v1117_v9, %s3826_s19  ;;  %v434_v9 = vrot.slane %v430_v54, 4  ;;  %v2134_v54 = vshll.u32 %v4356_v29, 16  ;;  %v4404_v5 = vld [vmem:[#allocation2 + $0x68] ss:$0 sps:$4 sm:$0x11]   ;;  %3647 = vmatprep.subr.bf16.mxu1 %v3756_v45  ;;  %v2148_v12 = vrot.slane %v2146_v7, 1 }
  0x8f   : > { %2387 = vrot.lane.b32.xlu0 %v2345_v37, %s3830_s23  ;;  %v667_v37 = vld [vmem:[#allocation2 + $0x80] sm:$0x1]  ;;  %v455_v28 = vrot.slane %v453_v1, 7  ;;  %v1131_v25 = vshrl.u32 %v4367_v36, 16  ;;  %v1135_v33 = vrot.slane %v1133_v63, 1  ;;  %vm2576_vm1 = vcmask 195584  }
  0x90   : > { %v442_v40 = vsel %vm3946_vm8, %v434_v9, %v441_v17  ;;  %v668_v48 = vsel %vm3965_vm9, %v443_v42, %v667_v37  ;;  %v2136_v23 = vrot.slane %v2134_v54, 1  ;;  %3612 = vmatpush3.bf16.msra.mxu0 %v3756_v45  ;;  %v4419_v42 = vld [vmem:[#allocation2 + $0x70] sm:$0xf]  ;;  %v896_v63 = vld [vmem:[#allocation2 + $0x6c] sm:$0xe]  ;;  %vm2642_vm3 = vcmask 261120  }
  0x91   : > { %666 = vst.msk [vmem:[#allocation2 + $0x7c] sm:$0xf] %vm215_vm0, %v442_v40  ;;  %669 = vst [vmem:[#allocation2 + $0x80] sm:$0x1] %v668_v48  ;;  %v458_v17 = vor.u32 %v456_v14, %v455_v28  ;;  %v460_v37 = vrot.slane %v455_v28, 4  ;;  %3650 = vmatpush3.bf16.msra.mxu1 %v3756_v45  ;;  %v1136_v1 = vor.u32 %v1135_v33, %v1131_v25  ;;  %vm2609_vm4 = vcmask 228352  }
  0x92   : > { %1240 = vrot.lane.b32.xlu1 %v1129_v46, %s3826_s19  ;;  %v1630_v46 = vsel %vm1033_vm6, %v1625_v16, %v1629_v20  ;;  %v4409_v16 = vrot.slane %v462_v34, 7  ;;  %v465_v20 = vshll.u32 %v205_v50, 16  ;;  %v4423_v50 = vld [vmem:[#allocation2 + $0x74] ss:$0 sps:$4 sm:$0x11]   ;;  %v3492_v28 = vcombine.low %v896_v63, %v4349_v13 }
  0x93   : > { %2389 = vrot.lane.b32.xlu0 %v2348_v39, %s3830_s23  ;;  %v1642_v39 = vsel %vm1033_vm6, %v1637_v32, %v1641_v15  ;;  %v895_v32 = vld [vmem:[#allocation2 + $0x60] sm:$0xe]  ;;  %v2139_v15 = vshll.u32 %v4389_v26, 16  ;;  %v677_v48 = vld [vmem:[#allocation2 + $0x90] sm:$0xf]  ;;  %v1335_v63 = vrot.slane %v4423_v50, 1 }
  0x94   : > { %v467_v45 = vor.u32 %v465_v20, %v4409_v16  ;;  %v3491_v54 = vcombine.low %v895_v32, %v4342_v47  ;;  %v769_v20 = vld [vmem:[#allocation2 + $0x6c] sm:$0xe]  ;;  %v768_v25 = vld [vmem:[#allocation2 + $0x60] sm:$0xe]  ;;  %v206_v33 = vld [vmem:[%s3927_s17 + $0x5c] sm:$0xf] }
  0x95   : > { %vm2695_vm5 = vcmask 293888  }
  0x96   : > { %1369 = vrot.lane.b32.xlu1 %v1330_v8, %s3825_s18  ;;  %v448_v8 = vshll.u32 %v203_v4, 16  ;;  %v1138_v4 = vshll.u32 %v4404_v5, 16 }
  0x97   : > { %1367 = vrot.lane.b32.xlu0 %v1327_v62, %s3825_s18  ;;  %v447_v62 = vrot.slane %v445_v58, 7  ;;  %v2137_v58 = vor.u32 %v2136_v23, %v2132_v57  ;;  %v794_v57 = vld [vmem:[#allocation2 + $0x78] sm:$0xf] }
  0x98   : > { %v1140_v47 = vrot.slane %v1138_v4, 1  ;;  %v2352_v4 = vrot.slane %v3492_v28, 1 }
  0x99   : > { %v450_v9 = vor.u32 %v448_v8, %v447_v62  ;;  %v451_v44 = vrot.slane %v447_v62, 4  ;;  %v2141_v8 = vrot.slane %v2139_v15, 1  ;;  %v4446_v62 = vld [vmem:[#allocation2 + $0x7c] sm:$0xf]  ;;  %v3398_v15 = vcombine.low %v769_v20, %v4391_v55  ;;  %v207_v20 = vld [vmem:[%s3927_s17 + $0x60] sm:$0xf] }
  0x9a   : > { %1481 = vrot.lane.b32.xlu1 %v4316_v31, %s3827_s20  ;;  %v730_v31 = vld [vmem:[#allocation2 + $0x6c] sm:$0xf]  ;;  %v4462_v13 = vcombine.low %v794_v57, %v4446_v62  ;;  %v681_v57 = vld [vmem:[#allocation2 + $0x98] sm:$0x1] }
  0x9b   : > { %1479 = vrot.lane.b32.xlu0 %v4310_v21, %s3827_s20  ;;  %v2151_v21 = vshll.u32 %v4381_v51, 16  ;;  %v4407_v6 = vcombine.low %v730_v31, %v4391_v55  ;;  %v671_v49 = vsel %vm3938_vm7, %v450_v9, %v670_v59  ;;  %v675_v31 = vsel %vm3965_vm9, %v460_v37, %v674_v30 }
  0x9c   : > { %672 = vst [vmem:[#allocation2 + $0x84] sm:$0xf] %v671_v49  ;;  %676 = vst [vmem:[#allocation2 + $0x8c] sm:$0x1] %v675_v31  ;;  %v2350_v59 = vrot.slane %v4389_v26, 1  ;;  %v2142_v23 = vsel %vm1033_vm6, %v2137_v58, %v2141_v8  ;;  %v2353_v49 = vrot.slane %v4381_v51, 1 }
  0x9d   : > { %v4412_v11 = vpop.permute.xlu1 %1355  ;;  %v1145_v35 = vshll.u32 %v4407_v6, 16  ;;  %v2153_v40 = vrot.slane %v2151_v21, 1  ;;  %v1143_v14 = vshrl.u32 %v4407_v6, 16  ;;  %v1150_v21 = vshll.u32 %v4423_v50, 16 }
  0x9e   : > { %1753 = vrot.lane.b32.xlu1 %v1642_v39, %s3831_s24  ;;  %v459_v39 = vsel %vm3946_vm8, %v451_v44, %v458_v17  ;;  %v4456_v44 = vld [vmem:[#allocation2 + $0x74] ss:$0 sps:$4 sm:$0x11]   ;;  %v1658_v55 = vshll.u32 %v4462_v13, 16  ;;  %v470_v31 = vshrl.u32 %v206_v33, 16  ;;  %v1332_v8 = vrot.slane %v4404_v5, 1 }
  0x9f   : > { %1751 = vrot.lane.b32.xlu0 %v1630_v46, %s3831_s24  ;;  %v2149_v46 = vor.u32 %v2148_v12, %v2144_v53  ;;  %v4430_v7 = vpop.permute.xlu0 %1226  ;;  %673 = vst.msk [vmem:[#allocation2 + $0x88] sm:$0xf] %vm215_vm0, %v459_v39  ;;  %v1147_v53 = vrot.slane %v1145_v35, 1  ;;  %v678_v12 = vsel %vm3938_vm7, %v467_v45, %v677_v48  ;;  %v1152_v26 = vrot.slane %v1150_v21, 1  ;;  %v857_v21 = vld [vmem:[#allocation2 + $0x78] sm:$0xf] }
  0xa0   : > { %679 = vst [vmem:[#allocation2 + $0x90] sm:$0xf] %v678_v12  ;;  %v3397_v35 = vcombine.low %v768_v25, %v4352_v24  ;;  %v1651_v39 = vshll.u32 %v4456_v44, 16  ;;  %v1334_v24 = vrot.slane %v3398_v15, 1  ;;  %v1656_v12 = vshrl.u32 %v4462_v13, 16 }
  0xa1   : > { %v2154_v34 = vsel %vm1033_vm6, %v2149_v46, %v2153_v40  ;;  %v1148_v32 = vor.u32 %v1147_v53, %v1143_v14  ;;  %v833_v14 = vld [vmem:[#allocation2 + $0x78] sm:$0xe]  ;;  %v1660_v28 = vrot.slane %v1658_v55, 1 }
  0xa2   : > { %1881 = vrot.lane.b32.xlu1 %v1842_v0, %s3829_s22  ;;  %v4437_v0 = vcombine.low %v792_v41, %v4419_v42  ;;  %v832_v41 = vld [vmem:[#allocation2 + $0x6c] sm:$0xe]  ;;  %v1331_v58 = vrot.slane %v3397_v35, 1  ;;  %v1653_v53 = vrot.slane %v1651_v39, 1  ;;  %v1336_v25 = vsel %vm1306_vm2, %v1334_v24, %v1335_v63 }
  0xa3   : > { %1879 = vrot.lane.b32.xlu0 %v4379_v2, %s3829_s22  ;;  %v1153_v48 = vsel %vm1033_vm6, %v1148_v32, %v1152_v26  ;;  %v473_v32 = vshll.u32 %v206_v33, 16  ;;  %v1661_v39 = vor.u32 %v1660_v28, %v1656_v12 }
  0xa4   : > { %v1646_v9 = vshll.u32 %v4437_v0, 16  ;;  %v1644_v46 = vshrl.u32 %v4437_v0, 16  ;;  %v1333_v15 = vsel %vm1306_vm2, %v1331_v58, %v1332_v8  ;;  %v479_v58 = vshrl.u32 %v207_v20, 16 }
  0xa6   : > { %1993 = vrot.lane.b32.xlu1 %v4361_v61, %s3828_s21  ;;  %v4441_v2 = vpop.permute.xlu1 %1469  ;;  %v2349_v61 = vrot.slane %v3491_v54, 1  ;;  %v1648_v40 = vrot.slane %v1646_v9, 1  ;;  %v4479_v54 = vld [vmem:[#allocation2 + $0x80] ss:$0 sps:$4 sm:$0x11]   ;;  %v481_v12 = vrot.slane %v479_v58, 7 }
  0xa7   : > { %1991 = vrot.lane.b32.xlu0 %v4356_v29, %s3828_s21  ;;  %v1141_v29 = vsel %vm1033_vm6, %v1136_v1, %v1140_v47  ;;  %v3445_v1 = vcombine.low %v832_v41, %v4419_v42  ;;  %v2354_v47 = vsel %vm1306_vm2, %v2352_v4, %v2353_v49  ;;  %v1663_v5 = vshll.u32 %v4479_v54, 16  ;;  %v4494_v42 = vld [vmem:[#allocation2 + $0x7c] sm:$0xf] }
  0xa8   : > { %v2351_v37 = vsel %vm1306_vm2, %v2349_v61, %v2350_v59  ;;  %v732_v61 = vld [vmem:[#allocation2 + $0x78] sm:$0xf]  ;;  %v472_v59 = vrot.slane %v470_v31, 7  ;;  %v4501_v9 = vld [vmem:[#allocation2 + $0x7c] sm:$0xf]  ;;  %v4518_v33 = vcombine.low %v857_v21, %v4494_v42 }
  0xa9   : > { %v4458_v30 = vpop.permute.xlu0 %1467  ;;  %v4509_v4 = vrot.slane %v3445_v1, 1  ;;  %v1665_v55 = vrot.slane %v1663_v5, 1  ;;  %v4526_v31 = vld [vmem:[#allocation2 + $0x80] ss:$0 sps:$4 sm:$0x11]   ;;  %v4534_v63 = vcombine.low %v732_v61, %v4501_v9 }
  0xaa   : > { %2265 = vrot.lane.b32.xlu1 %v2154_v34, %s3832_s25  ;;  %v1649_v34 = vor.u32 %v1648_v40, %v1644_v46  ;;  %v477_v35 = vrot.slane %v472_v59, 4  ;;  %v475_v49 = vor.u32 %v473_v32, %v472_v59  ;;  %v208_v46 = vld [vmem:[%s3927_s17 + $0x64] sm:$0xf]  ;;  %v2158_v21 = vshll.u32 %v4518_v33, 16 }
  0xab   : > { %2263 = vrot.lane.b32.xlu0 %v2142_v23, %s3832_s25  ;;  %v2413_v23 = vsel %vm2411_vm11, %v3932_v10, %v4430_v7  ;;  %v859_v10 = vld [vmem:[#allocation2 + $0x84] sm:$0xf]  ;;  %v4511_v7 = vld [vmem:[#allocation2 + $0x88] sm:$0xf]  ;;  %v490_v28 = vshll.u32 %v208_v46, 16  ;;  %v1666_v59 = vsel %vm1033_vm6, %v1661_v39, %v1665_v55  ;;  %v1157_v58 = vshll.u32 %v4534_v63, 16 }
  0xac   : > { %v4468_v17 = vpop.permute.xlu1 %1981  ;;  %v4514_v41 = vsel %vm1033_vm6, %v1649_v34, %v1653_v53  ;;  %v4531_v24 = vcombine.low %v859_v10, %v4511_v7  ;;  %v487_v34 = vshrl.u32 %v208_v46, 16  ;;  %v684_v53 = vld [vmem:[#allocation2 + $0x9c] sm:$0xf]  ;;  %v688_v5 = vld [vmem:[#allocation2 + $0xa4] sm:$0x1]  ;;  %v485_v10 = vrot.slane %v481_v12, 4 }
  0xad   : > { %v4475_v45 = vpop.permute.xlu0 %1979  ;;  %v734_v46 = vld [vmem:[#allocation2 + $0x84] sm:$0xf]  ;;  %v4560_v39 = vld [vmem:[#allocation2 + $0x88] sm:$0xf] }
  0xae   : > { %1242 = vrot.lane.b32.xlu1 %v1141_v29, %s3826_s19  ;;  %v468_v29 = vrot.slane %v4409_v16, 4  ;;  %v1844_v16 = vrot.slane %v4456_v44, 1  ;;  %v2170_v32 = vshll.u32 %v4531_v24, 16 }
  0xaf   : > { %2391 = vrot.lane.b32.xlu0 %v2351_v37, %s3830_s23  ;;  %v3446_v37 = vcombine.low %v833_v14, %v4446_v62  ;;  %v2446_v62 = vsel %vm2444_vm12, %v2413_v23, %v4412_v11  ;;  %v482_v14 = vshll.u32 %v207_v20, 16  ;;  %v2163_v20 = vshll.u32 %v4526_v31, 16 }
  0xb0   : > { %v4484_v51 = vpop.permute.xlu1 %1357  ;;  %v476_v11 = vsel %vm3946_vm8, %v468_v29, %v475_v49  ;;  %v1155_v23 = vshrl.u32 %v4534_v63, 16 }
  0xb1   : > { %v4489_v50 = vpop.permute.xlu0 %1867  ;;  %v1846_v1 = vrot.slane %v3446_v37, 1  ;;  %680 = vst.msk [vmem:[#allocation2 + $0x94] sm:$0xf] %vm215_vm0, %v476_v11  ;;  %v484_v37 = vor.u32 %v482_v14, %v481_v12 }
  0xb2   : > { %1244 = vrot.lane.b32.xlu1 %v1153_v48, %s3826_s19  ;;  %v682_v48 = vsel %vm3965_vm9, %v477_v35, %v681_v57  ;;  %v2156_v57 = vshrl.u32 %v4518_v33, 16 }
  0xb3   : > { %2393 = vrot.lane.b32.xlu0 %v2354_v47, %s3830_s23  ;;  %683 = vst [vmem:[#allocation2 + $0x98] sm:$0x1] %v682_v48  ;;  %v1847_v47 = vrot.slane %v4479_v54, 1  ;;  %v4546_v54 = vld [vmem:[#allocation2 + $0x8c] ss:$0 sps:$4 sm:$0x11]   ;;  %v2479_v48 = vsel %vm2477_vm13, %v2446_v62, %v4458_v30 }
  0xb4   : > { %v4505_v26 = vpop.permute.xlu1 %1869  ;;  %v2168_v62 = vshrl.u32 %v4531_v24, 16 }
  0xb5   : > { %v4523_v40 = vpop.permute.xlu0 %2379  ;;  %v1848_v49 = vsel %vm1306_vm2, %v1846_v1, %v1847_v47  ;;  %v2175_v1 = vshll.u32 %v4546_v54, 16 }
  0xb6   : > { %1373 = vrot.lane.b32.xlu1 %v1336_v25, %s3825_s18  ;;  %v489_v25 = vrot.slane %v487_v34, 7  ;;  %v2172_v34 = vrot.slane %v2170_v32, 1 }
  0xb7   : > { %1371 = vrot.lane.b32.xlu0 %v1333_v15, %s3825_s18  ;;  %v4553_v15 = vld [vmem:[#allocation2 + $0x80] ss:$0 sps:$4 sm:$0x11]   ;;  %v2177_v32 = vrot.slane %v2175_v1, 1 }
  0xb8   : > { %v1742_v8 = vpop.permute.xlu1 %1741  ;;  %v492_v55 = vor.u32 %v490_v28, %v489_v25  ;;  %v2173_v44 = vor.u32 %v2172_v34, %v2168_v62  ;;  %v2356_v62 = vrot.slane %v4526_v31, 1 }
  0xb9   : > { %v1229_v61 = vpop.permute.xlu0 %1228 }
  0xba   : > { %1485 = vrot.lane.b32.xlu1 %v4462_v13, %s3827_s20  ;;  %v2415_v29 = vsel %vm2411_vm11, %v4007_v52, %v1229_v61  ;;  %v494_v52 = vrot.slane %v489_v25, 4  ;;  %v493_v47 = vsel %vm3946_vm8, %v485_v10, %v492_v55  ;;  %v2160_v61 = vrot.slane %v2158_v21, 1  ;;  %v898_v21 = vld [vmem:[#allocation2 + $0x84] sm:$0xe]  ;;  %v210_v55 = vld [vmem:[%s3927_s17 + $0x6c] sm:$0xf] }
  0xbb   : > { %v2448_v13 = vsel %vm2444_vm12, %v2415_v29, %v4484_v51  ;;  %1483 = vrot.lane.b32.xlu0 %v4437_v0, %s3827_s20  ;;  %v685_v51 = vsel %vm3938_vm7, %v484_v37, %v684_v53  ;;  %v4579_v53 = vcombine.low %v734_v46, %v4560_v39  ;;  %687 = vst.msk [vmem:[#allocation2 + $0xa0] sm:$0xf] %vm215_vm0, %v493_v47  ;;  %v1159_v29 = vrot.slane %v1157_v58, 1  ;;  %v771_v47 = vld [vmem:[#allocation2 + $0x84] sm:$0xe] }
  0xbc   : > { %v2254_v35 = vpop.permute.xlu1 %2253  ;;  %v2481_v11 = vsel %vm2477_vm13, %v2448_v13, %v4441_v2  ;;  %686 = vst [vmem:[#allocation2 + $0x9c] sm:$0xf] %v685_v51  ;;  %v689_v30 = vsel %vm3965_vm9, %v494_v52, %v688_v5  ;;  %v897_v5 = vld [vmem:[#allocation2 + $0x78] sm:$0xe]  ;;  %v2161_v46 = vor.u32 %v2160_v61, %v2156_v57  ;;  %v3494_v52 = vcombine.low %v898_v21, %v4511_v7  ;;  %v796_v51 = vld [vmem:[#allocation2 + $0x84] sm:$0xf] }
  0xbd   : > { %v2514_v0 = vsel %vm2510_vm14, %v2481_v11, %v1742_v8  ;;  %v1740_v14 = vpop.permute.xlu0 %1739  ;;  %690 = vst [vmem:[#allocation2 + $0xa4] sm:$0x1] %v689_v30  ;;  %v1169_v10 = vshll.u32 %v4579_v53, 16  ;;  %v1167_v57 = vshrl.u32 %v4579_v53, 16  ;;  %v504_v30 = vshrl.u32 %v210_v55, 16 }
  0xbe   : > { %1757 = vrot.lane.b32.xlu1 %v1666_v59, %s3831_s24  ;;  %v2512_v2 = vsel %vm2510_vm14, %v2479_v48, %v1740_v14  ;;  %v2547_v8 = vsel %vm2543_vm15, %v2514_v0, %v4505_v26  ;;  %v1162_v59 = vshll.u32 %v4553_v15, 16  ;;  %v1845_v26 = vsel %vm1306_vm2, %v4509_v4, %v1844_v16  ;;  %v4605_v4 = vld [vmem:[%s3927_s17 + $0x68] sm:$0xf] }
  0xbf   : > { %v2545_v12 = vsel %vm2543_vm15, %v2512_v2, %v4489_v50  ;;  %1755 = vrot.lane.b32.xlu0 %v4514_v41, %s3831_s24  ;;  %v4597_v50 = vld [vmem:[#allocation2 + $0x8c] ss:$0 sps:$4 sm:$0x11]   ;;  %v2580_v37 = vsel %vm2576_vm1, %v2547_v8, %v4468_v17  ;;  %v2165_v17 = vrot.slane %v2163_v20, 1  ;;  %v1160_v48 = vor.u32 %v1159_v29, %v1155_v23  ;;  %v4625_v20 = vld [vmem:[#allocation2 + $0x88] sm:$0xf] }
  0xc0   : > { %v4588_v28 = vpop.permute.xlu1 %1230  ;;  %v2578_v25 = vsel %vm2576_vm1, %v2545_v12, %v4475_v45  ;;  %v1164_v11 = vrot.slane %v1162_v59, 1  ;;  %v1174_v58 = vshll.u32 %v4597_v50, 16  ;;  %v2613_v0 = vsel %vm2609_vm4, %v2580_v37, %v2254_v35  ;;  %v798_v8 = vld [vmem:[#allocation2 + $0x90] sm:$0xf]  ;;  %v4638_v12 = vld [vmem:[#allocation2 + $0x94] sm:$0xf] }
  0xc1   : > { %v2252_v41 = vpop.permute.xlu0 %2251  ;;  %v496_v7 = vshrl.u32 %v4605_v4, 16  ;;  %v2178_v23 = vsel %vm1033_vm6, %v2173_v44, %v2177_v32  ;;  %v1171_v1 = vrot.slane %v1169_v10, 1  ;;  %v2358_v61 = vrot.slane %v3494_v52, 1  ;;  %v834_v10 = vld [vmem:[#allocation2 + $0x84] sm:$0xe] }
  0xc2   : > { %1885 = vrot.lane.b32.xlu1 %v1848_v49, %s3829_s22  ;;  %v2611_v45 = vsel %vm2609_vm4, %v2578_v25, %v2252_v41  ;;  %v3493_v49 = vcombine.low %v897_v5, %v4494_v42  ;;  %v1165_v5 = vsel %vm1033_vm6, %v1160_v48, %v1164_v11  ;;  %v2359_v59 = vrot.slane %v4546_v54, 1 }
  0xc3   : > { %1883 = vrot.lane.b32.xlu0 %v1845_v26, %s3829_s22  ;;  %v2644_v16 = vsel %vm2642_vm3, %v2611_v45, %v4523_v40  ;;  %v770_v40 = vld [vmem:[#allocation2 + $0x78] sm:$0xe]  ;;  %v1176_v26 = vrot.slane %v1174_v58, 1  ;;  %v3400_v31 = vcombine.low %v771_v47, %v4560_v39  ;;  %v499_v29 = vshll.u32 %v4605_v4, 16 }
  0xc4   : > { %v4610_v13 = vpop.permute.xlu1 %1232  ;;  %3613 = vmatprep.mubr.msk.bf16.mxu0 %vm2695_vm5, %v2644_v16  ;;  %v2355_v2 = vrot.slane %v3493_v49, 1  ;;  %v3399_v34 = vcombine.low %v770_v40, %v4501_v9  ;;  %v498_v9 = vrot.slane %v496_v7, 7  ;;  %v1172_v41 = vor.u32 %v1171_v1, %v1167_v57  ;;  %v4656_v45 = vld [vmem:[#allocation2 + $0x8c] ss:$0 sps:$4 sm:$0x11]  }
  0xc5   : > { %v2382_v42 = vpop.permute.xlu0 %2381  ;;  %v4651_v21 = vcombine.low %v798_v8, %v4638_v12  ;;  %v506_v32 = vrot.slane %v504_v30, 7  ;;  %v507_v54 = vshll.u32 %v210_v55, 16  ;;  %v4661_v16 = vld [vmem:[%s3927_s17 + $0x70] sm:$0xf]  ;;  %v1340_v49 = vrot.slane %v3400_v31, 1 }
  0xc6   : > { %1997 = vrot.lane.b32.xlu1 %v4531_v24, %s3828_s21  ;;  %v2646_v14 = vsel %vm2642_vm3, %v2613_v0, %v2382_v42  ;;  %v2166_v24 = vsel %vm1033_vm6, %v2161_v46, %v2165_v17  ;;  %v2357_v44 = vsel %vm1306_vm2, %v2355_v2, %v2356_v62  ;;  %v1341_v46 = vrot.slane %v4597_v50, 1  ;;  %v835_v55 = vld [vmem:[#allocation2 + $0x90] sm:$0xe]  ;;  %v4670_v40 = vld [vmem:[#allocation2 + $0x98] ss:$0 sps:$4 sm:$0x11]  }
  0xc7   : > { %1995 = vrot.lane.b32.xlu0 %v4518_v33, %s3828_s21  ;;  %3614 = vmatmul.mubr.msk.bf16.vlgmr.msra.gmra.mxu0 %vm2695_vm5, %v2646_v14  ;;  %v4643_v33 = vcombine.low %v796_v51, %v4625_v20  ;;  %v1337_v17 = vrot.slane %v3399_v34, 1  ;;  %v501_v52 = vor.u32 %v499_v29, %v498_v9  ;;  %v1177_v48 = vsel %vm1033_vm6, %v1172_v41, %v1176_v26  ;;  %v691_v0 = vld [vmem:[#allocation2 + $0xa8] sm:$0xf]  ;;  %v695_v30 = vld [vmem:[#allocation2 + $0xb0] sm:$0x1] }
  0xc8   : > { %v4633_v35 = vpop.permute.xlu1 %1361  ;;  %v2360_v11 = vsel %vm1306_vm2, %v2358_v61, %v2359_v59  ;;  %v1682_v58 = vshll.u32 %v4651_v21, 16  ;;  %v509_v51 = vor.u32 %v507_v54, %v506_v32  ;;  %v1338_v50 = vrot.slane %v4553_v15, 1  ;;  %v861_v15 = vld [vmem:[#allocation2 + $0x90] sm:$0xf]  ;;  %v212_v8 = vld [vmem:[%s3927_s17 + $0x74] sm:$0xf] }
  0xc9   : > { %v4645_v25 = vpop.permute.xlu0 %1359  ;;  %v1670_v39 = vshll.u32 %v4643_v33, 16  ;;  %v3447_v57 = vcombine.low %v834_v10, %v4625_v20  ;;  %v1668_v7 = vshrl.u32 %v4643_v33, 16  ;;  %v1675_v14 = vshll.u32 %v4656_v45, 16  ;;  %v4690_v59 = vld [vmem:[#allocation2 + $0x94] sm:$0xf] }
  0xca   : > { %2269 = vrot.lane.b32.xlu1 %v2178_v23, %s3832_s25  ;;  %v3448_v23 = vcombine.low %v835_v55, %v4638_v12  ;;  %v502_v47 = vrot.slane %v498_v9, 4  ;;  %v1342_v62 = vsel %vm1306_vm2, %v1340_v49, %v1341_v46  ;;  %v692_v20 = vsel %vm3938_vm7, %v501_v52, %v691_v0  ;;  %v4699_v54 = vld [vmem:[#allocation2 + $0xa0] sm:$0xf]  ;;  %v213_v55 = vld [vmem:[%s3927_s17 + $0x78] sm:$0xf] }
  0xcb   : > { %2267 = vrot.lane.b32.xlu0 %v2166_v24, %s3832_s25  ;;  %v1672_v1 = vrot.slane %v1670_v39, 1  ;;  %v513_v24 = vshrl.u32 %v4661_v16, 16  ;;  %v511_v34 = vrot.slane %v506_v32, 4  ;;  %v1684_v12 = vrot.slane %v1682_v58, 1  ;;  %693 = vst [vmem:[#allocation2 + $0xa8] sm:$0xf] %v692_v20 }
  0xcc   : > { %v4654_v37 = vpop.permute.xlu1 %1473  ;;  %v1687_v61 = vshll.u32 %v4670_v40, 16  ;;  %v510_v26 = vsel %vm3946_vm8, %v502_v47, %v509_v51  ;;  %v1339_v9 = vsel %vm1306_vm2, %v1337_v17, %v1338_v50  ;;  %v1849_v29 = vrot.slane %v3447_v57, 1  ;;  %v863_v32 = vld [vmem:[#allocation2 + $0x9c] sm:$0xf]  ;;  %v698_v58 = vld [vmem:[#allocation2 + $0xb4] sm:$0xf] }
  0xcd   : > { %v4663_v4 = vpop.permute.xlu0 %1471  ;;  %v1850_v41 = vrot.slane %v4656_v45, 1  ;;  %694 = vst.msk [vmem:[#allocation2 + $0xac] sm:$0xf] %vm215_vm0, %v510_v26  ;;  %v1673_v10 = vor.u32 %v1672_v1, %v1668_v7  ;;  %v1677_v39 = vrot.slane %v1675_v14, 1  ;;  %v1852_v49 = vrot.slane %v3448_v23, 1 }
  0xce   : > { %1246 = vrot.lane.b32.xlu1 %v1165_v5, %s3826_s19  ;;  %v1680_v5 = vshrl.u32 %v4651_v21, 16  ;;  %v515_v46 = vrot.slane %v513_v24, 7  ;;  %v1853_v17 = vrot.slane %v4670_v40, 1  ;;  %v4708_v45 = vcombine.low %v861_v15, %v4690_v59  ;;  %v736_v57 = vld [vmem:[#allocation2 + $0x90] sm:$0xf] }
  0xcf   : > { %2395 = vrot.lane.b32.xlu0 %v2357_v44, %s3830_s23  ;;  %v696_v44 = vsel %vm3965_vm9, %v511_v34, %v695_v30  ;;  %v1689_v0 = vrot.slane %v1687_v61, 1  ;;  %v4712_v50 = vcombine.low %v863_v32, %v4699_v54  ;;  %v4714_v7 = vld [vmem:[#allocation2 + $0x94] sm:$0xf]  ;;  %v524_v14 = vshll.u32 %v212_v8, 16  ;;  %v702_v61 = vld [vmem:[#allocation2 + $0xbc] sm:$0x1] }
  0xd0   : > { %v4673_v42 = vpop.permute.xlu1 %1745  ;;  %697 = vst [vmem:[#allocation2 + $0xb0] sm:$0x1] %v696_v44  ;;  %v1685_v51 = vor.u32 %v1684_v12, %v1680_v5  ;;  %v519_v1 = vrot.slane %v515_v46, 4  ;;  %v530_v30 = vshrl.u32 %v213_v55, 16  ;;  %v2182_v20 = vshll.u32 %v4708_v45, 16 }
  0xd1   : > { %v4681_v2 = vpop.permute.xlu0 %1743  ;;  %v4722_v24 = vld [vmem:[#allocation2 + $0x98] ss:$0 sps:$4 sm:$0x11]   ;;  %v4727_v34 = vld [vmem:[#allocation2 + $0xa4] ss:$0 sps:$4 sm:$0x11]   ;;  %v2417_v32 = vsel %vm2411_vm11, %v4018_v3, %v4588_v28 }
  0xd2   : > { %1248 = vrot.lane.b32.xlu1 %v1177_v48, %s3826_s19  ;;  %v516_v48 = vshll.u32 %v4661_v16, 16  ;;  %v4720_v16 = vsel %vm1306_vm2, %v1849_v29, %v1850_v41  ;;  %v1690_v26 = vsel %vm1033_vm6, %v1685_v51, %v1689_v0  ;;  %v4736_v29 = vld [vmem:[#allocation2 + $0x98] ss:$0 sps:$4 sm:$0x11]   ;;  %v4738_v41 = vrot.slane %v530_v30, 7 }
  0xd3   : > { %2397 = vrot.lane.b32.xlu0 %v2360_v11, %s3830_s23  ;;  %v521_v11 = vshrl.u32 %v212_v8, 16  ;;  %v4730_v8 = vcombine.low %v736_v57, %v4714_v7  ;;  %v2450_v51 = vsel %vm2444_vm12, %v2417_v32, %v4645_v25  ;;  %v2187_v0 = vshll.u32 %v4722_v24, 16  ;;  %v4788_v32 = vld [vmem:[#allocation2 + $0xa4] ss:$0 sps:$4 sm:$0x11]  }
  0xd4   : > { %v4695_v31 = vpop.permute.xlu1 %1873  ;;  %v518_v40 = vor.u32 %v516_v48, %v515_v46  ;;  %v1678_v46 = vsel %vm1033_vm6, %v1673_v10, %v1677_v39  ;;  %v738_v48 = vld [vmem:[#allocation2 + $0x9c] sm:$0xf]  ;;  %v2483_v10 = vsel %vm2477_vm13, %v2450_v51, %v4663_v4  ;;  %v2199_v25 = vshll.u32 %v4727_v34, 16 }
  0xd5   : > { %v1872_v52 = vpop.permute.xlu0 %1871  ;;  %v523_v47 = vrot.slane %v521_v11, 7  ;;  %v4747_v11 = vld [vmem:[#allocation2 + $0xa0] sm:$0xf]  ;;  %v2516_v57 = vsel %vm2510_vm14, %v2483_v10, %v4681_v2  ;;  %v1186_v30 = vshll.u32 %v4736_v29, 16  ;;  %v1198_v10 = vshll.u32 %v4788_v32, 16 }
  0xd6   : > { %1377 = vrot.lane.b32.xlu1 %v1342_v62, %s3825_s18  ;;  %v533_v62 = vshll.u32 %v213_v55, 16  ;;  %v699_v12 = vsel %vm3938_vm7, %v518_v40, %v698_v58  ;;  %v1854_v55 = vsel %vm1306_vm2, %v1852_v49, %v1853_v17  ;;  %v1181_v49 = vshll.u32 %v4730_v8, 16  ;;  %v705_v17 = vld [vmem:[#allocation2 + $0xc0] sm:$0xf] }
  0xd7   : > { %1375 = vrot.lane.b32.xlu0 %v1339_v9, %s3825_s18  ;;  %v526_v5 = vor.u32 %v524_v14, %v523_v47  ;;  %v2194_v9 = vshll.u32 %v4712_v50, 16  ;;  %700 = vst [vmem:[#allocation2 + $0xb4] sm:$0xf] %v699_v12  ;;  %v2192_v14 = vshrl.u32 %v4712_v50, 16  ;;  %v1179_v12 = vshrl.u32 %v4730_v8, 16 }
  0xd8   : > { %v4717_v23 = vpop.permute.xlu1 %1985  ;;  %v535_v28 = vor.u32 %v533_v62, %v4738_v41 }
  0xd9   : > { %v1984_v15 = vpop.permute.xlu0 %1983  ;;  %v527_v58 = vsel %vm3946_vm8, %v519_v1, %v526_v5  ;;  %v2196_v40 = vrot.slane %v2194_v9, 1  ;;  %v2180_v1 = vshrl.u32 %v4708_v45, 16  ;;  %v899_v5 = vld [vmem:[#allocation2 + $0x90] sm:$0xe] }
  0xda   : > { %1489 = vrot.lane.b32.xlu1 %v4651_v21, %s3827_s20  ;;  %v528_v21 = vrot.slane %v523_v47, 4  ;;  %701 = vst.msk [vmem:[#allocation2 + $0xb8] sm:$0xf] %vm215_vm0, %v527_v58  ;;  %v2184_v47 = vrot.slane %v2182_v20, 1  ;;  %v2201_v20 = vrot.slane %v2199_v25, 1  ;;  %v3495_v58 = vcombine.low %v899_v5, %v4690_v59 }
  0xdb   : > { %1487 = vrot.lane.b32.xlu0 %v4643_v33, %s3827_s20  ;;  %v2419_v33 = vsel %vm2411_vm11, %v4046_v43, %v4610_v13  ;;  %v4770_v43 = vcombine.low %v738_v48, %v4747_v11  ;;  %v2549_v13 = vsel %vm2543_vm15, %v2516_v57, %v1872_v52  ;;  %v706_v52 = vsel %vm3938_vm7, %v535_v28, %v705_v17  ;;  %v802_v17 = vld [vmem:[#allocation2 + $0xa8] sm:$0xf]  ;;  %v4818_v57 = vld [vmem:[#allocation2 + $0xac] sm:$0xf] }
  0xdc   : > { %v2258_v44 = vpop.permute.xlu1 %2257  ;;  %v703_v3 = vsel %vm3965_vm9, %v528_v21, %v702_v61  ;;  %v2452_v2 = vsel %vm2444_vm12, %v2419_v33, %v4633_v35  ;;  %v2582_v62 = vsel %vm2576_vm1, %v2549_v13, %v1984_v15  ;;  %v1183_v21 = vrot.slane %v1181_v49, 1  ;;  %707 = vst [vmem:[#allocation2 + $0xc0] sm:$0xf] %v706_v52 }
  0xdd   : > { %v2256_v39 = vpop.permute.xlu0 %2255  ;;  %704 = vst [vmem:[#allocation2 + $0xbc] sm:$0x1] %v703_v3  ;;  %v2485_v61 = vsel %vm2477_vm13, %v2452_v2, %v4654_v37  ;;  %v2197_v22 = vor.u32 %v2196_v40, %v2192_v14  ;;  %v2185_v51 = vor.u32 %v2184_v47, %v2180_v1  ;;  %v2189_v3 = vrot.slane %v2187_v0, 1  ;;  %v4826_v2 = vld [vmem:[#allocation2 + $0xa0] sm:$0xf] }
  0xde   : > { %1761 = vrot.lane.b32.xlu1 %v1690_v26, %s3831_s24  ;;  %v2615_v26 = vsel %vm2609_vm4, %v2582_v62, %v2256_v39  ;;  %v2518_v35 = vsel %vm2510_vm14, %v2485_v61, %v4673_v42  ;;  %v900_v42 = vld [vmem:[#allocation2 + $0x9c] sm:$0xe]  ;;  %v1191_v49 = vshrl.u32 %v4770_v43, 16  ;;  %v2361_v40 = vrot.slane %v3495_v58, 1 }
  0xdf   : > { %1759 = vrot.lane.b32.xlu0 %v1678_v46, %s3831_s24  ;;  %v1193_v46 = vshll.u32 %v4770_v43, 16  ;;  %v2551_v37 = vsel %vm2543_vm15, %v2518_v35, %v4695_v31  ;;  %v1184_v31 = vor.u32 %v1183_v21, %v1179_v12  ;;  %v214_v39 = vld [vmem:[%s3927_s17 + $0x7c] sm:$0xf]  ;;  %v3496_v0 = vcombine.low %v900_v42, %v4699_v54  ;;  %v4847_v42 = vld [vmem:[#allocation2 + $0xb0] ss:$0 sps:$4 sm:$0x11]  }
  0xe0   : > { %v4774_v4 = vpop.permute.xlu1 %1234  ;;  %v2584_v48 = vsel %vm2576_vm1, %v2551_v37, %v4717_v23  ;;  %v2202_v23 = vsel %vm1033_vm6, %v2197_v22, %v2201_v20  ;;  %v2190_v14 = vsel %vm1033_vm6, %v2185_v51, %v2189_v3  ;;  %v2362_v13 = vrot.slane %v4722_v24, 1  ;;  %v709_v37 = vld [vmem:[#allocation2 + $0xc8] sm:$0x1] }
  0xe1   : > { %v2384_v9 = vpop.permute.xlu0 %2383  ;;  %v2617_v28 = vsel %vm2609_vm4, %v2584_v48, %v2258_v44  ;;  %v1195_v59 = vrot.slane %v1193_v46, 1  ;;  %v773_v44 = vld [vmem:[#allocation2 + $0x9c] sm:$0xe]  ;;  %v538_v1 = vshrl.u32 %v214_v39, 16  ;;  %v1200_v5 = vrot.slane %v1198_v10, 1 }
  0xe2   : > { %1889 = vrot.lane.b32.xlu1 %v1854_v55, %s3829_s22  ;;  %v2648_v15 = vsel %vm2642_vm3, %v2615_v26, %v2384_v9  ;;  %v3402_v12 = vcombine.low %v773_v44, %v4747_v11  ;;  %v4830_v52 = vcombine.low %v802_v17, %v4818_v57  ;;  %v2364_v61 = vrot.slane %v3496_v0, 1  ;;  %v837_v0 = vld [vmem:[#allocation2 + $0xa8] sm:$0xe]  ;;  %v867_v17 = vld [vmem:[#allocation2 + $0xb4] sm:$0xf] }
  0xe3   : > { %1887 = vrot.lane.b32.xlu0 %v4720_v16, %s3829_s22  ;;  %3617 = vmatprep.mubr.msk.bf16.mxu0 %vm2695_vm5, %v2648_v15  ;;  %v1188_v16 = vrot.slane %v1186_v30, 1  ;;  %v800_v30 = vld [vmem:[#allocation2 + $0x9c] sm:$0xf]  ;;  %v1196_v62 = vor.u32 %v1195_v59, %v1191_v49  ;;  %v2365_v26 = vrot.slane %v4727_v34, 1  ;;  %v2363_v9 = vsel %vm1306_vm2, %v2361_v40, %v2362_v13 }
  0xe4   : > { %v4799_v55 = vpop.permute.xlu1 %1236  ;;  %v4839_v21 = vcombine.low %v800_v30, %v4826_v2  ;;  %v540_v35 = vrot.slane %v538_v1, 7  ;;  %v1347_v11 = vrot.slane %v4788_v32, 1  ;;  %v536_v22 = vrot.slane %v4738_v41, 4 }
  0xe5   : > { %v2386_v33 = vpop.permute.xlu0 %2385  ;;  %v1189_v54 = vsel %vm1033_vm6, %v1184_v31, %v1188_v16  ;;  %v541_v46 = vshll.u32 %v214_v39, 16  ;;  %v1201_v34 = vsel %vm1033_vm6, %v1196_v62, %v1200_v5  ;;  %v1346_v48 = vrot.slane %v3402_v12, 1  ;;  %v836_v16 = vld [vmem:[#allocation2 + $0x9c] sm:$0xe] }
  0xe6   : > { %2001 = vrot.lane.b32.xlu1 %v4712_v50, %s3828_s21  ;;  %v2650_v25 = vsel %vm2642_vm3, %v2617_v28, %v2386_v33  ;;  %v545_v58 = vrot.slane %v540_v35, 4  ;;  %v2366_v3 = vsel %vm1306_vm2, %v2364_v61, %v2365_v26  ;;  %v3790_v28 = vld [vmem:[#allocation2 + $0xa4] ss:$0 sps:$4 sm:$0x11]   ;;  %v1344_v41 = vrot.slane %v4736_v29, 1 }
  0xe7   : > { %1999 = vrot.lane.b32.xlu0 %v4708_v45, %s3828_s21  ;;  %3618 = vmatmul.mubr.msk.bf16.gmra.mxu0 %vm2695_vm5, %v2650_v25  ;;  %v772_v45 = vld [vmem:[#allocation2 + $0x90] sm:$0xe]  ;;  %v543_v32 = vor.u32 %v541_v46, %v540_v35  ;;  %v1694_v31 = vshll.u32 %v4839_v21, 16  ;;  %v1704_v49 = vshrl.u32 %v4830_v52, 16  ;;  %v1711_v29 = vshll.u32 %v4847_v42, 16 }
  0xe8   : > { %v4816_v50 = vpop.permute.xlu1 %1365  ;;  %v3401_v20 = vcombine.low %v772_v45, %v4714_v7  ;;  %v1706_v7 = vshll.u32 %v4830_v52, 16  ;;  %v710_v10 = vsel %vm3965_vm9, %v545_v58, %v709_v37  ;;  %v1692_v44 = vshrl.u32 %v4839_v21, 16  ;;  %v4875_v45 = vld [vmem:[#allocation2 + $0xac] sm:$0xf]  ;;  %v742_v58 = vld [vmem:[#allocation2 + $0xb4] sm:$0xf] }
  0xe9   : > { %v4822_v47 = vpop.permute.xlu0 %1363  ;;  %v544_v25 = vsel %vm3946_vm8, %v536_v22, %v543_v32  ;;  %711 = vst [vmem:[#allocation2 + $0xc8] sm:$0x1] %v710_v10  ;;  %v3449_v27 = vcombine.low %v836_v16, %v4826_v2  ;;  %v1696_v13 = vrot.slane %v1694_v31, 1  ;;  %v1699_v1 = vshll.u32 %v3790_v28, 16  ;;  %v740_v2 = vld [vmem:[#allocation2 + $0xa8] sm:$0xf] }
  0xea   : > { %2273 = vrot.lane.b32.xlu1 %v2202_v23, %s3832_s25  ;;  %v1343_v33 = vrot.slane %v3401_v20, 1  ;;  %v1348_v23 = vsel %vm1306_vm2, %v1346_v48, %v1347_v11  ;;  %v1708_v59 = vrot.slane %v1706_v7, 1  ;;  %708 = vst.msk [vmem:[#allocation2 + $0xc4] sm:$0xf] %vm215_vm0, %v544_v25  ;;  %v3450_v62 = vcombine.low %v837_v0, %v4818_v57  ;;  %v4882_v26 = vld [vmem:[#allocation2 + $0xac] sm:$0xf] }
  0xeb   : > { %2271 = vrot.lane.b32.xlu0 %v2190_v14, %s3832_s25  ;;  %v4872_v14 = vld [vmem:[#allocation2 + $0xb8] sm:$0xf]  ;;  %v1713_v12 = vrot.slane %v1711_v29, 1  ;;  %v1855_v20 = vrot.slane %v3449_v27, 1  ;;  %v1856_v35 = vrot.slane %v3790_v28, 1  ;;  %v1697_v22 = vor.u32 %v1696_v13, %v1692_v44 }
  0xec   : > { %v4833_v24 = vpop.permute.xlu1 %1477  ;;  %v1345_v40 = vsel %vm1306_vm2, %v1343_v33, %v1344_v41  ;;  %v1709_v5 = vor.u32 %v1708_v59, %v1704_v49  ;;  %v4880_v61 = vcombine.low %v867_v17, %v4872_v14  ;;  %v1701_v46 = vrot.slane %v1699_v1, 1  ;;  %v4890_v57 = vld [vmem:[#allocation2 + $0xb0] ss:$0 sps:$4 sm:$0x11]   ;;  %v4902_v33 = vld [vmem:[#allocation2 + $0xb8] sm:$0xf] }
  0xed   : > { %v4841_v15 = vpop.permute.xlu0 %1475  ;;  %v1859_v48 = vrot.slane %v4847_v42, 1  ;;  %v4896_v7 = vcombine.low %v740_v2, %v4882_v26  ;;  %v4899_v28 = vld [vmem:[#allocation2 + $0xbc] ss:$0 sps:$4 sm:$0x11]   ;;  %v2421_v41 = vsel %vm2411_vm11, %v4121_v38, %v4774_v4  ;;  %v1857_v42 = vsel %vm1306_vm2, %v1855_v20, %v1856_v35  ;;  %v901_v29 = vld [vmem:[#allocation2 + $0xa8] sm:$0xe] }
  0xee   : > { %1250 = vrot.lane.b32.xlu1 %v1189_v54, %s3826_s19  ;;  %v865_v54 = vld [vmem:[#allocation2 + $0xa8] sm:$0xf]  ;;  %v2218_v32 = vshll.u32 %v4880_v61, 16  ;;  %v2454_v16 = vsel %vm2444_vm12, %v2421_v41, %v4822_v47  ;;  %v1702_v10 = vsel %vm1033_vm6, %v1697_v22, %v1701_v46  ;;  %v4916_v49 = vld [vmem:[#allocation2 + $0xb0] ss:$0 sps:$4 sm:$0x11]   ;;  %v4924_v47 = vcombine.low %v742_v58, %v4902_v33 }
  0xef   : > { %2399 = vrot.lane.b32.xlu0 %v2363_v9, %s3830_s23  ;;  %v4888_v11 = vcombine.low %v865_v54, %v4875_v45  ;;  %v2487_v38 = vsel %vm2477_vm13, %v2454_v16, %v4841_v15  ;;  %v1205_v59 = vshll.u32 %v4896_v7, 16  ;;  %v2216_v44 = vshrl.u32 %v4880_v61, 16  ;;  %v902_v16 = vld [vmem:[#allocation2 + $0xb4] sm:$0xe] }
  0xf0   : > { %v4851_v51 = vpop.permute.xlu1 %1749  ;;  %v2220_v27 = vrot.slane %v2218_v32, 1  ;;  %v2223_v17 = vshll.u32 %v4899_v28, 16  ;;  %v2423_v15 = vsel %vm2411_vm11, %v4148_v60, %v4799_v55  ;;  %v1203_v54 = vshrl.u32 %v4896_v7, 16 }
  0xf1   : > { %v4858_v39 = vpop.permute.xlu0 %1747  ;;  %v2206_v31 = vshll.u32 %v4888_v11, 16  ;;  %v2204_v25 = vshrl.u32 %v4888_v11, 16  ;;  %v1207_v2 = vrot.slane %v1205_v59, 1  ;;  %v1217_v20 = vshll.u32 %v4924_v47, 16 }
  0xf2   : > { %1252 = vrot.lane.b32.xlu1 %v1201_v34, %s3826_s19  ;;  %v1858_v34 = vrot.slane %v3450_v62, 1  ;;  %v2520_v0 = vsel %vm2510_vm14, %v2487_v38, %v4858_v39  ;;  %v2456_v39 = vsel %vm2444_vm12, %v2423_v15, %v4816_v50  ;;  %v2221_v22 = vor.u32 %v2220_v27, %v2216_v44  ;;  %v4974_v38 = vld [vmem:[#allocation2 + $0xc4] sm:$0xf]  ;;  %v4982_v44 = vld [vmem:[#allocation2 + $0xb8] sm:$0xf] }
  0xf3   : > { %2401 = vrot.lane.b32.xlu0 %v2366_v3, %s3830_s23  ;;  %v1714_v3 = vsel %vm1033_vm6, %v1709_v5, %v1713_v12  ;;  %v2208_v1 = vrot.slane %v2206_v31, 1  ;;  %v1210_v5 = vshll.u32 %v4916_v49, 16  ;;  %v3497_v12 = vcombine.low %v901_v29, %v4875_v45 }
  0xf4   : > { %v4868_v56 = vpop.permute.xlu1 %1877  ;;  %v2489_v60 = vsel %vm2477_vm13, %v2456_v39, %v4833_v24  ;;  %v2225_v46 = vrot.slane %v2223_v17, 1  ;;  %v1215_v31 = vshrl.u32 %v4924_v47, 16  ;;  %v2371_v39 = vrot.slane %v4899_v28, 1 }
  0xf5   : > { %v1876_v30 = vpop.permute.xlu0 %1875  ;;  %v2522_v50 = vsel %vm2510_vm14, %v2489_v60, %v4851_v51  ;;  %v2209_v51 = vor.u32 %v2208_v1, %v2204_v25  ;;  %v1212_v58 = vrot.slane %v1210_v5, 1  ;;  %vm3021_vm0 = vcmask 125952  }
  0xf6   : > { %1381 = vrot.lane.b32.xlu1 %v1348_v23, %s3825_s18  ;;  %v2211_v23 = vshll.u32 %v4890_v57, 16  ;;  %v2555_v24 = vsel %vm2543_vm15, %v2522_v50, %v4868_v56  ;;  %v1208_v56 = vor.u32 %v1207_v2, %v1203_v54 }
  0xf7   : > { %1379 = vrot.lane.b32.xlu0 %v1345_v40, %s3825_s18  ;;  %v2553_v40 = vsel %vm2543_vm15, %v2520_v0, %v1876_v30  ;;  %v774_v0 = vld [vmem:[#allocation2 + $0xa8] sm:$0xe] }
  0xf8   : > { %v4885_v9 = vpop.permute.xlu1 %1989  ;;  %v1213_v29 = vsel %vm1033_vm6, %v1208_v56, %v1212_v58  ;;  %v839_v58 = vld [vmem:[#allocation2 + $0xc0] sm:$0xe] }
  0xf9   : > { %v1988_v37 = vpop.permute.xlu0 %1987 }
  0xfa   : > { %1493 = vrot.lane.b32.xlu1 %v4830_v52, %s3827_s20  ;;  %v2586_v62 = vsel %vm2576_vm1, %v2553_v40, %v1988_v37  ;;  %v4951_v37 = vld [vmem:[#allocation2 + $0xbc] ss:$0 sps:$4 sm:$0x11]  }
  0xfb   : > { %1491 = vrot.lane.b32.xlu0 %v4839_v21, %s3827_s20  ;;  %v1860_v21 = vsel %vm1306_vm2, %v1858_v34, %v1859_v48  ;;  %v2213_v34 = vrot.slane %v2211_v23, 1  ;;  %v2588_v48 = vsel %vm2576_vm1, %v2555_v24, %v4885_v9  ;;  %v2226_v23 = vsel %vm1033_vm6, %v2221_v22, %v2225_v46 }
  0xfc   : > { %v2262_v52 = vpop.permute.xlu1 %2261  ;;  %v1219_v9 = vrot.slane %v1217_v20, 1  ;;  %v1222_v25 = vshll.u32 %v4951_v37, 16 }
  0xfd   : > { %v2260_v4 = vpop.permute.xlu0 %2259  ;;  %v2621_v32 = vsel %vm2609_vm4, %v2588_v48, %v2262_v52  ;;  %v806_v52 = vld [vmem:[#allocation2 + $0xc0] sm:$0xf] }
  0xfe   : > { %1765 = vrot.lane.b32.xlu1 %v1714_v3, %s3831_s24  ;;  %v2619_v55 = vsel %vm2609_vm4, %v2586_v62, %v2260_v4  ;;  %v2368_v3 = vrot.slane %v4890_v57, 1  ;;  %v2214_v4 = vsel %vm1033_vm6, %v2209_v51, %v2213_v34  ;;  %v1220_v27 = vor.u32 %v1219_v9, %v1215_v31  ;;  %v838_v31 = vld [vmem:[#allocation2 + $0xb4] sm:$0xe] }
  0xff   : > { %1763 = vrot.lane.b32.xlu0 %v1702_v10, %s3831_s24  ;;  %v1224_v17 = vrot.slane %v1222_v25, 1  ;;  %v3420_v40 = vcombine.low %v806_v52, %v4974_v38  ;;  %v3403_v62 = vcombine.low %v774_v0, %v4882_v26  ;;  %v1350_v26 = vrot.slane %v4916_v49, 1 }
 0x100   : > { %v4935_v13 = vpop.permute.xlu1 %1238 }
 0x101   : > { %v2388_v30 = vpop.permute.xlu0 %2387  ;;  %v1730_v2 = vshll.u32 %v3420_v40, 16  ;;  %v1349_v50 = vrot.slane %v3403_v62, 1 }
 0x102   : > { %1893 = vrot.lane.b32.xlu1 %v1860_v21, %s3829_s22  ;;  %v2652_v35 = vsel %vm2642_vm3, %v2619_v55, %v2388_v30  ;;  %v3498_v21 = vcombine.low %v902_v16, %v4872_v14  ;;  %v1353_v55 = vrot.slane %v4951_v37, 1  ;;  %v3806_v30 = vld [vmem:[#allocation2 + $0xc8] ss:$0 sps:$4 sm:$0x11]   ;;  %v1728_v37 = vshrl.u32 %v3420_v40, 16 }
 0x103   : > { %1891 = vrot.lane.b32.xlu0 %v1857_v42, %s3829_s22  ;;  %3621 = vmatprep.mubr.msk.bf16.mxu0 %vm2695_vm5, %v2652_v35  ;;  %v2367_v42 = vrot.slane %v3497_v12, 1  ;;  %v5001_v35 = vld [vmem:[#allocation2 + $0xbc] ss:$0 sps:$4 sm:$0x11]   ;;  %v1732_v34 = vrot.slane %v1730_v2, 1  ;;  %v1735_v48 = vshll.u32 %v3806_v30, 16  ;;  %v1351_v49 = vsel %vm1306_vm2, %v1349_v50, %v1350_v26 }
 0x104   : > { %v4957_v45 = vpop.permute.xlu1 %1240  ;;  %v2370_v54 = vrot.slane %v3498_v21, 1  ;;  %v3451_v21 = vcombine.low %v838_v31, %v4982_v44 }
 0x105   : > { %v2390_v41 = vpop.permute.xlu0 %2389  ;;  %v2369_v14 = vsel %vm1306_vm2, %v2367_v42, %v2368_v3  ;;  %v871_v3 = vld [vmem:[#allocation2 + $0xcc] sm:$0xf]  ;;  %v1723_v42 = vshll.u32 %v5001_v35, 16  ;;  %v1733_v9 = vor.u32 %v1732_v34, %v1728_v37  ;;  %v1737_v25 = vrot.slane %v1735_v48, 1 }
 0x106   : > { %2005 = vrot.lane.b32.xlu1 %v4880_v61, %s3828_s21  ;;  %v2654_v10 = vsel %vm2642_vm3, %v2621_v32, %v2390_v41  ;;  %v775_v61 = vld [vmem:[#allocation2 + $0xb4] sm:$0xe]  ;;  %v2372_v28 = vsel %vm1306_vm2, %v2370_v54, %v2371_v39  ;;  %v5008_v32 = vld [vmem:[#allocation2 + $0xd0] sm:$0xf]  ;;  %v2425_v39 = vsel %vm2411_vm11, %v4241_v19, %v4935_v13  ;;  %v1861_v62 = vrot.slane %v3451_v21, 1 }
 0x107   : > { %2003 = vrot.lane.b32.xlu0 %v4888_v11, %s3828_s21  ;;  %3622 = vmatmul.mubr.msk.bf16.gmra.mxu0 %vm2695_vm5, %v2654_v10  ;;  %v804_v11 = vld [vmem:[#allocation2 + $0xb4] sm:$0xf]  ;;  %v3404_v15 = vcombine.low %v775_v61, %v4902_v33  ;;  %v1225_v33 = vsel %vm1033_vm6, %v1220_v27, %v1224_v17  ;;  %v869_v10 = vld [vmem:[#allocation2 + $0xc0] sm:$0xf]  ;;  %v3452_v61 = vcombine.low %v839_v58, %v4974_v38  ;;  %v1725_v0 = vrot.slane %v1723_v42, 1 }
 0x108   : > { %v4972_v57 = vpop.permute.xlu1 %1369  ;;  %v3419_v5 = vcombine.low %v804_v11, %v4982_v44  ;;  %v3468_v52 = vcombine.low %v871_v3, %v5008_v32  ;;  %v1738_v17 = vsel %vm1033_vm6, %v1733_v9, %v1737_v25  ;;  %v5022_v54 = vld [vmem:[#allocation2 + $0xd4] ss:$0 sps:$4 sm:$0x11]  }
 0x109   : > { %v4978_v59 = vpop.permute.xlu0 %1367  ;;  %v1352_v60 = vrot.slane %v3404_v15, 1  ;;  %v1864_v15 = vrot.slane %v3452_v61, 1  ;;  %v2247_v26 = vshll.u32 %v5022_v54, 16 }
 0x10a   : > { %2277 = vrot.lane.b32.xlu1 %v2226_v23, %s3832_s25  ;;  %v1718_v22 = vshll.u32 %v3419_v5, 16  ;;  %v1716_v41 = vshrl.u32 %v3419_v5, 16  ;;  %v5013_v23 = vld [vmem:[#allocation2 + $0xc4] sm:$0xf]  ;;  %v2242_v38 = vshll.u32 %v3468_v52, 16  ;;  %v2240_v50 = vshrl.u32 %v3468_v52, 16 }
 0x10b   : > { %2275 = vrot.lane.b32.xlu0 %v2214_v4, %s3832_s25  ;;  %v1354_v24 = vsel %vm1306_vm2, %v1352_v60, %v1353_v55  ;;  %v3467_v11 = vcombine.low %v869_v10, %v5013_v23  ;;  %v3813_v55 = vld [vmem:[#allocation2 + $0xc8] ss:$0 sps:$4 sm:$0x11]   ;;  %v2249_v31 = vrot.slane %v2247_v26, 1 }
 0x10c   : > { %v4987_v1 = vpop.permute.xlu1 %1481  ;;  %v1720_v56 = vrot.slane %v1718_v22, 1  ;;  %v2235_v58 = vshll.u32 %v3813_v55, 16 }
 0x10d   : > { %v1480_v12 = vpop.permute.xlu0 %1479  ;;  %v2228_v37 = vshrl.u32 %v3467_v11, 16 }
 0x10e   : > { %1254 = vrot.lane.b32.xlu1 %v1213_v29, %s3826_s19  ;;  %v1721_v29 = vor.u32 %v1720_v56, %v1716_v41  ;;  %v903_v41 = vld [vmem:[#allocation2 + $0xc0] sm:$0xe] }
 0x10f   : > { %2403 = vrot.lane.b32.xlu0 %v2369_v14, %s3830_s23  ;;  %v1865_v14 = vrot.slane %v3806_v30, 1  ;;  %v2230_v30 = vshll.u32 %v3467_v11, 16  ;;  %v3499_v25 = vcombine.low %v903_v41, %v5013_v23 }
 0x110   : > { %v4997_v20 = vpop.permute.xlu1 %1753  ;;  %v1726_v60 = vsel %vm1033_vm6, %v1721_v29, %v1725_v0  ;;  %v2377_v0 = vrot.slane %v5022_v54, 1 }
 0x111   : > { %v1752_v46 = vpop.permute.xlu0 %1751  ;;  %v1866_v13 = vsel %vm1306_vm2, %v1864_v15, %v1865_v14  ;;  %v2232_v48 = vrot.slane %v2230_v30, 1  ;;  %v2373_v23 = vrot.slane %v3499_v25, 1 }
 0x112   : > { %1256 = vrot.lane.b32.xlu1 %v1225_v33, %s3826_s19  ;;  %v1862_v33 = vrot.slane %v5001_v35, 1  ;;  %v904_v35 = vld [vmem:[#allocation2 + $0xcc] sm:$0xe] }
 0x113   : > { %2405 = vrot.lane.b32.xlu0 %v2372_v28, %s3830_s23  ;;  %v2233_v9 = vor.u32 %v2232_v48, %v2228_v37 }
 0x114   : > { %v5006_v51 = vpop.permute.xlu1 %1881 }
 0x115   : > { %v1880_v16 = vpop.permute.xlu0 %1879 }
 0x116   : > { %1385 = vrot.lane.b32.xlu1 %v1354_v24, %s3825_s18  ;;  %v1863_v24 = vsel %vm1306_vm2, %v1861_v62, %v1862_v33 }
 0x117   : > { %1383 = vrot.lane.b32.xlu0 %v1351_v49, %s3825_s18  ;;  %v3500_v49 = vcombine.low %v904_v35, %v5008_v32  ;;  %v2237_v32 = vrot.slane %v2235_v58, 1 }
 0x118   : > { %v1994_v4 = vpop.permute.xlu1 %1993 }
 0x119   : > { %v1992_v27 = vpop.permute.xlu0 %1991  ;;  %v2376_v29 = vrot.slane %v3500_v49, 1 }
 0x11a   : > { %1497 = vrot.lane.b32.xlu1 %v3420_v40, %s3827_s20  ;;  %v2458_v40 = vsel %vm2444_vm12, %v2425_v39, %v4978_v59  ;;  %v2427_v59 = vsel %vm2411_vm11, %v4268_v18, %v4957_v45 }
 0x11b   : > { %1495 = vrot.lane.b32.xlu0 %v3419_v5, %s3827_s20  ;;  %v2491_v2 = vsel %vm2477_vm13, %v2458_v40, %v1480_v12  ;;  %v2244_v5 = vrot.slane %v2242_v38, 1 }
 0x11c   : > { %v2266_v44 = vpop.permute.xlu1 %2265  ;;  %v2524_v19 = vsel %vm2510_vm14, %v2491_v2, %v1752_v46  ;;  %v2460_v46 = vsel %vm2444_vm12, %v2427_v59, %v4972_v57 }
 0x11d   : > { %v2264_v28 = vpop.permute.xlu0 %2263  ;;  %v2557_v22 = vsel %vm2543_vm15, %v2524_v19, %v1880_v16  ;;  %v2493_v3 = vsel %vm2477_vm13, %v2460_v46, %v4987_v1  ;;  %v2245_v42 = vor.u32 %v2244_v5, %v2240_v50 }
 0x11e   : > { %1769 = vrot.lane.b32.xlu1 %v1738_v17, %s3831_s24  ;;  %v2590_v34 = vsel %vm2576_vm1, %v2557_v22, %v1992_v27  ;;  %v2526_v56 = vsel %vm2510_vm14, %v2493_v3, %v4997_v20  ;;  %v2238_v27 = vsel %vm1033_vm6, %v2233_v9, %v2237_v32  ;;  %v2374_v17 = vrot.slane %v3813_v55, 1 }
 0x11f   : > { %1767 = vrot.lane.b32.xlu0 %v1726_v60, %s3831_s24  ;;  %v2623_v18 = vsel %vm2609_vm4, %v2590_v34, %v2264_v28  ;;  %v2559_v16 = vsel %vm2543_vm15, %v2526_v56, %v5006_v51  ;;  %v2250_v51 = vsel %vm1033_vm6, %v2245_v42, %v2249_v31  ;;  %vm3259_vm6 = vcmask 123904  }
 0x120   : > { %v1243_v12 = vpop.permute.xlu1 %1242  ;;  %v2592_v10 = vsel %vm2576_vm1, %v2559_v16, %v1994_v4  ;;  %v2375_v38 = vsel %vm1306_vm2, %v2373_v23, %v2374_v17 }
 0x121   : > { %v2392_v45 = vpop.permute.xlu0 %2391  ;;  %v2625_v20 = vsel %vm2609_vm4, %v2592_v10, %v2266_v44  ;;  %v2429_v60 = vsel %vm2411_vm11, %v4367_v36, %v1243_v12 }
 0x122   : > { %1897 = vrot.lane.b32.xlu1 %v1866_v13, %s3829_s22  ;;  %v2656_v57 = vsel %vm2642_vm3, %v2623_v18, %v2392_v45 }
 0x123   : > { %1895 = vrot.lane.b32.xlu0 %v1863_v24, %s3829_s22  ;;  %3625 = vmatprep.mubr.msk.bf16.mxu0 %vm2695_vm5, %v2656_v57 }
 0x124   : > { %v1245_v1 = vpop.permute.xlu1 %1244 }
 0x125   : > { %v2394_v61 = vpop.permute.xlu0 %2393  ;;  %v2431_v19 = vsel %vm2411_vm11, %v4407_v6, %v1245_v1 }
 0x126   : > { %2009 = vrot.lane.b32.xlu1 %v3468_v52, %s3828_s21  ;;  %v2658_v21 = vsel %vm2642_vm3, %v2625_v20, %v2394_v61  ;;  %v2378_v52 = vsel %vm1306_vm2, %v2376_v29, %v2377_v0  ;;  %vm3257_vm2 = vcmask 1040384  }
 0x127   : > { %2007 = vrot.lane.b32.xlu0 %v3467_v11, %s3828_s21  ;;  %3626 = vmatmul.mubr.msk.bf16.gmra.mxu0 %vm2695_vm5, %v2658_v21 }
 0x128   : > { %v1374_v4 = vpop.permute.xlu1 %1373 }
 0x129   : > { %v1372_v15 = vpop.permute.xlu0 %1371  ;;  %v2464_v26 = vsel %vm2444_vm12, %v2431_v19, %v1374_v4 }
 0x12a   : > { %2281 = vrot.lane.b32.xlu1 %v2250_v51, %s3832_s25  ;;  %v2462_v30 = vsel %vm2444_vm12, %v2429_v60, %v1372_v15 }
 0x12b   : > { %2279 = vrot.lane.b32.xlu0 %v2238_v27, %s3832_s25 }
 0x12c   : > { %v1486_v14 = vpop.permute.xlu1 %1485 }
 0x12d   : > { %v1484_v54 = vpop.permute.xlu0 %1483  ;;  %v2497_v36 = vsel %vm2477_vm13, %v2464_v26, %v1486_v14 }
 0x12e   : > { %2409 = vrot.lane.b32.xlu1 %v2378_v52, %s3830_s23  ;;  %v2495_v2 = vsel %vm2477_vm13, %v2462_v30, %v1484_v54 }
 0x12f   : > { %2407 = vrot.lane.b32.xlu0 %v2375_v38, %s3830_s23 }
 0x130   : > { %v1758_v11 = vpop.permute.xlu1 %1757 }
 0x131   : > { %v1756_v39 = vpop.permute.xlu0 %1755  ;;  %v2530_v12 = vsel %vm2510_vm14, %v2497_v36, %v1758_v11 }
 0x132   : > { %v2528_v50 = vsel %vm2510_vm14, %v2495_v2, %v1756_v39 }
 0x134   : > { %v1886_v44 = vpop.permute.xlu1 %1885 }
 0x135   : > { %v1884_v62 = vpop.permute.xlu0 %1883  ;;  %v2563_v37 = vsel %vm2543_vm15, %v2530_v12, %v1886_v44 }
 0x136   : > { %v2561_v13 = vsel %vm2543_vm15, %v2528_v50, %v1884_v62 }
 0x138   : > { %v1998_v33 = vpop.permute.xlu1 %1997 }
 0x139   : > { %v1996_v40 = vpop.permute.xlu0 %1995  ;;  %v2596_v46 = vsel %vm2576_vm1, %v2563_v37, %v1998_v33 }
 0x13a   : > { %v2594_v35 = vsel %vm2576_vm1, %v2561_v13, %v1996_v40 }
 0x13c   : > { %v2270_v55 = vpop.permute.xlu1 %2269 }
 0x13d   : > { %v2268_v28 = vpop.permute.xlu0 %2267  ;;  %v2629_v34 = vsel %vm2609_vm4, %v2596_v46, %v2270_v55 }
 0x13e   : > { %v2627_v59 = vsel %vm2609_vm4, %v2594_v35, %v2268_v28 }
 0x140   : > { %v1247_v5 = vpop.permute.xlu1 %1246 }
 0x141   : > { %v2396_v22 = vpop.permute.xlu0 %2395  ;;  %v2433_v1 = vsel %vm2411_vm11, %v4534_v63, %v1247_v5 }
 0x142   : > { %v2660_v24 = vsel %vm2642_vm3, %v2627_v59, %v2396_v22 }
 0x143   : > { %3629 = vmatprep.mubr.msk.bf16.mxu1 %vm2695_vm5, %v2660_v24 }
 0x144   : > { %v1249_v6 = vpop.permute.xlu1 %1248 }
 0x145   : > { %v2398_v48 = vpop.permute.xlu0 %2397  ;;  %v2435_v61 = vsel %vm2411_vm11, %v4579_v53, %v1249_v6 }
 0x146   : > { %v2662_v58 = vsel %vm2642_vm3, %v2629_v34, %v2398_v48 }
 0x147   : > { %3630 = vmatmul.mubr.msk.bf16.vlgmr.msra.gmra.mxu1 %vm2695_vm5, %v2662_v58 }
 0x148   : > { %v1378_v3 = vpop.permute.xlu1 %1377 }
 0x149   : > { %v1376_v18 = vpop.permute.xlu0 %1375  ;;  %v2468_v29 = vsel %vm2444_vm12, %v2435_v61, %v1378_v3 }
 0x14a   : > { %v2466_v9 = vsel %vm2444_vm12, %v2433_v1, %v1376_v18 }
 0x14c   : > { %v1490_v45 = vpop.permute.xlu1 %1489 }
 0x14d   : > { %v1488_v49 = vpop.permute.xlu0 %1487  ;;  %v2501_v63 = vsel %vm2477_vm13, %v2468_v29, %v1490_v45 }
 0x14e   : > { %v2499_v32 = vsel %vm2477_vm13, %v2466_v9, %v1488_v49 }
 0x150   : > { %v1762_v41 = vpop.permute.xlu1 %1761 }
 0x151   : > { %v1760_v56 = vpop.permute.xlu0 %1759  ;;  %v2534_v23 = vsel %vm2510_vm14, %v2501_v63, %v1762_v41 }
 0x152   : > { %v2532_v20 = vsel %vm2510_vm14, %v2499_v32, %v1760_v56 }
 0x154   : > { %v1890_v57 = vpop.permute.xlu1 %1889 }
 0x155   : > { %v1888_v42 = vpop.permute.xlu0 %1887  ;;  %v2567_v15 = vsel %vm2543_vm15, %v2534_v23, %v1890_v57 }
 0x156   : > { %v2565_v21 = vsel %vm2543_vm15, %v2532_v20, %v1888_v42 }
 0x158   : > { %v2002_v31 = vpop.permute.xlu1 %2001 }
 0x159   : > { %v2000_v16 = vpop.permute.xlu0 %1999  ;;  %v2600_v52 = vsel %vm2576_vm1, %v2567_v15, %v2002_v31 }
 0x15a   : > { %v2598_v0 = vsel %vm2576_vm1, %v2565_v21, %v2000_v16 }
 0x15c   : > { %v2274_v10 = vpop.permute.xlu1 %2273 }
 0x15d   : > { %v2272_v25 = vpop.permute.xlu0 %2271  ;;  %v2633_v14 = vsel %vm2609_vm4, %v2600_v52, %v2274_v10 }
 0x15e   : > { %v2631_v4 = vsel %vm2609_vm4, %v2598_v0, %v2272_v25 }
 0x160   : > { %v1251_v51 = vpop.permute.xlu1 %1250 }
 0x161   : > { %v2400_v27 = vpop.permute.xlu0 %2399  ;;  %v2437_v28 = vsel %vm2411_vm11, %v4730_v8, %v1251_v51 }
 0x162   : > { %v2664_v17 = vsel %vm2642_vm3, %v2631_v4, %v2400_v27 }
 0x163   : > { %3633 = vmatprep.mubr.msk.bf16.mxu1 %vm2695_vm5, %v2664_v17 }
 0x164   : > { %v1253_v53 = vpop.permute.xlu1 %1252 }
 0x165   : > { %v2402_v38 = vpop.permute.xlu0 %2401  ;;  %v2439_v35 = vsel %vm2411_vm11, %v4770_v43, %v1253_v53 }
 0x166   : > { %v2666_v54 = vsel %vm2642_vm3, %v2633_v14, %v2402_v38 }
 0x167   : > { %3634 = vmatmul.mubr.msk.bf16.gmra.mxu1 %vm2695_vm5, %v2666_v54 }
 0x168   : > { %v1382_v11 = vpop.permute.xlu1 %1381 }
 0x169   : > { %v1380_v39 = vpop.permute.xlu0 %1379  ;;  %v2472_v22 = vsel %vm2444_vm12, %v2439_v35, %v1382_v11 }
 0x16a   : > { %v2470_v19 = vsel %vm2444_vm12, %v2437_v28, %v1380_v39 }
 0x16c   : > { %v1494_v44 = vpop.permute.xlu1 %1493 }
 0x16d   : > { %v1492_v62 = vpop.permute.xlu0 %1491  ;;  %v2505_v8 = vsel %vm2477_vm13, %v2472_v22, %v1494_v44 }
 0x16e   : > { %v2503_v13 = vsel %vm2477_vm13, %v2470_v19, %v1492_v62 }
 0x170   : > { %v1766_v33 = vpop.permute.xlu1 %1765 }
 0x171   : > { %v1764_v40 = vpop.permute.xlu0 %1763  ;;  %v2538_v6 = vsel %vm2510_vm14, %v2505_v8, %v1766_v33 }
 0x172   : > { %v2536_v26 = vsel %vm2510_vm14, %v2503_v13, %v1764_v40 }
 0x174   : > { %v1894_v60 = vpop.permute.xlu1 %1893 }
 0x175   : > { %v1892_v55 = vpop.permute.xlu0 %1891  ;;  %v2571_v34 = vsel %vm2543_vm15, %v2538_v6, %v1894_v60 }
 0x176   : > { %v2569_v36 = vsel %vm2543_vm15, %v2536_v26, %v1892_v55 }
 0x178   : > { %v2006_v30 = vpop.permute.xlu1 %2005 }
 0x179   : > { %v2004_v2 = vpop.permute.xlu0 %2003  ;;  %v2604_v48 = vsel %vm2576_vm1, %v2571_v34, %v2006_v30 }
 0x17a   : > { %v2602_v12 = vsel %vm2576_vm1, %v2569_v36, %v2004_v2 }
 0x17c   : > { %v2278_v50 = vpop.permute.xlu1 %2277 }
 0x17d   : > { %v2276_v5 = vpop.permute.xlu0 %2275  ;;  %v2637_v58 = vsel %vm2609_vm4, %v2604_v48, %v2278_v50 }
 0x17e   : > { %v2635_v24 = vsel %vm2609_vm4, %v2602_v12, %v2276_v5 }
 0x180   : > { %v1255_v59 = vpop.permute.xlu1 %1254 }
 0x181   : > { %v2404_v37 = vpop.permute.xlu0 %2403  ;;  %v2441_v63 = vsel %vm2411_vm11, %v4896_v7, %v1255_v59 }
 0x182   : > { %v2668_v46 = vsel %vm2642_vm3, %v2635_v24, %v2404_v37 }
 0x183   : > { %3637 = vmatprep.mubr.msk.bf16.mxu1 %vm2695_vm5, %v2668_v46 }
 0x184   : > { %v1257_v43 = vpop.permute.xlu1 %1256 }
 0x185   : > { %v2406_v3 = vpop.permute.xlu0 %2405  ;;  %v2443_v0 = vsel %vm2411_vm11, %v4924_v47, %v1257_v43 }
 0x186   : > { %v2670_v18 = vsel %vm2642_vm3, %v2637_v58, %v2406_v3 }
 0x187   : > { %v5140_v45 = vpop.f32.mrf.mxu0  ;;  %3638 = vmatmul.mubr.msk.bf16.gmra.mxu1 %vm2695_vm5, %v2670_v18 }
 0x188   : > { %v1386_v49 = vpop.permute.xlu1 %1385  ;;  %v3558_v41 = vpack.c.bf16 %v5140_v45, %v5140_v45 }
 0x189   : > { %v5145_v56 = vpop.f32.mrf.mxu0  ;;  %v1384_v57 = vpop.permute.xlu0 %1383  ;;  %v2476_v4 = vsel %vm2444_vm12, %v2443_v0, %v1386_v49 }
 0x18a   : > { %3024 = vst.msk [vmem:[%s5138_s7 + $0x8] sm:$0xf] %vm3021_vm0, %v3558_v41  ;;  %v3556_v42 = vpack.c.bf16 %v5145_v56, %v5145_v56  ;;  %v2474_v23 = vsel %vm2444_vm12, %v2441_v63, %v1384_v57 }
 0x18b   : > { %v5151_v31 = vpop.f32.mrf.mxu0 }
 0x18c   : > { %v1498_v16 = vpop.permute.xlu1 %1497  ;;  %3022 = vst.msk [vmem:[%s5138_s7] sm:$0xf] %vm3021_vm0, %v3556_v42  ;;  %v3559_v1 = vpack.c.bf16 %v5151_v31, %v5151_v31 }
 0x18d   : > { %v5157_v10 = vpop.f32.mrf.mxu0  ;;  %v1496_v9 = vpop.permute.xlu0 %1495  ;;  %v2509_v17 = vsel %vm2477_vm13, %v2476_v4, %v1498_v16 }
 0x18e   : > { %3025 = vst.msk [vmem:[%s5138_s7 + $0xc] sm:$0xf] %vm3021_vm0, %v3559_v1  ;;  %v3557_v32 = vpack.c.bf16 %v5157_v10, %v5157_v10  ;;  %v2507_v15 = vsel %vm2477_vm13, %v2474_v23, %v1496_v9  ;;  %v3055_v9 = vsel %vm2510_vm14, %v5157_v10, 0.0 }
 0x190   : > { %v1770_v25 = vpop.permute.xlu1 %1769  ;;  %3023 = vst.msk [vmem:[%s5138_s7 + $0x4] sm:$0xf] %vm3021_vm0, %v3557_v32  ;;  %v3054_v32 = vsel %vm2510_vm14, %v5145_v56, 0.0 }
 0x191   : > { %v1768_v20 = vpop.permute.xlu0 %1767  ;;  %v2542_v53 = vsel %vm2510_vm14, %v2509_v17, %v1770_v25  ;;  %v3056_v25 = vadd.f32 %v3055_v9, %v3054_v32 }
 0x192   : > { %v2540_v14 = vsel %vm2510_vm14, %v2507_v15, %v1768_v20  ;;  %v3057_v20 = vsel %vm2510_vm14, %v5140_v45, 0.0 }
 0x194   : > { %v1898_v61 = vpop.permute.xlu1 %1897 }
 0x195   : > { %v1896_v21 = vpop.permute.xlu0 %1895  ;;  %v2575_v47 = vsel %vm2543_vm15, %v2542_v53, %v1898_v61  ;;  %v3058_v61 = vadd.f32 %v3057_v20, %v3056_v25 }
 0x196   : > { %v2573_v38 = vsel %vm2543_vm15, %v2540_v14, %v1896_v21  ;;  %v3059_v21 = vsel %vm2510_vm14, %v5151_v31, 0.0 }
 0x198   : > { %v2010_v51 = vpop.permute.xlu1 %2009 }
 0x199   : > { %v2008_v29 = vpop.permute.xlu0 %2007  ;;  %v2608_v7 = vsel %vm2576_vm1, %v2575_v47, %v2010_v51 }
 0x19a   : > { %v2606_v11 = vsel %vm2576_vm1, %v2573_v38, %v2008_v29  ;;  %v3060_v29 = vadd.f32 %v3059_v21, %v3058_v61 }
 0x19c   : > { %v2282_v27 = vpop.permute.xlu1 %2281 }
 0x19d   : > { %v2280_v52 = vpop.permute.xlu0 %2279  ;;  %v2641_v39 = vsel %vm2609_vm4, %v2608_v7, %v2282_v27 }
 0x19e   : > { %v2639_v44 = vsel %vm2609_vm4, %v2606_v11, %v2280_v52 }
 0x1a0   : > { %v2410_v54 = vpop.permute.xlu1 %2409 }
 0x1a1   : > { %v2674_v62 = vsel %vm2642_vm3, %v2641_v39, %v2410_v54  ;;  %v2408_v33 = vpop.permute.xlu0 %2407 }
 0x1a2   : > { %v2672_v40 = vsel %vm2642_vm3, %v2639_v44, %v2408_v33 }
 0x1a3   : > { %3641 = vmatprep.mubr.msk.bf16.mxu1 %vm2695_vm5, %v2672_v40 }
 0x1a4   : > { %3642 = vmatmul.mubr.msk.bf16.gmra.mxu1 %vm2695_vm5, %v2674_v62 }
 0x1a7   : > { %v5185_v60 = vpop.f32.mrf.mxu0 }
 0x1a8   : > { %v3562_v55 = vpack.c.bf16 %v5185_v60, %v5185_v60  ;;  %v3065_v27 = vsel %vm2510_vm14, %v5185_v60, 0.0 }
 0x1a9   : > { %v5189_v30 = vpop.f32.mrf.mxu0 }
 0x1aa   : > { %3028 = vst.msk [vmem:[%s5138_s7 + $0x18] sm:$0xf] %vm3021_vm0, %v3562_v55  ;;  %v3560_v2 = vpack.c.bf16 %v5189_v30, %v5189_v30  ;;  %v3061_v51 = vsel %vm2510_vm14, %v5189_v30, 0.0 }
 0x1ab   : > { %v5195_v28 = vpop.f32.mrf.mxu0  ;;  %v3062_v63 = vadd.f32 %v3061_v51, %v3060_v29 }
 0x1ac   : > { %3026 = vst.msk [vmem:[%s5138_s7 + $0x10] sm:$0xf] %vm3021_vm0, %v3560_v2  ;;  %v3563_v50 = vpack.c.bf16 %v5195_v28, %v5195_v28  ;;  %v3067_v14 = vsel %vm2510_vm14, %v5195_v28, 0.0 }
 0x1ad   : > { %v5201_v19 = vpop.f32.mrf.mxu0 }
 0x1ae   : > { %3029 = vst.msk [vmem:[%s5138_s7 + $0x1c] sm:$0xf] %vm3021_vm0, %v3563_v50  ;;  %v3561_v13 = vpack.c.bf16 %v5201_v19, %v5201_v19  ;;  %v3063_v0 = vsel %vm2510_vm14, %v5201_v19, 0.0 }
 0x1af   : > { %v3064_v4 = vadd.f32 %v3063_v0, %v3062_v63 }
 0x1b0   : > { %3027 = vst.msk [vmem:[%s5138_s7 + $0x14] sm:$0xf] %vm3021_vm0, %v3561_v13 }
 0x1b1   : > { %v3066_v17 = vadd.f32 %v3065_v27, %v3064_v4 }
 0x1b3   : > { %v3068_v7 = vadd.f32 %v3067_v14, %v3066_v17 }
 0x1c7   : > { %v5209_v5 = vpop.f32.mrf.mxu0 }
 0x1c8   : > { %v3566_v26 = vpack.c.bf16 %v5209_v5, %v5209_v5  ;;  %v3073_v40 = vsel %vm2510_vm14, %v5209_v5, 0.0 }
 0x1c9   : > { %v5213_v35 = vpop.f32.mrf.mxu0 }
 0x1ca   : > { %3032 = vst.msk [vmem:[%s5138_s7 + $0x28] sm:$0xf] %vm3021_vm0, %v3566_v26  ;;  %v3564_v36 = vpack.c.bf16 %v5213_v35, %v5213_v35  ;;  %v3069_v47 = vsel %vm2510_vm14, %v5213_v35, 0.0 }
 0x1cb   : > { %v5219_v59 = vpop.f32.mrf.mxu0  ;;  %v3070_v44 = vadd.f32 %v3069_v47, %v3068_v7 }
 0x1cc   : > { %3030 = vst.msk [vmem:[%s5138_s7 + $0x20] sm:$0xf] %vm3021_vm0, %v3564_v36  ;;  %v3567_v22 = vpack.c.bf16 %v5219_v59, %v5219_v59  ;;  %v3075_v2 = vsel %vm2510_vm14, %v5219_v59, 0.0 }
 0x1cd   : > { %v5225_v12 = vpop.f32.mrf.mxu0 }
 0x1ce   : > { %3033 = vst.msk [vmem:[%s5138_s7 + $0x2c] sm:$0xf] %vm3021_vm0, %v3567_v22  ;;  %v3565_v8 = vpack.c.bf16 %v5225_v12, %v5225_v12  ;;  %v3071_v11 = vsel %vm2510_vm14, %v5225_v12, 0.0 }
 0x1cf   : > { %v3072_v33 = vadd.f32 %v3071_v11, %v3070_v44 }
 0x1d0   : > { %3031 = vst.msk [vmem:[%s5138_s7 + $0x24] sm:$0xf] %vm3021_vm0, %v3565_v8 }
 0x1d1   : > { %v3074_v55 = vadd.f32 %v3073_v40, %v3072_v33 }
 0x1d3   : > { %v3076_v13 = vadd.f32 %v3075_v2, %v3074_v55 }
 0x1e7   : > { %v5233_v24 = vpop.f32.mrf.mxu0 }
 0x1e8   : > { %v3570_v37 = vpack.c.bf16 %v5233_v24, %v5233_v24  ;;  %v3081_v8 = vsel %vm2510_vm14, %v5233_v24, 0.0 }
 0x1e9   : > { %v5237_v6 = vpop.f32.mrf.mxu0 }
 0x1ea   : > { %3036 = vst.msk [vmem:[%s5138_s7 + $0x38] sm:$0xf] %vm3021_vm0, %v3570_v37  ;;  %v3568_v46 = vpack.c.bf16 %v5237_v6, %v5237_v6  ;;  %v3077_v50 = vsel %vm2510_vm14, %v5237_v6, 0.0 }
 0x1eb   : > { %v5243_v34 = vpop.f32.mrf.mxu0  ;;  %v3078_v36 = vadd.f32 %v3077_v50, %v3076_v13 }
 0x1ec   : > { %3034 = vst.msk [vmem:[%s5138_s7 + $0x30] sm:$0xf] %vm3021_vm0, %v3568_v46  ;;  %v3571_v43 = vpack.c.bf16 %v5243_v34, %v5243_v34  ;;  %v3083_v46 = vsel %vm2510_vm14, %v5243_v34, 0.0 }
 0x1ed   : > { %v5249_v48 = vpop.f32.mrf.mxu0 }
 0x1ee   : > { %3037 = vst.msk [vmem:[%s5138_s7 + $0x3c] sm:$0xf] %vm3021_vm0, %v3571_v43  ;;  %v3569_v58 = vpack.c.bf16 %v5249_v48, %v5249_v48  ;;  %v3079_v26 = vsel %vm2510_vm14, %v5249_v48, 0.0 }
 0x1ef   : > { %v3080_v22 = vadd.f32 %v3079_v26, %v3078_v36 }
 0x1f0   : > { %3035 = vst.msk [vmem:[%s5138_s7 + $0x34] sm:$0xf] %vm3021_vm0, %v3569_v58 }
 0x1f1   : > { %v3082_v37 = vadd.f32 %v3081_v8, %v3080_v22 }
 0x1f3   : > { %v3084_v58 = vadd.f32 %v3083_v46, %v3082_v37 }
 0x207   : > { %v5257_v3 = vpop.f32.mrf.mxu1 }
 0x208   : > { %v3574_v18 = vpack.c.bf16 %v5257_v3, %v5257_v3  ;;  %v3089_v20 = vsel %vm2510_vm14, %v5257_v3, 0.0 }
 0x209   : > { %v5261_v49 = vpop.f32.mrf.mxu1 }
 0x20a   : > { %3040 = vst.msk [vmem:[%s5138_s7 + $0x48] sm:$0xf] %vm3021_vm0, %v3574_v18  ;;  %v3572_v41 = vpack.c.bf16 %v5261_v49, %v5261_v49  ;;  %v3085_v43 = vsel %vm2510_vm14, %v5261_v49, 0.0 }
 0x20b   : > { %v5267_v57 = vpop.f32.mrf.mxu1 }
 0x20c   : > { %3038 = vst.msk [vmem:[%s5138_s7 + $0x40] sm:$0xf] %vm3021_vm0, %v3572_v41  ;;  %v3575_v42 = vpack.c.bf16 %v5267_v57, %v5267_v57  ;;  %v3086_v41 = vadd.f32 %v3085_v43, %v3084_v58  ;;  %v3091_v63 = vsel %vm2510_vm14, %v5267_v57, 0.0 }
 0x20d   : > { %v5273_v16 = vpop.f32.mrf.mxu1 }
 0x20e   : > { %3041 = vst.msk [vmem:[%s5138_s7 + $0x4c] sm:$0xf] %vm3021_vm0, %v3575_v42  ;;  %v3573_v1 = vpack.c.bf16 %v5273_v16, %v5273_v16  ;;  %v3087_v18 = vsel %vm2510_vm14, %v5273_v16, 0.0 }
 0x210   : > { %3039 = vst.msk [vmem:[%s5138_s7 + $0x44] sm:$0xf] %vm3021_vm0, %v3573_v1  ;;  %v3088_v1 = vadd.f32 %v3087_v18, %v3086_v41 }
 0x212   : > { %v3090_v21 = vadd.f32 %v3089_v20, %v3088_v1 }
 0x214   : > { %v3092_v27 = vadd.f32 %v3091_v63, %v3090_v21 }
 0x227   : > { %v5295_v23 = vpop.f32.mrf.mxu1 }
 0x228   : > { %v3578_v15 = vpack.c.bf16 %v5295_v23, %v5295_v23  ;;  %v3097_v14 = vsel %vm2510_vm14, %v5295_v23, 0.0 }
 0x229   : > { %v5299_v53 = vpop.f32.mrf.mxu1 }
 0x22a   : > { %3044 = vst.msk [vmem:[%s5138_s7 + $0x58] sm:$0xf] %vm3021_vm0, %v3578_v15  ;;  %v3576_v52 = vpack.c.bf16 %v5299_v53, %v5299_v53  ;;  %v3093_v4 = vsel %vm2510_vm14, %v5299_v53, 0.0 }
 0x22b   : > { %v5309_v38 = vpop.f32.mrf.mxu1  ;;  %v3094_v15 = vadd.f32 %v3093_v4, %v3092_v27 }
 0x22c   : > { %3042 = vst.msk [vmem:[%s5138_s7 + $0x50] sm:$0xf] %vm3021_vm0, %v3576_v52  ;;  %v3579_v54 = vpack.c.bf16 %v5309_v38, %v5309_v38  ;;  %v3099_v7 = vsel %vm2510_vm14, %v5309_v38, 0.0 }
 0x22d   : > { %v5317_v39 = vpop.f32.mrf.mxu1 }
 0x22e   : > { %3045 = vst.msk [vmem:[%s5138_s7 + $0x5c] sm:$0xf] %vm3021_vm0, %v3579_v54  ;;  %v3577_v62 = vpack.c.bf16 %v5317_v39, %v5317_v39  ;;  %v3095_v17 = vsel %vm2510_vm14, %v5317_v39, 0.0 }
 0x22f   : > { %v3096_v52 = vadd.f32 %v3095_v17, %v3094_v15 }
 0x230   : > { %3043 = vst.msk [vmem:[%s5138_s7 + $0x54] sm:$0xf] %vm3021_vm0, %v3577_v62 }
 0x231   : > { %v3098_v47 = vadd.f32 %v3097_v14, %v3096_v52 }
 0x233   : > { %v3100_v11 = vadd.f32 %v3099_v7, %v3098_v47 }
 0x247   : > { %v5341_v42 = vpop.f32.mrf.mxu1 }
 0x248   : > { %v3582_v9 = vpack.c.bf16 %v5341_v42, %v5341_v42  ;;  %v3105_v40 = vsel %vm2510_vm14, %v5341_v42, 0.0 }
 0x249   : > { %v5345_v32 = vpop.f32.mrf.mxu1 }
 0x24a   : > { %3048 = vst.msk [vmem:[%s5138_s7 + $0x68] sm:$0xf] %vm3021_vm0, %v3582_v9  ;;  %v3580_v25 = vpack.c.bf16 %v5345_v32, %v5345_v32  ;;  %v3101_v54 = vsel %vm2510_vm14, %v5345_v32, 0.0 }
 0x24b   : > { %v5353_v61 = vpop.f32.mrf.mxu1  ;;  %v3102_v62 = vadd.f32 %v3101_v54, %v3100_v11 }
 0x24c   : > { %3046 = vst.msk [vmem:[%s5138_s7 + $0x60] sm:$0xf] %vm3021_vm0, %v3580_v25  ;;  %v3583_v51 = vpack.c.bf16 %v5353_v61, %v5353_v61  ;;  %v3107_v26 = vsel %vm2510_vm14, %v5353_v61, 0.0 }
 0x24d   : > { %v5359_v29 = vpop.f32.mrf.mxu1 }
 0x24e   : > { %3049 = vst.msk [vmem:[%s5138_s7 + $0x6c] sm:$0xf] %vm3021_vm0, %v3583_v51  ;;  %v3581_v0 = vpack.c.bf16 %v5359_v29, %v5359_v29  ;;  %v3103_v44 = vsel %vm2510_vm14, %v5359_v29, 0.0 }
 0x24f   : > { %v3104_v33 = vadd.f32 %v3103_v44, %v3102_v62 }
 0x250   : > { %3047 = vst.msk [vmem:[%s5138_s7 + $0x64] sm:$0xf] %vm3021_vm0, %v3581_v0 }
 0x251   : > { %v3106_v55 = vadd.f32 %v3105_v40, %v3104_v33 }
 0x253   : > { %v3108_v8 = vadd.f32 %v3107_v26, %v3106_v55 }
 0x264   : > { %v5383_v2 = vpop.f32.mrf.mxu1 }
 0x265   : > { %v3586_v50 = vpack.c.bf16 %v5383_v2, %v5383_v2  ;;  %v3113_v9 = vsel %vm2510_vm14, %v5383_v2, 0.0 }
 0x266   : > { %v5387_v13 = vpop.f32.mrf.mxu1 }
 0x267   : > { %3052 = vst.msk [vmem:[%s5138_s7 + $0x78] sm:$0xf] %vm3021_vm0, %v3586_v50  ;;  %v3584_v36 = vpack.c.bf16 %v5387_v13, %v5387_v13  ;;  %v3109_v22 = vsel %vm2510_vm14, %v5387_v13, 0.0 }
 0x268   : > { %v5397_v37 = vpop.f32.mrf.mxu1  ;;  %v3110_v43 = vadd.f32 %v3109_v22, %v3108_v8 }
 0x269   : > { %3050 = vst.msk [vmem:[%s5138_s7 + $0x70] sm:$0xf] %vm3021_vm0, %v3584_v36  ;;  %v3587_v46 = vpack.c.bf16 %v5397_v37, %v5397_v37  ;;  %v3115_v20 = vsel %vm2510_vm14, %v5397_v37, 0.0 }
 0x26a   : > { %v5403_v58 = vpop.f32.mrf.mxu1 }
 0x26b   : > { %3053 = vst.msk [vmem:[%s5138_s7 + $0x7c] sm:$0xf] %vm3021_vm0, %v3587_v46  ;;  %v3585_v18 = vpack.c.bf16 %v5403_v58, %v5403_v58  ;;  %v3111_v41 = vsel %vm2510_vm14, %v5403_v58, 0.0 }
 0x26c   : > { %v3112_v1 = vadd.f32 %v3111_v41, %v3110_v43 }
 0x26d   : > { %3051 = vst.msk [vmem:[%s5138_s7 + $0x74] sm:$0xf] %vm3021_vm0, %v3585_v18 }
 0x26e   : > { %v3114_v25 = vadd.f32 %v3113_v9, %v3112_v1 }
 0x270   : > { %v3116_v21 = vadd.f32 %v3115_v20, %v3114_v25 }
 0x272   : > { %v3117_v51 = vrot.slane %v3116_v21, 4 }
 0x274   : > { %v3118_v0 = vadd.f32 %v3117_v51, %v3116_v21 }
 0x276   : > { %v3119_v63 = vrot.slane %v3118_v0, 2 }
 0x278   : > { %v3120_v4 = vadd.f32 %v3119_v63, %v3118_v0 }
 0x27a   : > { %v3121_v27 = vrot.slane %v3120_v4, 1 }
 0x27c   : > { %v5417_v17 = vadd.f32 %v3121_v27, %v3120_v4 }
 0x27e   : > { %v5420_v15 = vmul.f32 0.00390625, %v5417_v17 }
 0x280   : > { %v3124_v52 = vsub.f32 %v5145_v56, %v5420_v15  ;;  %v3125_v14 = vsub.f32 %v5157_v10, %v5420_v15  ;;  %v3126_v47 = vsub.f32 %v5140_v45, %v5420_v15  ;;  %v3127_v7 = vsub.f32 %v5151_v31, %v5420_v15 }
 0x281   : > { %v3128_v44 = vsub.f32 %v5189_v30, %v5420_v15  ;;  %v3129_v33 = vsub.f32 %v5201_v19, %v5420_v15  ;;  %v3130_v45 = vsub.f32 %v5185_v60, %v5420_v15  ;;  %v3131_v30 = vsub.f32 %v5195_v28, %v5420_v15 }
 0x282   : > { %v3156_v54 = vmul.f32 %v3124_v52, %v3124_v52  ;;  %v3157_v11 = vmul.f32 %v3125_v14, %v3125_v14  ;;  %v3158_v62 = vmul.f32 %v3126_v47, %v3126_v47  ;;  %v3159_v40 = vmul.f32 %v3127_v7, %v3127_v7 }
 0x283   : > { %v3160_v50 = vmul.f32 %v3128_v44, %v3128_v44  ;;  %v3161_v36 = vmul.f32 %v3129_v33, %v3129_v33  ;;  %v3132_v8 = vsub.f32 %v5213_v35, %v5420_v15  ;;  %v3162_v46 = vmul.f32 %v3130_v45, %v3130_v45 }
 0x284   : > { %v3188_v56 = vsel %vm2510_vm14, %v3156_v54, 0.0  ;;  %v3189_v10 = vsel %vm2510_vm14, %v3157_v11, 0.0  ;;  %v3191_v31 = vsel %vm2510_vm14, %v3158_v62, 0.0  ;;  %v3193_v22 = vsel %vm2510_vm14, %v3159_v40, 0.0 }
 0x285   : > { %v3190_v55 = vadd.f32 %v3189_v10, %v3188_v56  ;;  %v3195_v43 = vsel %vm2510_vm14, %v3160_v50, 0.0  ;;  %v3133_v60 = vsub.f32 %v5225_v12, %v5420_v15  ;;  %v3163_v41 = vmul.f32 %v3131_v30, %v3131_v30 }
 0x286   : > { %v3197_v1 = vsel %vm2510_vm14, %v3161_v36, 0.0  ;;  %v3134_v28 = vsub.f32 %v5209_v5, %v5420_v15  ;;  %v3164_v25 = vmul.f32 %v3132_v8, %v3132_v8  ;;  %v3199_v20 = vsel %vm2510_vm14, %v3162_v46, 0.0 }
 0x287   : > { %v3192_v26 = vadd.f32 %v3191_v31, %v3190_v55  ;;  %v3135_v35 = vsub.f32 %v5219_v59, %v5420_v15  ;;  %v3165_v51 = vmul.f32 %v3133_v60, %v3133_v60  ;;  %v3201_v0 = vsel %vm2510_vm14, %v3163_v41, 0.0 }
 0x288   : > { %v3136_v12 = vsub.f32 %v5237_v6, %v5420_v15  ;;  %v3166_v4 = vmul.f32 %v3134_v28, %v3134_v28  ;;  %v3203_v27 = vsel %vm2510_vm14, %v3164_v25, 0.0  ;;  %v3137_v5 = vsub.f32 %v5249_v48, %v5420_v15 }
 0x289   : > { %v3194_v19 = vadd.f32 %v3193_v22, %v3192_v26  ;;  %v3167_v14 = vmul.f32 %v3135_v35, %v3135_v35  ;;  %v3205_v47 = vsel %vm2510_vm14, %v3165_v51, 0.0  ;;  %v3138_v59 = vsub.f32 %v5233_v24, %v5420_v15 }
 0x28a   : > { %v3168_v54 = vmul.f32 %v3136_v12, %v3136_v12  ;;  %v3207_v11 = vsel %vm2510_vm14, %v3166_v4, 0.0  ;;  %v3139_v6 = vsub.f32 %v5243_v34, %v5420_v15  ;;  %v3169_v62 = vmul.f32 %v3137_v5, %v3137_v5 }
 0x28b   : > { %v3196_v18 = vadd.f32 %v3195_v43, %v3194_v19  ;;  %v3209_v33 = vsel %vm2510_vm14, %v3167_v14, 0.0  ;;  %v3140_v48 = vsub.f32 %v5261_v49, %v5420_v15  ;;  %v3170_v56 = vmul.f32 %v3138_v59, %v3138_v59 }
 0x28c   : > { %v3211_v10 = vsel %vm2510_vm14, %v3168_v54, 0.0  ;;  %v3141_v24 = vsub.f32 %v5273_v16, %v5420_v15  ;;  %v3171_v45 = vmul.f32 %v3139_v6, %v3139_v6  ;;  %v3213_v50 = vsel %vm2510_vm14, %v3169_v62, 0.0 }
 0x28d   : > { %v3198_v9 = vadd.f32 %v3197_v1, %v3196_v18  ;;  %v3142_v34 = vsub.f32 %v5257_v3, %v5420_v15  ;;  %v3172_v26 = vmul.f32 %v3140_v48, %v3140_v48  ;;  %v3215_v30 = vsel %vm2510_vm14, %v3170_v56, 0.0 }
 0x28e   : > { %v3143_v49 = vsub.f32 %v5267_v57, %v5420_v15  ;;  %v3173_v22 = vmul.f32 %v3141_v24, %v3141_v24  ;;  %v3217_v19 = vsel %vm2510_vm14, %v3171_v45, 0.0  ;;  %v3144_v16 = vsub.f32 %v5299_v53, %v5420_v15 }
 0x28f   : > { %v3200_v21 = vadd.f32 %v3199_v20, %v3198_v9  ;;  %v3174_v46 = vmul.f32 %v3142_v34, %v3142_v34  ;;  %v3219_v43 = vsel %vm2510_vm14, %v3172_v26, 0.0  ;;  %v3145_v3 = vsub.f32 %v5317_v39, %v5420_v15 }
 0x290   : > { %v3175_v60 = vmul.f32 %v3143_v49, %v3143_v49  ;;  %v3221_v41 = vsel %vm2510_vm14, %v3173_v22, 0.0  ;;  %v3146_v57 = vsub.f32 %v5295_v23, %v5420_v15  ;;  %v3176_v9 = vmul.f32 %v3144_v16, %v3144_v16 }
 0x291   : > { %v3202_v63 = vadd.f32 %v3201_v0, %v3200_v21  ;;  %v3223_v28 = vsel %vm2510_vm14, %v3174_v46, 0.0  ;;  %v3147_v53 = vsub.f32 %v5309_v38, %v5420_v15  ;;  %v3177_v20 = vmul.f32 %v3145_v3, %v3145_v3 }
 0x292   : > { %v3225_v21 = vsel %vm2510_vm14, %v3175_v60, 0.0  ;;  %v3148_v39 = vsub.f32 %v5345_v32, %v5420_v15  ;;  %v3178_v51 = vmul.f32 %v3146_v57, %v3146_v57  ;;  %v3227_v0 = vsel %vm2510_vm14, %v3176_v9, 0.0 }
 0x293   : > { %v3204_v52 = vadd.f32 %v3203_v27, %v3202_v63  ;;  %v3149_v23 = vsub.f32 %v5359_v29, %v5420_v15  ;;  %v3179_v12 = vmul.f32 %v3147_v53, %v3147_v53  ;;  %v3229_v4 = vsel %vm2510_vm14, %v3177_v20, 0.0 }
 0x294   : > { %v3150_v38 = vsub.f32 %v5341_v42, %v5420_v15  ;;  %v3231_v5 = vsel %vm2510_vm14, %v3178_v51, 0.0  ;;  %v3151_v32 = vsub.f32 %v5353_v61, %v5420_v15  ;;  %v3152_v29 = vsub.f32 %v5387_v13, %v5420_v15 }
 0x295   : > { %v3206_v7 = vadd.f32 %v3205_v47, %v3204_v52  ;;  %v3180_v52 = vmul.f32 %v3148_v39, %v3148_v39  ;;  %v3181_v47 = vmul.f32 %v3149_v23, %v3149_v23  ;;  %v3153_v42 = vsub.f32 %v5403_v58, %v5420_v15 }
 0x296   : > { %v3182_v54 = vmul.f32 %v3150_v38, %v3150_v38  ;;  %v3183_v6 = vmul.f32 %v3151_v32, %v3151_v32  ;;  %v3154_v61 = vsub.f32 %v5383_v2, %v5420_v15  ;;  %v3155_v13 = vsub.f32 %v5397_v37, %v5420_v15 }
 0x297   : > { %v3208_v44 = vadd.f32 %v3207_v11, %v3206_v7  ;;  %v3233_v7 = vsel %vm2510_vm14, %v3179_v12, 0.0  ;;  %v3235_v11 = vsel %vm2510_vm14, %v3180_v52, 0.0  ;;  %v3237_v62 = vsel %vm2510_vm14, %v3181_v47, 0.0 }
 0x298   : > { %v3239_v48 = vsel %vm2510_vm14, %v3182_v54, 0.0  ;;  %v3186_v58 = vmul.f32 %v3154_v61, %v3154_v61 }
 0x299   : > { %v3210_v40 = vadd.f32 %v3209_v33, %v3208_v44 }
 0x29a   : > { %v3247_v26 = vsel %vm2510_vm14, %v3186_v58, 0.0 }
 0x29b   : > { %v3212_v55 = vadd.f32 %v3211_v10, %v3210_v40  ;;  %v3184_v40 = vmul.f32 %v3152_v29, %v3152_v29  ;;  %v3185_v10 = vmul.f32 %v3153_v42, %v3153_v42 }
 0x29d   : > { %v3214_v31 = vadd.f32 %v3213_v50, %v3212_v55  ;;  %v3241_v55 = vsel %vm2510_vm14, %v3183_v6, 0.0  ;;  %v3243_v45 = vsel %vm2510_vm14, %v3184_v40, 0.0  ;;  %v3245_v34 = vsel %vm2510_vm14, %v3185_v10, 0.0 }
 0x29f   : > { %v3216_v36 = vadd.f32 %v3215_v30, %v3214_v31  ;;  %v3187_v31 = vmul.f32 %v3155_v13, %v3155_v13 }
 0x2a1   : > { %v3218_v8 = vadd.f32 %v3217_v19, %v3216_v36  ;;  %v3249_v36 = vsel %vm2510_vm14, %v3187_v31, 0.0 }
 0x2a3   : > { %v3220_v18 = vadd.f32 %v3219_v43, %v3218_v8 }
 0x2a5   : > { %v3222_v1 = vadd.f32 %v3221_v41, %v3220_v18 }
 0x2a7   : > { %v3224_v25 = vadd.f32 %v3223_v28, %v3222_v1 }
 0x2a9   : > { %v3226_v35 = vadd.f32 %v3225_v21, %v3224_v25 }
 0x2ab   : > { %v3228_v63 = vadd.f32 %v3227_v0, %v3226_v35 }
 0x2ad   : > { %v3230_v27 = vadd.f32 %v3229_v4, %v3228_v63 }
 0x2af   : > { %v3232_v14 = vadd.f32 %v3231_v5, %v3230_v27 }
 0x2b1   : > { %v3234_v59 = vadd.f32 %v3233_v7, %v3232_v14 }
 0x2b3   : > { %v3236_v44 = vadd.f32 %v3235_v11, %v3234_v59 }
 0x2b5   : > { %v3238_v33 = vadd.f32 %v3237_v62, %v3236_v44 }
 0x2b7   : > { %v3240_v56 = vadd.f32 %v3239_v48, %v3238_v33 }
 0x2b9   : > { %v3242_v24 = vadd.f32 %v3241_v55, %v3240_v56 }
 0x2bb   : > { %v3244_v50 = vadd.f32 %v3243_v45, %v3242_v24 }
 0x2bd   : > { %v3246_v2 = vadd.f32 %v3245_v34, %v3244_v50 }
 0x2bf   : > { %v3248_v30 = vadd.f32 %v3247_v26, %v3246_v2 }
 0x2c1   : > { %v3250_v49 = vadd.f32 %v3249_v36, %v3248_v30 }
 0x2c3   : > { %v3251_v37 = vrot.slane %v3250_v49, 4 }
 0x2c5   : > { %v3252_v15 = vadd.f32 %v3251_v37, %v3250_v49 }
 0x2c7   : > { %v3253_v22 = vrot.slane %v3252_v15, 2 }
 0x2c9   : > { %v3254_v19 = vadd.f32 %v3253_v22, %v3252_v15 }
 0x2cb   : > { %v3255_v8 = vrot.slane %v3254_v19, 1 }
 0x2cd   : > { %v3256_v16 = vadd.f32 %v3255_v8, %v3254_v19 }
 0x2cf   : > { %v3258_v46 = vsel %vm3257_vm2, %v5417_v17, %v3256_v16 }
 0x2d0   : > { %3260 = vst.msk [vmem:[%s181_s11] sm:$0x3] %vm3259_vm6, %v3258_v46 }
 0x2d1 PF: > { %s14_s12 = sadd.s32 1, %s3822_s12  }
 0x2d2   : > { %p11_p4 = scmp.ge.s32.totalorder %s14_s12, 4  }
 0x2d4   :  { %13 = sbr.rel (!%p11_p4) target bundleno = 1 (0x1), region = 72 }

// kernel: conv_block_forward.4
= control target key start
LH: loop header
LB: loop body
LE: loop exit
PB: predicated region body
PF: predicated region fallthrough
CT: control target
= control target key end

     0   :  { %s4286_s18 = smov 0   ;;  %s6176_s0 = inlined_call_operand.vmem [shape: bf16[2,16,16,16], index: 0, kind: input, shape index: {}]   ;;  %s6177_s1 = inlined_call_operand.vmem [shape: bf16[144,16], index: 1, kind: input, shape index: {}]   ;;  %s6178_s2 = inlined_call_operand.vmem [shape: f32[1,16], index: 2, kind: input, shape index: {}]   ;;  %s6179_s3 = inlined_call_operand.vmem [shape: f32[1,16], index: 3, kind: input, shape index: {}]   ;;  %s6180_s4 = inlined_call_operand.vmem [shape: bf16[2,16,16,16], index: 4, kind: output, shape index: {0}]   ;;  %s6181_s5 = inlined_call_operand.vmem [shape: f32[2,2,16], index: 5, kind: output, shape index: {1}]  }
   0x1 LB: > { %s3652_s19 = sadd.s32 4294967295, %s4246_s18   ;;  %p3656_p0 = scmp.ge.s32.totalorder %s4246_s18, 1  ;;  %s4246_s18 = sphi %s4286_s18, %s16_s18  }
   0x2   : > { %p190_p1 = scmp.lt.s32.totalorder %s4246_s18, 3 }
   0x4   : > { %p191_p2 = pnand %p3656_p0, %p190_p1 }
   0x6   : > { %194 = sbr.rel (%p191_p2) target bundleno = 702 (0x2be), region = 36 }
   0xb   : > { %vm427_vm0 = vcmask 125952   ;;  %vm430_vm1 = vcmask 122880   ;;  %v4248_v0 = vmov 0   ;;  %p222_p3 = scmp.lt.s32.totalorder %s3652_s19, 1  ;;  %v4414_v1 = vld [vmem:[%s6178_s2] ss:$0 sm:$0xff] }
   0xc   : > { %428 = vst.msk [vmem:[#allocation2] sm:$0xf] %vm427_vm0, %v4248_v0  ;;  %429 = vst.msk [vmem:[#allocation2 + $0x4] sm:$0xf] %vm427_vm0, %v4248_v0  ;;  %3038 = vmatprep.subr.bf16.mxu0 %v4248_v0  ;;  %4044 = vmatprep.subr.bf16.mxu1 %v4248_v0  ;;  %vm1325_vm2 = vsmask.f32 7424 }
   0xd   : > { %431 = vst.msk [vmem:[#allocation2 + $0x8] sm:$0x1] %vm430_vm1, %v4248_v0  ;;  %434 = vst.msk [vmem:[#allocation2 + $0x14] sm:$0x1] %vm430_vm1, %v4248_v0  ;;  %s6227_s19 = smov (!%p222_p3, %s3652_s19), 1  ;;  %vm1598_vm3 = vcmask 1046528  }
   0xe   : > { %432 = vst.msk [vmem:[#allocation2 + $0xc] sm:$0xf] %vm427_vm0, %v4248_v0  ;;  %433 = vst.msk [vmem:[#allocation2 + $0x10] sm:$0xf] %vm427_vm0, %v4248_v0  ;;  %s3899_s20 = sshll.u32 %s6227_s19, 7  ;;  %s4249_s28 = smov 32  }
   0xf   : > { %435 = vst.msk [vmem:[#allocation2 + $0x18] sm:$0xf] %vm427_vm0, %v4248_v0  ;;  %436 = vst.msk [vmem:[#allocation2 + $0x1c] sm:$0xf] %vm427_vm0, %v4248_v0  ;;  %s4421_s25 = scalar_lea.vmem %s6176_s0, %s3899_s20  ;;  %v4427_v3 = vld [vmem:[%s6179_s3] ss:$0 sm:$0xff] }
  0x10   : > { %437 = vst.msk [vmem:[#allocation2 + $0x20] sm:$0x1] %vm430_vm1, %v4248_v0  ;;  %440 = vst.msk [vmem:[#allocation2 + $0x2c] sm:$0x1] %vm430_vm1, %v4248_v0  ;;  %v4030_v2 = vld [vmem:[%s4421_s25 + $0x10] sm:$0xff]   ;;  %v3966_v4 = vld [vmem:[%s4421_s25] sm:$0xff]  }
  0x11   : > { %438 = vst.msk [vmem:[#allocation2 + $0x24] sm:$0xf] %vm427_vm0, %v4248_v0  ;;  %439 = vst.msk [vmem:[#allocation2 + $0x28] sm:$0xf] %vm427_vm0, %v4248_v0  ;;  %v4029_v5 = vld [vmem:[%s4421_s25 + $0x8] sm:$0xff]   ;;  %v3975_v8 = vunpack.c.l.bf16 %v4030_v2  ;;  %v3976_v9 = vunpack.c.h.bf16 %v4030_v2  ;;  %v3967_v10 = vunpack.c.l.bf16 %v3966_v4  ;;  %v3968_v11 = vunpack.c.h.bf16 %v3966_v4  ;;  %v4442_v29 = vld [vmem:[%s4421_s25 + $0x18] sm:$0xff]  }
  0x12   : > { %441 = vst.msk [vmem:[#allocation2 + $0x30] sm:$0xf] %vm427_vm0, %v4248_v0  ;;  %442 = vst.msk [vmem:[#allocation2 + $0x34] sm:$0xf] %vm427_vm0, %v4248_v0  ;;  %vm563_vm4 = vsmask.f32 256  ;;  %v3971_v15 = vunpack.c.l.bf16 %v4029_v5  ;;  %v3972_v16 = vunpack.c.h.bf16 %v4029_v5  ;;  %v3979_v41 = vunpack.c.l.bf16 %v4442_v29 }
  0x13   : > { %443 = vst.msk [vmem:[#allocation2 + $0x38] sm:$0x1] %vm430_vm1, %v4248_v0  ;;  %446 = vst.msk [vmem:[#allocation2 + $0x44] sm:$0x1] %vm430_vm1, %v4248_v0  ;;  %v1005_v6 = vld [vmem:[#allocation2 + $0x4] sm:$0xf]  ;;  %v312_v18 = vmul.f32 %v3975_v8, %v4414_v1  ;;  %v313_v19 = vmul.f32 %v3976_v9, %v4414_v1  ;;  %v308_v20 = vmul.f32 %v3967_v10, %v4414_v1  ;;  %v3980_v49 = vunpack.c.h.bf16 %v4442_v29 }
  0x14   : > { %444 = vst.msk [vmem:[#allocation2 + $0x3c] sm:$0xf] %vm427_vm0, %v4248_v0  ;;  %445 = vst.msk [vmem:[#allocation2 + $0x40] sm:$0xf] %vm427_vm0, %v4248_v0  ;;  %v1052_v7 = vld [vmem:[#allocation2] sm:$0xe]  ;;  %v309_v24 = vmul.f32 %v3968_v11, %v4414_v1  ;;  %v310_v37 = vmul.f32 %v3971_v15, %v4414_v1  ;;  %v311_v40 = vmul.f32 %v3972_v16, %v4414_v1 }
  0x15   : > { %447 = vst.msk [vmem:[#allocation2 + $0x48] sm:$0xf] %vm427_vm0, %v4248_v0  ;;  %448 = vst.msk [vmem:[#allocation2 + $0x4c] sm:$0xf] %vm427_vm0, %v4248_v0  ;;  %v3728_v13 = vcombine.low %v1052_v7, %v1005_v6  ;;  %v1004_v14 = vld [vmem:[#allocation2] sm:$0xf]  ;;  %v351_v27 = vadd.f32 %v4427_v3, %v312_v18  ;;  %v352_v28 = vadd.f32 %v4427_v3, %v313_v19 }
  0x16   : > { %449 = vst.msk [vmem:[#allocation2 + $0x50] sm:$0x1] %vm430_vm1, %v4248_v0  ;;  %452 = vst.msk [vmem:[#allocation2 + $0x5c] sm:$0x1] %vm430_vm1, %v4248_v0  ;;  %vm564_vm5 = vsmask.f32 4368  ;;  %v4431_v17 = vcombine.low %v1004_v14, %v1005_v6  ;;  %v347_v32 = vadd.f32 %v4427_v3, %v308_v20  ;;  %v348_v33 = vadd.f32 %v4427_v3, %v309_v24 }
  0x17   : > { %450 = vst.msk [vmem:[#allocation2 + $0x54] sm:$0xf] %vm427_vm0, %v4248_v0  ;;  %451 = vst.msk [vmem:[#allocation2 + $0x58] sm:$0xf] %vm427_vm0, %v4248_v0  ;;  %vm888_vm6 = vsmask.f32 7938  ;;  %v349_v45 = vadd.f32 %v4427_v3, %v310_v37  ;;  %v350_v48 = vadd.f32 %v4427_v3, %v311_v40  ;;  %v314_v7 = vmul.f32 %v3979_v41, %v4414_v1 }
  0x18   : > { %453 = vst.msk [vmem:[#allocation2 + $0x60] sm:$0xf] %vm427_vm0, %v4248_v0  ;;  %454 = vst.msk [vmem:[#allocation2 + $0x64] sm:$0xf] %vm427_vm0, %v4248_v0  ;;  %v1599_v21 = vrot.slane %v3728_v13, 1  ;;  %v1327_v25 = vshrl.u32 %v4431_v17, 16 }
  0x19   : > { %455 = vst.msk [vmem:[#allocation2 + $0x68] sm:$0x1] %vm430_vm1, %v4248_v0  ;;  %458 = vst.msk [vmem:[#allocation2 + $0x74] sm:$0x1] %vm430_vm1, %v4248_v0  ;;  %v1329_v26 = vshll.u32 %v4431_v17, 16  ;;  %v383_v35 = vmax.f32 %v351_v27, 0.0 }
  0x1a   : > { %456 = vst.msk [vmem:[#allocation2 + $0x6c] sm:$0xf] %vm427_vm0, %v4248_v0  ;;  %457 = vst.msk [vmem:[#allocation2 + $0x70] sm:$0xf] %vm427_vm0, %v4248_v0  ;;  %v384_v36 = vmax.f32 %v352_v28, 0.0  ;;  %v379_v38 = vmax.f32 %v347_v32, 0.0 }
  0x1b   : > { %459 = vst.msk [vmem:[#allocation2 + $0x78] sm:$0xf] %vm427_vm0, %v4248_v0  ;;  %460 = vst.msk [vmem:[#allocation2 + $0x7c] sm:$0xf] %vm427_vm0, %v4248_v0  ;;  %v1331_v34 = vrot.slane %v1329_v26, 1  ;;  %v380_v39 = vmax.f32 %v348_v33, 0.0  ;;  %v3905_v43 = vpack.c.bf16 %v383_v35, %v383_v35  ;;  %v315_v33 = vmul.f32 %v3980_v49, %v4414_v1 }
  0x1c   : > { %461 = vst.msk [vmem:[#allocation2 + $0x80] sm:$0x1] %vm430_vm1, %v4248_v0  ;;  %464 = vst.msk [vmem:[#allocation2 + $0x8c] sm:$0x1] %vm430_vm1, %v4248_v0  ;;  %v3906_v44 = vpack.c.bf16 %v384_v36, %v384_v36  ;;  %v3901_v46 = vpack.c.bf16 %v379_v38, %v379_v38  ;;  %s4250_s29 = smov 16   ;;  %v381_v62 = vmax.f32 %v349_v45, 0.0 }
  0x1d   : > { %462 = vst.msk [vmem:[#allocation2 + $0x84] sm:$0xf] %vm427_vm0, %v4248_v0  ;;  %463 = vst.msk [vmem:[#allocation2 + $0x88] sm:$0xf] %vm427_vm0, %v4248_v0  ;;  %v1332_v42 = vor.u32 %v1331_v34, %v1327_v25  ;;  %v3902_v47 = vpack.c.bf16 %v380_v39, %v380_v39  ;;  %v601_v51 = vshrl.u32 %v3905_v43, 16  ;;  %v604_v52 = vshll.u32 %v3905_v43, 16 }
  0x1e   : > { %465 = vst.msk [vmem:[#allocation2 + $0x90] sm:$0xf] %vm427_vm0, %v4248_v0  ;;  %466 = vst.msk [vmem:[#allocation2 + $0x94] sm:$0xf] %vm427_vm0, %v4248_v0  ;;  %v609_v53 = vshrl.u32 %v3906_v44, 16  ;;  %v612_v54 = vshll.u32 %v3906_v44, 16  ;;  %v353_v34 = vadd.f32 %v4427_v3, %v314_v7  ;;  %v354_v41 = vadd.f32 %v4427_v3, %v315_v33 }
  0x1f   : > { %467 = vst.msk [vmem:[#allocation2 + $0x98] sm:$0x1] %vm430_vm1, %v4248_v0  ;;  %470 = vst.msk [vmem:[#allocation2 + $0xa4] sm:$0x1] %vm430_vm1, %v4248_v0  ;;  %v567_v55 = vshrl.u32 %v3901_v46, 16  ;;  %v570_v56 = vshll.u32 %v3901_v46, 16 }
  0x20   : > { %468 = vst.msk [vmem:[#allocation2 + $0x9c] sm:$0xf] %vm427_vm0, %v4248_v0  ;;  %469 = vst.msk [vmem:[#allocation2 + $0xa0] sm:$0xf] %vm427_vm0, %v4248_v0  ;;  %v575_v57 = vshrl.u32 %v3902_v47, 16  ;;  %v603_v59 = vrot.slane %v601_v51, 7 }
  0x21   : > { %471 = vst.msk [vmem:[#allocation2 + $0xa8] sm:$0xf] %vm427_vm0, %v4248_v0  ;;  %472 = vst.msk [vmem:[#allocation2 + $0xac] sm:$0xf] %vm427_vm0, %v4248_v0  ;;  %v611_v60 = vrot.slane %v609_v53, 7  ;;  %v578_v61 = vshll.u32 %v3902_v47, 16 }
  0x22   : > { %473 = vst.msk [vmem:[#allocation2 + $0xb0] sm:$0x1] %vm430_vm1, %v4248_v0  ;;  %476 = vst.msk [vmem:[#allocation2 + $0xbc] sm:$0x1] %vm430_vm1, %v4248_v0  ;;  %v906_v2 = vld [vmem:[#allocation2 + $0x24] sm:$0xf]  ;;  %v606_v8 = vor.u32 %v604_v52, %v603_v59 }
  0x23   : > { %474 = vst.msk [vmem:[#allocation2 + $0xb4] sm:$0xf] %vm427_vm0, %v4248_v0  ;;  %475 = vst.msk [vmem:[#allocation2 + $0xb8] sm:$0xf] %vm427_vm0, %v4248_v0  ;;  %v569_v4 = vrot.slane %v567_v55, 7  ;;  %v577_v5 = vrot.slane %v575_v57, 7  ;;  %v614_v10 = vor.u32 %v612_v54, %v611_v60 }
  0x24   : > { %477 = vst.msk [vmem:[#allocation2 + $0xc0] sm:$0xf] %vm427_vm0, %v4248_v0  ;;  %478 = vst.msk [vmem:[#allocation2 + $0xc4] sm:$0xf] %vm427_vm0, %v4248_v0  ;;  %v382_v6 = vmax.f32 %v350_v48, 0.0  ;;  %v607_v9 = vrot.slane %v603_v59, 4 }
  0x25   : > { %479 = vst.msk [vmem:[#allocation2 + $0xc8] sm:$0x1] %vm430_vm1, %v4248_v0  ;;  %482 = vst.msk [vmem:[#allocation2 + $0xd4] sm:$0x1] %vm430_vm1, %v4248_v0  ;;  %v890_v11 = vld [vmem:[#allocation2 + $0xc] sm:$0xf]  ;;  %v572_v13 = vor.u32 %v570_v56, %v569_v4  ;;  %v580_v15 = vor.u32 %v578_v61, %v577_v5 }
  0x26   : > { %480 = vst.msk [vmem:[#allocation2 + $0xcc] sm:$0xf] %vm427_vm0, %v4248_v0  ;;  %481 = vst.msk [vmem:[#allocation2 + $0xd0] sm:$0xf] %vm427_vm0, %v4248_v0  ;;  %v573_v14 = vrot.slane %v569_v4, 4  ;;  %v3904_v16 = vpack.c.bf16 %v382_v6, %v382_v6  ;;  %v582_v32 = vrot.slane %v577_v5, 4 }
  0x27   : > { %v4078_v12 = vld [vmem:[#allocation2 + $0x8] ss:$0 sps:$4 sm:$0x11]   ;;  %vm4458_vm7 = vmor %vm563_vm4, %vm564_vm5  ;;  %v896_v18 = vld [vmem:[#allocation2 + $0x14] sm:$0x1]  ;;  %v616_v37 = vrot.slane %v611_v60, 4 }
  0x28   : > { %v1600_v22 = vrot.slane %v4078_v12, 1  ;;  %v1334_v23 = vshll.u32 %v4078_v12, 16  ;;  %vm4464_vm8 = vmand %vm427_vm0, %vm888_vm6  ;;  %v3903_v12 = vpack.c.bf16 %v381_v62, %v381_v62  ;;  %v615_v19 = vsel %vm4458_vm7, %v607_v9, %v614_v10  ;;  %v899_v29 = vld [vmem:[#allocation2 + $0x18] sm:$0xf]  ;;  %v903_v35 = vld [vmem:[#allocation2 + $0x20] sm:$0x1] }
  0x29   : > { %v907_v20 = vsel %vm4464_vm8, %v606_v8, %v906_v2  ;;  %vm4475_vm9 = vmand %vm430_vm1, %vm563_vm4  ;;  %909 = vst.msk [vmem:[#allocation2 + $0x28] sm:$0xf] %vm427_vm0, %v615_v19  ;;  %v581_v25 = vsel %vm4458_vm7, %v573_v14, %v580_v15  ;;  %v891_v26 = vsel %vm4464_vm8, %v572_v13, %v890_v11  ;;  %v592_v27 = vshrl.u32 %v3904_v16, 16  ;;  %v4149_v51 = vld [vmem:[%s6177_s1 + $0x30] sm:$0xff]   ;;  %v4509_v54 = vld [vmem:[%s4421_s25 + $0x38] sm:$0xff]   ;;  %s4251_s9 = smov 96  }
  0x2a   : > { %v1601_v30 = vsel %vm1598_vm3, %v1599_v21, %v1600_v22  ;;  %v1336_v31 = vrot.slane %v1334_v23, 1  ;;  %v584_v21 = vshrl.u32 %v3903_v12, 16  ;;  %v587_v22 = vshll.u32 %v3903_v12, 16  ;;  %v910_v23 = vld [vmem:[#allocation2 + $0x2c] sm:$0x1]  ;;  %s4252_s10 = smov 48  }
  0x2b   : > { %1647 = vrot.lane.b32.xlu0 %v1601_v30, %s4249_s28  ;;  %908 = vst [vmem:[#allocation2 + $0x24] sm:$0xf] %v907_v20  ;;  %v595_v28 = vshll.u32 %v3904_v16, 16  ;;  %v4147_v30 = vld [vmem:[%s6177_s1 + $0x38] sm:$0xff]   ;;  %892 = vst [vmem:[#allocation2 + $0xc] sm:$0xf] %v891_v26  ;;  %v897_v40 = vsel %vm4475_vm9, %v582_v32, %v896_v18  ;;  %v911_v45 = vsel %vm4475_vm9, %v616_v37, %v910_v23  ;;  %v3995_v11 = vunpack.c.l.bf16 %v4509_v54 }
  0x2c   : > { %v1337_v50 = vsel %vm1325_vm2, %v1332_v42, %v1336_v31  ;;  %893 = vst.msk [vmem:[#allocation2 + $0x10] sm:$0xf] %vm427_vm0, %v581_v25  ;;  %v586_v31 = vrot.slane %v584_v21, 7  ;;  %v594_v36 = vrot.slane %v592_v27, 7  ;;  %3039 = vmatpush1.bf16.msra.mxu0 %v4147_v30  ;;  %4053 = vmatpush1.bf16.msra.mxu1 %v4147_v30  ;;  %898 = vst [vmem:[#allocation2 + $0x14] sm:$0x1] %v897_v40  ;;  %v3996_v30 = vunpack.c.h.bf16 %v4509_v54 }
  0x2d   : > { %3040 = vmatprep.subr.bf16.mxu0 %v4248_v0  ;;  %4045 = vmatprep.subr.bf16.mxu1 %v4248_v0  ;;  %v385_v43 = vmax.f32 %v353_v34, 0.0  ;;  %v386_v47 = vmax.f32 %v354_v41, 0.0  ;;  %912 = vst [vmem:[#allocation2 + $0x2c] sm:$0x1] %v911_v45  ;;  %v4529_v13 = vld [vmem:[%s4421_s25 + $0x40] sm:$0xff]   ;;  %s4253_s13 = smov 80  }
  0x2e   : > { %v589_v38 = vor.u32 %v587_v22, %v586_v31  ;;  %v590_v39 = vrot.slane %v586_v31, 4  ;;  %v597_v42 = vor.u32 %v595_v28, %v594_v36  ;;  %v599_v44 = vrot.slane %v594_v36, 4  ;;  %s4254_s23 = smov 112   ;;  %s4255_s27 = smov 64   ;;  %v5634_v24 = vld [vmem:[#allocation2 + $0xd0] sm:$0xf] }
  0x2f   : > { %1518 = vrot.lane.b32.xlu0 %v1337_v50, %s4250_s29  ;;  %v4032_v50 = vld [vmem:[%s4421_s25 + $0x20] sm:$0xff]   ;;  %v3907_v60 = vpack.c.bf16 %v385_v43, %v385_v43  ;;  %v3908_v5 = vpack.c.bf16 %v386_v47, %v386_v47  ;;  %v322_v31 = vmul.f32 %v3995_v11, %v4414_v1  ;;  %v3999_v37 = vunpack.c.l.bf16 %v4529_v13 }
  0x30   : > { %v900_v46 = vsel %vm4464_vm8, %v589_v38, %v899_v29  ;;  %v598_v48 = vsel %vm4458_vm7, %v590_v39, %v597_v42  ;;  %v904_v49 = vsel %vm4475_vm9, %v599_v44, %v903_v35  ;;  %v1136_v53 = vld [vmem:[#allocation2 + $0x28] sm:$0xf]  ;;  %3041 = vmatpush1.bf16.msra.mxu0 %v4149_v51  ;;  %4054 = vmatpush1.bf16.msra.mxu1 %v4149_v51  ;;  %v3983_v9 = vunpack.c.l.bf16 %v4032_v50 }
  0x31   : > { %901 = vst [vmem:[#allocation2 + $0x18] sm:$0xf] %v900_v46  ;;  %902 = vst.msk [vmem:[#allocation2 + $0x1c] sm:$0xf] %vm427_vm0, %v598_v48  ;;  %v1073_v4 = vld [vmem:[#allocation2 + $0x28] sm:$0xf]  ;;  %3042 = vmatprep.subr.bf16.mxu0 %v4248_v0  ;;  %4046 = vmatprep.subr.bf16.mxu1 %v4248_v0  ;;  %v3984_v10 = vunpack.c.h.bf16 %v4032_v50  ;;  %v4000_v11 = vunpack.c.h.bf16 %v4529_v13 }
  0x32   : > { %v1135_v52 = vld [vmem:[#allocation2 + $0x24] sm:$0xf]  ;;  %905 = vst [vmem:[#allocation2 + $0x20] sm:$0x1] %v904_v49  ;;  %v1068_v56 = vld [vmem:[#allocation2 + $0xc] sm:$0xf]  ;;  %v316_v28 = vmul.f32 %v3983_v9, %v4414_v1 }
  0x33   : > { %v4511_v55 = vcombine.low %v1135_v52, %v1136_v53  ;;  %v1069_v57 = vld [vmem:[#allocation2 + $0x10] sm:$0xf]  ;;  %v1116_v59 = vld [vmem:[#allocation2 + $0xc] sm:$0xe]  ;;  %v1072_v2 = vld [vmem:[#allocation2 + $0x24] sm:$0xf]  ;;  %v317_v29 = vmul.f32 %v3984_v10, %v4414_v1 }
  0x34   : > { %v4513_v61 = vcombine.low %v1068_v56, %v1069_v57  ;;  %v3776_v62 = vcombine.low %v1116_v59, %v1069_v57  ;;  %v4519_v6 = vcombine.low %v1072_v2, %v1073_v4  ;;  %v4521_v7 = vld [vmem:[#allocation2 + $0x10] sm:$0xf]  ;;  %v1053_v8 = vld [vmem:[#allocation2 + $0xc] sm:$0xe]  ;;  %v1118_v14 = vld [vmem:[#allocation2 + $0x24] sm:$0xe]  ;;  %v323_v59 = vmul.f32 %v3996_v30, %v4414_v1 }
  0x35   : > { %2273 = vrot.lane.b32.xlu0 %v4511_v55, %s4251_s9  ;;  %v4526_v12 = vld [vmem:[#allocation2 + $0x14] ss:$0 sps:$4 sm:$0x11]   ;;  %v618_v16 = vshrl.u32 %v3907_v60, 16  ;;  %v3729_v18 = vcombine.low %v1053_v8, %v4521_v7  ;;  %v2366_v19 = vshll.u32 %v4511_v55, 16  ;;  %v621_v22 = vshll.u32 %v3907_v60, 16 }
  0x36   : > { %1759 = vrot.lane.b32.xlu1 %v4513_v61, %s4252_s10  ;;  %v2111_v15 = vrot.slane %v3776_v62, 1  ;;  %v2112_v21 = vrot.slane %v4526_v12, 1  ;;  %v626_v23 = vshrl.u32 %v3908_v5, 16  ;;  %v3778_v32 = vcombine.low %v1118_v14, %v1073_v4  ;;  %v4541_v36 = vld [vmem:[#allocation2 + $0x14] ss:$0 sps:$4 sm:$0x11]  }
  0x37   : > { %v4154_v38 = vld [vmem:[%s6177_s1 + $0x28] sm:$0xff]   ;;  %v620_v39 = vrot.slane %v618_v16, 7  ;;  %v629_v41 = vshll.u32 %v3908_v5, 16  ;;  %v1602_v42 = vrot.slane %v3729_v18, 1  ;;  %v1842_v43 = vshll.u32 %v4513_v61, 16 }
  0x38   : > { %v1133_v20 = vld [vmem:[#allocation2 + $0x18] sm:$0xf]  ;;  %v1134_v25 = vld [vmem:[#allocation2 + $0x1c] sm:$0xf]  ;;  %v2113_v34 = vsel %vm1598_vm3, %v2111_v15, %v2112_v21  ;;  %v4547_v40 = vrot.slane %v626_v23, 7  ;;  %v1866_v44 = vshll.u32 %v4519_v6, 16  ;;  %3043 = vmatpush1.bf16.msra.mxu0 %v4154_v38  ;;  %4055 = vmatpush1.bf16.msra.mxu1 %v4154_v38  ;;  %v4573_v10 = vadd.f32 %v4427_v3, %v316_v28 }
  0x39   : > { %1763 = vrot.lane.b32.xlu0 %v4519_v6, %s4252_s10  ;;  %v1070_v26 = vld [vmem:[#allocation2 + $0x18] sm:$0xf]  ;;  %v1071_v27 = vld [vmem:[#allocation2 + $0x1c] sm:$0xf]  ;;  %v3792_v33 = vcombine.low %v1133_v20, %v1134_v25  ;;  %v913_v46 = vld [vmem:[#allocation2 + $0x30] sm:$0xf]  ;;  %v623_v49 = vor.u32 %v621_v22, %v620_v39  ;;  %3044 = vmatprep.subr.bf16.mxu0 %v4248_v0  ;;  %v4583_v21 = vadd.f32 %v4427_v3, %v317_v29 }
  0x3a   : > { %v1117_v35 = vld [vmem:[#allocation2 + $0x18] sm:$0xe]  ;;  %v4552_v45 = vcombine.low %v1070_v26, %v1071_v27  ;;  %v1603_v47 = vrot.slane %v4541_v36, 1  ;;  %v624_v50 = vrot.slane %v620_v39, 4  ;;  %v631_v51 = vor.u32 %v629_v41, %v4547_v40  ;;  %4047 = vmatprep.subr.bf16.mxu1 %v4248_v0  ;;  %v1009_v9 = vld [vmem:[#allocation2 + $0x1c] sm:$0xf] }
  0x3b   : > { %2271 = vrot.lane.b32.xlu1 %v3792_v33, %s4251_s9  ;;  %v2354_v48 = vshll.u32 %v3792_v33, 16  ;;  %v3777_v52 = vcombine.low %v1117_v35, %v1071_v27  ;;  %v4559_v54 = vld [vmem:[#allocation2 + $0x2c] ss:$0 sps:$4 sm:$0x11]   ;;  %v2117_v56 = vrot.slane %v3778_v32, 1  ;;  %v914_v62 = vsel %vm4464_vm8, %v623_v49, %v913_v46  ;;  %v4157_v28 = vld [vmem:[%s6177_s1 + $0x20] sm:$0xff]  }
  0x3c   : > { %v1604_v53 = vsel %vm1598_vm3, %v1602_v42, %v1603_v47  ;;  %v1008_v57 = vld [vmem:[#allocation2 + $0x18] sm:$0xf]  ;;  %v632_v60 = vsel %vm4458_vm7, %v624_v50, %v631_v51  ;;  %v4096_v2 = vld [vmem:[#allocation2 + $0x20] ss:$0 sps:$4 sm:$0x11]   ;;  %v2352_v4 = vshrl.u32 %v3792_v33, 16  ;;  %v4586_v22 = vadd.f32 %v4427_v3, %v322_v31  ;;  %3045 = vmatpush1.bf16.msra.mxu0 %v4157_v28  ;;  %4056 = vmatpush1.bf16.msra.mxu1 %v4157_v28 }
  0x3d   : > { %2159 = vrot.lane.b32.xlu0 %v2113_v34, %s4253_s13  ;;  %v1854_v5 = vshll.u32 %v4552_v45, 16  ;;  %915 = vst [vmem:[#allocation2 + $0x30] sm:$0xf] %v914_v62  ;;  %916 = vst.msk [vmem:[#allocation2 + $0x34] sm:$0xf] %vm427_vm0, %v632_v60  ;;  %v2118_v8 = vrot.slane %v4559_v54, 1  ;;  %v4580_v16 = vcombine.low %v1008_v57, %v1009_v9  ;;  %v4590_v13 = vadd.f32 %v4427_v3, %v323_v59 }
  0x3e   : > { %v4577_v14 = vld [vmem:[%s4421_s25 + $0x28] sm:$0xff]   ;;  %v1054_v15 = vld [vmem:[#allocation2 + $0x18] sm:$0xe]  ;;  %v4101_v18 = vld [vmem:[#allocation2 + $0x20] ss:$0 sps:$4 sm:$0x11]   ;;  %v4593_v27 = vmul.f32 %v3999_v37, %v4414_v1  ;;  %v325_v39 = vmul.f32 %v4000_v11, %v4414_v1  ;;  %3046 = vmatprep.subr.bf16.mxu0 %v4248_v0  ;;  %4048 = vmatprep.subr.bf16.mxu1 %v4248_v0 }
  0x3f   : > { %1761 = vrot.lane.b32.xlu1 %v4552_v45, %s4252_s10  ;;  %v2356_v20 = vrot.slane %v2354_v48, 1  ;;  %v1006_v23 = vld [vmem:[#allocation2 + $0xc] sm:$0xf]  ;;  %v2114_v25 = vrot.slane %v3777_v52, 1  ;;  %v2119_v26 = vsel %vm1598_vm3, %v2117_v56, %v2118_v8  ;;  %v2115_v30 = vrot.slane %v4096_v2, 1  ;;  %v4160_v37 = vld [vmem:[%s6177_s1 + $0x18] sm:$0xff]  }
  0x40   : > { %v2359_v32 = vshll.u32 %v4101_v18, 16  ;;  %v1852_v31 = vshrl.u32 %v4552_v45, 16  ;;  %v4599_v33 = vld [vmem:[#allocation2 + $0x20] ss:$0 sps:$4 sm:$0x11]   ;;  %v3730_v34 = vcombine.low %v1054_v15, %v1009_v9  ;;  %v1856_v35 = vrot.slane %v1854_v5, 1  ;;  %3047 = vmatpush1.bf16.msra.mxu0 %v4160_v37  ;;  %4057 = vmatpush1.bf16.msra.mxu1 %v4160_v37 }
  0x41   : > { %1649 = vrot.lane.b32.xlu0 %v1604_v53, %s4249_s28  ;;  %v2357_v29 = vor.u32 %v2356_v20, %v2352_v4  ;;  %v1859_v38 = vshll.u32 %v4096_v2, 16  ;;  %v4606_v41 = vcombine.low %v1006_v23, %v4521_v7  ;;  %v1353_v45 = vshll.u32 %v4580_v16, 16  ;;  %v917_v51 = vld [vmem:[#allocation2 + $0x38] sm:$0x1]  ;;  %v4627_v5 = vld [vmem:[%s4421_s25 + $0x48] sm:$0xff]   ;;  %v4164_v8 = vld [vmem:[%s6177_s1 + $0x10] sm:$0xff]   ;;  %3048 = vmatprep.subr.bf16.mxu0 %v4248_v0 }
  0x42   : > { %v2361_v42 = vrot.slane %v2359_v32, 1  ;;  %v3987_v46 = vunpack.c.l.bf16 %v4577_v14  ;;  %v1857_v47 = vor.u32 %v1856_v35, %v1852_v31  ;;  %v1351_v49 = vshrl.u32 %v4580_v16, 16  ;;  %v1055_v28 = vld [vmem:[#allocation2 + $0x24] sm:$0xe]  ;;  %4049 = vmatprep.subr.bf16.mxu1 %v4248_v0  ;;  %v4166_v37 = vld [vmem:[%s6177_s1 + $0x8] sm:$0xff]  }
  0x43   : > { %v1861_v48 = vrot.slane %v1859_v38, 1  ;;  %v1358_v50 = vshll.u32 %v4599_v33, 16  ;;  %v2116_v53 = vsel %vm1598_vm3, %v2114_v25, %v2115_v30  ;;  %v1840_v57 = vshrl.u32 %v4513_v61, 16  ;;  %v4103_v32 = vld [vmem:[#allocation2 + $0x2c] ss:$0 sps:$4 sm:$0x11]  }
  0x44   : > { %v1137_v7 = vld [vmem:[#allocation2 + $0x30] sm:$0xf]  ;;  %v4615_v52 = vld [vmem:[#allocation2 + $0x34] sm:$0xf]  ;;  %v2362_v56 = vsel %vm1325_vm2, %v2357_v29, %v2361_v42  ;;  %v3988_v59 = vunpack.c.h.bf16 %v4577_v14  ;;  %v1605_v62 = vrot.slane %v3730_v34, 1  ;;  %v1844_v2 = vrot.slane %v1842_v43, 1  ;;  %3049 = vmatpush1.bf16.msra.mxu0 %v4164_v8  ;;  %4058 = vmatpush1.bf16.msra.mxu1 %v4164_v8 }
  0x45   : > { %2163 = vrot.lane.b32.xlu0 %v2119_v26, %s4253_s13  ;;  %v4622_v60 = vcombine.low %v1137_v7, %v4615_v52  ;;  %v1355_v4 = vrot.slane %v1353_v45, 1  ;;  %v1606_v9 = vrot.slane %v4599_v33, 1  ;;  %v1847_v11 = vshll.u32 %v4526_v12, 16  ;;  %v1010_v43 = vld [vmem:[#allocation2 + $0x24] sm:$0xf]  ;;  %3050 = vmatprep.subr.bf16.mxu0 %v4248_v0 }
  0x46   : > { %v1341_v15 = vshll.u32 %v4606_v41, 16  ;;  %v633_v61 = vrot.slane %v4547_v40, 4  ;;  %v1862_v18 = vsel %vm1325_vm2, %v1857_v47, %v1861_v48  ;;  %v1360_v23 = vrot.slane %v1358_v50, 1  ;;  %v1011_v26 = vld [vmem:[#allocation2 + $0x28] sm:$0xf]  ;;  %4050 = vmatprep.subr.bf16.mxu1 %v4248_v0 }
  0x47   : > { %2275 = vrot.lane.b32.xlu1 %v4622_v60, %s4251_s9  ;;  %v1356_v20 = vor.u32 %v1355_v4, %v1351_v49  ;;  %v1346_v25 = vshll.u32 %v4541_v36, 16  ;;  %v2378_v12 = vshll.u32 %v4622_v60, 16  ;;  %v1339_v40 = vshrl.u32 %v4606_v41, 16  ;;  %v1074_v33 = vld [vmem:[#allocation2 + $0x30] sm:$0xf] }
  0x48   : > { %v1343_v30 = vrot.slane %v1341_v15, 1  ;;  %v918_v29 = vsel %vm4475_vm9, %v633_v61, %v917_v51  ;;  %v1845_v31 = vor.u32 %v1844_v2, %v1840_v57  ;;  %v4647_v34 = vld [vmem:[#allocation2 + $0x34] sm:$0xf]  ;;  %v4651_v36 = vadd.f32 %v4427_v3, %v4593_v27  ;;  %v4664_v27 = vld [vmem:[#allocation2 + $0x2c] ss:$0 sps:$4 sm:$0x11]   ;;  %3051 = vmatpush1.bf16.msra.mxu0 %v4166_v37  ;;  %4059 = vmatpush1.bf16.msra.mxu1 %v4166_v37 }
  0x49   : > { %2543 = vrot.lane.b32.xlu0 %v2362_v56, %s4254_s23  ;;  %919 = vst [vmem:[#allocation2 + $0x38] sm:$0x1] %v918_v29  ;;  %v4654_v35 = vadd.f32 %v4427_v3, %v325_v39  ;;  %v4003_v38 = vunpack.c.l.bf16 %v4627_v5  ;;  %v1607_v42 = vsel %vm1598_vm3, %v1605_v62, %v1606_v9  ;;  %v1849_v45 = vrot.slane %v1847_v11, 1  ;;  %3052 = vmatprep.subr.bf16.mxu0 %v4248_v0  ;;  %v1119_v37 = vld [vmem:[#allocation2 + $0x30] sm:$0xe] }
  0x4a   : > { %v4662_v47 = vcombine.low %v1010_v43, %v1011_v26  ;;  %v3731_v39 = vcombine.low %v1055_v28, %v1011_v26  ;;  %v1361_v48 = vsel %vm1325_vm2, %v1356_v20, %v1360_v23  ;;  %v1348_v49 = vrot.slane %v1346_v25, 1  ;;  %4051 = vmatprep.subr.bf16.mxu1 %v4248_v0  ;;  %v4700_v23 = vld [vmem:[#allocation2 + $0x34] sm:$0xf] }
  0x4b   : > { %2161 = vrot.lane.b32.xlu1 %v2116_v53, %s4253_s13  ;;  %v2376_v50 = vshrl.u32 %v4622_v60, 16  ;;  %v2364_v51 = vshrl.u32 %v4511_v55, 16  ;;  %v1344_v7 = vor.u32 %v1343_v30, %v1339_v40  ;;  %v2380_v56 = vrot.slane %v2378_v12, 1  ;;  %v4171_v55 = vld [vmem:[%s6177_s1] sm:$0xff]  }
  0x4c   : > { %6199 = vst [vmem:[#allocation3_spill] sm:$0xff] %v4662_v47  ;;  %v2368_v57 = vrot.slane %v2366_v19, 1  ;;  %v4675_v62 = vcombine.low %v1074_v33, %v4647_v34  ;;  %v2371_v2 = vshll.u32 %v4103_v32, 16  ;;  %v1864_v53 = vshrl.u32 %v4519_v6, 16  ;;  %3053 = vmatpush1.bf16.msra.mxu0 %v4171_v55  ;;  %4060 = vmatpush1.bf16.msra.mxu1 %v4171_v55 }
  0x4d   : > { %2033 = vrot.lane.b32.xlu0 %v1862_v18, %s4255_s27  ;;  %v1868_v4 = vrot.slane %v1866_v44, 1  ;;  %v4683_v60 = vmul.f32 %v3987_v46, %v4414_v1  ;;  %v1850_v19 = vsel %vm1325_vm2, %v1845_v31, %v1849_v45  ;;  %v1608_v8 = vrot.slane %v3731_v39, 1  ;;  %3068 = vmatprep.subr.bf16.mxu0 %v4248_v0 }
  0x4e   : > { %v1609_v9 = vrot.slane %v4664_v27, 1  ;;  %v1871_v6 = vshll.u32 %v4559_v54, 16  ;;  %v1878_v44 = vshll.u32 %v4675_v62, 16  ;;  %v1365_v46 = vshll.u32 %v4662_v47, 16  ;;  %v1012_v54 = vld [vmem:[#allocation2 + $0x30] sm:$0xf]  ;;  %4052 = vmatprep.subr.bf16.mxu1 %v4248_v0 }
  0x4f   : > { %1651 = vrot.lane.b32.xlu1 %v1607_v42, %s4249_s28  ;;  %v387_v11 = vmax.f32 %v4573_v10, 0.0  ;;  %v388_v15 = vmax.f32 %v4583_v21, 0.0  ;;  %v1349_v61 = vsel %vm1325_vm2, %v1344_v7, %v1348_v49  ;;  %v2381_v18 = vor.u32 %v2380_v56, %v2376_v50  ;;  %v4173_v10 = vld [vmem:[%s6177_s1 + $0x40] sm:$0xff]   ;;  %v1056_v49 = vld [vmem:[#allocation2 + $0x30] sm:$0xe] }
  0x50   : > { %v4102_v43 = vld [vmem:[#allocation2 + $0x38] ss:$0 sps:$4 sm:$0x11]   ;;  %v2369_v20 = vor.u32 %v2368_v57, %v2364_v51  ;;  %v4705_v25 = vmul.f32 %v3988_v59, %v4414_v1  ;;  %v2373_v21 = vrot.slane %v2371_v2, 1  ;;  %v1869_v26 = vor.u32 %v1868_v4, %v1864_v53  ;;  %3069 = vmatpush2.bf16.msra.mxu0 %v4173_v10  ;;  %4061 = vmatpush2.bf16.msra.mxu1 %v4173_v10  ;;  %v920_v4 = vld [vmem:[#allocation2 + $0x3c] sm:$0xf] }
  0x51   : > { %1522 = vrot.lane.b32.xlu0 %v1361_v48, %s4250_s29  ;;  %v4710_v28 = vld [vmem:[#allocation2 + $0x38] ss:$0 sps:$4 sm:$0x11]   ;;  %v3909_v12 = vpack.c.bf16 %v387_v11, %v387_v11  ;;  %v3910_v40 = vpack.c.bf16 %v388_v15, %v388_v15  ;;  %v2383_v30 = vshll.u32 %v4102_v43, 16  ;;  %v1873_v29 = vrot.slane %v1871_v6, 1 }
  0x52   : > { %v1876_v32 = vshrl.u32 %v4675_v62, 16  ;;  %v1363_v14 = vshrl.u32 %v4662_v47, 16  ;;  %v1880_v1 = vrot.slane %v1878_v44, 1  ;;  %v1367_v59 = vrot.slane %v1365_v46, 1  ;;  %v924_v15 = vld [vmem:[#allocation2 + $0x44] sm:$0x1] }
  0x53   : > { %2031 = vrot.lane.b32.xlu1 %v1850_v19, %s4255_s27  ;;  %v635_v31 = vshrl.u32 %v3909_v12, 16  ;;  %v638_v33 = vshll.u32 %v3909_v12, 16  ;;  %v2385_v42 = vrot.slane %v2383_v30, 1  ;;  %v1883_v45 = vshll.u32 %v4710_v28, 16  ;;  %v973_v47 = vld [vmem:[#allocation2 + $0x98] sm:$0x1] }
  0x54   : > { %v643_v39 = vshrl.u32 %v3910_v40, 16  ;;  %v646_v48 = vshll.u32 %v3910_v40, 16  ;;  %v1610_v50 = vsel %vm1598_vm3, %v1608_v8, %v1609_v9  ;;  %v1370_v51 = vshll.u32 %v4664_v27, 16  ;;  %v4728_v19 = vld [vmem:[#allocation2 + $0x38] ss:$0 sps:$4 sm:$0x11]  }
  0x55   : > { %v637_v7 = vrot.slane %v635_v31, 7  ;;  %v4721_v0 = vcombine.low %v1012_v54, %v4700_v23  ;;  %v2386_v56 = vsel %vm1325_vm2, %v2381_v18, %v2385_v42  ;;  %v2374_v57 = vsel %vm1325_vm2, %v2369_v20, %v2373_v21 }
  0x56   : > { %v1874_v2 = vsel %vm1325_vm2, %v1869_v26, %v1873_v29  ;;  %v645_v53 = vrot.slane %v643_v39, 7  ;;  %2547 = vrot.lane.b32.xlu0 %v2386_v56, %s4254_s23  ;;  %v3779_v8 = vcombine.low %v1119_v37, %v4647_v34  ;;  %v3732_v9 = vcombine.low %v1056_v49, %v4700_v23 }
  0x57   : > { %6200 = vst [vmem:[#allocation4_spill] sm:$0xff] %v4721_v0  ;;  %1520 = vrot.lane.b32.xlu1 %v1349_v61, %s4250_s29  ;;  %v640_v55 = vor.u32 %v638_v33, %v637_v7  ;;  %v641_v27 = vrot.slane %v637_v7, 4  ;;  %v1881_v6 = vor.u32 %v1880_v1, %v1876_v32  ;;  %v1885_v44 = vrot.slane %v1883_v45, 1 }
  0x58   : > { %v1368_v46 = vor.u32 %v1367_v59, %v1363_v14  ;;  %v648_v11 = vor.u32 %v646_v48, %v645_v53  ;;  %v1372_v43 = vrot.slane %v1370_v51, 1  ;;  %v1377_v61 = vshll.u32 %v4721_v0, 16 }
  0x59   : > { %v921_v18 = vsel %vm4464_vm8, %v640_v55, %v920_v4  ;;  %v650_v20 = vrot.slane %v645_v53, 4  ;;  %v393_v34 = vmax.f32 %v4586_v22, 0.0  ;;  %v394_v23 = vmax.f32 %v4590_v13, 0.0 }
  0x5a   : > { %v649_v54 = vsel %vm4458_vm7, %v641_v27, %v648_v11  ;;  %922 = vst [vmem:[#allocation2 + $0x3c] sm:$0xf] %v921_v18  ;;  %v395_v10 = vmax.f32 %v4651_v36, 0.0  ;;  %1653 = vrot.lane.b32.xlu0 %v1610_v50, %s4249_s28  ;;  %v1382_v21 = vshll.u32 %v4728_v19, 16  ;;  %v396_v12 = vmax.f32 %v4654_v35, 0.0 }
  0x5b   : > { %2545 = vrot.lane.b32.xlu1 %v2374_v57, %s4254_s23  ;;  %923 = vst.msk [vmem:[#allocation2 + $0x40] sm:$0xf] %vm427_vm0, %v649_v54  ;;  %v925_v26 = vsel %vm4475_vm9, %v650_v20, %v924_v15  ;;  %v357_v22 = vadd.f32 %v4427_v3, %v4683_v60  ;;  %v1886_v13 = vsel %vm1325_vm2, %v1881_v6, %v1885_v44  ;;  %v1375_v32 = vshrl.u32 %v4721_v0, 16  ;;  %v941_v50 = vld [vmem:[#allocation2 + $0x60] sm:$0xf] }
  0x5c   : > { %926 = vst [vmem:[#allocation2 + $0x44] sm:$0x1] %v925_v26  ;;  %v3915_v36 = vpack.c.bf16 %v393_v34, %v393_v34  ;;  %v3916_v40 = vpack.c.bf16 %v394_v23, %v394_v23  ;;  %v3917_v30 = vpack.c.bf16 %v395_v10, %v395_v10  ;;  %v1373_v29 = vsel %vm1325_vm2, %v1368_v46, %v1372_v43  ;;  %v945_v57 = vld [vmem:[#allocation2 + $0x68] sm:$0x1] }
  0x5d   : > { %v1379_v14 = vrot.slane %v1377_v61, 1  ;;  %v358_v1 = vadd.f32 %v4427_v3, %v4705_v25  ;;  %v1384_v60 = vrot.slane %v1382_v21, 1  ;;  %v2120_v37 = vrot.slane %v3779_v8, 1 }
  0x5e   : > { %v686_v59 = vshrl.u32 %v3915_v36, 16  ;;  %v689_v31 = vshll.u32 %v3915_v36, 16  ;;  %v694_v35 = vshrl.u32 %v3916_v40, 16  ;;  %v697_v33 = vshll.u32 %v3916_v40, 16  ;;  %2037 = vrot.lane.b32.xlu0 %v1886_v13, %s4255_s27  ;;  %v948_v13 = vld [vmem:[#allocation2 + $0x6c] sm:$0xf] }
  0x5f   : > { %2035 = vrot.lane.b32.xlu1 %v1874_v2, %s4255_s27  ;;  %v2121_v42 = vrot.slane %v4710_v28, 1  ;;  %v4757_v45 = vpack.c.bf16 %v396_v12, %v396_v12  ;;  %v1611_v39 = vrot.slane %v3732_v9, 1  ;;  %v703_v51 = vshrl.u32 %v3917_v30, 16 }
  0x60   : > { %v688_v48 = vrot.slane %v686_v59, 7  ;;  %v696_v49 = vrot.slane %v694_v35, 7  ;;  %v1380_v25 = vor.u32 %v1379_v14, %v1375_v32  ;;  %v1612_v7 = vrot.slane %v4728_v19, 1  ;;  %v4791_v59 = vld [vmem:[%s6178_s2] ss:$0 sm:$0xff] }
  0x61   : > { %v1139_v3 = vld [vmem:[#allocation2 + $0x3c] sm:$0xf]  ;;  %v389_v2 = vmax.f32 %v357_v22, 0.0  ;;  %v4004_v53 = vunpack.c.h.bf16 %v4627_v5  ;;  %v706_v8 = vshll.u32 %v3917_v30, 16  ;;  %v390_v9 = vmax.f32 %v358_v1, 0.0 }
  0x62   : > { %v1076_v56 = vld [vmem:[#allocation2 + $0x3c] sm:$0xf]  ;;  %v4761_v4 = vld [vmem:[#allocation2 + $0x40] sm:$0xf]  ;;  %v691_v28 = vor.u32 %v689_v31, %v688_v48  ;;  %v699_v27 = vor.u32 %v697_v33, %v696_v49  ;;  %v2122_v44 = vsel %vm1598_vm3, %v2120_v37, %v2121_v42  ;;  %v711_v11 = vshrl.u32 %v4757_v45, 16 }
  0x63   : > { %v4763_v55 = vld [vmem:[#allocation2 + $0x40] sm:$0xf]  ;;  %1524 = vrot.lane.b32.xlu1 %v1373_v29, %s4250_s29  ;;  %v3795_v6 = vcombine.low %v1139_v3, %v4761_v4  ;;  %v4114_v19 = vld [vmem:[#allocation2 + $0x44] ss:$0 sps:$4 sm:$0x11]   ;;  %v692_v15 = vrot.slane %v688_v48, 4  ;;  %v3911_v23 = vpack.c.bf16 %v389_v2, %v389_v2  ;;  %v1385_v10 = vsel %vm1325_vm2, %v1380_v25, %v1384_v60 }
  0x64   : > { %v4769_v46 = vcombine.low %v1076_v56, %v4763_v55  ;;  %v701_v43 = vrot.slane %v696_v49, 4  ;;  %v942_v18 = vsel %vm4464_vm8, %v691_v28, %v941_v50  ;;  %v705_v61 = vrot.slane %v703_v51, 7  ;;  %v4781_v22 = vld [vmem:[#allocation2 + $0x44] ss:$0 sps:$4 sm:$0x11]  }
  0x65   : > { %v2390_v20 = vshll.u32 %v3795_v6, 16  ;;  %2277 = vrot.lane.b32.xlu0 %v3795_v6, %s4251_s9  ;;  %v2388_v54 = vshrl.u32 %v3795_v6, 16  ;;  %v2395_v34 = vshll.u32 %v4114_v19, 16  ;;  %943 = vst [vmem:[#allocation2 + $0x60] sm:$0xf] %v942_v18  ;;  %v700_v26 = vsel %vm4458_vm7, %v692_v15, %v699_v27 }
  0x66   : > { %v1890_v21 = vshll.u32 %v4769_v46, 16  ;;  %v946_v12 = vsel %vm4475_vm9, %v701_v43, %v945_v57  ;;  %944 = vst.msk [vmem:[#allocation2 + $0x64] sm:$0xf] %vm427_vm0, %v700_v26  ;;  %v708_v40 = vor.u32 %v706_v8, %v705_v61  ;;  %v714_v30 = vshll.u32 %v4757_v45, 16  ;;  %v1120_v37 = vld [vmem:[#allocation2 + $0x3c] sm:$0xe] }
  0x67   : > { %1765 = vrot.lane.b32.xlu1 %v4675_v62, %s4252_s10  ;;  %v2392_v36 = vrot.slane %v2390_v20, 1  ;;  %947 = vst [vmem:[#allocation2 + $0x68] sm:$0x1] %v946_v12  ;;  %v3912_v29 = vpack.c.bf16 %v390_v9, %v390_v9  ;;  %v1613_v32 = vsel %vm1598_vm3, %v1611_v39, %v1612_v7  ;;  %v2397_v14 = vrot.slane %v2395_v34, 1  ;;  %v927_v50 = vld [vmem:[#allocation2 + $0x48] sm:$0xf] }
  0x68   : > { %v709_v1 = vrot.slane %v705_v61, 4  ;;  %v326_v62 = vmul.f32 %v4791_v59, %v4003_v38  ;;  %v713_v35 = vrot.slane %v711_v11, 7  ;;  %v949_v33 = vsel %vm4464_vm8, %v708_v40, %v948_v13  ;;  %v952_v51 = vld [vmem:[#allocation2 + $0x74] sm:$0x1]  ;;  %v1014_v2 = vld [vmem:[#allocation2 + $0x3c] sm:$0xf] }
  0x69   : > { %1526 = vrot.lane.b32.xlu0 %v1385_v10, %s4250_s29  ;;  %v2393_v31 = vor.u32 %v2392_v36, %v2388_v54  ;;  %v652_v60 = vshrl.u32 %v3911_v23, 16  ;;  %v1888_v42 = vshrl.u32 %v4769_v46, 16  ;;  %v1892_v45 = vrot.slane %v1890_v21, 1  ;;  %950 = vst [vmem:[#allocation2 + $0x6c] sm:$0xf] %v949_v33 }
  0x6a   : > { %v1895_v39 = vshll.u32 %v4781_v22, 16  ;;  %v655_v48 = vshll.u32 %v3911_v23, 16  ;;  %v716_v5 = vor.u32 %v714_v30, %v713_v35  ;;  %v660_v49 = vshrl.u32 %v3912_v29, 16  ;;  %v4807_v28 = vld [vmem:[%s6179_s3] ss:$0 sm:$0xff] }
  0x6b   : > { %2165 = vrot.lane.b32.xlu1 %v2122_v44, %s4253_s13  ;;  %v654_v38 = vrot.slane %v652_v60, 7  ;;  %v327_v3 = vmul.f32 %v4791_v59, %v4004_v53  ;;  %v2398_v25 = vsel %vm1325_vm2, %v2393_v31, %v2397_v14  ;;  %v663_v56 = vshll.u32 %v3912_v29, 16  ;;  %v4814_v19 = vld [vmem:[#allocation2 + $0x40] sm:$0xf]  ;;  %v931_v23 = vld [vmem:[#allocation2 + $0x50] sm:$0x1] }
  0x6c   : > { %v1020_v7 = vld [vmem:[#allocation2 + $0x60] sm:$0xf]  ;;  %v718_v57 = vrot.slane %v713_v35, 4  ;;  %v365_v27 = vadd.f32 %v4807_v28, %v326_v62  ;;  %v3780_v8 = vcombine.low %v1120_v37, %v4763_v55  ;;  %v717_v53 = vsel %vm4458_vm7, %v709_v1, %v716_v5 }
  0x6d   : > { %1655 = vrot.lane.b32.xlu0 %v1613_v32, %s4249_s28  ;;  %v1060_v9 = vld [vmem:[#allocation2 + $0x60] sm:$0xe]  ;;  %v657_v6 = vor.u32 %v655_v48, %v654_v38  ;;  %v662_v44 = vrot.slane %v660_v49, 7  ;;  %v1021_v11 = vld [vmem:[#allocation2 + $0x64] sm:$0xf]  ;;  %v1893_v15 = vor.u32 %v1892_v45, %v1888_v42  ;;  %v1897_v43 = vrot.slane %v1895_v39, 1 }
  0x6e   : > { %951 = vst.msk [vmem:[#allocation2 + $0x70] sm:$0xf] %vm427_vm0, %v717_v53  ;;  %v658_v18 = vrot.slane %v654_v38, 4  ;;  %v953_v61 = vsel %vm4475_vm9, %v718_v57, %v952_v51  ;;  %v4820_v55 = vcombine.low %v1020_v7, %v1021_v11  ;;  %v4118_v20 = vld [vmem:[#allocation2 + $0x68] ss:$0 sps:$4 sm:$0x11]   ;;  %v366_v10 = vadd.f32 %v4807_v28, %v327_v3 }
  0x6f   : > { %2549 = vrot.lane.b32.xlu1 %v2398_v25, %s4254_s23  ;;  %v665_v54 = vor.u32 %v663_v56, %v662_v44  ;;  %v928_v34 = vsel %vm4464_vm8, %v657_v6, %v927_v50  ;;  %954 = vst [vmem:[#allocation2 + $0x74] sm:$0x1] %v953_v61  ;;  %v3736_v21 = vcombine.low %v1060_v9, %v1021_v11  ;;  %v667_v26 = vrot.slane %v662_v44, 4  ;;  %v4843_v48 = vld [vmem:[#allocation2 + $0x44] ss:$0 sps:$4 sm:$0x11]  }
  0x70   : > { %6201 = vst [vmem:[#allocation5_spill] sm:$0xff] %v4820_v55  ;;  %929 = vst [vmem:[#allocation2 + $0x48] sm:$0xf] %v928_v34  ;;  %v4826_v12 = vcombine.low %v1014_v2, %v4814_v19  ;;  %v397_v13 = vmax.f32 %v365_v27, 0.0  ;;  %v1423_v36 = vshrl.u32 %v4820_v55, 16  ;;  %v1425_v40 = vshll.u32 %v4820_v55, 16 }
  0x71   : > { %1767 = vrot.lane.b32.xlu0 %v4769_v46, %s4252_s10  ;;  %v1430_v30 = vshll.u32 %v4118_v20, 16  ;;  %v2123_v29 = vrot.slane %v3780_v8, 1  ;;  %v1898_v32 = vsel %vm1325_vm2, %v1893_v15, %v1897_v43  ;;  %v2124_v14 = vrot.slane %v4781_v22, 1  ;;  %v1084_v33 = vld [vmem:[#allocation2 + $0x6c] sm:$0xf]  ;;  %v4854_v2 = vld [vmem:[%s4421_s25 + $0x30] sm:$0xff]  }
  0x72   : > { %6202 = vst [vmem:[#allocation6_spill] sm:$0xff] %v4826_v12  ;;  %v666_v1 = vsel %vm4458_vm7, %v658_v18, %v665_v54  ;;  %v932_v62 = vsel %vm4475_vm9, %v667_v26, %v931_v23  ;;  %v1427_v31 = vrot.slane %v1425_v40, 1  ;;  %v398_v46 = vmax.f32 %v366_v10, 0.0  ;;  %v4851_v57 = vld [vmem:[#allocation2 + $0x3c] sm:$0xe] }
  0x73   : > { %v1432_v35 = vrot.slane %v1430_v30, 1  ;;  %930 = vst.msk [vmem:[#allocation2 + $0x4c] sm:$0xf] %vm427_vm0, %v666_v1  ;;  %933 = vst [vmem:[#allocation2 + $0x50] sm:$0x1] %v932_v62  ;;  %v1623_v60 = vrot.slane %v3736_v21, 1  ;;  %v3919_v45 = vpack.c.bf16 %v397_v13, %v397_v13  ;;  %v2125_v38 = vsel %vm1598_vm3, %v2123_v29, %v2124_v14 }
  0x74   : > { %v1624_v37 = vrot.slane %v4118_v20, 1  ;;  %v1389_v42 = vshll.u32 %v4826_v12, 16  ;;  %v1428_v22 = vor.u32 %v1427_v31, %v1423_v36  ;;  %v3920_v5 = vpack.c.bf16 %v398_v46, %v398_v46  ;;  %v1124_v44 = vld [vmem:[#allocation2 + $0x6c] sm:$0xe]  ;;  %v955_v61 = vld [vmem:[#allocation2 + $0x78] sm:$0xf] }
  0x75   : > { %2039 = vrot.lane.b32.xlu0 %v1898_v32, %s4255_s27  ;;  %v4841_v39 = vld [vmem:[#allocation2 + $0x70] sm:$0xf]  ;;  %v720_v51 = vshrl.u32 %v3919_v45, 16  ;;  %v1387_v25 = vshrl.u32 %v4826_v12, 16  ;;  %v723_v7 = vshll.u32 %v3919_v45, 16  ;;  %v1394_v23 = vshll.u32 %v4843_v48, 16 }
  0x76   : > { %v3752_v49 = vcombine.low %v1084_v33, %v4841_v39  ;;  %v4847_v50 = vld [vmem:[#allocation2 + $0x74] ss:$0 sps:$4 sm:$0x11]   ;;  %v1433_v3 = vsel %vm1325_vm2, %v1428_v22, %v1432_v35  ;;  %v728_v56 = vshrl.u32 %v3920_v5, 16  ;;  %v1625_v27 = vsel %vm1598_vm3, %v1623_v60, %v1624_v37  ;;  %v959_v20 = vld [vmem:[#allocation2 + $0x80] sm:$0x1] }
  0x77   : > { %1534 = vrot.lane.b32.xlu1 %v1433_v3, %s4250_s29  ;;  %v1141_v9 = vld [vmem:[#allocation2 + $0x48] sm:$0xf]  ;;  %v1943_v53 = vshll.u32 %v4847_v50, 16  ;;  %v1391_v6 = vrot.slane %v1389_v42, 1  ;;  %v722_v15 = vrot.slane %v720_v51, 7  ;;  %v731_v18 = vshll.u32 %v3920_v5, 16 }
  0x78   : > { %v1938_v8 = vshll.u32 %v3752_v49, 16  ;;  %v1936_v11 = vshrl.u32 %v3752_v49, 16  ;;  %v730_v43 = vrot.slane %v728_v56, 7  ;;  %v1022_v10 = vld [vmem:[#allocation2 + $0x6c] sm:$0xf]  ;;  %v3991_v26 = vunpack.c.l.bf16 %v4854_v2  ;;  %v4038_v56 = vld [vmem:[%s4421_s25 + $0x50] sm:$0xff]  }
  0x79   : > { %2167 = vrot.lane.b32.xlu0 %v2125_v38, %s4253_s13  ;;  %v1023_v21 = vld [vmem:[#allocation2 + $0x70] sm:$0xf]  ;;  %v3992_v13 = vunpack.c.h.bf16 %v4854_v2  ;;  %v1945_v40 = vrot.slane %v1943_v53, 1  ;;  %v725_v29 = vor.u32 %v723_v7, %v722_v15  ;;  %v3733_v32 = vcombine.low %v4851_v57, %v4814_v19  ;;  %v1078_v14 = vld [vmem:[#allocation2 + $0x48] sm:$0xf] }
  0x7a   : > { %v4860_v54 = vld [vmem:[#allocation2 + $0x4c] sm:$0xf]  ;;  %v1940_v34 = vrot.slane %v1938_v8, 1  ;;  %v4126_v30 = vld [vmem:[#allocation2 + $0x50] ss:$0 sps:$4 sm:$0x11]   ;;  %v3784_v1 = vcombine.low %v1124_v44, %v4841_v39  ;;  %v733_v31 = vor.u32 %v731_v18, %v730_v43  ;;  %v1392_v45 = vor.u32 %v1391_v6, %v1387_v25 }
  0x7b   : > { %v3796_v36 = vcombine.low %v1141_v9, %v4860_v54  ;;  %1663 = vrot.lane.b32.xlu1 %v1625_v27, %s4249_s28  ;;  %v726_v62 = vrot.slane %v722_v15, 4  ;;  %v735_v35 = vrot.slane %v730_v43, 4  ;;  %v2407_v37 = vshll.u32 %v4126_v30, 16  ;;  %v4871_v42 = vld [vmem:[#allocation2 + $0x4c] sm:$0xf] }
  0x7c   : > { %v1941_v46 = vor.u32 %v1940_v34, %v1936_v11  ;;  %v956_v22 = vsel %vm4464_vm8, %v725_v29, %v955_v61  ;;  %v4879_v5 = vld [vmem:[#allocation2 + $0x74] ss:$0 sps:$4 sm:$0x11]   ;;  %v1061_v38 = vld [vmem:[#allocation2 + $0x6c] sm:$0xe]  ;;  %v1396_v7 = vrot.slane %v1394_v23, 1  ;;  %v4882_v25 = vcombine.low %v1022_v10, %v1023_v21 }
  0x7d   : > { %v2402_v33 = vshll.u32 %v3796_v36, 16  ;;  %2279 = vrot.lane.b32.xlu0 %v3796_v36, %s4251_s9  ;;  %v2400_v60 = vshrl.u32 %v3796_v36, 16  ;;  %v734_v19 = vsel %vm4458_vm7, %v726_v62, %v733_v31  ;;  %v960_v39 = vsel %vm4475_vm9, %v735_v35, %v959_v20  ;;  %957 = vst [vmem:[#allocation2 + $0x78] sm:$0xf] %v956_v22  ;;  %v4236_v58 = vld [vmem:[#allocation2 + $0x64] sm:$0xf] }
  0x7e   : > { %v2409_v3 = vrot.slane %v2407_v37, 1  ;;  %958 = vst.msk [vmem:[#allocation2 + $0x7c] sm:$0xf] %vm427_vm0, %v734_v19  ;;  %961 = vst [vmem:[#allocation2 + $0x80] sm:$0x1] %v960_v39  ;;  %v2135_v57 = vrot.slane %v3784_v1, 1  ;;  %v4888_v27 = vcombine.low %v1078_v14, %v4871_v42  ;;  %v320_v8 = vmul.f32 %v4791_v59, %v3991_v26 }
  0x7f   : > { %v2404_v51 = vrot.slane %v2402_v33, 1  ;;  %6203 = vst [vmem:[#allocation7_spill] sm:$0xff] %v4882_v25  ;;  %1775 = vrot.lane.b32.xlu1 %v3752_v49, %s4252_s10  ;;  %v2136_v2 = vrot.slane %v4847_v50, 1  ;;  %v1946_v9 = vsel %vm1325_vm2, %v1941_v46, %v1945_v40  ;;  %v4892_v6 = vld [vmem:[#allocation2 + $0x50] ss:$0 sps:$4 sm:$0x11]   ;;  %v3737_v44 = vcombine.low %v1061_v38, %v1023_v21 }
  0x80   : > { %v321_v11 = vmul.f32 %v4791_v59, %v3992_v13  ;;  %v1614_v15 = vrot.slane %v3733_v32, 1  ;;  %v1615_v43 = vrot.slane %v4843_v48, 1  ;;  %v4007_v49 = vunpack.c.l.bf16 %v4038_v56  ;;  %v1121_v21 = vld [vmem:[#allocation2 + $0x48] sm:$0xe] }
  0x81   : > { %v2405_v53 = vor.u32 %v2404_v51, %v2400_v60  ;;  %v1397_v50 = vsel %vm1325_vm2, %v1392_v45, %v1396_v7  ;;  %v1437_v61 = vshll.u32 %v4882_v25, 16  ;;  %v1442_v20 = vshll.u32 %v4879_v5, 16 }
  0x82   : > { %v2137_v34 = vsel %vm1598_vm3, %v2135_v57, %v2136_v2  ;;  %v1902_v23 = vshll.u32 %v4888_v27, 16  ;;  %v1435_v10 = vshrl.u32 %v4882_v25, 16  ;;  %v359_v48 = vadd.f32 %v4807_v28, %v320_v8  ;;  %v1182_v2 = vld [vmem:[#allocation2 + $0x24] sm:$0xe] }
  0x83   : > { %v2410_v18 = vsel %vm1325_vm2, %v2405_v53, %v2409_v3  ;;  %2047 = vrot.lane.b32.xlu1 %v1946_v9, %s4255_s27  ;;  %v1900_v26 = vshrl.u32 %v4888_v27, 16  ;;  %v1907_v13 = vshll.u32 %v4892_v6, 16  ;;  %v4908_v36 = vrot.slane %v3737_v44, 1 }
  0x84   : > { %2551 = vrot.lane.b32.xlu0 %v2410_v18, %s4254_s23  ;;  %v360_v40 = vadd.f32 %v4807_v28, %v321_v11  ;;  %v1149_v30 = vld [vmem:[#allocation2 + $0x78] sm:$0xf]  ;;  %v4008_v32 = vunpack.c.h.bf16 %v4038_v56  ;;  %v1439_v62 = vrot.slane %v1437_v61, 1  ;;  %v1444_v31 = vrot.slane %v1442_v20, 1  ;;  %v934_v61 = vld [vmem:[#allocation2 + $0x54] sm:$0xf] }
  0x85   : > { %v4911_v29 = vld [vmem:[#allocation2 + $0x7c] sm:$0xf]  ;;  %v4914_v1 = vld [vmem:[#allocation2 + $0x80] ss:$0 sps:$4 sm:$0x11]   ;;  %v391_v35 = vmax.f32 %v359_v48, 0.0  ;;  %v1616_v33 = vsel %vm1598_vm3, %v1614_v15, %v1615_v43  ;;  %v3781_v46 = vcombine.low %v1121_v21, %v4871_v42  ;;  %v328_v51 = vmul.f32 %v4791_v59, %v4007_v49 }
  0x86   : > { %v3800_v14 = vcombine.low %v1149_v30, %v4911_v29  ;;  %v1904_v60 = vrot.slane %v1902_v23, 1  ;;  %v1086_v37 = vld [vmem:[#allocation2 + $0x78] sm:$0xf]  ;;  %v4920_v45 = vld [vmem:[#allocation2 + $0x7c] sm:$0xf]  ;;  %v392_v19 = vmax.f32 %v360_v40, 0.0  ;;  %v329_v57 = vmul.f32 %v4791_v59, %v4008_v32 }
  0x87   : > { %2175 = vrot.lane.b32.xlu1 %v2137_v34, %s4253_s13  ;;  %v2455_v38 = vshll.u32 %v4914_v1, 16  ;;  %v1909_v3 = vrot.slane %v1907_v13, 1  ;;  %v3913_v7 = vpack.c.bf16 %v391_v35, %v391_v35  ;;  %v1627_v42 = vrot.slane %v4879_v5, 1  ;;  %v938_v20 = vld [vmem:[#allocation2 + $0x5c] sm:$0x1] }
  0x88   : > { %1528 = vrot.lane.b32.xlu0 %v1397_v50, %s4250_s29  ;;  %v2450_v22 = vshll.u32 %v3800_v14, 16  ;;  %v2448_v39 = vshrl.u32 %v3800_v14, 16  ;;  %v3914_v56 = vpack.c.bf16 %v392_v19, %v392_v19  ;;  %v4927_v53 = vcombine.low %v1086_v37, %v4920_v45  ;;  %v1016_v34 = vld [vmem:[#allocation2 + $0x48] sm:$0xf]  ;;  %v1183_v5 = vld [vmem:[#allocation2 + $0x30] sm:$0xe] }
  0x89   : > { %v2457_v9 = vrot.slane %v2455_v38, 1  ;;  %v669_v44 = vshrl.u32 %v3913_v7, 16  ;;  %v672_v11 = vshll.u32 %v3913_v7, 16  ;;  %v1440_v18 = vor.u32 %v1439_v62, %v1435_v10  ;;  %v4932_v40 = vld [vmem:[#allocation2 + $0x4c] sm:$0xf] }
  0x8a   : > { %v2452_v8 = vrot.slane %v2450_v22, 1  ;;  %v677_v15 = vshrl.u32 %v3914_v56, 16  ;;  %v680_v43 = vshll.u32 %v3914_v56, 16  ;;  %v1905_v50 = vor.u32 %v1904_v60, %v1900_v26  ;;  %v4226_v32 = vld [vmem:[#allocation2 + $0x28] sm:$0xf] }
  0x8b   : > { %2287 = vrot.lane.b32.xlu1 %v3800_v14, %s4251_s9  ;;  %v367_v23 = vadd.f32 %v4807_v28, %v328_v51  ;;  %v2126_v48 = vrot.slane %v3781_v46, 1  ;;  %v671_v21 = vrot.slane %v669_v44, 7  ;;  %v368_v30 = vadd.f32 %v4807_v28, %v329_v57  ;;  %v1125_v26 = vld [vmem:[#allocation2 + $0x78] sm:$0xe] }
  0x8c   : > { %1657 = vrot.lane.b32.xlu0 %v1616_v33, %s4249_s28  ;;  %v2453_v49 = vor.u32 %v2452_v8, %v2448_v39  ;;  %v679_v13 = vrot.slane %v677_v15, 7  ;;  %v3825_v14 = vcombine.low %v1182_v2, %v4226_v32  ;;  %v2127_v10 = vrot.slane %v4892_v6, 1  ;;  %v4941_v37 = vld [vmem:[#allocation2 + $0x80] ss:$0 sps:$4 sm:$0x11]  }
  0x8d   : > { %v1950_v62 = vshll.u32 %v4927_v53, 16  ;;  %v674_v33 = vor.u32 %v672_v11, %v671_v21  ;;  %v675_v46 = vrot.slane %v671_v21, 4  ;;  %v1445_v22 = vsel %vm1325_vm2, %v1440_v18, %v1444_v31  ;;  %v4954_v56 = vld [vmem:[#allocation2 + $0x50] ss:$0 sps:$4 sm:$0x11]  }
  0x8e   : > { %v2458_v35 = vsel %vm1325_vm2, %v2453_v49, %v2457_v9  ;;  %v682_v60 = vor.u32 %v680_v43, %v679_v13  ;;  %v684_v19 = vrot.slane %v679_v13, 4  ;;  %v1910_v39 = vsel %vm1325_vm2, %v1905_v50, %v1909_v3  ;;  %v1024_v18 = vld [vmem:[#allocation2 + $0x78] sm:$0xf]  ;;  %v4968_v50 = vld [vmem:[#allocation2 + $0x7c] sm:$0xf] }
  0x8f   : > { %2559 = vrot.lane.b32.xlu1 %v2458_v35, %s4254_s23  ;;  %v4946_v6 = vcombine.low %v1016_v34, %v4932_v40  ;;  %v399_v38 = vmax.f32 %v367_v23, 0.0  ;;  %v400_v57 = vmax.f32 %v368_v30, 0.0  ;;  %v4956_v2 = vrot.slane %v3825_v14, 1  ;;  %v962_v21 = vld [vmem:[#allocation2 + $0x84] sm:$0xf] }
  0x90   : > { %1769 = vrot.lane.b32.xlu0 %v4888_v27, %s4252_s10  ;;  %v683_v51 = vsel %vm4458_vm7, %v675_v46, %v682_v60  ;;  %v935_v27 = vsel %vm4464_vm8, %v674_v33, %v934_v61  ;;  %v939_v7 = vsel %vm4475_vm9, %v684_v19, %v938_v20  ;;  %v3826_v31 = vcombine.low %v1183_v5, %v4615_v52  ;;  %v4970_v61 = vld [vmem:[#allocation2 + $0x3c] sm:$0xe]  ;;  %v1146_v33 = vld [vmem:[#allocation2 + $0x64] sm:$0xf] }
  0x91   : > { %6204 = vst [vmem:[#allocation8_spill] sm:$0xff] %v4946_v6  ;;  %v3785_v3 = vcombine.low %v1125_v26, %v4920_v45  ;;  %936 = vst [vmem:[#allocation2 + $0x54] sm:$0xf] %v935_v27  ;;  %v3921_v8 = vpack.c.bf16 %v399_v38, %v399_v38  ;;  %v1948_v9 = vshrl.u32 %v4927_v53, 16  ;;  %v1952_v44 = vrot.slane %v1950_v62, 1 }
  0x92   : > { %937 = vst.msk [vmem:[#allocation2 + $0x58] sm:$0xf] %vm427_vm0, %v683_v51  ;;  %940 = vst [vmem:[#allocation2 + $0x5c] sm:$0x1] %v939_v7  ;;  %v1955_v11 = vshll.u32 %v4941_v37, 16  ;;  %v3922_v15 = vpack.c.bf16 %v400_v57, %v400_v57  ;;  %v1628_v52 = vsel %vm1598_vm3, %v4908_v36, %v1627_v42  ;;  %v2128_v45 = vsel %vm1598_vm3, %v2126_v48, %v2127_v10 }
  0x93   : > { %1536 = vrot.lane.b32.xlu1 %v1445_v22, %s4250_s29  ;;  %v737_v43 = vshrl.u32 %v3921_v8, 16  ;;  %v740_v49 = vshll.u32 %v3921_v8, 16  ;;  %v1401_v20 = vshll.u32 %v4946_v6, 16  ;;  %v1406_v34 = vshll.u32 %v4954_v56, 16  ;;  %v1058_v48 = vld [vmem:[#allocation2 + $0x48] sm:$0xe] }
  0x94   : > { %2041 = vrot.lane.b32.xlu0 %v1910_v39, %s4255_s27  ;;  %v745_v23 = vshrl.u32 %v3922_v15, 16  ;;  %v748_v5 = vshll.u32 %v3922_v15, 16  ;;  %v4974_v13 = vrot.slane %v3826_v31, 1  ;;  %v2138_v30 = vrot.slane %v3785_v3, 1  ;;  %v1145_v62 = vld [vmem:[#allocation2 + $0x60] sm:$0xf] }
  0x95   : > { %v2139_v36 = vrot.slane %v4941_v37, 1  ;;  %v739_v42 = vrot.slane %v737_v43, 7  ;;  %v1953_v32 = vor.u32 %v1952_v44, %v1948_v9  ;;  %v1957_v14 = vrot.slane %v1955_v11, 1  ;;  %v966_v22 = vld [vmem:[#allocation2 + $0x8c] sm:$0x1] }
  0x96   : > { %v747_v35 = vrot.slane %v745_v23, 7  ;;  %v4982_v26 = vcombine.low %v1024_v18, %v4968_v50  ;;  %v1399_v60 = vshrl.u32 %v4946_v6, 16  ;;  %v4987_v39 = vld [vmem:[#allocation2 + $0x80] ss:$0 sps:$4 sm:$0x11]   ;;  %v1403_v27 = vrot.slane %v1401_v20, 1 }
  0x97   : > { %1665 = vrot.lane.b32.xlu1 %v1628_v52, %s4249_s28  ;;  %v742_v37 = vor.u32 %v740_v49, %v739_v42  ;;  %v743_v19 = vrot.slane %v739_v42, 4  ;;  %v1408_v7 = vrot.slane %v1406_v34, 1  ;;  %v3734_v31 = vcombine.low %v1058_v48, %v4932_v40  ;;  %v1062_v3 = vld [vmem:[#allocation2 + $0x78] sm:$0xe] }
  0x98   : > { %2169 = vrot.lane.b32.xlu0 %v2128_v45, %s4253_s13  ;;  %6205 = vst [vmem:[#allocation9_spill] sm:$0xff] %v4982_v26  ;;  %v1143_v38 = vld [vmem:[#allocation2 + $0x54] sm:$0xf]  ;;  %v750_v57 = vor.u32 %v748_v5, %v747_v35  ;;  %v752_v11 = vrot.slane %v747_v35, 4  ;;  %v4995_v15 = vcombine.low %v1145_v62, %v1146_v33  ;;  %v1958_v52 = vsel %vm1325_vm2, %v1953_v32, %v1957_v14  ;;  %v4039_v20 = vld [vmem:[%s4421_s25 + $0x58] sm:$0xff]  }
  0x99   : > { %v4989_v51 = vld [vmem:[#allocation2 + $0x58] sm:$0xf]  ;;  %v4142_v9 = vld [vmem:[#allocation2 + $0x5c] ss:$0 sps:$4 sm:$0x11]   ;;  %v963_v44 = vsel %vm4464_vm8, %v742_v37, %v962_v21  ;;  %v2140_v45 = vsel %vm1598_vm3, %v2138_v30, %v2139_v36  ;;  %v1449_v18 = vshll.u32 %v4982_v26, 16  ;;  %v1404_v21 = vor.u32 %v1403_v27, %v1399_v60 }
  0x9a   : > { %v3797_v8 = vcombine.low %v1143_v38, %v4989_v51  ;;  %v751_v40 = vsel %vm4458_vm7, %v743_v19, %v750_v57  ;;  %964 = vst [vmem:[#allocation2 + $0x84] sm:$0xf] %v963_v44  ;;  %v1080_v43 = vld [vmem:[#allocation2 + $0x54] sm:$0xf]  ;;  %v1081_v49 = vld [vmem:[#allocation2 + $0x58] sm:$0xf]  ;;  %v967_v36 = vsel %vm4475_vm9, %v752_v11, %v966_v22  ;;  %v3738_v62 = vcombine.low %v1062_v3, %v4968_v50 }
  0x9b   : > { %1777 = vrot.lane.b32.xlu1 %v4927_v53, %s4252_s10  ;;  %v2419_v5 = vshll.u32 %v4142_v9, 16  ;;  %965 = vst.msk [vmem:[#allocation2 + $0x88] sm:$0xf] %vm427_vm0, %v751_v40  ;;  %v1454_v53 = vshll.u32 %v4987_v39, 16  ;;  %v1617_v30 = vrot.slane %v3734_v31, 1  ;;  %v5010_v32 = vcombine.low %v1080_v43, %v1081_v49 }
  0x9c   : > { %v2414_v34 = vshll.u32 %v3797_v8, 16  ;;  %2281 = vrot.lane.b32.xlu0 %v3797_v8, %s4251_s9  ;;  %v2412_v23 = vshrl.u32 %v3797_v8, 16  ;;  %v1122_v48 = vld [vmem:[#allocation2 + $0x54] sm:$0xe]  ;;  %968 = vst [vmem:[#allocation2 + $0x8c] sm:$0x1] %v967_v36  ;;  %v4011_v33 = vunpack.c.l.bf16 %v4039_v20  ;;  %v4012_v38 = vunpack.c.h.bf16 %v4039_v20 }
  0x9d   : > { %v4979_v10 = vpop.permute.xlu0 %1647  ;;  %v2421_v35 = vrot.slane %v2419_v5, 1  ;;  %v1618_v37 = vrot.slane %v4954_v56, 1  ;;  %v1447_v60 = vshrl.u32 %v4982_v26, 16  ;;  %v1451_v19 = vrot.slane %v1449_v18, 1  ;;  %v5019_v3 = vld [vmem:[#allocation2 + $0x48] sm:$0xe] }
  0x9e   : > { %v2416_v14 = vrot.slane %v2414_v34, 1  ;;  %vm2671_vm10 = vcmask 130048   ;;  %v3782_v22 = vcombine.low %v1122_v48, %v1081_v49  ;;  %v1456_v57 = vrot.slane %v1454_v53, 1  ;;  %v4155_v31 = vld [vmem:[#allocation2 + $0x5c] ss:$0 sps:$4 sm:$0x11]  }
  0x9f   : > { %2049 = vrot.lane.b32.xlu1 %v1958_v52, %s4255_s27  ;;  %v1914_v8 = vshll.u32 %v5010_v32, 16  ;;  %vm2704_vm11 = vcmask 261120   ;;  %v1630_v9 = vrot.slane %v4987_v39, 1  ;;  %v2426_v50 = vshll.u32 %v4995_v15, 16  ;;  %v1018_v5 = vld [vmem:[#allocation2 + $0x54] sm:$0xf] }
  0xa0   : > { %v2417_v27 = vor.u32 %v2416_v14, %v2412_v23  ;;  %v1629_v11 = vrot.slane %v3738_v62, 1  ;;  %v2424_v52 = vshrl.u32 %v4995_v15, 16  ;;  %v330_v40 = vmul.f32 %v4791_v59, %v4011_v33  ;;  %v4165_v23 = vld [vmem:[#allocation2 + $0x68] ss:$0 sps:$4 sm:$0x11]  }
  0xa1   : > { %v1519_v42 = vpop.permute.xlu0 %1518  ;;  %v1151_v44 = vld [vmem:[#allocation2 + $0x84] sm:$0xf]  ;;  %v1409_v43 = vsel %vm1325_vm2, %v1404_v21, %v1408_v7  ;;  %v1452_v39 = vor.u32 %v1451_v19, %v1447_v60  ;;  %v331_v53 = vmul.f32 %v4791_v59, %v4012_v38  ;;  %v1912_v48 = vshrl.u32 %v5010_v32, 16  ;;  %v5065_v6 = vld [vmem:[#allocation2 + $0x54] sm:$0xe] }
  0xa2   : > { %v2422_v56 = vsel %vm1325_vm2, %v2417_v27, %v2421_v35  ;;  %v5027_v49 = vld [vmem:[#allocation2 + $0x88] sm:$0xf]  ;;  %v1088_v20 = vld [vmem:[#allocation2 + $0x84] sm:$0xf]  ;;  %v1919_v14 = vshll.u32 %v4155_v31, 16  ;;  %v1619_v21 = vsel %vm1598_vm3, %v1617_v30, %v1618_v37  ;;  %v2673_v33 = vsel %vm2671_vm10, %v4431_v17, %v1519_v42 }
  0xa3   : > { %2553 = vrot.lane.b32.xlu0 %v2422_v56, %s4254_s23  ;;  %2177 = vrot.lane.b32.xlu1 %v2140_v45, %s4253_s13  ;;  %6206 = vst [vmem:[#allocation10_spill] sm:$0xff] %v5027_v49  ;;  %v5031_v34 = vld [vmem:[#allocation2 + $0x88] sm:$0xf]  ;;  %v3801_v36 = vcombine.low %v1151_v44, %v5027_v49  ;;  %v2129_v45 = vrot.slane %v3782_v22, 1  ;;  %v5036_v35 = vld [vmem:[#allocation2 + $0x58] sm:$0xf]  ;;  %v369_v22 = vadd.f32 %v4807_v28, %v330_v40 }
  0xa4   : > { %v5041_v62 = vld [vmem:[#allocation2 + $0x8c] ss:$0 sps:$4 sm:$0x11]   ;;  %v1916_v60 = vrot.slane %v1914_v8, 1  ;;  %v5048_v27 = vcombine.low %v1088_v20, %v5031_v34  ;;  %v2130_v56 = vrot.slane %v4155_v31, 1  ;;  %v2428_v42 = vrot.slane %v2426_v50, 1 }
  0xa5   : > { %6207 = vst [vmem:[#allocation11_spill] sm:$0xff] %v5041_v62  ;;  %v2462_v59 = vshll.u32 %v3801_v36, 16  ;;  %v2460_v19 = vshrl.u32 %v3801_v36, 16  ;;  %v2467_v30 = vshll.u32 %v5041_v62, 16  ;;  %v1126_v17 = vld [vmem:[#allocation2 + $0x84] sm:$0xe]  ;;  %v370_v8 = vadd.f32 %v4807_v28, %v331_v53 }
  0xa6   : > { %v1457_v7 = vsel %vm1325_vm2, %v1452_v39, %v1456_v57  ;;  %v5060_v20 = vsel %vm2704_vm11, %v2673_v33, %v4979_v10  ;;  %v5063_v40 = vcombine.low %v1018_v5, %v5036_v35  ;;  %v1921_v46 = vrot.slane %v1919_v14, 1  ;;  %v5078_v5 = vld [vmem:[#allocation2 + $0x8c] ss:$0 sps:$4 sm:$0x11]  }
  0xa7   : > { %v5029_v18 = vpop.permute.xlu0 %2273  ;;  %1530 = vrot.lane.b32.xlu0 %v1409_v43, %s4250_s29  ;;  %2289 = vrot.lane.b32.xlu1 %v3801_v36, %s4251_s9  ;;  %v2464_v44 = vrot.slane %v2462_v59, 1  ;;  %v2469_v43 = vrot.slane %v2467_v30, 1  ;;  %v1917_v36 = vor.u32 %v1916_v60, %v1912_v48  ;;  %v2431_v26 = vshll.u32 %v4165_v23, 16  ;;  %v5095_v30 = vld [vmem:[#allocation2 + $0x88] sm:$0xf] }
  0xa8   : > { %v5045_v38 = vpop.permute.xlu1 %1759  ;;  %6208 = vst [vmem:[#allocation12_spill] sm:$0xff] %v5063_v40  ;;  %v1962_v50 = vshll.u32 %v5048_v27, 16  ;;  %v3786_v28 = vcombine.low %v1126_v17, %v5031_v34  ;;  %v401_v53 = vmax.f32 %v369_v22, 0.0  ;;  %v5071_v10 = vsel %vm1598_vm3, %v1629_v11, %v1630_v9  ;;  %v5085_v34 = vld [vmem:[#allocation2 + $0x5c] ss:$0 sps:$4 sm:$0x11]  }
  0xa9   : > { %v2465_v31 = vor.u32 %v2464_v44, %v2460_v19  ;;  %v5074_v57 = vsel %vm1598_vm3, %v2129_v45, %v2130_v56  ;;  %v5080_v23 = vor.u32 %v2428_v42, %v2424_v52  ;;  %v402_v48 = vmax.f32 %v370_v8, 0.0  ;;  %v1181_v45 = vld [vmem:[#allocation2 + $0x18] sm:$0xe]  ;;  %v1026_v22 = vld [vmem:[#allocation2 + $0x84] sm:$0xf] }
  0xaa   : > { %v3923_v9 = vpack.c.bf16 %v401_v53, %v401_v53  ;;  %vm2737_vm12 = vcmask 392192   ;;  %v1922_v52 = vsel %vm1325_vm2, %v1917_v36, %v1921_v46  ;;  %v1960_v60 = vshrl.u32 %v5048_v27, 16  ;;  %v1082_v44 = vld [vmem:[#allocation2 + $0x60] sm:$0xf]  ;;  %v5105_v53 = vld [vmem:[#allocation2 + $0x64] sm:$0xf] }
  0xab   : > { %v5054_v37 = vpop.permute.xlu0 %1763  ;;  %1659 = vrot.lane.b32.xlu0 %v1619_v21, %s4249_s28  ;;  %v2470_v14 = vsel %vm1325_vm2, %v2465_v31, %v2469_v43  ;;  %v1413_v21 = vshll.u32 %v5063_v40, 16  ;;  %v5093_v59 = vrot.slane %v2431_v26, 1  ;;  %v3924_v19 = vpack.c.bf16 %v402_v48, %v402_v48  ;;  %v5113_v25 = vld [vmem:[#allocation2 + $0x8c] ss:$0 sps:$4 sm:$0x11]  }
  0xac   : > { %2561 = vrot.lane.b32.xlu1 %v2470_v14, %s4254_s23  ;;  %v1964_v56 = vrot.slane %v1962_v50, 1  ;;  %v5097_v17 = vrot.slane %v3786_v28, 1  ;;  %v754_v42 = vshrl.u32 %v3923_v9, 16  ;;  %v757_v8 = vshll.u32 %v3923_v9, 16  ;;  %v969_v14 = vld [vmem:[#allocation2 + $0x90] sm:$0xf] }
  0xad   : > { %v5083_v33 = vpop.permute.xlu1 %2271  ;;  %v1967_v43 = vshll.u32 %v5078_v5, 16  ;;  %v1411_v26 = vshrl.u32 %v5063_v40, 16  ;;  %v762_v36 = vshrl.u32 %v3924_v19, 16  ;;  %v765_v31 = vshll.u32 %v3924_v19, 16  ;;  %v4227_v40 = vld [vmem:[#allocation2 + $0x1c] sm:$0xf] }
  0xae   : > { %v1415_v48 = vrot.slane %v1413_v21, 1  ;;  %v1418_v50 = vshll.u32 %v5085_v34, 16  ;;  %v756_v28 = vrot.slane %v754_v42, 7  ;;  %v5109_v9 = vcombine.low %v1026_v22, %v5095_v30  ;;  %v4228_v19 = vld [vmem:[#allocation2 + $0x20] ss:$0 sps:$4 sm:$0x11]  }
  0xaf   : > { %v5076_v39 = vpop.permute.xlu0 %2159  ;;  %1771 = vrot.lane.b32.xlu0 %v5010_v32, %s4252_s10  ;;  %v2142_v32 = vrot.slane %v5078_v5, 1  ;;  %v764_v11 = vrot.slane %v762_v36, 7  ;;  %v3824_v12 = vcombine.low %v1181_v45, %v4227_v40  ;;  %v2624_v55 = vrot.slane %v4228_v19, 1 }
  0xb0   : > { %1538 = vrot.lane.b32.xlu1 %v1457_v7, %s4250_s29  ;;  %v1965_v21 = vor.u32 %v1964_v56, %v1960_v60  ;;  %v759_v0 = vor.u32 %v757_v8, %v756_v28  ;;  %v760_v42 = vrot.slane %v756_v28, 4  ;;  %v5118_v22 = vcombine.low %v1082_v44, %v5105_v53  ;;  %v5120_v7 = vld [vmem:[#allocation2 + $0x54] sm:$0xe]  ;;  %v1123_v28 = vld [vmem:[#allocation2 + $0x60] sm:$0xe] }
  0xb1   : > { %v5115_v62 = vpop.permute.xlu1 %1761  ;;  %v767_v36 = vor.u32 %v765_v31, %v764_v11  ;;  %v769_v40 = vrot.slane %v764_v11, 4  ;;  %v1461_v45 = vshll.u32 %v5109_v9, 16  ;;  %v2623_v19 = vrot.slane %v3824_v12, 1  ;;  %v4040_v44 = vld [vmem:[%s4421_s25 + $0x60] sm:$0xff]  }
  0xb2   : > { %v1969_v49 = vrot.slane %v1967_v43, 1  ;;  %v1416_v60 = vor.u32 %v1415_v48, %v1411_v26  ;;  %v1420_v56 = vrot.slane %v1418_v50, 1  ;;  %v970_v8 = vsel %vm4464_vm8, %v759_v0, %v969_v14  ;;  %v1063_v50 = vld [vmem:[#allocation2 + $0x84] sm:$0xe] }
  0xb3   : > { %v5102_v46 = vpop.permute.xlu0 %1649  ;;  %2043 = vrot.lane.b32.xlu0 %v1922_v52, %s4255_s27  ;;  %v768_v52 = vsel %vm4458_vm7, %v760_v42, %v767_v36  ;;  %971 = vst [vmem:[#allocation2 + $0x90] sm:$0xf] %v970_v8  ;;  %v974_v11 = vsel %vm4475_vm9, %v769_v40, %v973_v47  ;;  %v1466_v12 = vshll.u32 %v5113_v25, 16  ;;  %v2625_v43 = vsel %vm1598_vm3, %v2623_v19, %v2624_v55  ;;  %v4178_v55 = vld [vmem:[#allocation2 + $0x68] ss:$0 sps:$4 sm:$0x11]  }
  0xb4   : > { %1667 = vrot.lane.b32.xlu1 %v5071_v10, %s4249_s28  ;;  %v6209_v26 = vcombine.low %v4970_v61, %v4761_v4  ;;  %v6210_v31 = vcombine.low %v5019_v3, %v4860_v54  ;;  %972 = vst.msk [vmem:[#allocation2 + $0x94] sm:$0xf] %vm427_vm0, %v768_v52  ;;  %975 = vst [vmem:[#allocation2 + $0x98] sm:$0x1] %v974_v11  ;;  %v1926_v47 = vshll.u32 %v5118_v22, 16  ;;  %3849 = vmatprep.mubr.msk.bf16.mxu0 %vm2671_vm10, %v2625_v43  ;;  %vm2770_vm13 = vcmask 523264  }
  0xb5   : > { %v3783_v54 = vcombine.low %v1123_v28, %v5105_v53  ;;  %v1459_v61 = vshrl.u32 %v5109_v9, 16  ;;  %v1463_v3 = vrot.slane %v1461_v45, 1  ;;  %v4015_v14 = vunpack.c.l.bf16 %v4040_v44  ;;  %v1147_v28 = vld [vmem:[#allocation2 + $0x6c] sm:$0xf] }
  0xb6   : > { %v5140_v0 = vrot.slane %v6209_v26, 1  ;;  %v5145_v10 = vrot.slane %v6210_v31, 1  ;;  %v5161_v42 = vsel %vm2737_vm12, %v5060_v20, %v5045_v38  ;;  %v6211_v40 = vcombine.low %v5065_v6, %v5036_v35  ;;  %v5182_v52 = vld [vmem:[#allocation2 + $0x74] ss:$0 sps:$4 sm:$0x11]  }
  0xb7   : > { %v5123_v5 = vpop.permute.xlu0 %2163  ;;  %2171 = vrot.lane.b32.xlu0 %v5074_v57, %s4253_s13  ;;  %v2434_v57 = vsel %vm1325_vm2, %v5080_v23, %v5093_v59  ;;  %v1621_v19 = vrot.slane %v5085_v34, 1  ;;  %v1970_v45 = vsel %vm1325_vm2, %v1965_v21, %v1969_v49  ;;  %v2143_v38 = vsel %vm1598_vm3, %v5097_v17, %v2142_v32  ;;  %v1148_v34 = vld [vmem:[#allocation2 + $0x70] sm:$0xf]  ;;  %v4230_v43 = vld [vmem:[#allocation2 + $0x2c] ss:$0 sps:$4 sm:$0x11]  }
  0xb8   : > { %v1620_v53 = vrot.slane %v6211_v40, 1  ;;  %1779 = vrot.lane.b32.xlu1 %v5048_v27, %s4252_s10  ;;  %v1421_v20 = vsel %vm1325_vm2, %v1416_v60, %v1420_v56  ;;  %v1468_v8 = vrot.slane %v1466_v12, 1  ;;  %v1924_v23 = vshrl.u32 %v5118_v22, 16  ;;  %v4231_v40 = vld [vmem:[#allocation2 + $0x38] ss:$0 sps:$4 sm:$0x11]  }
  0xb9   : > { %v5163_v36 = vpop.permute.xlu1 %2275  ;;  %v1928_v59 = vrot.slane %v1926_v47, 1  ;;  %v1931_v6 = vshll.u32 %v4178_v55, 16  ;;  %v3739_v35 = vcombine.low %v1063_v50, %v5095_v30  ;;  %v1464_v27 = vor.u32 %v1463_v3, %v1459_v61 }
  0xba   : > { %v2132_v49 = vrot.slane %v3783_v54, 1  ;;  %v2133_v21 = vrot.slane %v4178_v55, 1  ;;  %v4016_v17 = vunpack.c.h.bf16 %v4040_v44  ;;  %v1153_v60 = vld [vmem:[#allocation2 + $0x90] sm:$0xf]  ;;  %v5187_v56 = vsel %vm1598_vm3, %v1620_v53, %v1621_v19 }
  0xbb   : > { %v5154_v4 = vpop.permute.xlu0 %2543  ;;  %2283 = vrot.lane.b32.xlu0 %v4995_v15, %s4251_s9  ;;  %vm2803_vm14 = vcmask 654336   ;;  %vm2836_vm15 = vcmask 785408   ;;  %v5194_v15 = vld [vmem:[%s6178_s2] ss:$0 sm:$0xff]  ;;  %v5198_v44 = vld [vmem:[#allocation2 + $0x94] sm:$0xf]  ;;  %v5201_v31 = vcombine.low %v1147_v28, %v1148_v34  ;;  %v1929_v61 = vor.u32 %v1928_v59, %v1924_v23 }
  0xbc   : > { %v332_v30 = vmul.f32 %v5194_v15, %v4015_v14  ;;  %2051 = vrot.lane.b32.xlu1 %v1970_v45, %s4255_s27  ;;  %v1633_v12 = vrot.slane %v5113_v25, 1  ;;  %v2627_v26 = vrot.slane %v4230_v43, 1  ;;  %v333_v47 = vmul.f32 %v5194_v15, %v4016_v17  ;;  %v5205_v54 = vld [vmem:[#allocation2 + $0x98] ss:$0 sps:$4 sm:$0x11]  }
  0xbd   : > { %v5184_v32 = vpop.permute.xlu1 %2161  ;;  %v3802_v55 = vcombine.low %v1153_v60, %v5198_v44  ;;  %v1933_v3 = vrot.slane %v1931_v6, 1  ;;  %v1632_v50 = vrot.slane %v3739_v35, 1  ;;  %v5209_v14 = vsel %vm1325_vm2, %v1464_v27, %v1468_v8  ;;  %v5220_v59 = vld [vmem:[%s6179_s3] ss:$0 sm:$0xff]  ;;  %v5224_v8 = vld [vmem:[%s4421_s25 + $0x68] sm:$0xff]   ;;  %v5227_v6 = vld [vmem:[%s4421_s25 + $0x70] sm:$0xff]  }
  0xbe   : > { %vm2869_vm1 = vcmask 916480   ;;  %v5212_v25 = vsel %vm1598_vm3, %v2132_v49, %v2133_v21  ;;  %v2630_v53 = vrot.slane %v4231_v40, 1  ;;  %v2479_v23 = vshll.u32 %v5205_v54, 16  ;;  %v1090_v35 = vld [vmem:[#allocation2 + $0x90] sm:$0xf] }
  0xbf   : > { %v5189_v11 = vpop.permute.xlu0 %2033  ;;  %2555 = vrot.lane.b32.xlu0 %v2434_v57, %s4254_s23  ;;  %v2474_v19 = vshll.u32 %v3802_v55, 16  ;;  %v2472_v28 = vshrl.u32 %v3802_v55, 16  ;;  %v371_v57 = vadd.f32 %v5220_v59, %v332_v30  ;;  %v2628_v34 = vsel %vm1598_vm3, %v4956_v2, %v2627_v26  ;;  %v5235_v17 = vld [vmem:[#allocation2 + $0x78] sm:$0xe]  ;;  %v5243_v48 = vld [vmem:[#allocation2 + $0x94] sm:$0xf] }
  0xc0   : > { %2179 = vrot.lane.b32.xlu1 %v2143_v38, %s4253_s13  ;;  %v2438_v27 = vshll.u32 %v5201_v31, 16  ;;  %v2443_v49 = vshll.u32 %v5182_v52, 16  ;;  %v372_v21 = vadd.f32 %v5220_v59, %v333_v47  ;;  %v2481_v30 = vrot.slane %v2479_v23, 1 }
  0xc1   : > { %v5214_v45 = vpop.permute.xlu1 %1651  ;;  %v2476_v60 = vrot.slane %v2474_v19, 1  ;;  %v5238_v40 = vsel %vm1325_vm2, %v1929_v61, %v1933_v3  ;;  %v5241_v38 = vsel %vm1598_vm3, %v1632_v50, %v1633_v12  ;;  %v2436_v2 = vshrl.u32 %v5201_v31, 16  ;;  %v5253_v3 = vld [vmem:[#allocation2 + $0x90] sm:$0xe] }
  0xc2   : > { %v5249_v52 = vsel %vm1598_vm3, %v4974_v13, %v2630_v53  ;;  %v4019_v26 = vunpack.c.l.bf16 %v5224_v8  ;;  %v403_v12 = vmax.f32 %v371_v57, 0.0  ;;  %v5261_v13 = vcombine.low %v1090_v35, %v5243_v48  ;;  %v5268_v50 = vld [vmem:[#allocation2 + $0x98] ss:$0 sps:$4 sm:$0x11]  }
  0xc3   : > { %v1523_v43 = vpop.permute.xlu0 %1522  ;;  %1532 = vrot.lane.b32.xlu0 %v1421_v20, %s4250_s29  ;;  %v2477_v19 = vor.u32 %v2476_v60, %v2472_v28  ;;  %v404_v53 = vmax.f32 %v372_v21, 0.0  ;;  %v3832_v28 = vcombine.low %v5235_v17, %v4911_v29  ;;  %v2440_v23 = vrot.slane %v2438_v27, 1  ;;  %v4233_v17 = vld [vmem:[#allocation2 + $0x44] ss:$0 sps:$4 sm:$0x11]  }
  0xc4   : > { %2291 = vrot.lane.b32.xlu1 %v3802_v55, %s4251_s9  ;;  %v3925_v47 = vpack.c.bf16 %v403_v12, %v403_v12  ;;  %v3787_v55 = vcombine.low %v5253_v3, %v5243_v48  ;;  %v5276_v35 = vrot.slane %v2443_v49, 1  ;;  %v1028_v12 = vld [vmem:[#allocation2 + $0x90] sm:$0xf]  ;;  %v1974_v48 = vshll.u32 %v5261_v13, 16 }
  0xc5   : > { %v2032_v61 = vpop.permute.xlu1 %2031  ;;  %v2482_v60 = vsel %vm1325_vm2, %v2477_v19, %v2481_v30  ;;  %v3926_v21 = vpack.c.bf16 %v404_v53, %v404_v53  ;;  %v2677_v30 = vsel %vm2671_vm10, %v4580_v16, %v1523_v43  ;;  %v1972_v43 = vshrl.u32 %v5261_v13, 16 }
  0xc6   : > { %v2772_v20 = vsel %vm2770_vm13, %v5161_v42, %v2032_v61  ;;  %v771_v61 = vshrl.u32 %v3925_v47, 16 }
  0xc7   : > { %v2805_v57 = vsel %vm2803_vm14, %v2772_v20, %v5076_v39  ;;  %1661 = vrot.lane.b32.xlu0 %v5187_v56, %s4249_s28  ;;  %v774_v56 = vshll.u32 %v3925_v47, 16  ;;  %v5284_v20 = vld [vmem:[#allocation2 + $0x94] sm:$0xf]  ;;  %v779_v16 = vshrl.u32 %v3926_v21, 16  ;;  %v782_v49 = vshll.u32 %v3926_v21, 16 }
  0xc8   : > { %v2838_v42 = vsel %vm2836_vm15, %v2805_v57, %v5083_v33  ;;  %v5282_v19 = vpop.permute.xlu0 %2547  ;;  %2563 = vrot.lane.b32.xlu1 %v2482_v60, %s4254_s23  ;;  %v1979_v47 = vshll.u32 %v5268_v50, 16  ;;  %v773_v3 = vrot.slane %v771_v61, 7  ;;  %v976_v57 = vld [vmem:[#allocation2 + $0x9c] sm:$0xf]  ;;  %v980_v61 = vld [vmem:[#allocation2 + $0xa4] sm:$0x1] }
  0xc9   : > { %v1521_v39 = vpop.permute.xlu1 %1520  ;;  %v2871_v27 = vsel %vm2869_vm1, %v2838_v42, %v5154_v4  ;;  %v781_v60 = vrot.slane %v779_v16, 7 }
  0xca   : > { %v2675_v33 = vsel %vm2671_vm10, %v4606_v41, %v1521_v39  ;;  %3071 = vmatmul.mubr.bf16.vlgmr.msra.gmra.mxu0 %v2871_v27  ;;  %v2710_v41 = vsel %vm2704_vm11, %v2677_v30, %v5214_v45  ;;  %v2441_v39 = vor.u32 %v2440_v23, %v2436_v2  ;;  %v776_v27 = vor.u32 %v774_v56, %v773_v3  ;;  %v5318_v23 = vld [vmem:[#allocation2 + $0x98] ss:$0 sps:$4 sm:$0x11]  }
  0xcb   : > { %v2708_v4 = vsel %vm2704_vm11, %v2675_v33, %v5102_v46  ;;  %3850 = vmatprep.mubr.msk.bf16.mxu0 %vm2671_vm10, %v2628_v34  ;;  %1773 = vrot.lane.b32.xlu0 %v5118_v22, %s4252_s10  ;;  %v5302_v46 = vcombine.low %v1028_v12, %v5284_v20  ;;  %v777_v22 = vrot.slane %v773_v3, 4  ;;  %v1976_v45 = vrot.slane %v1974_v48, 1 }
  0xcc   : > { %v2741_v53 = vsel %vm2737_vm12, %v2708_v4, %v5115_v62  ;;  %v5304_v42 = vpop.permute.xlu0 %1653  ;;  %1540 = vrot.lane.b32.xlu1 %v5209_v14, %s4250_s29  ;;  %v784_v30 = vor.u32 %v782_v49, %v781_v60  ;;  %v786_v12 = vrot.slane %v781_v60, 4  ;;  %v2743_v33 = vsel %vm2737_vm12, %v2710_v41, %v5054_v37  ;;  %v5338_v41 = vld [vmem:[#allocation2 + $0x84] sm:$0xe] }
  0xcd   : > { %v2546_v34 = vpop.permute.xlu1 %2545  ;;  %v2774_v21 = vsel %vm2770_vm13, %v2741_v53, %v5189_v11  ;;  %v1981_v11 = vrot.slane %v1979_v47, 1  ;;  %v977_v2 = vsel %vm4464_vm8, %v776_v27, %v976_v57  ;;  %v2144_v49 = vrot.slane %v3787_v55, 1  ;;  %v1064_v57 = vld [vmem:[#allocation2 + $0x90] sm:$0xe] }
  0xce   : > { %v2807_v62 = vsel %vm2803_vm14, %v2774_v21, %v5184_v32  ;;  %v785_v14 = vsel %vm4458_vm7, %v777_v22, %v784_v30  ;;  %978 = vst [vmem:[#allocation2 + $0x9c] sm:$0xf] %v977_v2  ;;  %v981_v37 = vsel %vm4475_vm9, %v786_v12, %v980_v61  ;;  %v2145_v4 = vrot.slane %v5268_v50, 1  ;;  %v6215_v27 = vld [vmem:[#allocation10_spill] sm:$0xff] }
  0xcf   : > { %v2840_v16 = vsel %vm2836_vm15, %v2807_v62, %v5029_v18  ;;  %2045 = vrot.lane.b32.xlu0 %v5238_v40, %s4255_s27  ;;  %v1473_v18 = vshll.u32 %v5302_v46, 16  ;;  %979 = vst.msk [vmem:[#allocation2 + $0xa0] sm:$0xf] %vm427_vm0, %v785_v14  ;;  %982 = vst [vmem:[#allocation2 + $0xa4] sm:$0x1] %v981_v37  ;;  %v334_v40 = vmul.f32 %v5194_v15, %v4019_v26  ;;  %v6212_v47 = vunpack.c.h.bf16 %v5224_v8 }
  0xd0   : > { %v2874_v32 = vsel %vm2869_vm1, %v2840_v16, %v2546_v34  ;;  %v5328_v48 = vpop.permute.xlu0 %2037  ;;  %1669 = vrot.lane.b32.xlu1 %v5241_v38, %s4249_s28  ;;  %v1977_v50 = vor.u32 %v1976_v45, %v1972_v43  ;;  %v1471_v53 = vshrl.u32 %v5302_v46, 16  ;;  %v2647_v60 = vrot.slane %v3832_v28, 1 }
  0xd1   : > { %v2036_v56 = vpop.permute.xlu1 %2035  ;;  %v335_v3 = vmul.f32 %v5194_v15, %v6212_v47  ;;  %v1478_v26 = vshll.u32 %v5318_v23, 16  ;;  %v373_v38 = vadd.f32 %v5220_v59, %v334_v40  ;;  %v6213_v34 = vunpack.c.l.bf16 %v5227_v6 }
  0xd2   : > { %v2776_v55 = vsel %vm2770_vm13, %v2743_v33, %v2036_v56  ;;  %3079 = vmatmul.mubr.bf16.gmra.mxu0 %v2874_v32  ;;  %v1475_v29 = vrot.slane %v1473_v18, 1  ;;  %v2633_v28 = vrot.slane %v4233_v17, 1  ;;  %v3833_v22 = vcombine.low %v5338_v41, %v6215_v27 }
  0xd3   : > { %v2809_v8 = vsel %vm2803_vm14, %v2776_v55, %v5123_v5  ;;  %3851 = vmatprep.mubr.msk.bf16.mxu0 %vm2671_vm10, %v5249_v52  ;;  %v336_v43 = vmul.f32 %v5194_v15, %v6213_v34  ;;  %2173 = vrot.lane.b32.xlu0 %v5212_v25, %s4253_s13  ;;  %v6214_v5 = vunpack.c.h.bf16 %v5227_v6  ;;  %v2648_v52 = vrot.slane %v4914_v1, 1  ;;  %v6216_v25 = vld [vmem:[#allocation3_spill] sm:$0xff] }
  0xd4   : > { %v2446_v62 = vsel %vm1325_vm2, %v2441_v39, %v5276_v35  ;;  %v374_v45 = vadd.f32 %v5220_v59, %v335_v3  ;;  %v405_v30 = vmax.f32 %v373_v38, 0.0  ;;  %1781 = vrot.lane.b32.xlu1 %v5261_v13, %s4252_s10  ;;  %v2842_v12 = vsel %vm2836_vm15, %v2809_v8, %v5163_v36 }
  0xd5   : > { %v337_v21 = vmul.f32 %v5194_v15, %v6214_v5  ;;  %v1525_v61 = vpop.permute.xlu1 %1524  ;;  %v3740_v1 = vcombine.low %v1064_v57, %v5284_v20  ;;  %v2649_v33 = vsel %vm1598_vm3, %v2647_v60, %v2648_v52  ;;  %v1982_v16 = vsel %vm1325_vm2, %v1977_v50, %v1981_v11  ;;  %v1155_v35 = vld [vmem:[#allocation2 + $0x9c] sm:$0xf]  ;;  %v4234_v60 = vld [vmem:[#allocation2 + $0x50] ss:$0 sps:$4 sm:$0x11]  }
  0xd6   : > { %v2679_v6 = vsel %vm2671_vm10, %v6216_v25, %v1525_v61  ;;  %v1480_v39 = vrot.slane %v1478_v26, 1  ;;  %v1092_v32 = vld [vmem:[#allocation2 + $0x9c] sm:$0xf]  ;;  %v3927_v14 = vpack.c.bf16 %v405_v30, %v405_v30  ;;  %v375_v13 = vadd.f32 %v5220_v59, %v336_v43  ;;  %3857 = vmatprep.mubr.msk.bf16.mxu1 %vm2671_vm10, %v2649_v33  ;;  %v5383_v20 = vld [vmem:[#allocation2 + $0xa0] sm:$0xf] }
  0xd7   : > { %v5376_v2 = vpop.permute.xlu0 %2277  ;;  %2285 = vrot.lane.b32.xlu0 %v5201_v31, %s4251_s9  ;;  %v2146_v36 = vsel %vm1598_vm3, %v2144_v49, %v2145_v4  ;;  %v1476_v37 = vor.u32 %v1475_v29, %v1471_v53  ;;  %v2634_v11 = vsel %vm1598_vm3, %v5140_v0, %v2633_v28  ;;  %v1093_v18 = vld [vmem:[#allocation2 + $0xa0] sm:$0xf]  ;;  %v376_v56 = vadd.f32 %v5220_v59, %v337_v21  ;;  %v5393_v55 = vld [vmem:[#allocation2 + $0xa4] ss:$0 sps:$4 sm:$0x11]  }
  0xd8   : > { %v2712_v40 = vsel %vm2704_vm11, %v2679_v6, %v5304_v42  ;;  %v2877_v3 = vsel %vm2869_vm1, %v2842_v12, %v5282_v19  ;;  %v3803_v31 = vcombine.low %v1155_v35, %v5383_v20  ;;  %v1128_v49 = vld [vmem:[#allocation2 + $0x9c] sm:$0xe]  ;;  %v406_v4 = vmax.f32 %v374_v45, 0.0  ;;  %2053 = vrot.lane.b32.xlu1 %v1982_v16, %s4255_s27  ;;  %v4194_v61 = vld [vmem:[#allocation2 + $0xa4] ss:$0 sps:$4 sm:$0x11]  }
  0xd9   : > { %v1766_v47 = vpop.permute.xlu1 %1765  ;;  %v1635_v50 = vrot.slane %v3740_v1, 1  ;;  %v788_v53 = vshrl.u32 %v3927_v14, 16  ;;  %v2636_v8 = vrot.slane %v4234_v60, 1  ;;  %v5400_v19 = vcombine.low %v1092_v32, %v1093_v18  ;;  %v1030_v6 = vld [vmem:[#allocation2 + $0x9c] sm:$0xf] }
  0xda   : > { %v2745_v0 = vsel %vm2737_vm12, %v2712_v40, %v1766_v47  ;;  %3087 = vmatmul.mubr.bf16.gmra.mxu0 %v2877_v3  ;;  %v2486_v42 = vshll.u32 %v3803_v31, 16  ;;  %v2484_v57 = vshrl.u32 %v3803_v31, 16  ;;  %v407_v38 = vmax.f32 %v375_v13, 0.0  ;;  %v5410_v12 = vld [vmem:[#allocation2 + $0xa0] sm:$0xf]  ;;  %v5426_v47 = vld [vmem:[%s4421_s25 + $0x78] sm:$0xff]  }
  0xdb   : > { %v5397_v26 = vpop.permute.xlu0 %1526  ;;  %3852 = vmatprep.mubr.msk.bf16.mxu0 %vm2671_vm10, %v2634_v11  ;;  %2557 = vrot.lane.b32.xlu0 %v2446_v62, %s4254_s23  ;;  %v2491_v34 = vshll.u32 %v5393_v55, 16  ;;  %v3788_v43 = vcombine.low %v1128_v49, %v1093_v18  ;;  %v791_v29 = vshll.u32 %v3927_v14, 16  ;;  %v408_v17 = vmax.f32 %v376_v56, 0.0 }
  0xdc   : > { %v2778_v28 = vsel %vm2770_vm13, %v2745_v0, %v5328_v48  ;;  %v2488_v21 = vrot.slane %v2486_v42, 1  ;;  %v1481_v52 = vsel %vm1325_vm2, %v1476_v37, %v1480_v39  ;;  %v3928_v45 = vpack.c.bf16 %v406_v4, %v406_v4  ;;  %2181 = vrot.lane.b32.xlu1 %v2146_v36, %s4253_s13  ;;  %v983_v39 = vld [vmem:[#allocation2 + $0xa8] sm:$0xf]  ;;  %v5418_v37 = vld [vmem:[#allocation2 + $0x90] sm:$0xe] }
  0xdd   : > { %v2166_v5 = vpop.permute.xlu1 %2165  ;;  %v1636_v62 = vrot.slane %v5318_v23, 1  ;;  %v790_v25 = vrot.slane %v788_v53, 7  ;;  %v2637_v1 = vsel %vm1598_vm3, %v5145_v10, %v2636_v8  ;;  %v2493_v33 = vrot.slane %v2491_v34, 1 }
  0xde   : > { %v2811_v30 = vsel %vm2803_vm14, %v2778_v28, %v2166_v5  ;;  %v2489_v48 = vor.u32 %v2488_v21, %v2484_v57  ;;  %v1986_v35 = vshll.u32 %v5400_v19, 16  ;;  %v3929_v32 = vpack.c.bf16 %v407_v38, %v407_v38  ;;  %v987_v38 = vld [vmem:[#allocation2 + $0xb0] sm:$0x1]  ;;  %v5444_v5 = vld [vmem:[#allocation2 + $0xa4] ss:$0 sps:$4 sm:$0x11]  }
  0xdf   : > { %v5414_v16 = vpop.permute.xlu0 %1655  ;;  %1542 = vrot.lane.b32.xlu0 %v1481_v52, %s4250_s29  ;;  %v2147_v14 = vrot.slane %v3788_v43, 1  ;;  %v2148_v23 = vrot.slane %v4194_v61, 1  ;;  %v793_v13 = vor.u32 %v791_v29, %v790_v25  ;;  %v3930_v36 = vpack.c.bf16 %v408_v17, %v408_v17 }
  0xe0   : > { %v2844_v10 = vsel %vm2836_vm15, %v2811_v30, %v5376_v2  ;;  %v796_v18 = vshrl.u32 %v3928_v45, 16  ;;  %v799_v56 = vshll.u32 %v3928_v45, 16  ;;  %v5423_v40 = vcombine.low %v1030_v6, %v5410_v12  ;;  %2293 = vrot.lane.b32.xlu1 %v3803_v31, %s4251_s9 }
  0xe1   : > { %v2550_v11 = vpop.permute.xlu1 %2549  ;;  %v1984_v49 = vshrl.u32 %v5400_v19, 16  ;;  %v1991_v4 = vshll.u32 %v4194_v61, 16  ;;  %v984_v0 = vsel %vm4464_vm8, %v793_v13, %v983_v39  ;;  %v2494_v53 = vsel %vm1325_vm2, %v2489_v48, %v2493_v33 }
  0xe2   : > { %v2880_v3 = vsel %vm2869_vm1, %v2844_v10, %v2550_v11  ;;  %v1988_v60 = vrot.slane %v1986_v35, 1  ;;  %v794_v8 = vrot.slane %v790_v25, 4  ;;  %v798_v42 = vrot.slane %v796_v18, 7  ;;  %985 = vst [vmem:[#allocation2 + $0xa8] sm:$0xf] %v984_v0 }
  0xe3   : > { %3095 = vmatmul.mubr.bf16.gmra.mxu0 %v2880_v3  ;;  %v5434_v2 = vpop.permute.xlu0 %1767  ;;  %v3834_v31 = vcombine.low %v5418_v37, %v5198_v44  ;;  %v1637_v57 = vsel %vm1598_vm3, %v1635_v50, %v1636_v62  ;;  %1783 = vrot.lane.b32.xlu0 %v5400_v19, %s4252_s10  ;;  %v805_v34 = vshrl.u32 %v3929_v32, 16  ;;  %v4027_v43 = vunpack.c.l.bf16 %v5426_v47  ;;  %v1065_v44 = vld [vmem:[#allocation2 + $0x9c] sm:$0xe] }
  0xe4   : > { %3853 = vmatprep.mubr.msk.bf16.mxu0 %vm2671_vm10, %v2637_v1  ;;  %v2149_v29 = vsel %vm1598_vm3, %v2147_v14, %v2148_v23  ;;  %v801_v17 = vor.u32 %v799_v56, %v798_v42  ;;  %v803_v28 = vrot.slane %v798_v42, 4  ;;  %v1485_v21 = vshll.u32 %v5423_v40, 16  ;;  %2565 = vrot.lane.b32.xlu1 %v2494_v53, %s4254_s23  ;;  %v990_v1 = vld [vmem:[#allocation2 + $0xb4] sm:$0xf] }
  0xe5   : > { %v807_v50 = vrot.slane %v805_v34, 7  ;;  %v808_v52 = vshll.u32 %v3929_v32, 16  ;;  %v813_v19 = vshrl.u32 %v3930_v36, 16  ;;  %v816_v61 = vshll.u32 %v3930_v36, 16  ;;  %v6217_v32 = vld [vmem:[#allocation4_spill] sm:$0xff] }
  0xe6   : > { %v1989_v45 = vor.u32 %v1988_v60, %v1984_v49  ;;  %v1993_v30 = vrot.slane %v1991_v4, 1  ;;  %v802_v25 = vsel %vm4458_vm7, %v794_v8, %v801_v17  ;;  %v988_v6 = vsel %vm4475_vm9, %v803_v28, %v987_v38 }
  0xe7   : > { %v2040_v62 = vpop.permute.xlu0 %2039  ;;  %2183 = vrot.lane.b32.xlu0 %v2149_v29, %s4253_s13  ;;  %986 = vst.msk [vmem:[#allocation2 + $0xac] sm:$0xf] %vm427_vm0, %v802_v25  ;;  %989 = vst [vmem:[#allocation2 + $0xb0] sm:$0x1] %v988_v6  ;;  %v810_v48 = vor.u32 %v808_v52, %v807_v50  ;;  %v811_v33 = vrot.slane %v807_v50, 4  ;;  %v815_v35 = vrot.slane %v813_v19, 7  ;;  %v4028_v39 = vunpack.c.h.bf16 %v5426_v47 }
  0xe8   : > { %v2681_v14 = vsel %vm2671_vm10, %v6217_v32, %v5397_v26  ;;  %v1490_v23 = vshll.u32 %v5444_v5, 16  ;;  %v3741_v13 = vcombine.low %v1065_v44, %v5410_v12  ;;  %v338_v36 = vmul.f32 %v5194_v15, %v4027_v43  ;;  %1671 = vrot.lane.b32.xlu1 %v1637_v57, %s4249_s28  ;;  %v994_v47 = vld [vmem:[#allocation2 + $0xbc] sm:$0x1]  ;;  %v5488_v57 = vld [vmem:[#allocation2 + $0x9c] sm:$0xe] }
  0xe9   : > { %v5462_v37 = vpop.permute.xlu1 %1534  ;;  %v1483_v11 = vshrl.u32 %v5423_v40, 16  ;;  %v1487_v10 = vrot.slane %v1485_v21, 1  ;;  %v818_v18 = vor.u32 %v816_v61, %v815_v35  ;;  %v991_v56 = vsel %vm4464_vm8, %v810_v48, %v990_v1  ;;  %v1094_v27 = vld [vmem:[#allocation2 + $0xa8] sm:$0xf] }
  0xea   : > { %v6218_v26 = vcombine.low %v5120_v7, %v4989_v51  ;;  %v5473_v12 = vrot.slane %v3833_v22, 1  ;;  %v1994_v49 = vsel %vm1325_vm2, %v1989_v45, %v1993_v30  ;;  %992 = vst [vmem:[#allocation2 + $0xb4] sm:$0xf] %v991_v56  ;;  %v820_v0 = vrot.slane %v815_v35, 4  ;;  %v1157_v7 = vld [vmem:[#allocation2 + $0xa8] sm:$0xf] }
  0xeb   : > { %v2168_v4 = vpop.permute.xlu0 %2167  ;;  %v5476_v53 = vrot.slane %v3834_v31, 1  ;;  %v2714_v60 = vsel %vm2704_vm11, %v2681_v14, %v5414_v16  ;;  %v819_v8 = vsel %vm4458_vm7, %v811_v33, %v818_v18  ;;  %v339_v51 = vmul.f32 %v5194_v15, %v4028_v39  ;;  %v1129_v34 = vld [vmem:[#allocation2 + $0xa8] sm:$0xe]  ;;  %v4235_v43 = vld [vmem:[#allocation2 + $0x5c] ss:$0 sps:$4 sm:$0x11]  }
  0xec   : > { %v2638_v3 = vrot.slane %v6218_v26, 1  ;;  %v1638_v42 = vrot.slane %v3741_v13, 1  ;;  %v1639_v41 = vrot.slane %v5444_v5, 1  ;;  %993 = vst.msk [vmem:[#allocation2 + $0xb8] sm:$0xf] %vm427_vm0, %v819_v8  ;;  %v995_v22 = vsel %vm4475_vm9, %v820_v0, %v994_v47  ;;  %2055 = vrot.lane.b32.xlu1 %v1994_v49, %s4255_s27 }
  0xed   : > { %v377_v31 = vadd.f32 %v5220_v59, %v338_v36  ;;  %v5491_v16 = vpop.permute.xlu1 %1663  ;;  %v1488_v38 = vor.u32 %v1487_v10, %v1483_v11  ;;  %v1492_v15 = vrot.slane %v1490_v23, 1  ;;  %996 = vst [vmem:[#allocation2 + $0xbc] sm:$0x1] %v995_v22  ;;  %v2639_v29 = vrot.slane %v4235_v43, 1  ;;  %v1032_v14 = vld [vmem:[#allocation2 + $0xa8] sm:$0xf] }
  0xee   : > { %v5493_v17 = vld [vmem:[#allocation2 + $0xac] sm:$0xf]  ;;  %v2747_v5 = vsel %vm2737_vm12, %v2714_v60, %v5434_v2  ;;  %v5498_v44 = vld [vmem:[#allocation2 + $0xb0] ss:$0 sps:$4 sm:$0x11]   ;;  %v5501_v19 = vadd.f32 %v5220_v59, %v339_v51  ;;  %v3835_v61 = vcombine.low %v5488_v57, %v5383_v20  ;;  %v5507_v30 = vsel %vm1598_vm3, %v1638_v42, %v1639_v41 }
  0xef   : > { %v1095_v28 = vld [vmem:[#allocation2 + $0xac] sm:$0xf]  ;;  %v3804_v21 = vcombine.low %v1157_v7, %v5493_v17  ;;  %v2280_v50 = vpop.permute.xlu0 %2279  ;;  %v2780_v45 = vsel %vm2770_vm13, %v2747_v5, %v2040_v62  ;;  %v5509_v25 = vld [vmem:[#allocation2 + $0xb0] ss:$0 sps:$4 sm:$0x11]   ;;  %v409_v2 = vmax.f32 %v377_v31, 0.0  ;;  %v1493_v59 = vsel %vm1325_vm2, %v1488_v38, %v1492_v15 }
  0xf0   : > { %v3757_v52 = vcombine.low %v1094_v27, %v1095_v28  ;;  %v2503_v48 = vshll.u32 %v5498_v44, 16  ;;  %v2813_v39 = vsel %vm2803_vm14, %v2780_v45, %v2168_v4  ;;  %v3789_v62 = vcombine.low %v1129_v34, %v1095_v28  ;;  %v5515_v23 = vld [vmem:[#allocation2 + $0xac] sm:$0xf]  ;;  %v5527_v0 = vld [vmem:[#allocation2 + $0xa8] sm:$0xe]  ;;  %v6219_v27 = vld [vmem:[#allocation11_spill] sm:$0xff] }
  0xf1   : > { %v2498_v6 = vshll.u32 %v3804_v21, 16  ;;  %2295 = vrot.lane.b32.xlu1 %v3804_v21, %s4251_s9  ;;  %v2496_v1 = vshrl.u32 %v3804_v21, 16  ;;  %v1776_v33 = vpop.permute.xlu1 %1775  ;;  %v1159_v35 = vld [vmem:[#allocation2 + $0xb4] sm:$0xf]  ;;  %v2640_v13 = vsel %vm1598_vm3, %v2638_v3, %v2639_v29  ;;  %v2003_v10 = vshll.u32 %v5509_v25, 16 }
  0xf2   : > { %v1998_v32 = vshll.u32 %v3757_v52, 16  ;;  %v2505_v11 = vrot.slane %v2503_v48, 1  ;;  %v410_v56 = vmax.f32 %v5501_v19, 0.0  ;;  %v1996_v47 = vshrl.u32 %v3757_v52, 16  ;;  %v1066_v41 = vld [vmem:[#allocation2 + $0xa8] sm:$0xe] }
  0xf3   : > { %v2500_v36 = vrot.slane %v2498_v6, 1  ;;  %v5519_v18 = vld [vmem:[#allocation2 + $0xb8] sm:$0xf]  ;;  %v5525_v4 = vpack.c.bf16 %v409_v2, %v409_v2  ;;  %v2846_v3 = vsel %vm2836_vm15, %v2813_v39, %v2280_v50  ;;  %v5534_v42 = vcombine.low %v1032_v14, %v5515_v23  ;;  %v5539_v34 = vld [vmem:[#allocation2 + $0xb4] sm:$0xe]  ;;  %v6220_v19 = vld [vmem:[#allocation5_spill] sm:$0xff] }
  0xf4   : > { %v2000_v26 = vrot.slane %v1998_v32, 1  ;;  %v5523_v49 = vcombine.low %v1159_v35, %v5519_v18  ;;  %v5531_v7 = vld [vmem:[#allocation2 + $0xbc] ss:$0 sps:$4 sm:$0x11]   ;;  %v2651_v22 = vrot.slane %v6219_v27, 1  ;;  %v2150_v31 = vrot.slane %v3789_v62, 1 }
  0xf5   : > { %v2501_v60 = vor.u32 %v2500_v36, %v2496_v1  ;;  %1544 = vrot.lane.b32.xlu1 %v1493_v59, %s4250_s29  ;;  %v2048_v8 = vpop.permute.xlu1 %2047  ;;  %v2151_v38 = vrot.slane %v5509_v25, 1  ;;  %v5542_v29 = vld [vmem:[#allocation2 + $0xb0] ss:$0 sps:$4 sm:$0x11]   ;;  %v2005_v5 = vrot.slane %v2003_v10, 1  ;;  %v2515_v50 = vshll.u32 %v5531_v7, 16 }
  0xf6   : > { %v2552_v51 = vpop.permute.xlu0 %2551  ;;  %v2510_v43 = vshll.u32 %v5523_v49, 16  ;;  %v2508_v21 = vshrl.u32 %v5523_v49, 16  ;;  %v2689_v45 = vsel %vm2671_vm10, %v6220_v19, %v5462_v37  ;;  %v2001_v25 = vor.u32 %v2000_v26, %v1996_v47  ;;  %v1096_v1 = vld [vmem:[#allocation2 + $0xb4] sm:$0xf]  ;;  %v5552_v48 = vld [vmem:[#allocation2 + $0xb8] sm:$0xf] }
  0xf7   : > { %v2883_v15 = vsel %vm2869_vm1, %v2846_v3, %v2552_v51  ;;  %v2506_v28 = vsel %vm1325_vm2, %v2501_v60, %v2505_v11  ;;  %v1497_v6 = vshll.u32 %v5534_v42, 16  ;;  %v2722_v59 = vsel %vm2704_vm11, %v2689_v45, %v5491_v16  ;;  %v5565_v10 = vld [vmem:[#allocation2 + $0xbc] ss:$0 sps:$4 sm:$0x11]  }
  0xf8   : > { %3103 = vmatmul.mubr.bf16.gmra.mxu0 %v2883_v15  ;;  %2567 = vrot.lane.b32.xlu0 %v2506_v28, %s4254_s23  ;;  %v2512_v2 = vrot.slane %v2510_v43, 1  ;;  %v3742_v37 = vcombine.low %v1066_v41, %v5515_v23  ;;  %v3932_v32 = vpack.c.bf16 %v410_v56, %v410_v56  ;;  %v822_v62 = vshrl.u32 %v5525_v4, 16  ;;  %v1034_v43 = vld [vmem:[#allocation2 + $0xb4] sm:$0xf]  ;;  %v5589_v28 = vld [vmem:[#allocation2 + $0xb8] sm:$0xf] }
  0xf9   : > { %3854 = vmatprep.mubr.msk.bf16.mxu0 %vm2671_vm10, %v2640_v13  ;;  %1785 = vrot.lane.b32.xlu1 %v3757_v52, %s4252_s10  ;;  %v2176_v35 = vpop.permute.xlu1 %2175  ;;  %v3836_v14 = vcombine.low %v5527_v0, %v5493_v17  ;;  %v2152_v36 = vsel %vm1598_vm3, %v2150_v31, %v2151_v38  ;;  %v2517_v13 = vrot.slane %v2515_v50, 1  ;;  %v2755_v16 = vsel %vm2737_vm12, %v2722_v59, %v1776_v33  ;;  %v1130_v59 = vld [vmem:[#allocation2 + $0xb4] sm:$0xe] }
  0xfa   : > { %v5558_v39 = vpop.permute.xlu0 %1528  ;;  %v2513_v11 = vor.u32 %v2512_v2, %v2508_v21  ;;  %v3837_v52 = vcombine.low %v5539_v34, %v5519_v18  ;;  %v5571_v47 = vcombine.low %v1096_v1, %v5552_v48  ;;  %v2652_v23 = vsel %vm1598_vm3, %v5473_v12, %v2651_v22  ;;  %v997_v2 = vld [vmem:[#allocation2 + $0xc0] sm:$0xf]  ;;  %v1067_v34 = vld [vmem:[#allocation2 + $0xb4] sm:$0xe] }
  0xfb   : > { %v2006_v56 = vsel %vm1325_vm2, %v2001_v25, %v2005_v5  ;;  %v1495_v26 = vshrl.u32 %v5534_v42, 16  ;;  %v1499_v60 = vrot.slane %v1497_v6, 1  ;;  %v1502_v3 = vshll.u32 %v5542_v29, 16 }
  0xfc   : > { %1673 = vrot.lane.b32.xlu0 %v5507_v30, %s4249_s28  ;;  %v1641_v41 = vrot.slane %v3742_v37, 1  ;;  %v1642_v27 = vrot.slane %v5542_v29, 1  ;;  %v2010_v12 = vshll.u32 %v5571_v47, 16  ;;  %v824_v22 = vrot.slane %v822_v62, 7 }
  0xfd   : > { %2185 = vrot.lane.b32.xlu1 %v2152_v36, %s4253_s13  ;;  %v2288_v33 = vpop.permute.xlu1 %2287  ;;  %v2788_v30 = vsel %vm2770_vm13, %v2755_v16, %v2048_v8  ;;  %v2518_v31 = vsel %vm1325_vm2, %v2513_v11, %v2517_v13  ;;  %v2008_v38 = vshrl.u32 %v5571_v47, 16  ;;  %v2015_v15 = vshll.u32 %v5565_v10, 16 }
  0xfe   : > { %v5581_v51 = vpop.permute.xlu0 %1657  ;;  %v2821_v5 = vsel %vm2803_vm14, %v2788_v30, %v2176_v35  ;;  %v2012_v21 = vrot.slane %v2010_v12, 1  ;;  %v825_v50 = vshll.u32 %v5525_v4, 16  ;;  %v830_v29 = vshrl.u32 %v3932_v32, 16 }
  0xff   : > { %v2854_v19 = vsel %vm2836_vm15, %v2821_v5, %v2288_v33  ;;  %v1500_v8 = vor.u32 %v1499_v60, %v1495_v26  ;;  %v1504_v45 = vrot.slane %v1502_v3, 1  ;;  %v833_v25 = vshll.u32 %v3932_v32, 16  ;;  %v1001_v32 = vld [vmem:[#allocation2 + $0xc8] sm:$0x1]  ;;  %v1187_v33 = vld [vmem:[#allocation2 + $0x60] sm:$0xe] }
 0x100   : > { %2057 = vrot.lane.b32.xlu0 %v2006_v56, %s4255_s27  ;;  %v827_v37 = vor.u32 %v825_v50, %v824_v22  ;;  %v828_v35 = vrot.slane %v824_v22, 4  ;;  %v832_v62 = vrot.slane %v830_v29, 7  ;;  %v5599_v4 = vcombine.low %v1034_v43, %v5589_v28 }
 0x101   : > { %2569 = vrot.lane.b32.xlu1 %v2518_v31, %s4254_s23  ;;  %v2560_v6 = vpop.permute.xlu1 %2559  ;;  %v1643_v36 = vsel %vm1598_vm3, %v1641_v41, %v1642_v27  ;;  %v2013_v13 = vor.u32 %v2012_v21, %v2008_v38  ;;  %v2017_v16 = vrot.slane %v2015_v15, 1  ;;  %v2654_v3 = vrot.slane %v5205_v54, 1  ;;  %v5612_v27 = vld [vmem:[#allocation2 + $0xbc] ss:$0 sps:$4 sm:$0x11]  }
 0x102   : > { %v5596_v1 = vpop.permute.xlu0 %1769  ;;  %v2895_v11 = vsel %vm2869_vm1, %v2854_v19, %v2560_v6  ;;  %v835_v56 = vor.u32 %v833_v25, %v832_v62  ;;  %v998_v26 = vsel %vm4464_vm8, %v827_v37, %v997_v2  ;;  %v837_v60 = vrot.slane %v832_v62, 4  ;;  %v1163_v31 = vld [vmem:[#allocation2 + $0xcc] sm:$0xf]  ;;  %v4237_v6 = vld [vmem:[#allocation2 + $0x68] ss:$0 sps:$4 sm:$0x11]  }
 0x103   : > { %3135 = vmatmul.mubr.bf16.vlgmr.msra.gmra.mxu1 %v2895_v11  ;;  %v2656_v12 = vrot.slane %v3835_v61, 1  ;;  %v3790_v41 = vcombine.low %v1130_v59, %v5552_v48  ;;  %999 = vst [vmem:[#allocation2 + $0xc0] sm:$0xf] %v998_v26  ;;  %v1505_v63 = vsel %vm1325_vm2, %v1500_v8, %v1504_v45  ;;  %v1509_v61 = vshll.u32 %v5599_v4, 16 }
 0x104   : > { %2297 = vrot.lane.b32.xlu0 %v5523_v49, %s4251_s9  ;;  %3858 = vmatprep.mubr.msk.bf16.mxu1 %vm2671_vm10, %v2652_v23  ;;  %v836_v20 = vsel %vm4458_vm7, %v828_v35, %v835_v56  ;;  %v1002_v57 = vsel %vm4475_vm9, %v837_v60, %v1001_v32  ;;  %v2659_v49 = vrot.slane %v3836_v14, 1  ;;  %v2662_v48 = vrot.slane %v3837_v52, 1 }
 0x105   : > { %1675 = vrot.lane.b32.xlu1 %v1643_v36, %s4249_s28  ;;  %v5617_v54 = vpop.permute.xlu1 %1536  ;;  %v2018_v23 = vsel %vm1325_vm2, %v2013_v13, %v2017_v16  ;;  %1000 = vst.msk [vmem:[#allocation2 + $0xc4] sm:$0xf] %vm427_vm0, %v836_v20  ;;  %1003 = vst [vmem:[#allocation2 + $0xc8] sm:$0x1] %v1002_v57  ;;  %v3830_v30 = vcombine.low %v1187_v33, %v4236_v58  ;;  %v5638_v38 = vsel %vm1598_vm3, %v5476_v53, %v2654_v3 }
 0x106   : > { %v5619_v22 = vpop.permute.xlu0 %2041  ;;  %v2657_v17 = vrot.slane %v5393_v55, 1  ;;  %v2154_v18 = vrot.slane %v5565_v10, 1  ;;  %v1514_v0 = vshll.u32 %v5612_v27, 16  ;;  %v2660_v14 = vrot.slane %v5498_v44, 1  ;;  %v6221_v10 = vld [vmem:[#allocation6_spill] sm:$0xff] }
 0x107   : > { %v2663_v52 = vrot.slane %v5531_v7, 1  ;;  %v2153_v15 = vrot.slane %v3790_v41, 1  ;;  %v1507_v5 = vshrl.u32 %v5599_v4, 16  ;;  %v1511_v55 = vrot.slane %v1509_v61, 1 }
 0x108   : > { %1546 = vrot.lane.b32.xlu0 %v1505_v63, %s4250_s29  ;;  %v5651_v21 = vsel %vm1598_vm3, %v2656_v12, %v2657_v17  ;;  %v2683_v50 = vsel %vm2671_vm10, %v6221_v10, %v5558_v39  ;;  %v5657_v44 = vcombine.low %v1163_v31, %v5634_v24  ;;  %v5659_v7 = vld [vmem:[#allocation2 + $0xd4] ss:$0 sps:$4 sm:$0x11]   ;;  %v5662_v29 = vsel %vm1598_vm3, %v2659_v49, %v2660_v14 }
 0x109   : > { %2059 = vrot.lane.b32.xlu1 %v2018_v23, %s4255_s27  ;;  %v5647_v43 = vpop.permute.xlu1 %1665  ;;  %v5665_v19 = vsel %vm1598_vm3, %v2662_v48, %v2663_v52  ;;  %v2641_v8 = vrot.slane %v3830_v30, 1  ;;  %v3743_v25 = vcombine.low %v1067_v34, %v5589_v28  ;;  %v2642_v59 = vrot.slane %v4237_v6, 1 }
 0x10a   : > { %v2170_v53 = vpop.permute.xlu0 %2169  ;;  %v1161_v45 = vld [vmem:[#allocation2 + $0xc0] sm:$0xf]  ;;  %v1516_v39 = vrot.slane %v1514_v0, 1  ;;  %v2532_v35 = vshrl.u32 %v5657_v44, 16  ;;  %v2716_v36 = vsel %vm2704_vm11, %v2683_v50, %v5581_v51  ;;  %v2155_v11 = vsel %vm1598_vm3, %v2153_v15, %v2154_v18 }
 0x10b   : > { %v1098_v2 = vld [vmem:[#allocation2 + $0xc0] sm:$0xf]  ;;  %v1512_v28 = vor.u32 %v1511_v55, %v1507_v5  ;;  %v1644_v3 = vrot.slane %v3743_v25, 1  ;;  %v2539_v12 = vshll.u32 %v5659_v7, 16  ;;  %v2643_v41 = vsel %vm1598_vm3, %v2641_v8, %v2642_v59  ;;  %v1196_v5 = vld [vmem:[#allocation2 + $0xcc] sm:$0xe] }
 0x10c   : > { %1787 = vrot.lane.b32.xlu0 %v5571_v47, %s4252_s10  ;;  %v1131_v37 = vld [vmem:[#allocation2 + $0xc0] sm:$0xe]  ;;  %v1162_v13 = vld [vmem:[#allocation2 + $0xc4] sm:$0xf]  ;;  %v2534_v47 = vshll.u32 %v5657_v44, 16  ;;  %v2749_v51 = vsel %vm2737_vm12, %v2716_v36, %v5596_v1  ;;  %v1645_v23 = vrot.slane %v5612_v27, 1  ;;  %v3839_v50 = vcombine.low %v1196_v5, %v5634_v24 }
 0x10d   : > { %v1195_v62 = vld [vmem:[#allocation2 + $0xc0] sm:$0xe]  ;;  %v5674_v16 = vpop.permute.xlu1 %1777  ;;  %v1099_v32 = vld [vmem:[#allocation2 + $0xc4] sm:$0xf]  ;;  %v3806_v56 = vcombine.low %v1161_v45, %v1162_v13  ;;  %v1517_v48 = vsel %vm1325_vm2, %v1512_v28, %v1516_v39  ;;  %v2782_v17 = vsel %vm2770_vm13, %v2749_v51, %v5619_v22 }
 0x10e   : > { %v4214_v26 = vld [vmem:[#allocation2 + $0xc8] ss:$0 sps:$4 sm:$0x11]   ;;  %v3759_v60 = vcombine.low %v1098_v2, %v1099_v32  ;;  %v2282_v33 = vpop.permute.xlu0 %2281  ;;  %v3838_v63 = vcombine.low %v1195_v62, %v1162_v13  ;;  %v3791_v31 = vcombine.low %v1131_v37, %v1099_v32  ;;  %v2815_v34 = vsel %vm2803_vm14, %v2782_v17, %v2170_v53 }
 0x10f   : > { %2299 = vrot.lane.b32.xlu1 %v3806_v56, %s4251_s9  ;;  %v2520_v20 = vshrl.u32 %v3806_v56, 16  ;;  %v2522_v57 = vshll.u32 %v3806_v56, 16  ;;  %v2527_v61 = vshll.u32 %v4214_v26, 16  ;;  %v4219_v49 = vld [vmem:[#allocation2 + $0xc8] ss:$0 sps:$4 sm:$0x11]   ;;  %v2848_v8 = vsel %vm2836_vm15, %v2815_v34, %v2282_v33 }
 0x110   : > { %2187 = vrot.lane.b32.xlu0 %v2155_v11, %s4253_s13  ;;  %v2022_v30 = vshll.u32 %v3759_v60, 16  ;;  %v2665_v0 = vrot.slane %v3838_v63, 1  ;;  %v2020_v14 = vshrl.u32 %v3759_v60, 16  ;;  %v2536_v52 = vrot.slane %v2534_v47, 1 }
 0x111   : > { %v2050_v58 = vpop.permute.xlu1 %2049  ;;  %v2524_v18 = vrot.slane %v2522_v57, 1  ;;  %v2529_v1 = vrot.slane %v2527_v61, 1  ;;  %v2666_v15 = vrot.slane %v4214_v26, 1  ;;  %v2027_v27 = vshll.u32 %v4219_v49, 16  ;;  %v1188_v61 = vld [vmem:[#allocation2 + $0x6c] sm:$0xe] }
 0x112   : > { %v2024_v10 = vrot.slane %v2022_v30, 1  ;;  %v2156_v25 = vrot.slane %v3791_v31, 1  ;;  %v2157_v2 = vrot.slane %v4219_v49, 1  ;;  %v2668_v39 = vrot.slane %v3839_v50, 1 }
 0x113   : > { %v2525_v55 = vor.u32 %v2524_v18, %v2520_v20  ;;  %1548 = vrot.lane.b32.xlu1 %v1517_v48, %s4250_s29  ;;  %v5692_v6 = vsel %vm1598_vm3, %v2665_v0, %v2666_v15  ;;  %v2669_v37 = vrot.slane %v5659_v7, 1  ;;  %v1646_v24 = vsel %vm1598_vm3, %v1644_v3, %v1645_v23  ;;  %v6222_v7 = vld [vmem:[#allocation7_spill] sm:$0xff]  ;;  %v6223_v48 = vld [vmem:[#allocation8_spill] sm:$0xff]  ;;  %v4239_v34 = vld [vmem:[#allocation2 + $0x74] ss:$0 sps:$4 sm:$0x11]   ;;  %s5798_s29 = scalar_lea.vmem %s6180_s4, %s3899_s20 }
 0x114   : > { %v2025_v62 = vor.u32 %v2024_v10, %v2020_v14  ;;  %v2029_v36 = vrot.slane %v2027_v27, 1  ;;  %v2158_v11 = vsel %vm1598_vm3, %v2156_v25, %v2157_v2  ;;  %v2537_v32 = vor.u32 %v2536_v52, %v2532_v35  ;;  %s3661_s20 = sshll.u32 %s6227_s19, 1 }
 0x115   : > { %v2554_v45 = vpop.permute.xlu0 %2553  ;;  %v2178_v22 = vpop.permute.xlu1 %2177  ;;  %v2530_v53 = vsel %vm1325_vm2, %v2525_v55, %v2529_v1  ;;  %v2541_v56 = vrot.slane %v2539_v12, 1  ;;  %v5705_v26 = vsel %vm1598_vm3, %v2668_v39, %v2669_v37  ;;  %v2691_v47 = vsel %vm2671_vm10, %v6222_v7, %v5617_v54 }
 0x116   : > { %v2886_v59 = vsel %vm2869_vm1, %v2848_v8, %v2554_v45  ;;  %2571 = vrot.lane.b32.xlu0 %v2530_v53, %s4254_s23  ;;  %v2030_v33 = vsel %vm1325_vm2, %v2025_v62, %v2029_v36  ;;  %v6224_v45 = vld [vmem:[#allocation9_spill] sm:$0xff] }
 0x117   : > { %3111 = vmatmul.mubr.bf16.gmra.mxu0 %v2886_v59  ;;  %1789 = vrot.lane.b32.xlu1 %v3759_v60, %s4252_s10  ;;  %v2724_v60 = vsel %vm2704_vm11, %v2691_v47, %v5647_v43  ;;  %v2542_v12 = vsel %vm1325_vm2, %v2537_v32, %v2541_v56  ;;  %v6225_v56 = vld [vmem:[#allocation12_spill] sm:$0xff]  ;;  %vm3564_vm2 = vcmask 123904  }
 0x118   : > { %3855 = vmatprep.mubr.msk.bf16.mxu0 %vm2671_vm10, %v2643_v41  ;;  %v2757_v3 = vsel %vm2737_vm12, %v2724_v60, %v5674_v16 }
 0x119   : > { %v1531_v13 = vpop.permute.xlu0 %1530  ;;  %v2290_v28 = vpop.permute.xlu1 %2289  ;;  %v2790_v35 = vsel %vm2770_vm13, %v2757_v3, %v2050_v58  ;;  %v4238_v58 = vld [vmem:[#allocation2 + $0x70] sm:$0xf] }
 0x11a   : > { %1677 = vrot.lane.b32.xlu0 %v1646_v24, %s4249_s28  ;;  %v2823_v63 = vsel %vm2803_vm14, %v2790_v35, %v2178_v22  ;;  %v2685_v23 = vsel %vm2671_vm10, %v6223_v48, %v1531_v13  ;;  %v3831_v30 = vcombine.low %v1188_v61, %v4238_v58 }
 0x11b   : > { %2189 = vrot.lane.b32.xlu1 %v2158_v11, %s4253_s13  ;;  %v2856_v54 = vsel %vm2836_vm15, %v2823_v63, %v2290_v28  ;;  %s235_s13 = scalar_lea.vmem %s6181_s5, %s3661_s20 }
 0x11c   : > { %v2644_v1 = vrot.slane %v3831_v30, 1 }
 0x11d   : > { %v1660_v41 = vpop.permute.xlu0 %1659 }
 0x11e   : > { %2061 = vrot.lane.b32.xlu0 %v2030_v33, %s4255_s27  ;;  %v2562_v43 = vpop.permute.xlu1 %2561  ;;  %v2718_v17 = vsel %vm2704_vm11, %v2685_v23, %v1660_v41 }
 0x11f   : > { %2573 = vrot.lane.b32.xlu1 %v2542_v12, %s4254_s23  ;;  %v2898_v16 = vsel %vm2869_vm1, %v2856_v54, %v2562_v43 }
 0x120   : > { %3143 = vmatmul.mubr.bf16.gmra.mxu1 %v2898_v16 }
 0x121   : > { %v1772_v51 = vpop.permute.xlu0 %1771  ;;  %3859 = vmatprep.mubr.msk.bf16.mxu1 %vm2671_vm10, %v5638_v38  ;;  %v2645_v38 = vrot.slane %v4239_v34, 1 }
 0x122   : > { %2301 = vrot.lane.b32.xlu0 %v5657_v44, %s4251_s9  ;;  %v1539_v20 = vpop.permute.xlu1 %1538  ;;  %v2751_v14 = vsel %vm2737_vm12, %v2718_v17, %v1772_v51 }
 0x123   : > { %v2646_v10 = vsel %vm1598_vm3, %v2644_v1, %v2645_v38  ;;  %v2693_v22 = vsel %vm2671_vm10, %v6224_v45, %v1539_v20 }
 0x125   : > { %v2044_v57 = vpop.permute.xlu0 %2043 }
 0x126   : > { %v1668_v49 = vpop.permute.xlu1 %1667  ;;  %v2784_v44 = vsel %vm2770_vm13, %v2751_v14, %v2044_v57 }
 0x127   : > { %v2726_v25 = vsel %vm2704_vm11, %v2693_v22, %v1668_v49 }
 0x129   : > { %v2172_v31 = vpop.permute.xlu0 %2171 }
 0x12a   : > { %v1780_v18 = vpop.permute.xlu1 %1779  ;;  %v2817_v15 = vsel %vm2803_vm14, %v2784_v44, %v2172_v31 }
 0x12b   : > { %v2759_v53 = vsel %vm2737_vm12, %v2726_v25, %v1780_v18 }
 0x12d   : > { %v2284_v0 = vpop.permute.xlu0 %2283 }
 0x12e   : > { %v2052_v52 = vpop.permute.xlu1 %2051  ;;  %v2850_v5 = vsel %vm2836_vm15, %v2817_v15, %v2284_v0 }
 0x12f   : > { %v2792_v59 = vsel %vm2770_vm13, %v2759_v53, %v2052_v52 }
 0x131   : > { %v2556_v55 = vpop.permute.xlu0 %2555 }
 0x132   : > { %v2889_v27 = vsel %vm2869_vm1, %v2850_v5, %v2556_v55  ;;  %v2180_v50 = vpop.permute.xlu1 %2179 }
 0x133   : > { %3119 = vmatmul.mubr.bf16.gmra.mxu0 %v2889_v27  ;;  %v2825_v37 = vsel %vm2803_vm14, %v2792_v59, %v2180_v50 }
 0x134   : > { %3856 = vmatprep.mubr.msk.bf16.mxu0 %vm2671_vm10, %v2646_v10 }
 0x135   : > { %v1533_v8 = vpop.permute.xlu0 %1532 }
 0x136   : > { %v2292_v2 = vpop.permute.xlu1 %2291  ;;  %v2687_v7 = vsel %vm2671_vm10, %v6225_v56, %v1533_v8 }
 0x137   : > { %v2858_v24 = vsel %vm2836_vm15, %v2825_v37, %v2292_v2 }
 0x139   : > { %v1662_v39 = vpop.permute.xlu0 %1661 }
 0x13a   : > { %v2564_v62 = vpop.permute.xlu1 %2563  ;;  %v2720_v60 = vsel %vm2704_vm11, %v2687_v7, %v1662_v39 }
 0x13b   : > { %v2901_v36 = vsel %vm2869_vm1, %v2858_v24, %v2564_v62 }
 0x13c   : > { %3151 = vmatmul.mubr.bf16.gmra.mxu1 %v2901_v36 }
 0x13d   : > { %v1774_v11 = vpop.permute.xlu0 %1773  ;;  %3860 = vmatprep.mubr.msk.bf16.mxu1 %vm2671_vm10, %v5651_v21 }
 0x13e   : > { %v1541_v13 = vpop.permute.xlu1 %1540  ;;  %v2753_v35 = vsel %vm2737_vm12, %v2720_v60, %v1774_v11 }
 0x13f   : > { %v2695_v51 = vsel %vm2671_vm10, %v5109_v9, %v1541_v13 }
 0x141   : > { %v2046_v28 = vpop.permute.xlu0 %2045 }
 0x142   : > { %v1670_v32 = vpop.permute.xlu1 %1669  ;;  %v2786_v12 = vsel %vm2770_vm13, %v2753_v35, %v2046_v28 }
 0x143   : > { %v2728_v20 = vsel %vm2704_vm11, %v2695_v51, %v1670_v32 }
 0x145   : > { %v2174_v47 = vpop.permute.xlu0 %2173 }
 0x146   : > { %v1782_v3 = vpop.permute.xlu1 %1781  ;;  %v2819_v63 = vsel %vm2803_vm14, %v2786_v12, %v2174_v47 }
 0x147   : > { %v2761_v61 = vsel %vm2737_vm12, %v2728_v20, %v1782_v3 }
 0x149   : > { %v2286_v33 = vpop.permute.xlu0 %2285 }
 0x14a   : > { %v2054_v41 = vpop.permute.xlu1 %2053  ;;  %v2852_v21 = vsel %vm2836_vm15, %v2819_v63, %v2286_v33 }
 0x14b   : > { %v2794_v49 = vsel %vm2770_vm13, %v2761_v61, %v2054_v41 }
 0x14d   : > { %v2558_v54 = vpop.permute.xlu0 %2557 }
 0x14e   : > { %v2892_v43 = vsel %vm2869_vm1, %v2852_v21, %v2558_v54  ;;  %v2182_v16 = vpop.permute.xlu1 %2181 }
 0x14f   : > { %3127 = vmatmul.mubr.bf16.gmra.mxu0 %v2892_v43  ;;  %v2827_v48 = vsel %vm2803_vm14, %v2794_v49, %v2182_v16 }
 0x151   : > { %v1543_v30 = vpop.permute.xlu0 %1542 }
 0x152   : > { %v2294_v57 = vpop.permute.xlu1 %2293  ;;  %v2697_v17 = vsel %vm2671_vm10, %v5302_v46, %v1543_v30 }
 0x153   : > { %v2860_v23 = vsel %vm2836_vm15, %v2827_v48, %v2294_v57 }
 0x155   : > { %v1784_v18 = vpop.permute.xlu0 %1783 }
 0x156   : > { %v2566_v58 = vpop.permute.xlu1 %2565 }
 0x157   : > { %v2904_v31 = vsel %vm2869_vm1, %v2860_v23, %v2566_v58 }
 0x158   : > { %3159 = vmatmul.mubr.bf16.gmra.mxu1 %v2904_v31 }
 0x159   : > { %3861 = vmatprep.mubr.msk.bf16.mxu1 %vm2671_vm10, %v5662_v29  ;;  %v2184_v44 = vpop.permute.xlu0 %2183 }
 0x15a   : > { %v1672_v9 = vpop.permute.xlu1 %1671 }
 0x15b   : > { %v2730_v0 = vsel %vm2704_vm11, %v2697_v17, %v1672_v9 }
 0x15c   : > { %v2763_v34 = vsel %vm2737_vm12, %v2730_v0, %v1784_v18 }
 0x15e   : > { %v2056_v1 = vpop.permute.xlu1 %2055 }
 0x15f   : > { %v2796_v14 = vsel %vm2770_vm13, %v2763_v34, %v2056_v1 }
 0x160   : > { %v2829_v52 = vsel %vm2803_vm14, %v2796_v14, %v2184_v44 }
 0x163   : > { %v2296_v38 = vpop.permute.xlu1 %2295 }
 0x164   : > { %v2862_v5 = vsel %vm2836_vm15, %v2829_v52, %v2296_v38 }
 0x167   : > { %v1545_v15 = vpop.permute.xlu1 %1544 }
 0x168   : > { %v2699_v46 = vsel %vm2671_vm10, %v5423_v40, %v1545_v15 }
 0x16a   : > { %v2568_v29 = vpop.permute.xlu0 %2567 }
 0x16b   : > { %v2907_v55 = vsel %vm2869_vm1, %v2862_v5, %v2568_v29  ;;  %v1786_v10 = vpop.permute.xlu1 %1785 }
 0x16c   : > { %3167 = vmatmul.mubr.bf16.gmra.mxu1 %v2907_v55 }
 0x16d   : > { %3862 = vmatprep.mubr.msk.bf16.mxu1 %vm2671_vm10, %v5665_v19 }
 0x16e   : > { %v1674_v27 = vpop.permute.xlu0 %1673 }
 0x16f   : > { %v2732_v50 = vsel %vm2704_vm11, %v2699_v46, %v1674_v27  ;;  %v2186_v8 = vpop.permute.xlu1 %2185 }
 0x170   : > { %v2765_v45 = vsel %vm2737_vm12, %v2732_v50, %v1786_v10 }
 0x172   : > { %v2058_v22 = vpop.permute.xlu0 %2057 }
 0x173   : > { %v2798_v25 = vsel %vm2770_vm13, %v2765_v45, %v2058_v22  ;;  %v2570_v2 = vpop.permute.xlu1 %2569 }
 0x174   : > { %v2831_v53 = vsel %vm2803_vm14, %v2798_v25, %v2186_v8 }
 0x176   : > { %v2298_v59 = vpop.permute.xlu0 %2297 }
 0x177   : > { %v2864_v39 = vsel %vm2836_vm15, %v2831_v53, %v2298_v59  ;;  %v1676_v37 = vpop.permute.xlu1 %1675 }
 0x178   : > { %v2910_v40 = vsel %vm2869_vm1, %v2864_v39, %v2570_v2 }
 0x179   : > { %3175 = vmatmul.mubr.bf16.gmra.mxu1 %v2910_v40 }
 0x17a   : > { %v1547_v19 = vpop.permute.xlu0 %1546  ;;  %3863 = vmatprep.mubr.msk.bf16.mxu1 %vm2671_vm10, %v5692_v6 }
 0x17b   : > { %v2701_v24 = vsel %vm2671_vm10, %v5534_v42, %v1547_v19  ;;  %v2060_v62 = vpop.permute.xlu1 %2059 }
 0x17c   : > { %v2734_v11 = vsel %vm2704_vm11, %v2701_v24, %v1676_v37 }
 0x17e   : > { %v1788_v36 = vpop.permute.xlu0 %1787 }
 0x17f   : > { %v2767_v13 = vsel %vm2737_vm12, %v2734_v11, %v1788_v36 }
 0x180   : > { %v2800_v32 = vsel %vm2770_vm13, %v2767_v13, %v2060_v62 }
 0x181   : > { %v2300_v28 = vpop.permute.xlu1 %2299 }
 0x182   : > { %v2188_v56 = vpop.permute.xlu0 %2187 }
 0x183   : > { %v2833_v7 = vsel %vm2803_vm14, %v2800_v32, %v2188_v56 }
 0x184   : > { %v2866_v60 = vsel %vm2836_vm15, %v2833_v7, %v2300_v28 }
 0x185   : > { %v1549_v47 = vpop.permute.xlu1 %1548 }
 0x186   : > { %v2703_v12 = vsel %vm2671_vm10, %v5599_v4, %v1549_v47 }
 0x188   : > { %v2572_v42 = vpop.permute.xlu0 %2571 }
 0x189   : > { %v2913_v3 = vsel %vm2869_vm1, %v2866_v60, %v2572_v42  ;;  %v1790_v33 = vpop.permute.xlu1 %1789 }
 0x18a   : > { %v5800_v6 = vpop.f32.mrf.mxu0  ;;  %3183 = vmatmul.mubr.bf16.gmra.mxu1 %v2913_v3 }
 0x18b   : > { %v3933_v35 = vpack.c.bf16 %v5800_v6, %v5800_v6  ;;  %3864 = vmatprep.mubr.msk.bf16.mxu1 %vm2671_vm10, %v5705_v26 }
 0x18c   : > { %v3074_v41 = vpop.f32.mrf.mxu0  ;;  %v1678_v63 = vpop.permute.xlu0 %1677 }
 0x18d   : > { %3327 = vst.msk [vmem:[%s5798_s29] sm:$0xf] %vm427_vm0, %v3933_v35  ;;  %v2736_v54 = vsel %vm2704_vm11, %v2703_v12, %v1678_v63  ;;  %v2190_v43 = vpop.permute.xlu1 %2189 }
 0x18e   : > { %v5811_v21 = vpop.f32.mrf.mxu0  ;;  %v2769_v51 = vsel %vm2737_vm12, %v2736_v54, %v1790_v33 }
 0x18f   : > { %v3934_v16 = vpack.c.bf16 %v5811_v21, %v5811_v21 }
 0x190   : > { %v3077_v20 = vpop.f32.mrf.mxu0  ;;  %v2062_v4 = vpop.permute.xlu0 %2061 }
 0x191   : > { %3328 = vst.msk [vmem:[%s5798_s29 + $0x4] sm:$0xf] %vm427_vm0, %v3934_v16  ;;  %v2802_v26 = vsel %vm2770_vm13, %v2769_v51, %v2062_v4  ;;  %v2574_v23 = vpop.permute.xlu1 %2573  ;;  %v3360_v20 = vsel %vm2671_vm10, %v5811_v21, 0.0  ;;  %v3359_v4 = vsel %vm2671_vm10, %v5800_v6, 0.0 }
 0x192   : > { %v5819_v57 = vpop.f32.mrf.mxu0  ;;  %v2835_v49 = vsel %vm2803_vm14, %v2802_v26, %v2190_v43 }
 0x193   : > { %v3935_v61 = vpack.c.bf16 %v5819_v57, %v5819_v57  ;;  %v3362_v26 = vsel %vm2671_vm10, %v5819_v57, 0.0 }
 0x194   : > { %v3082_v48 = vpop.f32.mrf.mxu0  ;;  %v2302_v58 = vpop.permute.xlu0 %2301 }
 0x195   : > { %3329 = vst.msk [vmem:[%s5798_s29 + $0x8] sm:$0xf] %vm427_vm0, %v3935_v61  ;;  %v2868_v31 = vsel %vm2836_vm15, %v2835_v49, %v2302_v58  ;;  %v3361_v61 = vadd.f32 %v3360_v20, %v3359_v4 }
 0x196   : > { %v5827_v30 = vpop.f32.mrf.mxu0  ;;  %v2916_v17 = vsel %vm2869_vm1, %v2868_v31, %v2574_v23 }
 0x197   : > { %v3936_v9 = vpack.c.bf16 %v5827_v30, %v5827_v30  ;;  %3191 = vmatmul.mubr.bf16.gmra.mxu1 %v2916_v17  ;;  %v3364_v49 = vsel %vm2671_vm10, %v5827_v30, 0.0  ;;  %v3363_v23 = vadd.f32 %v3362_v26, %v3361_v61 }
 0x198   : > { %v3085_v18 = vpop.f32.mrf.mxu0 }
 0x199   : > { %3330 = vst.msk [vmem:[%s5798_s29 + $0xc] sm:$0xf] %vm427_vm0, %v3936_v9  ;;  %v3365_v17 = vadd.f32 %v3364_v49, %v3363_v23 }
 0x19a   : > { %v5835_v1 = vpop.f32.mrf.mxu0 }
 0x19b   : > { %v3937_v0 = vpack.c.bf16 %v5835_v1, %v5835_v1  ;;  %v3366_v31 = vsel %vm2671_vm10, %v5835_v1, 0.0 }
 0x19c   : > { %v3090_v34 = vpop.f32.mrf.mxu0 }
 0x19d   : > { %3331 = vst.msk [vmem:[%s5798_s29 + $0x10] sm:$0xf] %vm427_vm0, %v3937_v0  ;;  %v3367_v34 = vadd.f32 %v3366_v31, %v3365_v17 }
 0x19e   : > { %v5841_v38 = vpop.f32.mrf.mxu0 }
 0x19f   : > { %v3938_v14 = vpack.c.bf16 %v5841_v38, %v5841_v38  ;;  %v3368_v18 = vsel %vm2671_vm10, %v5841_v38, 0.0 }
 0x1a0   : > { %v3093_v44 = vpop.f32.mrf.mxu0 }
 0x1a1   : > { %3332 = vst.msk [vmem:[%s5798_s29 + $0x14] sm:$0xf] %vm427_vm0, %v3938_v14 }
 0x1a3   : > { %v5847_v52 = vpop.f32.mrf.mxu0 }
 0x1a4   : > { %v3939_v15 = vpack.c.bf16 %v5847_v52, %v5847_v52  ;;  %v3370_v44 = vsel %vm2671_vm10, %v5847_v52, 0.0 }
 0x1a5   : > { %v3098_v5 = vpop.f32.mrf.mxu0 }
 0x1a6   : > { %3333 = vst.msk [vmem:[%s5798_s29 + $0x18] sm:$0xf] %vm427_vm0, %v3939_v15  ;;  %v3369_v5 = vadd.f32 %v3368_v18, %v3367_v34 }
 0x1a7   : > { %v5853_v29 = vpop.f32.mrf.mxu0 }
 0x1a8   : > { %v3940_v55 = vpack.c.bf16 %v5853_v29, %v5853_v29 }
 0x1a9   : > { %v3101_v10 = vpop.f32.mrf.mxu0 }
 0x1aa   : > { %3334 = vst.msk [vmem:[%s5798_s29 + $0x1c] sm:$0xf] %vm427_vm0, %v3940_v55  ;;  %v3372_v55 = vsel %vm2671_vm10, %v5853_v29, 0.0  ;;  %v3371_v10 = vadd.f32 %v3370_v44, %v3369_v5 }
 0x1b8   : > { %v5859_v46 = vpop.f32.mrf.mxu0 }
 0x1b9   : > { %v3941_v27 = vpack.c.bf16 %v5859_v46, %v5859_v46 }
 0x1ba   : > { %v3106_v50 = vpop.f32.mrf.mxu0 }
 0x1bb   : > { %3335 = vst.msk [vmem:[%s5798_s29 + $0x20] sm:$0xf] %vm427_vm0, %v3941_v27  ;;  %v3374_v27 = vsel %vm2671_vm10, %v5859_v46, 0.0 }
 0x1bc   : > { %v5865_v8 = vpop.f32.mrf.mxu0 }
 0x1bd   : > { %v3942_v45 = vpack.c.bf16 %v5865_v8, %v5865_v8 }
 0x1be   : > { %v3109_v22 = vpop.f32.mrf.mxu0 }
 0x1bf   : > { %3336 = vst.msk [vmem:[%s5798_s29 + $0x24] sm:$0xf] %vm427_vm0, %v3942_v45  ;;  %v3373_v45 = vadd.f32 %v3372_v55, %v3371_v10 }
 0x1c3   : > { %v5871_v25 = vpop.f32.mrf.mxu1 }
 0x1c4   : > { %v3949_v2 = vpack.c.bf16 %v5871_v25, %v5871_v25  ;;  %v3390_v20 = vsel %vm2671_vm10, %v5871_v25, 0.0 }
 0x1c5   : > { %v3138_v53 = vpop.f32.mrf.mxu1 }
 0x1c6   : > { %3343 = vst.msk [vmem:[%s5798_s29 + $0x40] sm:$0xf] %vm427_vm0, %v3949_v2  ;;  %v3376_v2 = vsel %vm2671_vm10, %v5865_v8, 0.0 }
 0x1c7   : > { %v5877_v59 = vpop.f32.mrf.mxu1 }
 0x1c8   : > { %v3950_v39 = vpack.c.bf16 %v5877_v59, %v5877_v59  ;;  %v3392_v23 = vsel %vm2671_vm10, %v5877_v59, 0.0 }
 0x1c9   : > { %v3141_v37 = vpop.f32.mrf.mxu1 }
 0x1ca   : > { %3344 = vst.msk [vmem:[%s5798_s29 + $0x44] sm:$0xf] %vm427_vm0, %v3950_v39  ;;  %v3375_v39 = vadd.f32 %v3374_v27, %v3373_v45 }
 0x1d7   : > { %v5883_v40 = vpop.f32.mrf.mxu0 }
 0x1d8   : > { %v3943_v19 = vpack.c.bf16 %v5883_v40, %v5883_v40  ;;  %v3378_v37 = vsel %vm2671_vm10, %v5883_v40, 0.0 }
 0x1d9   : > { %v3114_v24 = vpop.f32.mrf.mxu0 }
 0x1da   : > { %3337 = vst.msk [vmem:[%s5798_s29 + $0x28] sm:$0xf] %vm427_vm0, %v3943_v19  ;;  %v3377_v24 = vadd.f32 %v3376_v2, %v3375_v39 }
 0x1db   : > { %v5889_v62 = vpop.f32.mrf.mxu0 }
 0x1dc   : > { %v3944_v36 = vpack.c.bf16 %v5889_v62, %v5889_v62 }
 0x1dd   : > { %v3117_v11 = vpop.f32.mrf.mxu0 }
 0x1de   : > { %3338 = vst.msk [vmem:[%s5798_s29 + $0x2c] sm:$0xf] %vm427_vm0, %v3944_v36  ;;  %v3380_v11 = vsel %vm2671_vm10, %v5889_v62, 0.0 }
 0x1e0   : > { %v5895_v13 = vpop.f32.mrf.mxu1 }
 0x1e1   : > { %v3951_v28 = vpack.c.bf16 %v5895_v13, %v5895_v13  ;;  %v3394_v17 = vsel %vm2671_vm10, %v5895_v13, 0.0 }
 0x1e2   : > { %v3146_v32 = vpop.f32.mrf.mxu1 }
 0x1e3   : > { %3345 = vst.msk [vmem:[%s5798_s29 + $0x48] sm:$0xf] %vm427_vm0, %v3951_v28  ;;  %v3379_v32 = vadd.f32 %v3378_v37, %v3377_v24 }
 0x1e4   : > { %v5901_v56 = vpop.f32.mrf.mxu1 }
 0x1e5   : > { %v3952_v7 = vpack.c.bf16 %v5901_v56, %v5901_v56  ;;  %v3396_v34 = vsel %vm2671_vm10, %v5901_v56, 0.0 }
 0x1e6   : > { %v3149_v47 = vpop.f32.mrf.mxu1 }
 0x1e7   : > { %3346 = vst.msk [vmem:[%s5798_s29 + $0x4c] sm:$0xf] %vm427_vm0, %v3952_v7  ;;  %v3381_v47 = vadd.f32 %v3380_v11, %v3379_v32 }
 0x1f3   : > { %v5907_v60 = vpop.f32.mrf.mxu0 }
 0x1f4   : > { %v3945_v42 = vpack.c.bf16 %v5907_v60, %v5907_v60  ;;  %v3382_v7 = vsel %vm2671_vm10, %v5907_v60, 0.0 }
 0x1f5   : > { %v3122_v3 = vpop.f32.mrf.mxu0 }
 0x1f6   : > { %3339 = vst.msk [vmem:[%s5798_s29 + $0x30] sm:$0xf] %vm427_vm0, %v3945_v42  ;;  %v3383_v3 = vadd.f32 %v3382_v7, %v3381_v47 }
 0x1f7   : > { %v5913_v33 = vpop.f32.mrf.mxu0 }
 0x1f8   : > { %v3946_v35 = vpack.c.bf16 %v5913_v33, %v5913_v33  ;;  %v3384_v42 = vsel %vm2671_vm10, %v5913_v33, 0.0 }
 0x1f9   : > { %v3125_v12 = vpop.f32.mrf.mxu0 }
 0x1fa   : > { %3340 = vst.msk [vmem:[%s5798_s29 + $0x34] sm:$0xf] %vm427_vm0, %v3946_v35  ;;  %v3385_v12 = vadd.f32 %v3384_v42, %v3383_v3 }
 0x1fc   : > { %v5919_v41 = vpop.f32.mrf.mxu1 }
 0x1fd   : > { %v3953_v63 = vpack.c.bf16 %v5919_v41, %v5919_v41  ;;  %v3398_v55 = vsel %vm2671_vm10, %v5919_v41, 0.0 }
 0x1fe   : > { %v3154_v54 = vpop.f32.mrf.mxu1 }
 0x1ff   : > { %3347 = vst.msk [vmem:[%s5798_s29 + $0x50] sm:$0xf] %vm427_vm0, %v3953_v63 }
 0x200   : > { %v5925_v43 = vpop.f32.mrf.mxu1 }
 0x201   : > { %v3954_v16 = vpack.c.bf16 %v5925_v43, %v5925_v43  ;;  %v3400_v2 = vsel %vm2671_vm10, %v5925_v43, 0.0 }
 0x202   : > { %v3157_v51 = vpop.f32.mrf.mxu1 }
 0x203   : > { %3348 = vst.msk [vmem:[%s5798_s29 + $0x54] sm:$0xf] %vm427_vm0, %v3954_v16 }
 0x20f   : > { %v5939_v48 = vpop.f32.mrf.mxu0 }
 0x210   : > { %v3947_v58 = vpack.c.bf16 %v5939_v48, %v5939_v48  ;;  %v3386_v35 = vsel %vm2671_vm10, %v5939_v48, 0.0 }
 0x211   : > { %v3130_v9 = vpop.f32.mrf.mxu0  ;;  %v3387_v54 = vadd.f32 %v3386_v35, %v3385_v12 }
 0x212   : > { %3341 = vst.msk [vmem:[%s5798_s29 + $0x38] sm:$0xf] %vm427_vm0, %v3947_v58 }
 0x213   : > { %v5949_v0 = vpop.f32.mrf.mxu0 }
 0x214   : > { %v3948_v14 = vpack.c.bf16 %v5949_v0, %v5949_v0  ;;  %v3388_v63 = vsel %vm2671_vm10, %v5949_v0, 0.0 }
 0x215   : > { %v3133_v15 = vpop.f32.mrf.mxu0  ;;  %v3389_v16 = vadd.f32 %v3388_v63, %v3387_v54 }
 0x216   : > { %3342 = vst.msk [vmem:[%s5798_s29 + $0x3c] sm:$0xf] %vm427_vm0, %v3948_v14 }
 0x217   : > { %v3391_v26 = vadd.f32 %v3390_v20, %v3389_v16 }
 0x218   : > { %v5961_v50 = vpop.f32.mrf.mxu1 }
 0x219   : > { %v3955_v22 = vpack.c.bf16 %v5961_v50, %v5961_v50  ;;  %v3393_v31 = vadd.f32 %v3392_v23, %v3391_v26  ;;  %v3402_v39 = vsel %vm2671_vm10, %v5961_v50, 0.0 }
 0x21a   : > { %v3162_v53 = vpop.f32.mrf.mxu1 }
 0x21b   : > { %3349 = vst.msk [vmem:[%s5798_s29 + $0x58] sm:$0xf] %vm427_vm0, %v3955_v22  ;;  %v3395_v18 = vadd.f32 %v3394_v17, %v3393_v31 }
 0x21c   : > { %v5971_v19 = vpop.f32.mrf.mxu1 }
 0x21d   : > { %v3956_v36 = vpack.c.bf16 %v5971_v19, %v5971_v19  ;;  %v3397_v44 = vadd.f32 %v3396_v34, %v3395_v18  ;;  %v3404_v24 = vsel %vm2671_vm10, %v5971_v19, 0.0 }
 0x21e   : > { %v3165_v28 = vpop.f32.mrf.mxu1 }
 0x21f   : > { %3350 = vst.msk [vmem:[%s5798_s29 + $0x5c] sm:$0xf] %vm427_vm0, %v3956_v36  ;;  %v3399_v27 = vadd.f32 %v3398_v55, %v3397_v44 }
 0x221   : > { %v3401_v53 = vadd.f32 %v3400_v2, %v3399_v27 }
 0x223   : > { %v3403_v37 = vadd.f32 %v3402_v39, %v3401_v53 }
 0x225   : > { %v3405_v36 = vadd.f32 %v3404_v24, %v3403_v37 }
 0x22c   : > { %v5987_v51 = vpop.f32.mrf.mxu1 }
 0x22d   : > { %v3957_v4 = vpack.c.bf16 %v5987_v51, %v5987_v51  ;;  %v3406_v11 = vsel %vm2671_vm10, %v5987_v51, 0.0 }
 0x22e   : > { %v3170_v61 = vpop.f32.mrf.mxu1  ;;  %v3407_v47 = vadd.f32 %v3406_v11, %v3405_v36 }
 0x22f   : > { %3351 = vst.msk [vmem:[%s5798_s29 + $0x60] sm:$0xf] %vm427_vm0, %v3957_v4 }
 0x230   : > { %v5995_v49 = vpop.f32.mrf.mxu1 }
 0x231   : > { %v3958_v58 = vpack.c.bf16 %v5995_v49, %v5995_v49  ;;  %v3408_v42 = vsel %vm2671_vm10, %v5995_v49, 0.0 }
 0x232   : > { %v3173_v9 = vpop.f32.mrf.mxu1  ;;  %v3409_v54 = vadd.f32 %v3408_v42, %v3407_v47 }
 0x233   : > { %3352 = vst.msk [vmem:[%s5798_s29 + $0x64] sm:$0xf] %vm427_vm0, %v3958_v58 }
 0x239   : > { %v6007_v14 = vpop.f32.mrf.mxu1 }
 0x23a   : > { %v3959_v15 = vpack.c.bf16 %v6007_v14, %v6007_v14  ;;  %v3410_v12 = vsel %vm2671_vm10, %v6007_v14, 0.0 }
 0x23b   : > { %v3178_v5 = vpop.f32.mrf.mxu1  ;;  %v3411_v20 = vadd.f32 %v3410_v12, %v3409_v54 }
 0x23c   : > { %3353 = vst.msk [vmem:[%s5798_s29 + $0x68] sm:$0xf] %vm427_vm0, %v3959_v15 }
 0x23d   : > { %v6015_v10 = vpop.f32.mrf.mxu1 }
 0x23e   : > { %v3960_v45 = vpack.c.bf16 %v6015_v10, %v6015_v10  ;;  %v3412_v16 = vsel %vm2671_vm10, %v6015_v10, 0.0 }
 0x23f   : > { %v3181_v22 = vpop.f32.mrf.mxu1  ;;  %v3413_v26 = vadd.f32 %v3412_v16, %v3411_v20 }
 0x240   : > { %3354 = vst.msk [vmem:[%s5798_s29 + $0x6c] sm:$0xf] %vm427_vm0, %v3960_v45 }
 0x24a   : > { %v6029_v28 = vpop.f32.mrf.mxu1 }
 0x24b   : > { %v3961_v32 = vpack.c.bf16 %v6029_v28, %v6029_v28  ;;  %v3414_v4 = vsel %vm2671_vm10, %v6029_v28, 0.0 }
 0x24c   : > { %v3186_v7 = vpop.f32.mrf.mxu1  ;;  %v3415_v23 = vadd.f32 %v3414_v4, %v3413_v26 }
 0x24d   : > { %3355 = vst.msk [vmem:[%s5798_s29 + $0x70] sm:$0xf] %vm427_vm0, %v3961_v32 }
 0x24e   : > { %v6037_v3 = vpop.f32.mrf.mxu1 }
 0x24f   : > { %v3962_v35 = vpack.c.bf16 %v6037_v3, %v6037_v3  ;;  %v3416_v61 = vsel %vm2671_vm10, %v6037_v3, 0.0 }
 0x250   : > { %v3189_v63 = vpop.f32.mrf.mxu1  ;;  %v3417_v17 = vadd.f32 %v3416_v61, %v3415_v23 }
 0x251   : > { %3356 = vst.msk [vmem:[%s5798_s29 + $0x74] sm:$0xf] %vm427_vm0, %v3962_v35 }
 0x257   : > { %v6051_v58 = vpop.f32.mrf.mxu1 }
 0x258   : > { %v3963_v31 = vpack.c.bf16 %v6051_v58, %v6051_v58  ;;  %v3418_v9 = vsel %vm2671_vm10, %v6051_v58, 0.0 }
 0x259   : > { %v3194_v18 = vpop.f32.mrf.mxu1  ;;  %v3419_v34 = vadd.f32 %v3418_v9, %v3417_v17 }
 0x25a   : > { %3357 = vst.msk [vmem:[%s5798_s29 + $0x78] sm:$0xf] %vm427_vm0, %v3963_v31 }
 0x25b   : > { %v6059_v44 = vpop.f32.mrf.mxu1 }
 0x25c   : > { %v3964_v15 = vpack.c.bf16 %v6059_v44, %v6059_v44  ;;  %v3420_v5 = vsel %vm2671_vm10, %v6059_v44, 0.0 }
 0x25d   : > { %v3421_v55 = vadd.f32 %v3420_v5, %v3419_v34  ;;  %v3197_v27 = vpop.f32.mrf.mxu1 }
 0x25e   : > { %3358 = vst.msk [vmem:[%s5798_s29 + $0x7c] sm:$0xf] %vm427_vm0, %v3964_v15  ;;  %vm3562_vm0 = vcmask 1040384  }
 0x25f   : > { %v3422_v45 = vrot.slane %v3421_v55, 4 }
 0x261   : > { %v3423_v22 = vadd.f32 %v3422_v45, %v3421_v55 }
 0x263   : > { %v3424_v2 = vrot.slane %v3423_v22, 2 }
 0x265   : > { %v3425_v53 = vadd.f32 %v3424_v2, %v3423_v22 }
 0x267   : > { %v3426_v39 = vrot.slane %v3425_v53, 1 }
 0x269   : > { %v6067_v37 = vadd.f32 %v3426_v39, %v3425_v53 }
 0x26b   : > { %v6070_v24 = vmul.f32 0.00390625, %v6067_v37 }
 0x26d   : > { %v3429_v36 = vsub.f32 %v5800_v6, %v6070_v24  ;;  %v3430_v11 = vsub.f32 %v5811_v21, %v6070_v24  ;;  %v3431_v32 = vsub.f32 %v5819_v57, %v6070_v24  ;;  %v3432_v7 = vsub.f32 %v5827_v30, %v6070_v24 }
 0x26e   : > { %v3433_v35 = vsub.f32 %v5835_v1, %v6070_v24  ;;  %v3434_v63 = vsub.f32 %v5841_v38, %v6070_v24  ;;  %v3435_v57 = vsub.f32 %v5847_v52, %v6070_v24  ;;  %v3436_v1 = vsub.f32 %v5853_v29, %v6070_v24 }
 0x26f   : > { %v3461_v47 = vmul.f32 %v3429_v36, %v3429_v36  ;;  %v3462_v42 = vmul.f32 %v3430_v11, %v3430_v11  ;;  %v3463_v12 = vmul.f32 %v3431_v32, %v3431_v32  ;;  %v3464_v54 = vmul.f32 %v3432_v7, %v3432_v7 }
 0x270   : > { %v3465_v20 = vmul.f32 %v3433_v35, %v3433_v35  ;;  %v3466_v26 = vmul.f32 %v3434_v63, %v3434_v63  ;;  %v3437_v23 = vsub.f32 %v5859_v46, %v6070_v24  ;;  %v3467_v31 = vmul.f32 %v3435_v57, %v3435_v57 }
 0x271   : > { %v3493_v6 = vsel %vm2671_vm10, %v3461_v47, 0.0  ;;  %v3494_v21 = vsel %vm2671_vm10, %v3462_v42, 0.0  ;;  %v3496_v30 = vsel %vm2671_vm10, %v3463_v12, 0.0  ;;  %v3498_v61 = vsel %vm2671_vm10, %v3464_v54, 0.0 }
 0x272   : > { %v3495_v16 = vadd.f32 %v3494_v21, %v3493_v6  ;;  %v3500_v9 = vsel %vm2671_vm10, %v3465_v20, 0.0  ;;  %v3438_v52 = vsub.f32 %v5865_v8, %v6070_v24  ;;  %v3468_v18 = vmul.f32 %v3436_v1, %v3436_v1 }
 0x273   : > { %v3502_v34 = vsel %vm2671_vm10, %v3466_v26, 0.0  ;;  %v3439_v29 = vsub.f32 %v5883_v40, %v6070_v24  ;;  %v3469_v5 = vmul.f32 %v3437_v23, %v3437_v23  ;;  %v3504_v55 = vsel %vm2671_vm10, %v3467_v31, 0.0 }
 0x274   : > { %v3497_v4 = vadd.f32 %v3496_v30, %v3495_v16  ;;  %v3440_v46 = vsub.f32 %v5889_v62, %v6070_v24  ;;  %v3470_v45 = vmul.f32 %v3438_v52, %v3438_v52  ;;  %v3506_v22 = vsel %vm2671_vm10, %v3468_v18, 0.0 }
 0x275   : > { %v3441_v8 = vsub.f32 %v5907_v60, %v6070_v24  ;;  %v3471_v53 = vmul.f32 %v3439_v29, %v3439_v29  ;;  %v3508_v39 = vsel %vm2671_vm10, %v3469_v5, 0.0  ;;  %v3442_v40 = vsub.f32 %v5913_v33, %v6070_v24 }
 0x276   : > { %v3499_v38 = vadd.f32 %v3498_v61, %v3497_v4  ;;  %v3472_v11 = vmul.f32 %v3440_v46, %v3440_v46  ;;  %v3510_v32 = vsel %vm2671_vm10, %v3470_v45, 0.0  ;;  %v3443_v62 = vsub.f32 %v5939_v48, %v6070_v24 }
 0x277   : > { %v3473_v47 = vmul.f32 %v3441_v8, %v3441_v8  ;;  %v3512_v42 = vsel %vm2671_vm10, %v3471_v53, 0.0  ;;  %v3444_v60 = vsub.f32 %v5949_v0, %v6070_v24  ;;  %v3474_v12 = vmul.f32 %v3442_v40, %v3442_v40 }
 0x278   : > { %v3501_v17 = vadd.f32 %v3500_v9, %v3499_v38  ;;  %v3514_v63 = vsel %vm2671_vm10, %v3472_v11, 0.0  ;;  %v3445_v33 = vsub.f32 %v5871_v25, %v6070_v24  ;;  %v3475_v6 = vmul.f32 %v3443_v62, %v3443_v62 }
 0x279   : > { %v3516_v21 = vsel %vm2671_vm10, %v3473_v47, 0.0  ;;  %v3446_v48 = vsub.f32 %v5877_v59, %v6070_v24  ;;  %v3476_v57 = vmul.f32 %v3444_v60, %v3444_v60  ;;  %v3518_v20 = vsel %vm2671_vm10, %v3474_v12, 0.0 }
 0x27a   : > { %v3503_v15 = vadd.f32 %v3502_v34, %v3501_v17  ;;  %v3447_v0 = vsub.f32 %v5895_v13, %v6070_v24  ;;  %v3477_v4 = vmul.f32 %v3445_v33, %v3445_v33  ;;  %v3520_v1 = vsel %vm2671_vm10, %v3475_v6, 0.0 }
 0x27b   : > { %v3448_v25 = vsub.f32 %v5901_v56, %v6070_v24  ;;  %v3478_v61 = vmul.f32 %v3446_v48, %v3446_v48  ;;  %v3522_v38 = vsel %vm2671_vm10, %v3476_v57, 0.0  ;;  %v3449_v59 = vsub.f32 %v5919_v41, %v6070_v24 }
 0x27c   : > { %v3505_v27 = vadd.f32 %v3504_v55, %v3503_v15  ;;  %v3479_v31 = vmul.f32 %v3447_v0, %v3447_v0  ;;  %v3524_v9 = vsel %vm2671_vm10, %v3477_v4, 0.0  ;;  %v3450_v13 = vsub.f32 %v5925_v43, %v6070_v24 }
 0x27d   : > { %v3480_v52 = vmul.f32 %v3448_v25, %v3448_v25  ;;  %v3526_v18 = vsel %vm2671_vm10, %v3478_v61, 0.0  ;;  %v3451_v56 = vsub.f32 %v5961_v50, %v6070_v24  ;;  %v3481_v15 = vmul.f32 %v3449_v59, %v3449_v59 }
 0x27e   : > { %v3507_v2 = vadd.f32 %v3506_v22, %v3505_v27  ;;  %v3528_v29 = vsel %vm2671_vm10, %v3479_v31, 0.0  ;;  %v3452_v41 = vsub.f32 %v5971_v19, %v6070_v24  ;;  %v3482_v55 = vmul.f32 %v3450_v13, %v3450_v13 }
 0x27f   : > { %v3530_v27 = vsel %vm2671_vm10, %v3480_v52, 0.0  ;;  %v3453_v43 = vsub.f32 %v5987_v51, %v6070_v24  ;;  %v3483_v45 = vmul.f32 %v3451_v56, %v3451_v56  ;;  %v3532_v22 = vsel %vm2671_vm10, %v3481_v15, 0.0 }
 0x280   : > { %v3509_v36 = vadd.f32 %v3508_v39, %v3507_v2  ;;  %v3454_v50 = vsub.f32 %v5995_v49, %v6070_v24  ;;  %v3484_v8 = vmul.f32 %v3452_v41, %v3452_v41  ;;  %v3534_v53 = vsel %vm2671_vm10, %v3482_v55, 0.0 }
 0x281   : > { %v3455_v19 = vsub.f32 %v6007_v14, %v6070_v24  ;;  %v3536_v40 = vsel %vm2671_vm10, %v3483_v45, 0.0  ;;  %v3456_v51 = vsub.f32 %v6015_v10, %v6070_v24  ;;  %v3457_v49 = vsub.f32 %v6029_v28, %v6070_v24 }
 0x282   : > { %v3511_v7 = vadd.f32 %v3510_v32, %v3509_v36  ;;  %v3485_v36 = vmul.f32 %v3453_v43, %v3453_v43  ;;  %v3486_v32 = vmul.f32 %v3454_v50, %v3454_v50  ;;  %v3458_v14 = vsub.f32 %v6037_v3, %v6070_v24 }
 0x283   : > { %v3487_v47 = vmul.f32 %v3455_v19, %v3455_v19  ;;  %v3488_v60 = vmul.f32 %v3456_v51, %v3456_v51  ;;  %v3459_v10 = vsub.f32 %v6051_v58, %v6070_v24  ;;  %v3460_v28 = vsub.f32 %v6059_v44, %v6070_v24 }
 0x284   : > { %v3513_v35 = vadd.f32 %v3512_v42, %v3511_v7  ;;  %v3538_v7 = vsel %vm2671_vm10, %v3484_v8, 0.0  ;;  %v3540_v42 = vsel %vm2671_vm10, %v3485_v36, 0.0  ;;  %v3542_v12 = vsel %vm2671_vm10, %v3486_v32, 0.0 }
 0x285   : > { %v3544_v33 = vsel %vm2671_vm10, %v3487_v47, 0.0  ;;  %v3491_v3 = vmul.f32 %v3459_v10, %v3459_v10 }
 0x286   : > { %v3515_v54 = vadd.f32 %v3514_v63, %v3513_v35 }
 0x287   : > { %v3552_v4 = vsel %vm2671_vm10, %v3491_v3, 0.0 }
 0x288   : > { %v3517_v16 = vadd.f32 %v3516_v21, %v3515_v54  ;;  %v3489_v54 = vmul.f32 %v3457_v49, %v3457_v49  ;;  %v3490_v21 = vmul.f32 %v3458_v14, %v3458_v14 }
 0x28a   : > { %v3519_v30 = vadd.f32 %v3518_v20, %v3517_v16  ;;  %v3546_v16 = vsel %vm2671_vm10, %v3488_v60, 0.0  ;;  %v3548_v57 = vsel %vm2671_vm10, %v3489_v54, 0.0  ;;  %v3550_v0 = vsel %vm2671_vm10, %v3490_v21, 0.0 }
 0x28c   : > { %v3521_v26 = vadd.f32 %v3520_v1, %v3519_v30  ;;  %v3492_v30 = vmul.f32 %v3460_v28, %v3460_v28 }
 0x28e   : > { %v3523_v23 = vadd.f32 %v3522_v38, %v3521_v26  ;;  %v3554_v26 = vsel %vm2671_vm10, %v3492_v30, 0.0 }
 0x290   : > { %v3525_v17 = vadd.f32 %v3524_v9, %v3523_v23 }
 0x292   : > { %v3527_v34 = vadd.f32 %v3526_v18, %v3525_v17 }
 0x294   : > { %v3529_v5 = vadd.f32 %v3528_v29, %v3527_v34 }
 0x296   : > { %v3531_v46 = vadd.f32 %v3530_v27, %v3529_v5 }
 0x298   : > { %v3533_v2 = vadd.f32 %v3532_v22, %v3531_v46 }
 0x29a   : > { %v3535_v39 = vadd.f32 %v3534_v53, %v3533_v2 }
 0x29c   : > { %v3537_v11 = vadd.f32 %v3536_v40, %v3535_v39 }
 0x29e   : > { %v3539_v62 = vadd.f32 %v3538_v7, %v3537_v11 }
 0x2a0   : > { %v3541_v35 = vadd.f32 %v3540_v42, %v3539_v62 }
 0x2a2   : > { %v3543_v63 = vadd.f32 %v3542_v12, %v3541_v35 }
 0x2a4   : > { %v3545_v6 = vadd.f32 %v3544_v33, %v3543_v63 }
 0x2a6   : > { %v3547_v48 = vadd.f32 %v3546_v16, %v3545_v6 }
 0x2a8   : > { %v3549_v20 = vadd.f32 %v3548_v57, %v3547_v48 }
 0x2aa   : > { %v3551_v58 = vadd.f32 %v3550_v0, %v3549_v20 }
 0x2ac   : > { %v3553_v1 = vadd.f32 %v3552_v4, %v3551_v58 }
 0x2ae   : > { %v3555_v25 = vadd.f32 %v3554_v26, %v3553_v1 }
 0x2b0   : > { %v3556_v44 = vrot.slane %v3555_v25, 4 }
 0x2b2   : > { %v3557_v24 = vadd.f32 %v3556_v44, %v3555_v25 }
 0x2b4   : > { %v3558_v61 = vrot.slane %v3557_v24, 2 }
 0x2b6   : > { %v3559_v38 = vadd.f32 %v3558_v61, %v3557_v24 }
 0x2b8   : > { %v3560_v23 = vrot.slane %v3559_v38, 1 }
 0x2ba   : > { %v3561_v59 = vadd.f32 %v3560_v23, %v3559_v38 }
 0x2bc   : > { %v3563_v31 = vsel %vm3562_vm0, %v6067_v37, %v3561_v59 }
 0x2bd   : > { %3565 = vst.msk [vmem:[%s235_s13] sm:$0x3] %vm3564_vm2, %v3563_v31 }
 0x2be PF: > { %s16_s18 = sadd.s32 1, %s4246_s18  }
 0x2bf   : > { %p13_p4 = scmp.ge.s32.totalorder %s16_s18, 4  }
 0x2c1   :  { %15 = sbr.rel (!%p13_p4) target bundleno = 1 (0x1), region = 80 }

</bundles_post_ra>
